<compile_context>
chip_gen: v7x
topology: tpu7x:2x2x1
jax: 0.10.0
libtpu: 0.0.40
codegen_flags: <defaults>
</compile_context>

<pallas_src>
from typing import NamedTuple

import jax
import jax.numpy as jnp
from jax.experimental import pallas as pl
from jax.experimental.pallas import tpu as pltpu


def _round_up(x: int, m: int) -> int:
    return ((x + m - 1) // m) * m


def _chip_tuning():
    """Pick (max_batch_tile, vmem_limit_bytes, cores_per_chip) per TPU generation."""
    kind = ""
    try:
        kind = jax.devices()[0].device_kind.lower()
    except Exception:
        pass
    if "v7" in kind:
        # v7x: 64 MiB VMEM per TensorCore, 2 TCs/chip -> modest tile, headroom.
        return 256, 48 << 20, 2
    if "v4" in kind or "v5" in kind or "v6" in kind:
        # v4/v5e/v6e: 128 MiB VMEM, single TC -> big tile amortizes per-step overhead.
        return 512, 96 << 20, 1
    # Unknown chip: try the hardware query, else conservative (safe everywhere).
    vmem = None
    try:
        vmem = getattr(pltpu.get_tpu_info(), "vmem_capacity_bytes", None)
    except Exception:
        pass
    if vmem is not None and vmem <= (64 << 20):
        return 256, 48 << 20, 2
    return 256, 48 << 20, 1


class PolicyParams(NamedTuple):
    w_h: jax.Array    # (in_features, hidden) bf16
    b_h: jax.Array    # (1, hidden) f32
    w_out: jax.Array  # (hidden, out_pad) bf16, zero-padded columns
    b_out: jax.Array  # (1, out_pad) f32, zero-padded columns
    outputs: int


def prepare_params(w_h, b_h, w_out, b_out) -> PolicyParams:
    """One-time parameter prep, hoisted out of the per-call forward path.

    Call once (e.g. after each optimizer step) and reuse the result for every
    forward call; re-doing these casts/pads per call costs ~8 MB of HBM traffic
    which dominates the kernel itself at small batch sizes.
    """
    hidden = w_h.shape[1]
    outputs = w_out.shape[1]
    out_pad = max(128, _round_up(outputs, 128))   # lane-dense output store

    w_h_bf16 = w_h.astype(jnp.bfloat16)           # dominant weight: half HBM bytes
    b_h2 = b_h.reshape(1, hidden).astype(jnp.float32)
    w_out_p = jnp.zeros((hidden, out_pad), jnp.bfloat16).at[:, :outputs].set(
        w_out.astype(jnp.bfloat16))
    b_out_p = jnp.zeros((1, out_pad), jnp.float32).at[:, :outputs].set(
        b_out.astype(jnp.float32))
    return PolicyParams(w_h_bf16, b_h2, w_out_p, b_out_p, outputs)


def policy_mlp_kernel(x_ref, wh_ref, bh_ref, wo_ref, bo_ref, out_ref):
    """Fused: out = relu(x @ Wh + bh) @ Wo_pad + bo_pad for one batch tile.

    Both dots run with bf16 operands on the MXU and accumulate in f32; the
    bias-add / ReLU epilogue stays f32 on the VPU (v5e has no bf16 VPU path).
    """
    # x may arrive f32 (cast here, no extra HBM traffic) or already bf16 from
    # an upstream producer (preferred: halves the dominant x stream).
    x = x_ref[...].astype(jnp.bfloat16)                         # (tn, 6400)
    h = jnp.dot(x, wh_ref[...], preferred_element_type=jnp.float32)
    h = jnp.maximum(h + bh_ref[...], 0.0)                       # f32 epilogue
    o = jnp.dot(h.astype(jnp.bfloat16), wo_ref[...],
                preferred_element_type=jnp.float32)
    out_ref[...] = o + bo_ref[...]                              # lane-dense store


# Tri-state cache for whether pl.Buffered(1) on grid-invariant operands is
# supported by the installed jax/libtpu (None = not probed yet).
_SINGLE_BUFFER_WEIGHTS_OK = [None]


def policy_network_forward(x, params: PolicyParams, *, block_rows=None):
    """x: (N, 6400) f32 or bf16 -> (N, outputs) f32 logits."""
    n, k = x.shape
    hidden = params.w_h.shape[1]
    out_pad = params.w_out.shape[1]
    outputs = params.outputs

    tile_cap, vmem_limit, cores = _chip_tuning()
    if block_rows is not None:
        tile_cap = block_rows

    # Batch tiling: sublane-aligned tile, rows padded to a multiple of it.
    tn = max(8, min(tile_cap, _round_up(n, 8)))
    if cores > 1 and n >= 16:
        # Give every TensorCore at least one grid step under "parallel".
        tn = min(tn, max(8, _round_up(pl.cdiv(n, cores), 8)))
    n_pad = _round_up(n, tn)
    if n_pad != n:
        x = jnp.pad(x, ((0, n_pad - n), (0, 0)))

    def run(single_buffer_weights: bool):
        def invariant(shape):
            # Grid-invariant operands are never re-fetched; a single VMEM
            # buffer saves ~2.7 MB (mostly the bf16 W_h) vs default double
            # buffering — the headroom matters most under v7x's 64 MiB VMEM.
            if single_buffer_weights:
                return pl.BlockSpec(shape, lambda i: (0, 0),
                                    pipeline_mode=pl.Buffered(1))
            return pl.BlockSpec(shape, lambda i: (0, 0))

        return pl.pallas_call(
            policy_mlp_kernel,
            out_shape=jax.ShapeDtypeStruct((n_pad, out_pad), jnp.float32),
            grid_spec=pl.GridSpec(
                grid=(n_pad // tn,),
                in_specs=[
                    pl.BlockSpec((tn, k), lambda i: (i, 0)),  # x tile (streamed)
                    invariant((k, hidden)),                    # W_h bf16 (resident)
                    invariant((1, hidden)),                    # b_h f32
                    invariant((hidden, out_pad)),              # W_out bf16 padded
                    invariant((1, out_pad)),                   # b_out f32 padded
                ],
                out_specs=pl.BlockSpec((tn, out_pad), lambda i: (i, 0)),
            ),
            compiler_params=pltpu.CompilerParams(
                dimension_semantics=("parallel",),
                vmem_limit_bytes=vmem_limit,
            ),
        )(x, params.w_h, params.b_h, params.w_out, params.b_out)

    if _SINGLE_BUFFER_WEIGHTS_OK[0] is None:
        try:
            out = run(True)
            jax.block_until_ready(out)
            _SINGLE_BUFFER_WEIGHTS_OK[0] = True
        except Exception:
            # pl.Buffered(1) unsupported on this jax/libtpu: fall back once,
            # remember, and never retry.
            _SINGLE_BUFFER_WEIGHTS_OK[0] = False
            out = run(False)
    elif _SINGLE_BUFFER_WEIGHTS_OK[0]:
        out = run(True)
    else:
        out = run(False)

    # Padded batch rows / padded output lanes are garbage — always slice.
    return out[:n, :outputs]


def init_params(key, in_features=6400, hidden=200, outputs=3):
    """Deterministic init mimicking PyTorch nn.Linear default U[-1/sqrt(fan_in), ...]."""
    k1, k2, k3, k4 = jax.random.split(key, 4)
    bound_h = 1.0 / jnp.sqrt(jnp.float32(in_features))
    bound_o = 1.0 / jnp.sqrt(jnp.float32(hidden))
    w_h = jax.random.uniform(k1, (in_features, hidden), jnp.float32,
                             minval=-bound_h, maxval=bound_h)
    b_h = jax.random.uniform(k2, (hidden,), jnp.float32,
                             minval=-bound_h, maxval=bound_h)
    w_out = jax.random.uniform(k3, (hidden, outputs), jnp.float32,
                               minval=-bound_o, maxval=bound_o)
    b_out = jax.random.uniform(k4, (outputs,), jnp.float32,
                               minval=-bound_o, maxval=bound_o)
    return w_h, b_h, w_out, b_out


def _reference_matching(x, w_h, b_h, w_out, b_out):
    """Plain-JAX reference with the same bf16-operand / f32-accumulate math."""
    h = jnp.dot(x.astype(jnp.bfloat16), w_h.astype(jnp.bfloat16),
                preferred_element_type=jnp.float32)
    h = jnp.maximum(h + b_h, 0.0)
    o = jnp.dot(h.astype(jnp.bfloat16), w_out.astype(jnp.bfloat16),
                preferred_element_type=jnp.float32)
    return o + b_out


if __name__ == "__main__":
    key = jax.random.PRNGKey(0)
    k_params, k_x, k_xb = jax.random.split(key, 3)

    N, IN_FEATURES, HIDDEN, OUTPUTS = 2, 6400, 200, 3
    w_h, b_h, w_out, b_out = init_params(k_params, IN_FEATURES, HIDDEN, OUTPUTS)

    # One-time prep (hoisted out of the forward path; reuse across calls).
    params = prepare_params(w_h, b_h, w_out, b_out)
    jax.block_until_ready(params.w_h)

    # Small-batch path (N=2): single tile.
    x = jax.random.normal(k_x, (N, IN_FEATURES), jnp.float32)
    logits = policy_network_forward(x, params)
    jax.block_until_ready(logits)
    assert logits.shape == (N, OUTPUTS)

    # Tight tolerance vs the matching bf16 math; loose vs the full-f32 module.
    ref_bf16 = _reference_matching(x, w_h, b_h, w_out, b_out)
    ref_f32 = jnp.maximum(x @ w_h + b_h, 0.0) @ w_out + b_out
    assert jnp.allclose(logits, ref_bf16, atol=2e-3, rtol=2e-3)
    assert jnp.allclose(logits, ref_f32, atol=5e-2, rtol=5e-2)

    # Larger batch: exercises row padding and the batch-parallel grid
    # (>=2 grid steps on 2-TC chips).
    NB = 256
    xb = jax.random.normal(k_xb, (NB, IN_FEATURES), jnp.float32)
    logits_b = policy_network_forward(xb, params)
    jax.block_until_ready(logits_b)
    assert logits_b.shape == (NB, OUTPUTS)
    assert jnp.allclose(logits_b, _reference_matching(xb, w_h, b_h, w_out, b_out),
                        atol=2e-3, rtol=2e-3)

    # Producer-side bf16 activations (preferred when the cast fuses upstream):
    logits_bf = policy_network_forward(xb.astype(jnp.bfloat16), params)
    jax.block_until_ready(logits_bf)
    assert jnp.allclose(logits_bf, logits_b, atol=2e-3, rtol=2e-3)

    # TODO(synk): conv1/bn1/conv2/bn2/head are defined in __init__ but unused
    # by forward(), so they are intentionally not implemented.
    # TODO(synk): if small-batch latency still matters, quantize W_h further
    # (int8 + per-column scales on v5e/v6e, fp8-e4m3 on v7x) to halve the
    # dominant weight DMA again.
    print("KERNEL_OK")
</pallas_src>

<mosaic_0001>
module attributes {stable_mosaic.version = 11 : i64} {
  func.func @policy_mlp_kernel(%arg0: i32, %arg1: memref<8x6400xf32, #tpu.memory_space<vmem>>, %arg2: memref<6400x200xbf16, #tpu.memory_space<vmem>>, %arg3: memref<1x200xf32, #tpu.memory_space<vmem>>, %arg4: memref<200x128xbf16, #tpu.memory_space<vmem>>, %arg5: memref<1x128xf32, #tpu.memory_space<vmem>>, %arg6: memref<8x128xf32, #tpu.memory_space<vmem>>) attributes {dimension_semantics = [#tpu.dimension_semantics<parallel>], iteration_bounds = array<i64: 1>, scalar_prefetch = 0 : i64, scratch_operands = 0 : i64, tpu.core_type = #tpu.core_type<tc>, window_params = [{transform_indices = @transform_0, window_bounds = array<i64: 8, 6400>}, {pipeline_mode = #tpu.pipeline_mode<synchronous>, transform_indices = @transform_1, window_bounds = array<i64: 6400, 200>}, {pipeline_mode = #tpu.pipeline_mode<synchronous>, transform_indices = @transform_2, window_bounds = array<i64: 1, 200>}, {pipeline_mode = #tpu.pipeline_mode<synchronous>, transform_indices = @transform_3, window_bounds = array<i64: 200, 128>}, {pipeline_mode = #tpu.pipeline_mode<synchronous>, transform_indices = @transform_4, window_bounds = array<i64: 1, 128>}, {transform_indices = @transform_5, window_bounds = array<i64: 8, 128>}]} {
    %c0 = arith.constant 0 : index
    %c0_0 = arith.constant 0 : index
    %0 = vector.load %arg1[%c0, %c0_0] : memref<8x6400xf32, #tpu.memory_space<vmem>>, vector<8x6400xf32>
    %1 = arith.truncf %0 : vector<8x6400xf32> to vector<8x6400xbf16>
    %c0_1 = arith.constant 0 : index
    %c0_2 = arith.constant 0 : index
    %2 = vector.load %arg2[%c0_1, %c0_2] : memref<6400x200xbf16, #tpu.memory_space<vmem>>, vector<6400x200xbf16>
    %cst = arith.constant dense<0.000000e+00> : vector<8x200xf32>
    %3 = tpu.matmul %1, %2, %cst {dimension_numbers = #tpu.dot_dimension_numbers<[1], [0], [0], [1], [0, 0, 1, 1], [], []>} : vector<8x6400xbf16>, vector<6400x200xbf16>, vector<8x200xf32> -> vector<8x200xf32>
    %c0_3 = arith.constant 0 : index
    %c0_4 = arith.constant 0 : index
    %4 = vector.load %arg3[%c0_3, %c0_4] : memref<1x200xf32, #tpu.memory_space<vmem>>, vector<1x200xf32>
    %5 = vector.broadcast %4 : vector<1x200xf32> to vector<8x200xf32>
    %6 = arith.addf %3, %5 : vector<8x200xf32>
    %cst_5 = arith.constant 0.000000e+00 : f32
    %7 = vector.broadcast %cst_5 : f32 to vector<8x200xf32>
    %8 = arith.maximumf %6, %7 : vector<8x200xf32>
    %9 = arith.truncf %8 : vector<8x200xf32> to vector<8x200xbf16>
    %c0_6 = arith.constant 0 : index
    %c0_7 = arith.constant 0 : index
    %10 = vector.load %arg4[%c0_6, %c0_7] : memref<200x128xbf16, #tpu.memory_space<vmem>>, vector<200x128xbf16>
    %cst_8 = arith.constant dense<0.000000e+00> : vector<8x128xf32>
    %11 = tpu.matmul %9, %10, %cst_8 {dimension_numbers = #tpu.dot_dimension_numbers<[1], [0], [0], [1], [0, 0, 1, 1], [], []>} : vector<8x200xbf16>, vector<200x128xbf16>, vector<8x128xf32> -> vector<8x128xf32>
    %c0_9 = arith.constant 0 : index
    %c0_10 = arith.constant 0 : index
    %12 = vector.load %arg5[%c0_9, %c0_10] : memref<1x128xf32, #tpu.memory_space<vmem>>, vector<1x128xf32>
    %13 = vector.broadcast %12 : vector<1x128xf32> to vector<8x128xf32>
    %14 = arith.addf %11, %13 : vector<8x128xf32>
    %c0_11 = arith.constant 0 : index
    %c0_12 = arith.constant 0 : index
    %15 = vector.load %arg6[%c0_11, %c0_12] : memref<8x128xf32, #tpu.memory_space<vmem>>, vector<8x128xf32>
    tpu.vector_store %arg6[%c0_11, %c0_12], %14 {strides = array<i32>} : memref<8x128xf32, #tpu.memory_space<vmem>>, vector<8x128xf32>,
    return
  }
  func.func @transform_0(%arg0: i32) -> (i32, i32) {
    %c0_i32 = arith.constant 0 : i32
    %c0_i32_0 = arith.constant 0 : i32
    return %arg0, %c0_i32 : i32, i32
  }
  func.func @transform_1(%arg0: i32) -> (i32, i32) {
    %c0_i32 = arith.constant 0 : i32
    %c0_i32_0 = arith.constant 0 : i32
    %c0_i32_1 = arith.constant 0 : i32
    return %c0_i32, %c0_i32_0 : i32, i32
  }
  func.func @transform_2(%arg0: i32) -> (i32, i32) {
    %c0_i32 = arith.constant 0 : i32
    %c0_i32_0 = arith.constant 0 : i32
    %c0_i32_1 = arith.constant 0 : i32
    return %c0_i32, %c0_i32_0 : i32, i32
  }
  func.func @transform_3(%arg0: i32) -> (i32, i32) {
    %c0_i32 = arith.constant 0 : i32
    %c0_i32_0 = arith.constant 0 : i32
    %c0_i32_1 = arith.constant 0 : i32
    return %c0_i32, %c0_i32_0 : i32, i32
  }
  func.func @transform_4(%arg0: i32) -> (i32, i32) {
    %c0_i32 = arith.constant 0 : i32
    %c0_i32_0 = arith.constant 0 : i32
    %c0_i32_1 = arith.constant 0 : i32
    return %c0_i32, %c0_i32_0 : i32, i32
  }
  func.func @transform_5(%arg0: i32) -> (i32, i32) {
    %c0_i32 = arith.constant 0 : i32
    %c0_i32_0 = arith.constant 0 : i32
    return %arg0, %c0_i32 : i32, i32
  }
}

module attributes {stable_mosaic.version = 11 : i64} {
  func.func @policy_mlp_kernel(%arg0: i32, %arg1: memref<8x6400xf32, #tpu.memory_space<vmem>>, %arg2: memref<6400x200xbf16, #tpu.memory_space<vmem>>, %arg3: memref<1x200xf32, #tpu.memory_space<vmem>>, %arg4: memref<200x128xbf16, #tpu.memory_space<vmem>>, %arg5: memref<1x128xf32, #tpu.memory_space<vmem>>, %arg6: memref<8x128xf32, #tpu.memory_space<vmem>>) attributes {dimension_semantics = [#tpu.dimension_semantics<parallel>], iteration_bounds = array<i64: 1>, scalar_prefetch = 0 : i64, scratch_operands = 0 : i64, tpu.core_type = #tpu.core_type<tc>, window_params = [{transform_indices = @transform_0, window_bounds = array<i64: 8, 6400>}, {pipeline_mode = #tpu.pipeline_mode<synchronous>, transform_indices = @transform_1, window_bounds = array<i64: 6400, 200>}, {pipeline_mode = #tpu.pipeline_mode<synchronous>, transform_indices = @transform_2, window_bounds = array<i64: 1, 200>}, {pipeline_mode = #tpu.pipeline_mode<synchronous>, transform_indices = @transform_3, window_bounds = array<i64: 200, 128>}, {pipeline_mode = #tpu.pipeline_mode<synchronous>, transform_indices = @transform_4, window_bounds = array<i64: 1, 128>}, {transform_indices = @transform_5, window_bounds = array<i64: 8, 128>}]} {
    %c0 = arith.constant 0 : index
    %c0_0 = arith.constant 0 : index
    %0 = vector.load %arg1[%c0, %c0_0] : memref<8x6400xf32, #tpu.memory_space<vmem>>, vector<8x6400xf32>
    %1 = arith.truncf %0 : vector<8x6400xf32> to vector<8x6400xbf16>
    %c0_1 = arith.constant 0 : index
    %c0_2 = arith.constant 0 : index
    %2 = vector.load %arg2[%c0_1, %c0_2] : memref<6400x200xbf16, #tpu.memory_space<vmem>>, vector<6400x200xbf16>
    %cst = arith.constant dense<0.000000e+00> : vector<8x200xf32>
    %3 = tpu.matmul %1, %2, %cst {dimension_numbers = #tpu.dot_dimension_numbers<[1], [0], [0], [1], [0, 0, 1, 1], [], []>} : vector<8x6400xbf16>, vector<6400x200xbf16>, vector<8x200xf32> -> vector<8x200xf32>
    %c0_3 = arith.constant 0 : index
    %c0_4 = arith.constant 0 : index
    %4 = vector.load %arg3[%c0_3, %c0_4] : memref<1x200xf32, #tpu.memory_space<vmem>>, vector<1x200xf32>
    %5 = vector.broadcast %4 : vector<1x200xf32> to vector<8x200xf32>
    %6 = arith.addf %3, %5 : vector<8x200xf32>
    %cst_5 = arith.constant 0.000000e+00 : f32
    %7 = vector.broadcast %cst_5 : f32 to vector<8x200xf32>
    %8 = arith.maximumf %6, %7 : vector<8x200xf32>
    %9 = arith.truncf %8 : vector<8x200xf32> to vector<8x200xbf16>
    %c0_6 = arith.constant 0 : index
    %c0_7 = arith.constant 0 : index
    %10 = vector.load %arg4[%c0_6, %c0_7] : memref<200x128xbf16, #tpu.memory_space<vmem>>, vector<200x128xbf16>
    %cst_8 = arith.constant dense<0.000000e+00> : vector<8x128xf32>
    %11 = tpu.matmul %9, %10, %cst_8 {dimension_numbers = #tpu.dot_dimension_numbers<[1], [0], [0], [1], [0, 0, 1, 1], [], []>} : vector<8x200xbf16>, vector<200x128xbf16>, vector<8x128xf32> -> vector<8x128xf32>
    %c0_9 = arith.constant 0 : index
    %c0_10 = arith.constant 0 : index
    %12 = vector.load %arg5[%c0_9, %c0_10] : memref<1x128xf32, #tpu.memory_space<vmem>>, vector<1x128xf32>
    %13 = vector.broadcast %12 : vector<1x128xf32> to vector<8x128xf32>
    %14 = arith.addf %11, %13 : vector<8x128xf32>
    %c0_11 = arith.constant 0 : index
    %c0_12 = arith.constant 0 : index
    %15 = vector.load %arg6[%c0_11, %c0_12] : memref<8x128xf32, #tpu.memory_space<vmem>>, vector<8x128xf32>
    tpu.vector_store %arg6[%c0_11, %c0_12], %14 {strides = array<i32>} : memref<8x128xf32, #tpu.memory_space<vmem>>, vector<8x128xf32>,
    return
  }
  func.func @transform_0(%arg0: i32) -> (i32, i32) {
    %c0_i32 = arith.constant 0 : i32
    %c0_i32_0 = arith.constant 0 : i32
    return %arg0, %c0_i32 : i32, i32
  }
  func.func @transform_1(%arg0: i32) -> (i32, i32) {
    %c0_i32 = arith.constant 0 : i32
    %c0_i32_0 = arith.constant 0 : i32
    %c0_i32_1 = arith.constant 0 : i32
    return %c0_i32, %c0_i32_0 : i32, i32
  }
  func.func @transform_2(%arg0: i32) -> (i32, i32) {
    %c0_i32 = arith.constant 0 : i32
    %c0_i32_0 = arith.constant 0 : i32
    %c0_i32_1 = arith.constant 0 : i32
    return %c0_i32, %c0_i32_0 : i32, i32
  }
  func.func @transform_3(%arg0: i32) -> (i32, i32) {
    %c0_i32 = arith.constant 0 : i32
    %c0_i32_0 = arith.constant 0 : i32
    %c0_i32_1 = arith.constant 0 : i32
    return %c0_i32, %c0_i32_0 : i32, i32
  }
  func.func @transform_4(%arg0: i32) -> (i32, i32) {
    %c0_i32 = arith.constant 0 : i32
    %c0_i32_0 = arith.constant 0 : i32
    %c0_i32_1 = arith.constant 0 : i32
    return %c0_i32, %c0_i32_0 : i32, i32
  }
  func.func @transform_5(%arg0: i32) -> (i32, i32) {
    %c0_i32 = arith.constant 0 : i32
    %c0_i32_0 = arith.constant 0 : i32
    return %arg0, %c0_i32 : i32, i32
  }
}

</mosaic_0001>

<bundles_post_ra>
// kernel: tpu_custom_call.1
= control target key start
LH: loop header
LB: loop body
LE: loop exit
PB: predicated region body
PF: predicated region fallthrough
CT: control target
= control target key end

     0   :  { %s10922_s0 = inlined_call_operand.vmem [shape: f32[8,6400], index: 0, kind: input, shape index: {}]   ;;  %s10923_s1 = inlined_call_operand.vmem [shape: bf16[6400,200], index: 1, kind: input, shape index: {}]   ;;  %s10924_s2 = inlined_call_operand.vmem [shape: f32[1,200], index: 2, kind: input, shape index: {}]   ;;  %s10925_s3 = inlined_call_operand.vmem [shape: bf16[200,128], index: 3, kind: input, shape index: {}]   ;;  %s10926_s4 = inlined_call_operand.vmem [shape: f32[1,128], index: 4, kind: input, shape index: {}]   ;;  %s10927_s5 = inlined_call_operand.hbm [shape: f32[8,128], index: 5, kind: output, shape index: {}]  }
   0x1   :  { %v7046_v0 = vld [vmem:[%s10923_s1 + $0x4] ss:$8 sps:$4 sm:$0xff]   ;;  %v7050_v2 = vld [vmem:[%s10923_s1] ss:$8 sps:$4 sm:$0xff]   ;;  %v7052_v4 = vld [vmem:[%s10923_s1 + $0x14] ss:$8 sps:$4 sm:$0xff]  }
   0x2   :  { %v7048_v1 = vld [vmem:[%s10923_s1 + $0xc04] ss:$8 sps:$4 sm:$0xff]   ;;  %4934 = vmatprep.subr.bf16.mxu1 %v7046_v0  ;;  %v7051_v3 = vld [vmem:[%s10923_s1 + $0xc00] ss:$8 sps:$4 sm:$0xff]   ;;  %v7054_v5 = vld [vmem:[%s10923_s1 + $0xc14] ss:$8 sps:$4 sm:$0xff]  }
   0x3   :  { %5426 = vmatprep.subr.bf16.mxu0 %v7048_v1  ;;  %4935 = vmatpush1.bf16.msra.mxu1 %v7050_v2  ;;  %v7056_v6 = vld [vmem:[%s10923_s1 + $0x10] ss:$8 sps:$4 sm:$0xff]   ;;  %v7058_v8 = vld [vmem:[%s10923_s1 + $0x24] ss:$8 sps:$4 sm:$0xff]   ;;  %v7062_v10 = vld [vmem:[%s10923_s1 + $0x20] ss:$8 sps:$4 sm:$0xff]  }
   0x4   :  { %5427 = vmatpush1.bf16.msra.mxu0 %v7051_v3  ;;  %4936 = vmatprep.subr.bf16.mxu1 %v7052_v4  ;;  %v7057_v7 = vld [vmem:[%s10923_s1 + $0xc10] ss:$8 sps:$4 sm:$0xff]   ;;  %v7060_v9 = vld [vmem:[%s10923_s1 + $0xc24] ss:$8 sps:$4 sm:$0xff]   ;;  %v7063_v11 = vld [vmem:[%s10923_s1 + $0xc20] ss:$8 sps:$4 sm:$0xff]  }
   0x5   :  { %5428 = vmatprep.subr.bf16.mxu0 %v7054_v5  ;;  %v7064_v12 = vld [vmem:[%s10923_s1 + $0x34] ss:$8 sps:$4 sm:$0xff]   ;;  %v7068_v14 = vld [vmem:[%s10923_s1 + $0x30] ss:$8 sps:$4 sm:$0xff]   ;;  %v7070_v16 = vld [vmem:[%s10923_s1 + $0x44] ss:$8 sps:$4 sm:$0xff]  }
   0x6   :  { %v7066_v13 = vld [vmem:[%s10923_s1 + $0xc34] ss:$8 sps:$4 sm:$0xff]   ;;  %v7069_v15 = vld [vmem:[%s10923_s1 + $0xc30] ss:$8 sps:$4 sm:$0xff]   ;;  %v7072_v17 = vld [vmem:[%s10923_s1 + $0xc44] ss:$8 sps:$4 sm:$0xff]  }
   0x7   :  { %4937 = vmatpush1.bf16.msra.mxu1 %v7056_v6  ;;  %v7074_v18 = vld [vmem:[%s10923_s1 + $0x40] ss:$8 sps:$4 sm:$0xff]   ;;  %v7076_v20 = vld [vmem:[%s10923_s1 + $0x54] ss:$8 sps:$4 sm:$0xff]   ;;  %v7080_v22 = vld [vmem:[%s10923_s1 + $0x50] ss:$8 sps:$4 sm:$0xff]  }
   0x8   :  { %5429 = vmatpush1.bf16.msra.mxu0 %v7057_v7  ;;  %4938 = vmatprep.subr.bf16.mxu1 %v7058_v8  ;;  %v7075_v19 = vld [vmem:[%s10923_s1 + $0xc40] ss:$8 sps:$4 sm:$0xff]   ;;  %v7078_v21 = vld [vmem:[%s10923_s1 + $0xc54] ss:$8 sps:$4 sm:$0xff]   ;;  %v7081_v23 = vld [vmem:[%s10923_s1 + $0xc50] ss:$8 sps:$4 sm:$0xff]  }
   0x9   :  { %5430 = vmatprep.subr.bf16.mxu0 %v7060_v9  ;;  %v7082_v24 = vld [vmem:[%s10923_s1 + $0x64] ss:$8 sps:$4 sm:$0xff]   ;;  %v7086_v26 = vld [vmem:[%s10923_s1 + $0x60] ss:$8 sps:$4 sm:$0xff]   ;;  %v7088_v28 = vld [vmem:[%s10923_s1 + $0x74] ss:$8 sps:$4 sm:$0xff]  }
   0xa   :  { %v7084_v25 = vld [vmem:[%s10923_s1 + $0xc64] ss:$8 sps:$4 sm:$0xff]   ;;  %v7087_v27 = vld [vmem:[%s10923_s1 + $0xc60] ss:$8 sps:$4 sm:$0xff]   ;;  %v7090_v29 = vld [vmem:[%s10923_s1 + $0xc74] ss:$8 sps:$4 sm:$0xff]  }
   0xb   :  { %4939 = vmatpush1.bf16.msra.mxu1 %v7062_v10  ;;  %v7092_v30 = vld [vmem:[%s10923_s1 + $0x70] ss:$8 sps:$4 sm:$0xff]   ;;  %v7094_v32 = vld [vmem:[%s10923_s1 + $0x84] ss:$8 sps:$4 sm:$0xff]   ;;  %v7098_v34 = vld [vmem:[%s10923_s1 + $0x80] ss:$8 sps:$4 sm:$0xff]  }
   0xc   :  { %5431 = vmatpush1.bf16.msra.mxu0 %v7063_v11  ;;  %4940 = vmatprep.subr.bf16.mxu1 %v7064_v12  ;;  %v7093_v31 = vld [vmem:[%s10923_s1 + $0xc70] ss:$8 sps:$4 sm:$0xff]   ;;  %v7096_v33 = vld [vmem:[%s10923_s1 + $0xc84] ss:$8 sps:$4 sm:$0xff]   ;;  %v7099_v35 = vld [vmem:[%s10923_s1 + $0xc80] ss:$8 sps:$4 sm:$0xff]  }
   0xd   :  { %5432 = vmatprep.subr.bf16.mxu0 %v7066_v13  ;;  %v7100_v36 = vld [vmem:[%s10923_s1 + $0x94] ss:$8 sps:$4 sm:$0xff]   ;;  %v7104_v38 = vld [vmem:[%s10923_s1 + $0x90] ss:$8 sps:$4 sm:$0xff]   ;;  %v7106_v40 = vld [vmem:[%s10923_s1 + $0xa4] ss:$8 sps:$4 sm:$0xff]  }
   0xe   :  { %v7102_v37 = vld [vmem:[%s10923_s1 + $0xc94] ss:$8 sps:$4 sm:$0xff]   ;;  %v7105_v39 = vld [vmem:[%s10923_s1 + $0xc90] ss:$8 sps:$4 sm:$0xff]   ;;  %v7108_v41 = vld [vmem:[%s10923_s1 + $0xca4] ss:$8 sps:$4 sm:$0xff]  }
   0xf   :  { %4941 = vmatpush1.bf16.msra.mxu1 %v7068_v14  ;;  %v7110_v42 = vld [vmem:[%s10923_s1 + $0xa0] ss:$8 sps:$4 sm:$0xff]   ;;  %v7112_v44 = vld [vmem:[%s10923_s1 + $0xb4] ss:$8 sps:$4 sm:$0xff]   ;;  %v7116_v47 = vld [vmem:[%s10923_s1 + $0xb0] ss:$8 sps:$4 sm:$0xff]  }
  0x10   :  { %5433 = vmatpush1.bf16.msra.mxu0 %v7069_v15  ;;  %4942 = vmatprep.subr.bf16.mxu1 %v7070_v16  ;;  %v7111_v43 = vld [vmem:[%s10923_s1 + $0xca0] ss:$8 sps:$4 sm:$0xff]   ;;  %v7114_v45 = vld [vmem:[%s10923_s1 + $0xcb4] ss:$8 sps:$4 sm:$0xff]   ;;  %v7117_v49 = vld [vmem:[%s10923_s1 + $0xcb0] ss:$8 sps:$4 sm:$0xff]  }
  0x11   :  { %5434 = vmatprep.subr.bf16.mxu0 %v7072_v17  ;;  %v23_v46 = vld [vmem:[%s10922_s0 + $0x8] sm:$0xff]  ;;  %v7124_v56 = vld [vmem:[%s10923_s1 + $0xd4] ss:$8 sps:$4 sm:$0xff]   ;;  %v7128_v58 = vld [vmem:[%s10923_s1 + $0xd0] ss:$8 sps:$4 sm:$0xff]  }
  0x12   :  { %v73_v48 = vpack.c.bf16 %v23_v46, %v23_v46  ;;  %v47_v50 = vld [vmem:[%s10922_s0 + $0xc8] sm:$0xff]  ;;  %v7126_v57 = vld [vmem:[%s10923_s1 + $0xcd4] ss:$8 sps:$4 sm:$0xff]   ;;  %v7129_v59 = vld [vmem:[%s10923_s1 + $0xcd0] ss:$8 sps:$4 sm:$0xff]  }
  0x13   :  { %4943 = vmatpush1.bf16.msra.mxu1 %v7074_v18  ;;  %v7118_v51 = vld [vmem:[%s10923_s1 + $0xc4] ss:$8 sps:$4 sm:$0xff]   ;;  %v97_v53 = vpack.c.bf16 %v47_v50, %v47_v50  ;;  %v7122_v54 = vld [vmem:[%s10923_s1 + $0xc0] ss:$8 sps:$4 sm:$0xff]   ;;  %v7136_v0 = vld [vmem:[%s10923_s1 + $0xf4] ss:$8 sps:$4 sm:$0xff]  }
  0x14   :  { %5435 = vmatpush1.bf16.msra.mxu0 %v7075_v19  ;;  %4944 = vmatprep.subr.bf16.mxu1 %v7076_v20  ;;  %v7120_v52 = vld [vmem:[%s10923_s1 + $0xcc4] ss:$8 sps:$4 sm:$0xff]   ;;  %v7123_v55 = vld [vmem:[%s10923_s1 + $0xcc0] ss:$8 sps:$4 sm:$0xff]   ;;  %v7138_v1 = vld [vmem:[%s10923_s1 + $0xcf4] ss:$8 sps:$4 sm:$0xff]  }
  0x15   :  { %5436 = vmatprep.subr.bf16.mxu0 %v7078_v21  ;;  %4966 = vmatprep.mubr.bf16.mxu1 %v73_v48  ;;  %v7130_v60 = vld [vmem:[%s10923_s1 + $0xe4] ss:$8 sps:$4 sm:$0xff]   ;;  %v7134_v62 = vld [vmem:[%s10923_s1 + $0xe0] ss:$8 sps:$4 sm:$0xff]   ;;  %v7140_v2 = vld [vmem:[%s10923_s1 + $0xf0] ss:$8 sps:$4 sm:$0xff]  }
  0x16   :  { %5458 = vmatprep.mubr.bf16.mxu0 %v97_v53  ;;  %v7132_v61 = vld [vmem:[%s10923_s1 + $0xce4] ss:$8 sps:$4 sm:$0xff]   ;;  %v7135_v63 = vld [vmem:[%s10923_s1 + $0xce0] ss:$8 sps:$4 sm:$0xff]   ;;  %v7141_v3 = vld [vmem:[%s10923_s1 + $0xcf0] ss:$8 sps:$4 sm:$0xff]  }
  0x17   :  { %4945 = vmatpush1.bf16.msra.mxu1 %v7080_v22  ;;  %v7144_v4 = vld [vmem:[%s10923_s1 + $0x104] ss:$8 sps:$4 sm:$0xff]   ;;  %v7142_v8 = vld [vmem:[%s10923_s1 + $0x100] ss:$8 sps:$4 sm:$0xff]   ;;  %v7150_v12 = vld [vmem:[%s10923_s1 + $0x114] ss:$8 sps:$4 sm:$0xff]  }
  0x18   :  { %5437 = vmatpush1.bf16.msra.mxu0 %v7081_v23  ;;  %4946 = vmatprep.subr.bf16.mxu1 %v7082_v24  ;;  %v22_v5 = vld [vmem:[%s10922_s0] sm:$0xff]  ;;  %v7153_v13 = vld [vmem:[%s10923_s1 + $0xd14] ss:$8 sps:$4 sm:$0xff]   ;;  %v7148_v14 = vld [vmem:[%s10923_s1 + $0x110] ss:$8 sps:$4 sm:$0xff]  }
  0x19   :  { %5438 = vmatprep.subr.bf16.mxu0 %v7084_v25  ;;  %v46_v6 = vld [vmem:[%s10922_s0 + $0xc0] sm:$0xff]  ;;  %v72_v10 = vpack.c.bf16 %v22_v5, %v22_v5  ;;  %v7151_v15 = vld [vmem:[%s10923_s1 + $0xd10] ss:$8 sps:$4 sm:$0xff]   ;;  %v7162_v20 = vld [vmem:[%s10923_s1 + $0x134] ss:$8 sps:$4 sm:$0xff]  }
  0x1a   :  { %v7147_v7 = vld [vmem:[%s10923_s1 + $0xd04] ss:$8 sps:$4 sm:$0xff]   ;;  %v7145_v9 = vld [vmem:[%s10923_s1 + $0xd00] ss:$8 sps:$4 sm:$0xff]   ;;  %v96_v11 = vpack.c.bf16 %v46_v6, %v46_v6  ;;  %v7165_v21 = vld [vmem:[%s10923_s1 + $0xd34] ss:$8 sps:$4 sm:$0xff]  }
  0x1b   :  { %4947 = vmatpush1.bf16.msra.mxu1 %v7086_v26  ;;  %v7156_v16 = vld [vmem:[%s10923_s1 + $0x124] ss:$8 sps:$4 sm:$0xff]   ;;  %v7154_v18 = vld [vmem:[%s10923_s1 + $0x120] ss:$8 sps:$4 sm:$0xff]   ;;  %v7160_v22 = vld [vmem:[%s10923_s1 + $0x130] ss:$8 sps:$4 sm:$0xff]  }
  0x1c   :  { %5439 = vmatpush1.bf16.msra.mxu0 %v7087_v27  ;;  %4948 = vmatprep.subr.bf16.mxu1 %v7088_v28  ;;  %v7159_v17 = vld [vmem:[%s10923_s1 + $0xd24] ss:$8 sps:$4 sm:$0xff]   ;;  %v7157_v19 = vld [vmem:[%s10923_s1 + $0xd20] ss:$8 sps:$4 sm:$0xff]   ;;  %v7163_v23 = vld [vmem:[%s10923_s1 + $0xd30] ss:$8 sps:$4 sm:$0xff]  }
  0x1d   :  { %5440 = vmatprep.subr.bf16.mxu0 %v7090_v29  ;;  %v7168_v24 = vld [vmem:[%s10923_s1 + $0x144] ss:$8 sps:$4 sm:$0xff]   ;;  %v7166_v26 = vld [vmem:[%s10923_s1 + $0x140] ss:$8 sps:$4 sm:$0xff]   ;;  %v7174_v28 = vld [vmem:[%s10923_s1 + $0x154] ss:$8 sps:$4 sm:$0xff]  }
  0x1e   :  { %v7171_v25 = vld [vmem:[%s10923_s1 + $0xd44] ss:$8 sps:$4 sm:$0xff]   ;;  %v7169_v27 = vld [vmem:[%s10923_s1 + $0xd40] ss:$8 sps:$4 sm:$0xff]   ;;  %v7177_v29 = vld [vmem:[%s10923_s1 + $0xd54] ss:$8 sps:$4 sm:$0xff]  }
  0x1f   :  { %4949 = vmatpush1.bf16.msra.mxu1 %v7092_v30  ;;  %v7172_v30 = vld [vmem:[%s10923_s1 + $0x150] ss:$8 sps:$4 sm:$0xff]   ;;  %v7190_v46 = vld [vmem:[%s10923_s1 + $0x180] ss:$8 sps:$4 sm:$0xff]   ;;  %v7198_v48 = vld [vmem:[%s10923_s1 + $0x194] ss:$8 sps:$4 sm:$0xff]  }
  0x20   :  { %5441 = vmatpush1.bf16.msra.mxu0 %v7093_v31  ;;  %4950 = vmatprep.subr.bf16.mxu1 %v7094_v32  ;;  %v7175_v31 = vld [vmem:[%s10923_s1 + $0xd50] ss:$8 sps:$4 sm:$0xff]   ;;  %v7180_v32 = vld [vmem:[%s10923_s1 + $0x164] ss:$8 sps:$4 sm:$0xff]   ;;  %v7226_v6 = vld [vmem:[%s10923_s1 + $0x1e0] ss:$8 sps:$4 sm:$0xff]  }
  0x21   :  { %5442 = vmatprep.subr.bf16.mxu0 %v7096_v33  ;;  %v7183_v33 = vld [vmem:[%s10923_s1 + $0xd64] ss:$8 sps:$4 sm:$0xff]   ;;  %v7196_v50 = vld [vmem:[%s10923_s1 + $0x190] ss:$8 sps:$4 sm:$0xff]  }
  0x22   :  { %v7207_v53 = vld [vmem:[%s10923_s1 + $0xda4] ss:$8 sps:$4 sm:$0xff]  }
  0x23   :  { %4951 = vmatpush1.bf16.msra.mxu1 %v7098_v34  ;;  %v25_v34 = vld [vmem:[%s10922_s0 + $0x18] sm:$0xff]  ;;  %v7231_v5 = vld [vmem:[%s10923_s1 + $0xde4] ss:$8 sps:$4 sm:$0xff]  }
  0x24   :  { %5443 = vmatpush1.bf16.msra.mxu0 %v7099_v35  ;;  %4952 = vmatprep.subr.bf16.mxu1 %v7100_v36  ;;  %v7178_v35 = vld [vmem:[%s10923_s1 + $0x160] ss:$8 sps:$4 sm:$0xff]   ;;  %v75_v36 = vpack.c.bf16 %v25_v34, %v25_v34  ;;  %v7256_v34 = vld [vmem:[%s10923_s1 + $0x230] ss:$8 sps:$4 sm:$0xff]  }
  0x25   :  { %5444 = vmatprep.subr.bf16.mxu0 %v7102_v37  ;;  %v7181_v37 = vld [vmem:[%s10923_s1 + $0xd60] ss:$8 sps:$4 sm:$0xff]  }
  0x27   :  { %4953 = vmatpush1.bf16.msra.mxu1 %v7104_v38  ;;  %v49_v38 = vld [vmem:[%s10922_s0 + $0xd8] sm:$0xff] }
  0x28   :  { %5445 = vmatpush1.bf16.msra.mxu0 %v7105_v39  ;;  %4954 = vmatprep.subr.bf16.mxu1 %v7106_v40  ;;  %v7186_v39 = vld [vmem:[%s10923_s1 + $0x174] ss:$8 sps:$4 sm:$0xff]  }
  0x29   :  { %5446 = vmatprep.subr.bf16.mxu0 %v7108_v41  ;;  %v7189_v40 = vld [vmem:[%s10923_s1 + $0xd74] ss:$8 sps:$4 sm:$0xff]   ;;  %v99_v41 = vpack.c.bf16 %v49_v38, %v49_v38  ;;  %v7262_v38 = vld [vmem:[%s10923_s1 + $0x240] ss:$8 sps:$4 sm:$0xff]  }
  0x2b   :  { %4955 = vmatpush1.bf16.msra.mxu1 %v7110_v42  ;;  %v7184_v42 = vld [vmem:[%s10923_s1 + $0x170] ss:$8 sps:$4 sm:$0xff]  }
  0x2c   :  { %5447 = vmatpush1.bf16.msra.mxu0 %v7111_v43  ;;  %4956 = vmatprep.subr.bf16.mxu1 %v7112_v44  ;;  %v7187_v43 = vld [vmem:[%s10923_s1 + $0xd70] ss:$8 sps:$4 sm:$0xff]   ;;  %v7192_v44 = vld [vmem:[%s10923_s1 + $0x184] ss:$8 sps:$4 sm:$0xff]  }
  0x2d   :  { %5448 = vmatprep.subr.bf16.mxu0 %v7114_v45  ;;  %v7195_v45 = vld [vmem:[%s10923_s1 + $0xd84] ss:$8 sps:$4 sm:$0xff]  }
  0x2f   :  { %4957 = vmatpush1.bf16.msra.mxu1 %v7116_v47  ;;  %v7193_v47 = vld [vmem:[%s10923_s1 + $0xd80] ss:$8 sps:$4 sm:$0xff]  }
  0x30   :  { %5449 = vmatpush1.bf16.msra.mxu0 %v7117_v49  ;;  %4958 = vmatprep.subr.bf16.mxu1 %v7118_v51  ;;  %v7201_v49 = vld [vmem:[%s10923_s1 + $0xd94] ss:$8 sps:$4 sm:$0xff]   ;;  %v7199_v51 = vld [vmem:[%s10923_s1 + $0xd90] ss:$8 sps:$4 sm:$0xff]  }
  0x31   :  { %5450 = vmatprep.subr.bf16.mxu0 %v7120_v52  ;;  %v7204_v52 = vld [vmem:[%s10923_s1 + $0x1a4] ss:$8 sps:$4 sm:$0xff]  }
  0x33   :  { %4959 = vmatpush1.bf16.msra.mxu1 %v7122_v54  ;;  %v7202_v54 = vld [vmem:[%s10923_s1 + $0x1a0] ss:$8 sps:$4 sm:$0xff]  }
  0x34   :  { %5451 = vmatpush1.bf16.msra.mxu0 %v7123_v55  ;;  %4960 = vmatprep.subr.bf16.mxu1 %v7124_v56  ;;  %v7205_v55 = vld [vmem:[%s10923_s1 + $0xda0] ss:$8 sps:$4 sm:$0xff]   ;;  %v7210_v56 = vld [vmem:[%s10923_s1 + $0x1b4] ss:$8 sps:$4 sm:$0xff]  }
  0x35   :  { %5452 = vmatprep.subr.bf16.mxu0 %v7126_v57  ;;  %v7213_v57 = vld [vmem:[%s10923_s1 + $0xdb4] ss:$8 sps:$4 sm:$0xff]  }
  0x37   :  { %4961 = vmatpush1.bf16.msra.mxu1 %v7128_v58  ;;  %v7208_v58 = vld [vmem:[%s10923_s1 + $0x1b0] ss:$8 sps:$4 sm:$0xff]  }
  0x38   :  { %5453 = vmatpush1.bf16.msra.mxu0 %v7129_v59  ;;  %4962 = vmatprep.subr.bf16.mxu1 %v7130_v60  ;;  %v7211_v59 = vld [vmem:[%s10923_s1 + $0xdb0] ss:$8 sps:$4 sm:$0xff]   ;;  %v7216_v60 = vld [vmem:[%s10923_s1 + $0x1c4] ss:$8 sps:$4 sm:$0xff]  }
  0x39   :  { %5454 = vmatprep.subr.bf16.mxu0 %v7132_v61  ;;  %v7219_v61 = vld [vmem:[%s10923_s1 + $0xdc4] ss:$8 sps:$4 sm:$0xff]  }
  0x3b   :  { %4963 = vmatpush1.bf16.msra.mxu1 %v7134_v62  ;;  %v7214_v62 = vld [vmem:[%s10923_s1 + $0x1c0] ss:$8 sps:$4 sm:$0xff]  }
  0x3c   :  { %5455 = vmatpush1.bf16.msra.mxu0 %v7135_v63  ;;  %4964 = vmatprep.subr.bf16.mxu1 %v7136_v0  ;;  %v7217_v63 = vld [vmem:[%s10923_s1 + $0xdc0] ss:$8 sps:$4 sm:$0xff]   ;;  %v7222_v0 = vld [vmem:[%s10923_s1 + $0x1d4] ss:$8 sps:$4 sm:$0xff]  }
  0x3d   :  { %5456 = vmatprep.subr.bf16.mxu0 %v7138_v1  ;;  %v7225_v1 = vld [vmem:[%s10923_s1 + $0xdd4] ss:$8 sps:$4 sm:$0xff]  }
  0x3f   :  { %4965 = vmatpush1.bf16.msra.mxu1 %v7140_v2  ;;  %v7220_v2 = vld [vmem:[%s10923_s1 + $0x1d0] ss:$8 sps:$4 sm:$0xff]  }
  0x40   :  { %5457 = vmatpush1.bf16.msra.mxu0 %v7141_v3  ;;  %4975 = vmatprep.subr.bf16.mxu1 %v7144_v4  ;;  %v7223_v3 = vld [vmem:[%s10923_s1 + $0xdd0] ss:$8 sps:$4 sm:$0xff]   ;;  %v7228_v4 = vld [vmem:[%s10923_s1 + $0x1e4] ss:$8 sps:$4 sm:$0xff]  }
  0x41   :  { %5467 = vmatprep.subr.bf16.mxu0 %v7147_v7  ;;  %v7229_v7 = vld [vmem:[%s10923_s1 + $0xde0] ss:$8 sps:$4 sm:$0xff]  }
  0x42   :  { %4967 = vmatmul.mubr.bf16.vlgmr.msra.gmra.mrb[0].mxu1 %v72_v10  ;;  %v7232_v10 = vld [vmem:[%s10923_s1 + $0x1f0] ss:$8 sps:$4 sm:$0xff]  }
  0x43   :  { %5459 = vmatmul.mubr.bf16.vlgmr.msra.gmra.mrb[0].mxu0 %v96_v11  ;;  %4976 = vmatpush1.bf16.msra.mxu1 %v7142_v8  ;;  %v7234_v8 = vld [vmem:[%s10923_s1 + $0x1f4] ss:$8 sps:$4 sm:$0xff]   ;;  %v7235_v11 = vld [vmem:[%s10923_s1 + $0xdf0] ss:$8 sps:$4 sm:$0xff]  }
  0x44   :  { %5468 = vmatpush1.bf16.msra.mxu0 %v7145_v9  ;;  %4977 = vmatprep.subr.bf16.mxu1 %v7150_v12  ;;  %v7237_v9 = vld [vmem:[%s10923_s1 + $0xdf4] ss:$8 sps:$4 sm:$0xff]   ;;  %v7240_v12 = vld [vmem:[%s10923_s1 + $0x204] ss:$8 sps:$4 sm:$0xff]  }
  0x45   :  { %5469 = vmatprep.subr.bf16.mxu0 %v7153_v13  ;;  %5007 = vmatprep.mubr.bf16.mxu1 %v75_v36  ;;  %v24_v13 = vld [vmem:[%s10922_s0 + $0x10] sm:$0xff]  ;;  %v7264_v36 = vld [vmem:[%s10923_s1 + $0x244] ss:$8 sps:$4 sm:$0xff]  }
  0x46   :  { %5499 = vmatprep.mubr.bf16.mxu0 %v99_v41  ;;  %v7273_v41 = vld [vmem:[%s10923_s1 + $0xe54] ss:$8 sps:$4 sm:$0xff]  }
  0x47   :  { %4978 = vmatpush1.bf16.msra.mxu1 %v7148_v14  ;;  %v48_v14 = vld [vmem:[%s10922_s0 + $0xd0] sm:$0xff] }
  0x48   :  { %5470 = vmatpush1.bf16.msra.mxu0 %v7151_v15  ;;  %4979 = vmatprep.subr.bf16.mxu1 %v7156_v16  ;;  %v7243_v15 = vld [vmem:[%s10923_s1 + $0xe04] ss:$8 sps:$4 sm:$0xff]   ;;  %v7238_v16 = vld [vmem:[%s10923_s1 + $0x200] ss:$8 sps:$4 sm:$0xff]  }
  0x49   :  { %5471 = vmatprep.subr.bf16.mxu0 %v7159_v17  ;;  %v7241_v17 = vld [vmem:[%s10923_s1 + $0xe00] ss:$8 sps:$4 sm:$0xff]  }
  0x4b   :  { %4980 = vmatpush1.bf16.msra.mxu1 %v7154_v18  ;;  %v74_v18 = vpack.c.bf16 %v24_v13, %v24_v13  ;;  %v7327_v13 = vld [vmem:[%s10923_s1 + $0xee4] ss:$8 sps:$4 sm:$0xff]  }
  0x4c   :  { %5472 = vmatpush1.bf16.msra.mxu0 %v7157_v19  ;;  %4981 = vmatprep.subr.bf16.mxu1 %v7162_v20  ;;  %v98_v19 = vpack.c.bf16 %v48_v14, %v48_v14  ;;  %v7246_v20 = vld [vmem:[%s10923_s1 + $0x214] ss:$8 sps:$4 sm:$0xff]   ;;  %v7322_v14 = vld [vmem:[%s10923_s1 + $0x2e0] ss:$8 sps:$4 sm:$0xff]  }
  0x4d   :  { %5473 = vmatprep.subr.bf16.mxu0 %v7165_v21  ;;  %v7249_v21 = vld [vmem:[%s10923_s1 + $0xe14] ss:$8 sps:$4 sm:$0xff]  }
  0x4f   :  { %4982 = vmatpush1.bf16.msra.mxu1 %v7160_v22  ;;  %v27_v22 = vld [vmem:[%s10922_s0 + $0x28] sm:$0xff] }
  0x50   :  { %5474 = vmatpush1.bf16.msra.mxu0 %v7163_v23  ;;  %4983 = vmatprep.subr.bf16.mxu1 %v7168_v24  ;;  %v7244_v23 = vld [vmem:[%s10923_s1 + $0x210] ss:$8 sps:$4 sm:$0xff]   ;;  %v77_v24 = vpack.c.bf16 %v27_v22, %v27_v22  ;;  %v50_v22 = vld [vmem:[%s10922_s0 + $0xe0] sm:$0xff] }
  0x51   :  { %5475 = vmatprep.subr.bf16.mxu0 %v7171_v25  ;;  %v7247_v25 = vld [vmem:[%s10923_s1 + $0xe10] ss:$8 sps:$4 sm:$0xff]  }
  0x53   :  { %4984 = vmatpush1.bf16.msra.mxu1 %v7166_v26  ;;  %v51_v26 = vld [vmem:[%s10922_s0 + $0xe8] sm:$0xff] }
  0x54   :  { %5476 = vmatpush1.bf16.msra.mxu0 %v7169_v27  ;;  %4985 = vmatprep.subr.bf16.mxu1 %v7174_v28  ;;  %v7252_v27 = vld [vmem:[%s10923_s1 + $0x224] ss:$8 sps:$4 sm:$0xff]  }
  0x55   :  { %5477 = vmatprep.subr.bf16.mxu0 %v7177_v29  ;;  %v7255_v28 = vld [vmem:[%s10923_s1 + $0xe24] ss:$8 sps:$4 sm:$0xff]   ;;  %v101_v29 = vpack.c.bf16 %v51_v26, %v51_v26 }
  0x57   :  { %4986 = vmatpush1.bf16.msra.mxu1 %v7172_v30  ;;  %v7250_v30 = vld [vmem:[%s10923_s1 + $0x220] ss:$8 sps:$4 sm:$0xff]  }
  0x58   :  { %5478 = vmatpush1.bf16.msra.mxu0 %v7175_v31  ;;  %4987 = vmatprep.subr.bf16.mxu1 %v7180_v32  ;;  %v7253_v31 = vld [vmem:[%s10923_s1 + $0xe20] ss:$8 sps:$4 sm:$0xff]   ;;  %v7258_v32 = vld [vmem:[%s10923_s1 + $0x234] ss:$8 sps:$4 sm:$0xff]  }
  0x59   :  { %5479 = vmatprep.subr.bf16.mxu0 %v7183_v33  ;;  %v7261_v33 = vld [vmem:[%s10923_s1 + $0xe34] ss:$8 sps:$4 sm:$0xff]  }
  0x5b   :  { %4988 = vmatpush1.bf16.msra.mxu1 %v7178_v35  ;;  %v7259_v35 = vld [vmem:[%s10923_s1 + $0xe30] ss:$8 sps:$4 sm:$0xff]  }
  0x5c   :  { %5480 = vmatpush1.bf16.msra.mxu0 %v7181_v37  ;;  %4989 = vmatprep.subr.bf16.mxu1 %v7186_v39  ;;  %v7267_v37 = vld [vmem:[%s10923_s1 + $0xe44] ss:$8 sps:$4 sm:$0xff]   ;;  %v7265_v39 = vld [vmem:[%s10923_s1 + $0xe40] ss:$8 sps:$4 sm:$0xff]  }
  0x5d   :  { %5481 = vmatprep.subr.bf16.mxu0 %v7189_v40  ;;  %v7270_v40 = vld [vmem:[%s10923_s1 + $0x254] ss:$8 sps:$4 sm:$0xff]  }
  0x5f   :  { %4990 = vmatpush1.bf16.msra.mxu1 %v7184_v42  ;;  %v7268_v42 = vld [vmem:[%s10923_s1 + $0x250] ss:$8 sps:$4 sm:$0xff]  }
  0x60   :  { %5482 = vmatpush1.bf16.msra.mxu0 %v7187_v43  ;;  %4991 = vmatprep.subr.bf16.mxu1 %v7192_v44  ;;  %v7271_v43 = vld [vmem:[%s10923_s1 + $0xe50] ss:$8 sps:$4 sm:$0xff]   ;;  %v7276_v44 = vld [vmem:[%s10923_s1 + $0x264] ss:$8 sps:$4 sm:$0xff]  }
  0x61   :  { %5483 = vmatprep.subr.bf16.mxu0 %v7195_v45  ;;  %v7279_v45 = vld [vmem:[%s10923_s1 + $0xe64] ss:$8 sps:$4 sm:$0xff]  }
  0x63   :  { %4992 = vmatpush1.bf16.msra.mxu1 %v7190_v46  ;;  %v7274_v46 = vld [vmem:[%s10923_s1 + $0x260] ss:$8 sps:$4 sm:$0xff]  }
  0x64   :  { %5484 = vmatpush1.bf16.msra.mxu0 %v7193_v47  ;;  %4993 = vmatprep.subr.bf16.mxu1 %v7198_v48  ;;  %v7277_v47 = vld [vmem:[%s10923_s1 + $0xe60] ss:$8 sps:$4 sm:$0xff]   ;;  %v7282_v48 = vld [vmem:[%s10923_s1 + $0x274] ss:$8 sps:$4 sm:$0xff]  }
  0x65   :  { %5485 = vmatprep.subr.bf16.mxu0 %v7201_v49  ;;  %v7285_v49 = vld [vmem:[%s10923_s1 + $0xe74] ss:$8 sps:$4 sm:$0xff]  }
  0x67   :  { %4994 = vmatpush1.bf16.msra.mxu1 %v7196_v50  ;;  %v7280_v50 = vld [vmem:[%s10923_s1 + $0x270] ss:$8 sps:$4 sm:$0xff]  }
  0x68   :  { %5486 = vmatpush1.bf16.msra.mxu0 %v7199_v51  ;;  %4995 = vmatprep.subr.bf16.mxu1 %v7204_v52  ;;  %v7283_v51 = vld [vmem:[%s10923_s1 + $0xe70] ss:$8 sps:$4 sm:$0xff]   ;;  %v7288_v52 = vld [vmem:[%s10923_s1 + $0x284] ss:$8 sps:$4 sm:$0xff]  }
  0x69   :  { %5487 = vmatprep.subr.bf16.mxu0 %v7207_v53  ;;  %v7291_v53 = vld [vmem:[%s10923_s1 + $0xe84] ss:$8 sps:$4 sm:$0xff]  }
  0x6b   :  { %4996 = vmatpush1.bf16.msra.mxu1 %v7202_v54  ;;  %v7286_v54 = vld [vmem:[%s10923_s1 + $0x280] ss:$8 sps:$4 sm:$0xff]  }
  0x6c   :  { %5488 = vmatpush1.bf16.msra.mxu0 %v7205_v55  ;;  %4997 = vmatprep.subr.bf16.mxu1 %v7210_v56  ;;  %v7289_v55 = vld [vmem:[%s10923_s1 + $0xe80] ss:$8 sps:$4 sm:$0xff]   ;;  %v7294_v56 = vld [vmem:[%s10923_s1 + $0x294] ss:$8 sps:$4 sm:$0xff]  }
  0x6d   :  { %5489 = vmatprep.subr.bf16.mxu0 %v7213_v57  ;;  %v7297_v57 = vld [vmem:[%s10923_s1 + $0xe94] ss:$8 sps:$4 sm:$0xff]  }
  0x6f   :  { %4998 = vmatpush1.bf16.msra.mxu1 %v7208_v58  ;;  %v7292_v58 = vld [vmem:[%s10923_s1 + $0x290] ss:$8 sps:$4 sm:$0xff]  }
  0x70   :  { %5490 = vmatpush1.bf16.msra.mxu0 %v7211_v59  ;;  %4999 = vmatprep.subr.bf16.mxu1 %v7216_v60  ;;  %v7295_v59 = vld [vmem:[%s10923_s1 + $0xe90] ss:$8 sps:$4 sm:$0xff]   ;;  %v7300_v60 = vld [vmem:[%s10923_s1 + $0x2a4] ss:$8 sps:$4 sm:$0xff]  }
  0x71   :  { %5491 = vmatprep.subr.bf16.mxu0 %v7219_v61  ;;  %v7303_v61 = vld [vmem:[%s10923_s1 + $0xea4] ss:$8 sps:$4 sm:$0xff]  }
  0x73   :  { %5000 = vmatpush1.bf16.msra.mxu1 %v7214_v62  ;;  %v7298_v62 = vld [vmem:[%s10923_s1 + $0x2a0] ss:$8 sps:$4 sm:$0xff]  }
  0x74   :  { %5492 = vmatpush1.bf16.msra.mxu0 %v7217_v63  ;;  %5001 = vmatprep.subr.bf16.mxu1 %v7222_v0  ;;  %v7301_v63 = vld [vmem:[%s10923_s1 + $0xea0] ss:$8 sps:$4 sm:$0xff]   ;;  %v7306_v0 = vld [vmem:[%s10923_s1 + $0x2b4] ss:$8 sps:$4 sm:$0xff]  }
  0x75   :  { %5493 = vmatprep.subr.bf16.mxu0 %v7225_v1  ;;  %v7309_v1 = vld [vmem:[%s10923_s1 + $0xeb4] ss:$8 sps:$4 sm:$0xff]  }
  0x77   :  { %5002 = vmatpush1.bf16.msra.mxu1 %v7220_v2  ;;  %v7304_v2 = vld [vmem:[%s10923_s1 + $0x2b0] ss:$8 sps:$4 sm:$0xff]  }
  0x78   :  { %5494 = vmatpush1.bf16.msra.mxu0 %v7223_v3  ;;  %5003 = vmatprep.subr.bf16.mxu1 %v7228_v4  ;;  %v7307_v3 = vld [vmem:[%s10923_s1 + $0xeb0] ss:$8 sps:$4 sm:$0xff]   ;;  %v7312_v4 = vld [vmem:[%s10923_s1 + $0x2c4] ss:$8 sps:$4 sm:$0xff]  }
  0x79   :  { %5495 = vmatprep.subr.bf16.mxu0 %v7231_v5  ;;  %v7315_v5 = vld [vmem:[%s10923_s1 + $0xec4] ss:$8 sps:$4 sm:$0xff]  }
  0x7b   :  { %5004 = vmatpush1.bf16.msra.mxu1 %v7226_v6  ;;  %v7310_v6 = vld [vmem:[%s10923_s1 + $0x2c0] ss:$8 sps:$4 sm:$0xff]  }
  0x7c   :  { %5496 = vmatpush1.bf16.msra.mxu0 %v7229_v7  ;;  %5005 = vmatprep.subr.bf16.mxu1 %v7234_v8  ;;  %v7313_v7 = vld [vmem:[%s10923_s1 + $0xec0] ss:$8 sps:$4 sm:$0xff]   ;;  %v7318_v8 = vld [vmem:[%s10923_s1 + $0x2d4] ss:$8 sps:$4 sm:$0xff]  }
  0x7d   :  { %5497 = vmatprep.subr.bf16.mxu0 %v7237_v9  ;;  %v7321_v9 = vld [vmem:[%s10923_s1 + $0xed4] ss:$8 sps:$4 sm:$0xff]  }
  0x7f   :  { %5006 = vmatpush1.bf16.msra.mxu1 %v7232_v10  ;;  %v7316_v10 = vld [vmem:[%s10923_s1 + $0x2d0] ss:$8 sps:$4 sm:$0xff]  }
  0x80   :  { %5498 = vmatpush1.bf16.msra.mxu0 %v7235_v11  ;;  %5016 = vmatprep.subr.bf16.mxu1 %v7240_v12  ;;  %v7319_v11 = vld [vmem:[%s10923_s1 + $0xed0] ss:$8 sps:$4 sm:$0xff]   ;;  %v7324_v12 = vld [vmem:[%s10923_s1 + $0x2e4] ss:$8 sps:$4 sm:$0xff]  }
  0x81   :  { %5508 = vmatprep.subr.bf16.mxu0 %v7243_v15  ;;  %v7325_v15 = vld [vmem:[%s10923_s1 + $0xee0] ss:$8 sps:$4 sm:$0xff]  }
  0x82   :  { %5008 = vmatmul.mubr.bf16.vlgmr.msra.gmra.mrb[0].mxu1 %v74_v18  ;;  %v7328_v18 = vld [vmem:[%s10923_s1 + $0x2f0] ss:$8 sps:$4 sm:$0xff]  }
  0x83   :  { %5500 = vmatmul.mubr.bf16.vlgmr.msra.gmra.mrb[0].mxu0 %v98_v19  ;;  %5017 = vmatpush1.bf16.msra.mxu1 %v7238_v16  ;;  %v7330_v16 = vld [vmem:[%s10923_s1 + $0x2f4] ss:$8 sps:$4 sm:$0xff]   ;;  %v7331_v19 = vld [vmem:[%s10923_s1 + $0xef0] ss:$8 sps:$4 sm:$0xff]  }
  0x84   :  { %5509 = vmatpush1.bf16.msra.mxu0 %v7241_v17  ;;  %5018 = vmatprep.subr.bf16.mxu1 %v7246_v20  ;;  %v7333_v17 = vld [vmem:[%s10923_s1 + $0xef4] ss:$8 sps:$4 sm:$0xff]   ;;  %v7336_v20 = vld [vmem:[%s10923_s1 + $0x304] ss:$8 sps:$4 sm:$0xff]  }
  0x85   :  { %5510 = vmatprep.subr.bf16.mxu0 %v7249_v21  ;;  %5048 = vmatprep.mubr.bf16.mxu1 %v77_v24  ;;  %v26_v21 = vld [vmem:[%s10922_s0 + $0x20] sm:$0xff] }
  0x86   :  { %5540 = vmatprep.mubr.bf16.mxu0 %v101_v29  ;;  %v7334_v24 = vld [vmem:[%s10923_s1 + $0x300] ss:$8 sps:$4 sm:$0xff]   ;;  %v76_v26 = vpack.c.bf16 %v26_v21, %v26_v21  ;;  %v53_v29 = vld [vmem:[%s10922_s0 + $0xf8] sm:$0xff]  ;;  %v7423_v21 = vld [vmem:[%s10923_s1 + $0xfe4] ss:$8 sps:$4 sm:$0xff]  }
  0x87   :  { %5019 = vmatpush1.bf16.msra.mxu1 %v7244_v23  ;;  %v7339_v23 = vld [vmem:[%s10923_s1 + $0xf04] ss:$8 sps:$4 sm:$0xff]  }
  0x88   :  { %5511 = vmatpush1.bf16.msra.mxu0 %v7247_v25  ;;  %5020 = vmatprep.subr.bf16.mxu1 %v7252_v27  ;;  %v7337_v25 = vld [vmem:[%s10923_s1 + $0xf00] ss:$8 sps:$4 sm:$0xff]   ;;  %v100_v27 = vpack.c.bf16 %v50_v22, %v50_v22 }
  0x89   :  { %5512 = vmatprep.subr.bf16.mxu0 %v7255_v28  ;;  %v29_v28 = vld [vmem:[%s10922_s0 + $0x38] sm:$0xff]  ;;  %v7418_v22 = vld [vmem:[%s10923_s1 + $0x3e0] ss:$8 sps:$4 sm:$0xff]  }
  0x8b   :  { %5021 = vmatpush1.bf16.msra.mxu1 %v7250_v30  ;;  %v7342_v30 = vld [vmem:[%s10923_s1 + $0x314] ss:$8 sps:$4 sm:$0xff]  }
  0x8c   :  { %5513 = vmatpush1.bf16.msra.mxu0 %v7253_v31  ;;  %5022 = vmatprep.subr.bf16.mxu1 %v7258_v32  ;;  %v7345_v31 = vld [vmem:[%s10923_s1 + $0xf14] ss:$8 sps:$4 sm:$0xff]   ;;  %v79_v32 = vpack.c.bf16 %v29_v28, %v29_v28  ;;  %v7432_v28 = vld [vmem:[%s10923_s1 + $0x404] ss:$8 sps:$4 sm:$0xff]  }
  0x8d   :  { %5514 = vmatprep.subr.bf16.mxu0 %v7261_v33  ;;  %v103_v33 = vpack.c.bf16 %v53_v29, %v53_v29  ;;  %v28_v29 = vld [vmem:[%s10922_s0 + $0x30] sm:$0xff] }
  0x8f   :  { %5023 = vmatpush1.bf16.msra.mxu1 %v7256_v34  ;;  %v7340_v34 = vld [vmem:[%s10923_s1 + $0x310] ss:$8 sps:$4 sm:$0xff]  }
  0x90   :  { %5515 = vmatpush1.bf16.msra.mxu0 %v7259_v35  ;;  %5024 = vmatprep.subr.bf16.mxu1 %v7264_v36  ;;  %v7343_v35 = vld [vmem:[%s10923_s1 + $0xf10] ss:$8 sps:$4 sm:$0xff]   ;;  %v7348_v36 = vld [vmem:[%s10923_s1 + $0x324] ss:$8 sps:$4 sm:$0xff]  }
  0x91   :  { %5516 = vmatprep.subr.bf16.mxu0 %v7267_v37  ;;  %v7351_v37 = vld [vmem:[%s10923_s1 + $0xf24] ss:$8 sps:$4 sm:$0xff]  }
  0x93   :  { %5025 = vmatpush1.bf16.msra.mxu1 %v7262_v38  ;;  %v7346_v38 = vld [vmem:[%s10923_s1 + $0x320] ss:$8 sps:$4 sm:$0xff]  }
  0x94   :  { %5517 = vmatpush1.bf16.msra.mxu0 %v7265_v39  ;;  %5026 = vmatprep.subr.bf16.mxu1 %v7270_v40  ;;  %v7349_v39 = vld [vmem:[%s10923_s1 + $0xf20] ss:$8 sps:$4 sm:$0xff]   ;;  %v7354_v40 = vld [vmem:[%s10923_s1 + $0x334] ss:$8 sps:$4 sm:$0xff]  }
  0x95   :  { %5518 = vmatprep.subr.bf16.mxu0 %v7273_v41  ;;  %v7357_v41 = vld [vmem:[%s10923_s1 + $0xf34] ss:$8 sps:$4 sm:$0xff]  }
  0x97   :  { %5027 = vmatpush1.bf16.msra.mxu1 %v7268_v42  ;;  %v7352_v42 = vld [vmem:[%s10923_s1 + $0x330] ss:$8 sps:$4 sm:$0xff]  }
  0x98   :  { %5519 = vmatpush1.bf16.msra.mxu0 %v7271_v43  ;;  %5028 = vmatprep.subr.bf16.mxu1 %v7276_v44  ;;  %v7355_v43 = vld [vmem:[%s10923_s1 + $0xf30] ss:$8 sps:$4 sm:$0xff]   ;;  %v7360_v44 = vld [vmem:[%s10923_s1 + $0x344] ss:$8 sps:$4 sm:$0xff]  }
  0x99   :  { %5520 = vmatprep.subr.bf16.mxu0 %v7279_v45  ;;  %v7363_v45 = vld [vmem:[%s10923_s1 + $0xf44] ss:$8 sps:$4 sm:$0xff]  }
  0x9b   :  { %5029 = vmatpush1.bf16.msra.mxu1 %v7274_v46  ;;  %v7358_v46 = vld [vmem:[%s10923_s1 + $0x340] ss:$8 sps:$4 sm:$0xff]  }
  0x9c   :  { %5521 = vmatpush1.bf16.msra.mxu0 %v7277_v47  ;;  %5030 = vmatprep.subr.bf16.mxu1 %v7282_v48  ;;  %v7361_v47 = vld [vmem:[%s10923_s1 + $0xf40] ss:$8 sps:$4 sm:$0xff]   ;;  %v7366_v48 = vld [vmem:[%s10923_s1 + $0x354] ss:$8 sps:$4 sm:$0xff]  }
  0x9d   :  { %5522 = vmatprep.subr.bf16.mxu0 %v7285_v49  ;;  %v7369_v49 = vld [vmem:[%s10923_s1 + $0xf54] ss:$8 sps:$4 sm:$0xff]  }
  0x9f   :  { %5031 = vmatpush1.bf16.msra.mxu1 %v7280_v50  ;;  %v7364_v50 = vld [vmem:[%s10923_s1 + $0x350] ss:$8 sps:$4 sm:$0xff]  }
  0xa0   :  { %5523 = vmatpush1.bf16.msra.mxu0 %v7283_v51  ;;  %5032 = vmatprep.subr.bf16.mxu1 %v7288_v52  ;;  %v7367_v51 = vld [vmem:[%s10923_s1 + $0xf50] ss:$8 sps:$4 sm:$0xff]   ;;  %v7372_v52 = vld [vmem:[%s10923_s1 + $0x364] ss:$8 sps:$4 sm:$0xff]  }
  0xa1   :  { %5524 = vmatprep.subr.bf16.mxu0 %v7291_v53  ;;  %v7375_v53 = vld [vmem:[%s10923_s1 + $0xf64] ss:$8 sps:$4 sm:$0xff]  }
  0xa3   :  { %5033 = vmatpush1.bf16.msra.mxu1 %v7286_v54  ;;  %v7370_v54 = vld [vmem:[%s10923_s1 + $0x360] ss:$8 sps:$4 sm:$0xff]  }
  0xa4   :  { %5525 = vmatpush1.bf16.msra.mxu0 %v7289_v55  ;;  %5034 = vmatprep.subr.bf16.mxu1 %v7294_v56  ;;  %v7373_v55 = vld [vmem:[%s10923_s1 + $0xf60] ss:$8 sps:$4 sm:$0xff]   ;;  %v7378_v56 = vld [vmem:[%s10923_s1 + $0x374] ss:$8 sps:$4 sm:$0xff]  }
  0xa5   :  { %5526 = vmatprep.subr.bf16.mxu0 %v7297_v57  ;;  %v7381_v57 = vld [vmem:[%s10923_s1 + $0xf74] ss:$8 sps:$4 sm:$0xff]  }
  0xa7   :  { %5035 = vmatpush1.bf16.msra.mxu1 %v7292_v58  ;;  %v7376_v58 = vld [vmem:[%s10923_s1 + $0x370] ss:$8 sps:$4 sm:$0xff]  }
  0xa8   :  { %5527 = vmatpush1.bf16.msra.mxu0 %v7295_v59  ;;  %5036 = vmatprep.subr.bf16.mxu1 %v7300_v60  ;;  %v7379_v59 = vld [vmem:[%s10923_s1 + $0xf70] ss:$8 sps:$4 sm:$0xff]   ;;  %v7384_v60 = vld [vmem:[%s10923_s1 + $0x384] ss:$8 sps:$4 sm:$0xff]  }
  0xa9   :  { %5528 = vmatprep.subr.bf16.mxu0 %v7303_v61  ;;  %v7387_v61 = vld [vmem:[%s10923_s1 + $0xf84] ss:$8 sps:$4 sm:$0xff]  }
  0xab   :  { %5037 = vmatpush1.bf16.msra.mxu1 %v7298_v62  ;;  %v7382_v62 = vld [vmem:[%s10923_s1 + $0x380] ss:$8 sps:$4 sm:$0xff]  }
  0xac   :  { %5529 = vmatpush1.bf16.msra.mxu0 %v7301_v63  ;;  %5038 = vmatprep.subr.bf16.mxu1 %v7306_v0  ;;  %v7385_v63 = vld [vmem:[%s10923_s1 + $0xf80] ss:$8 sps:$4 sm:$0xff]   ;;  %v7390_v0 = vld [vmem:[%s10923_s1 + $0x394] ss:$8 sps:$4 sm:$0xff]  }
  0xad   :  { %5530 = vmatprep.subr.bf16.mxu0 %v7309_v1  ;;  %v7393_v1 = vld [vmem:[%s10923_s1 + $0xf94] ss:$8 sps:$4 sm:$0xff]  }
  0xaf   :  { %5039 = vmatpush1.bf16.msra.mxu1 %v7304_v2  ;;  %v7388_v2 = vld [vmem:[%s10923_s1 + $0x390] ss:$8 sps:$4 sm:$0xff]  }
  0xb0   :  { %5531 = vmatpush1.bf16.msra.mxu0 %v7307_v3  ;;  %5040 = vmatprep.subr.bf16.mxu1 %v7312_v4  ;;  %v7391_v3 = vld [vmem:[%s10923_s1 + $0xf90] ss:$8 sps:$4 sm:$0xff]   ;;  %v7396_v4 = vld [vmem:[%s10923_s1 + $0x3a4] ss:$8 sps:$4 sm:$0xff]  }
  0xb1   :  { %5532 = vmatprep.subr.bf16.mxu0 %v7315_v5  ;;  %v7399_v5 = vld [vmem:[%s10923_s1 + $0xfa4] ss:$8 sps:$4 sm:$0xff]  }
  0xb3   :  { %5041 = vmatpush1.bf16.msra.mxu1 %v7310_v6  ;;  %v7394_v6 = vld [vmem:[%s10923_s1 + $0x3a0] ss:$8 sps:$4 sm:$0xff]  }
  0xb4   :  { %5533 = vmatpush1.bf16.msra.mxu0 %v7313_v7  ;;  %5042 = vmatprep.subr.bf16.mxu1 %v7318_v8  ;;  %v7397_v7 = vld [vmem:[%s10923_s1 + $0xfa0] ss:$8 sps:$4 sm:$0xff]   ;;  %v7402_v8 = vld [vmem:[%s10923_s1 + $0x3b4] ss:$8 sps:$4 sm:$0xff]  }
  0xb5   :  { %5534 = vmatprep.subr.bf16.mxu0 %v7321_v9  ;;  %v7405_v9 = vld [vmem:[%s10923_s1 + $0xfb4] ss:$8 sps:$4 sm:$0xff]  }
  0xb7   :  { %5043 = vmatpush1.bf16.msra.mxu1 %v7316_v10  ;;  %v7400_v10 = vld [vmem:[%s10923_s1 + $0x3b0] ss:$8 sps:$4 sm:$0xff]  }
  0xb8   :  { %5535 = vmatpush1.bf16.msra.mxu0 %v7319_v11  ;;  %5044 = vmatprep.subr.bf16.mxu1 %v7324_v12  ;;  %v7403_v11 = vld [vmem:[%s10923_s1 + $0xfb0] ss:$8 sps:$4 sm:$0xff]   ;;  %v7408_v12 = vld [vmem:[%s10923_s1 + $0x3c4] ss:$8 sps:$4 sm:$0xff]  }
  0xb9   :  { %5536 = vmatprep.subr.bf16.mxu0 %v7327_v13  ;;  %v7411_v13 = vld [vmem:[%s10923_s1 + $0xfc4] ss:$8 sps:$4 sm:$0xff]  }
  0xbb   :  { %5045 = vmatpush1.bf16.msra.mxu1 %v7322_v14  ;;  %v7406_v14 = vld [vmem:[%s10923_s1 + $0x3c0] ss:$8 sps:$4 sm:$0xff]  }
  0xbc   :  { %5537 = vmatpush1.bf16.msra.mxu0 %v7325_v15  ;;  %5046 = vmatprep.subr.bf16.mxu1 %v7330_v16  ;;  %v7409_v15 = vld [vmem:[%s10923_s1 + $0xfc0] ss:$8 sps:$4 sm:$0xff]   ;;  %v7414_v16 = vld [vmem:[%s10923_s1 + $0x3d4] ss:$8 sps:$4 sm:$0xff]  }
  0xbd   :  { %5538 = vmatprep.subr.bf16.mxu0 %v7333_v17  ;;  %v7417_v17 = vld [vmem:[%s10923_s1 + $0xfd4] ss:$8 sps:$4 sm:$0xff]  }
  0xbf   :  { %5047 = vmatpush1.bf16.msra.mxu1 %v7328_v18  ;;  %v7412_v18 = vld [vmem:[%s10923_s1 + $0x3d0] ss:$8 sps:$4 sm:$0xff]  }
  0xc0   :  { %5539 = vmatpush1.bf16.msra.mxu0 %v7331_v19  ;;  %5057 = vmatprep.subr.bf16.mxu1 %v7336_v20  ;;  %v7415_v19 = vld [vmem:[%s10923_s1 + $0xfd0] ss:$8 sps:$4 sm:$0xff]   ;;  %v7420_v20 = vld [vmem:[%s10923_s1 + $0x3e4] ss:$8 sps:$4 sm:$0xff]  }
  0xc1   :  { %5549 = vmatprep.subr.bf16.mxu0 %v7339_v23  ;;  %v7421_v23 = vld [vmem:[%s10923_s1 + $0xfe0] ss:$8 sps:$4 sm:$0xff]  }
  0xc2   :  { %5049 = vmatmul.mubr.bf16.vlgmr.msra.gmra.mrb[0].mxu1 %v76_v26  ;;  %v7424_v26 = vld [vmem:[%s10923_s1 + $0x3f0] ss:$8 sps:$4 sm:$0xff]  }
  0xc3   :  { %5541 = vmatmul.mubr.bf16.vlgmr.msra.gmra.mrb[0].mxu0 %v100_v27  ;;  %5058 = vmatpush1.bf16.msra.mxu1 %v7334_v24  ;;  %v7426_v24 = vld [vmem:[%s10923_s1 + $0x3f4] ss:$8 sps:$4 sm:$0xff]   ;;  %v7427_v27 = vld [vmem:[%s10923_s1 + $0xff0] ss:$8 sps:$4 sm:$0xff]  }
  0xc4   :  { %5550 = vmatpush1.bf16.msra.mxu0 %v7337_v25  ;;  %5059 = vmatprep.subr.bf16.mxu1 %v7342_v30  ;;  %v7429_v25 = vld [vmem:[%s10923_s1 + $0xff4] ss:$8 sps:$4 sm:$0xff]  }
  0xc5   :  { %5551 = vmatprep.subr.bf16.mxu0 %v7345_v31  ;;  %5089 = vmatprep.mubr.bf16.mxu1 %v79_v32  ;;  %v52_v30 = vld [vmem:[%s10922_s0 + $0xf0] sm:$0xff]  ;;  %v7435_v31 = vld [vmem:[%s10923_s1 + $0x1004] ss:$8 sps:$4 sm:$0xff]   ;;  %v7430_v32 = vld [vmem:[%s10923_s1 + $0x400] ss:$8 sps:$4 sm:$0xff]  }
  0xc6   :  { %5581 = vmatprep.mubr.bf16.mxu0 %v103_v33  ;;  %v7433_v33 = vld [vmem:[%s10923_s1 + $0x1000] ss:$8 sps:$4 sm:$0xff]  }
  0xc7   :  { %5060 = vmatpush1.bf16.msra.mxu1 %v7340_v34  ;;  %v78_v34 = vpack.c.bf16 %v28_v29, %v28_v29  ;;  %v7519_v29 = vld [vmem:[%s10923_s1 + $0x10e4] ss:$8 sps:$4 sm:$0xff]  }
  0xc8   :  { %5552 = vmatpush1.bf16.msra.mxu0 %v7343_v35  ;;  %5061 = vmatprep.subr.bf16.mxu1 %v7348_v36  ;;  %v102_v35 = vpack.c.bf16 %v52_v30, %v52_v30  ;;  %v31_v36 = vld [vmem:[%s10922_s0 + $0x48] sm:$0xff] }
  0xc9   :  { %5553 = vmatprep.subr.bf16.mxu0 %v7351_v37  ;;  %v55_v37 = vld [vmem:[%s10922_s0 + $0x108] sm:$0xff] }
  0xca   :  { %v7514_v30 = vld [vmem:[%s10923_s1 + $0x4e0] ss:$8 sps:$4 sm:$0xff]  }
  0xcb   :  { %5062 = vmatpush1.bf16.msra.mxu1 %v7346_v38  ;;  %v7438_v38 = vld [vmem:[%s10923_s1 + $0x414] ss:$8 sps:$4 sm:$0xff]  }
  0xcc   :  { %5554 = vmatpush1.bf16.msra.mxu0 %v7349_v39  ;;  %5063 = vmatprep.subr.bf16.mxu1 %v7354_v40  ;;  %v7441_v39 = vld [vmem:[%s10923_s1 + $0x1014] ss:$8 sps:$4 sm:$0xff]   ;;  %v81_v40 = vpack.c.bf16 %v31_v36, %v31_v36  ;;  %v7528_v36 = vld [vmem:[%s10923_s1 + $0x504] ss:$8 sps:$4 sm:$0xff]  }
  0xcd   :  { %5555 = vmatprep.subr.bf16.mxu0 %v7357_v41  ;;  %v105_v41 = vpack.c.bf16 %v55_v37, %v55_v37  ;;  %v7531_v37 = vld [vmem:[%s10923_s1 + $0x1104] ss:$8 sps:$4 sm:$0xff]  }
  0xcf   :  { %5064 = vmatpush1.bf16.msra.mxu1 %v7352_v42  ;;  %v7436_v42 = vld [vmem:[%s10923_s1 + $0x410] ss:$8 sps:$4 sm:$0xff]  }
  0xd0   :  { %5556 = vmatpush1.bf16.msra.mxu0 %v7355_v43  ;;  %5065 = vmatprep.subr.bf16.mxu1 %v7360_v44  ;;  %v7439_v43 = vld [vmem:[%s10923_s1 + $0x1010] ss:$8 sps:$4 sm:$0xff]   ;;  %v7444_v44 = vld [vmem:[%s10923_s1 + $0x424] ss:$8 sps:$4 sm:$0xff]  }
  0xd1   :  { %5557 = vmatprep.subr.bf16.mxu0 %v7363_v45  ;;  %v7447_v45 = vld [vmem:[%s10923_s1 + $0x1024] ss:$8 sps:$4 sm:$0xff]  }
  0xd3   :  { %5066 = vmatpush1.bf16.msra.mxu1 %v7358_v46  ;;  %v7442_v46 = vld [vmem:[%s10923_s1 + $0x420] ss:$8 sps:$4 sm:$0xff]  }
  0xd4   :  { %5558 = vmatpush1.bf16.msra.mxu0 %v7361_v47  ;;  %5067 = vmatprep.subr.bf16.mxu1 %v7366_v48  ;;  %v7445_v47 = vld [vmem:[%s10923_s1 + $0x1020] ss:$8 sps:$4 sm:$0xff]   ;;  %v7450_v48 = vld [vmem:[%s10923_s1 + $0x434] ss:$8 sps:$4 sm:$0xff]  }
  0xd5   :  { %5559 = vmatprep.subr.bf16.mxu0 %v7369_v49  ;;  %v7453_v49 = vld [vmem:[%s10923_s1 + $0x1034] ss:$8 sps:$4 sm:$0xff]  }
  0xd7   :  { %5068 = vmatpush1.bf16.msra.mxu1 %v7364_v50  ;;  %v7448_v50 = vld [vmem:[%s10923_s1 + $0x430] ss:$8 sps:$4 sm:$0xff]  }
  0xd8   :  { %5560 = vmatpush1.bf16.msra.mxu0 %v7367_v51  ;;  %5069 = vmatprep.subr.bf16.mxu1 %v7372_v52  ;;  %v7451_v51 = vld [vmem:[%s10923_s1 + $0x1030] ss:$8 sps:$4 sm:$0xff]   ;;  %v7456_v52 = vld [vmem:[%s10923_s1 + $0x444] ss:$8 sps:$4 sm:$0xff]  }
  0xd9   :  { %5561 = vmatprep.subr.bf16.mxu0 %v7375_v53  ;;  %v7459_v53 = vld [vmem:[%s10923_s1 + $0x1044] ss:$8 sps:$4 sm:$0xff]  }
  0xdb   :  { %5070 = vmatpush1.bf16.msra.mxu1 %v7370_v54  ;;  %v7454_v54 = vld [vmem:[%s10923_s1 + $0x440] ss:$8 sps:$4 sm:$0xff]  }
  0xdc   :  { %5562 = vmatpush1.bf16.msra.mxu0 %v7373_v55  ;;  %5071 = vmatprep.subr.bf16.mxu1 %v7378_v56  ;;  %v7457_v55 = vld [vmem:[%s10923_s1 + $0x1040] ss:$8 sps:$4 sm:$0xff]   ;;  %v7462_v56 = vld [vmem:[%s10923_s1 + $0x454] ss:$8 sps:$4 sm:$0xff]  }
  0xdd   :  { %5563 = vmatprep.subr.bf16.mxu0 %v7381_v57  ;;  %v7465_v57 = vld [vmem:[%s10923_s1 + $0x1054] ss:$8 sps:$4 sm:$0xff]  }
  0xdf   :  { %5072 = vmatpush1.bf16.msra.mxu1 %v7376_v58  ;;  %v7460_v58 = vld [vmem:[%s10923_s1 + $0x450] ss:$8 sps:$4 sm:$0xff]  }
  0xe0   :  { %5564 = vmatpush1.bf16.msra.mxu0 %v7379_v59  ;;  %5073 = vmatprep.subr.bf16.mxu1 %v7384_v60  ;;  %v7463_v59 = vld [vmem:[%s10923_s1 + $0x1050] ss:$8 sps:$4 sm:$0xff]   ;;  %v7468_v60 = vld [vmem:[%s10923_s1 + $0x464] ss:$8 sps:$4 sm:$0xff]  }
  0xe1   :  { %5565 = vmatprep.subr.bf16.mxu0 %v7387_v61  ;;  %v7471_v61 = vld [vmem:[%s10923_s1 + $0x1064] ss:$8 sps:$4 sm:$0xff]  }
  0xe3   :  { %5074 = vmatpush1.bf16.msra.mxu1 %v7382_v62  ;;  %v7466_v62 = vld [vmem:[%s10923_s1 + $0x460] ss:$8 sps:$4 sm:$0xff]  }
  0xe4   :  { %5566 = vmatpush1.bf16.msra.mxu0 %v7385_v63  ;;  %5075 = vmatprep.subr.bf16.mxu1 %v7390_v0  ;;  %v7469_v63 = vld [vmem:[%s10923_s1 + $0x1060] ss:$8 sps:$4 sm:$0xff]   ;;  %v7474_v0 = vld [vmem:[%s10923_s1 + $0x474] ss:$8 sps:$4 sm:$0xff]  }
  0xe5   :  { %5567 = vmatprep.subr.bf16.mxu0 %v7393_v1  ;;  %v7477_v1 = vld [vmem:[%s10923_s1 + $0x1074] ss:$8 sps:$4 sm:$0xff]  }
  0xe7   :  { %5076 = vmatpush1.bf16.msra.mxu1 %v7388_v2  ;;  %v7472_v2 = vld [vmem:[%s10923_s1 + $0x470] ss:$8 sps:$4 sm:$0xff]  }
  0xe8   :  { %5568 = vmatpush1.bf16.msra.mxu0 %v7391_v3  ;;  %5077 = vmatprep.subr.bf16.mxu1 %v7396_v4  ;;  %v7475_v3 = vld [vmem:[%s10923_s1 + $0x1070] ss:$8 sps:$4 sm:$0xff]   ;;  %v7480_v4 = vld [vmem:[%s10923_s1 + $0x484] ss:$8 sps:$4 sm:$0xff]  }
  0xe9   :  { %5569 = vmatprep.subr.bf16.mxu0 %v7399_v5  ;;  %v7483_v5 = vld [vmem:[%s10923_s1 + $0x1084] ss:$8 sps:$4 sm:$0xff]  }
  0xeb   :  { %5078 = vmatpush1.bf16.msra.mxu1 %v7394_v6  ;;  %v7478_v6 = vld [vmem:[%s10923_s1 + $0x480] ss:$8 sps:$4 sm:$0xff]  }
  0xec   :  { %5570 = vmatpush1.bf16.msra.mxu0 %v7397_v7  ;;  %5079 = vmatprep.subr.bf16.mxu1 %v7402_v8  ;;  %v7481_v7 = vld [vmem:[%s10923_s1 + $0x1080] ss:$8 sps:$4 sm:$0xff]   ;;  %v7486_v8 = vld [vmem:[%s10923_s1 + $0x494] ss:$8 sps:$4 sm:$0xff]  }
  0xed   :  { %5571 = vmatprep.subr.bf16.mxu0 %v7405_v9  ;;  %v7489_v9 = vld [vmem:[%s10923_s1 + $0x1094] ss:$8 sps:$4 sm:$0xff]  }
  0xef   :  { %5080 = vmatpush1.bf16.msra.mxu1 %v7400_v10  ;;  %v7484_v10 = vld [vmem:[%s10923_s1 + $0x490] ss:$8 sps:$4 sm:$0xff]  }
  0xf0   :  { %5572 = vmatpush1.bf16.msra.mxu0 %v7403_v11  ;;  %5081 = vmatprep.subr.bf16.mxu1 %v7408_v12  ;;  %v7487_v11 = vld [vmem:[%s10923_s1 + $0x1090] ss:$8 sps:$4 sm:$0xff]   ;;  %v7492_v12 = vld [vmem:[%s10923_s1 + $0x4a4] ss:$8 sps:$4 sm:$0xff]  }
  0xf1   :  { %5573 = vmatprep.subr.bf16.mxu0 %v7411_v13  ;;  %v7495_v13 = vld [vmem:[%s10923_s1 + $0x10a4] ss:$8 sps:$4 sm:$0xff]  }
  0xf3   :  { %5082 = vmatpush1.bf16.msra.mxu1 %v7406_v14  ;;  %v7490_v14 = vld [vmem:[%s10923_s1 + $0x4a0] ss:$8 sps:$4 sm:$0xff]  }
  0xf4   :  { %5574 = vmatpush1.bf16.msra.mxu0 %v7409_v15  ;;  %5083 = vmatprep.subr.bf16.mxu1 %v7414_v16  ;;  %v7493_v15 = vld [vmem:[%s10923_s1 + $0x10a0] ss:$8 sps:$4 sm:$0xff]   ;;  %v7498_v16 = vld [vmem:[%s10923_s1 + $0x4b4] ss:$8 sps:$4 sm:$0xff]  }
  0xf5   :  { %5575 = vmatprep.subr.bf16.mxu0 %v7417_v17  ;;  %v7501_v17 = vld [vmem:[%s10923_s1 + $0x10b4] ss:$8 sps:$4 sm:$0xff]  }
  0xf7   :  { %5084 = vmatpush1.bf16.msra.mxu1 %v7412_v18  ;;  %v7496_v18 = vld [vmem:[%s10923_s1 + $0x4b0] ss:$8 sps:$4 sm:$0xff]  }
  0xf8   :  { %5576 = vmatpush1.bf16.msra.mxu0 %v7415_v19  ;;  %5085 = vmatprep.subr.bf16.mxu1 %v7420_v20  ;;  %v7499_v19 = vld [vmem:[%s10923_s1 + $0x10b0] ss:$8 sps:$4 sm:$0xff]   ;;  %v7504_v20 = vld [vmem:[%s10923_s1 + $0x4c4] ss:$8 sps:$4 sm:$0xff]  }
  0xf9   :  { %5577 = vmatprep.subr.bf16.mxu0 %v7423_v21  ;;  %v7507_v21 = vld [vmem:[%s10923_s1 + $0x10c4] ss:$8 sps:$4 sm:$0xff]  }
  0xfb   :  { %5086 = vmatpush1.bf16.msra.mxu1 %v7418_v22  ;;  %v7502_v22 = vld [vmem:[%s10923_s1 + $0x4c0] ss:$8 sps:$4 sm:$0xff]  }
  0xfc   :  { %5578 = vmatpush1.bf16.msra.mxu0 %v7421_v23  ;;  %5087 = vmatprep.subr.bf16.mxu1 %v7426_v24  ;;  %v7505_v23 = vld [vmem:[%s10923_s1 + $0x10c0] ss:$8 sps:$4 sm:$0xff]   ;;  %v7510_v24 = vld [vmem:[%s10923_s1 + $0x4d4] ss:$8 sps:$4 sm:$0xff]  }
  0xfd   :  { %5579 = vmatprep.subr.bf16.mxu0 %v7429_v25  ;;  %v7513_v25 = vld [vmem:[%s10923_s1 + $0x10d4] ss:$8 sps:$4 sm:$0xff]  }
  0xff   :  { %5088 = vmatpush1.bf16.msra.mxu1 %v7424_v26  ;;  %v7508_v26 = vld [vmem:[%s10923_s1 + $0x4d0] ss:$8 sps:$4 sm:$0xff]  }
 0x100   :  { %5580 = vmatpush1.bf16.msra.mxu0 %v7427_v27  ;;  %5098 = vmatprep.subr.bf16.mxu1 %v7432_v28  ;;  %v7511_v27 = vld [vmem:[%s10923_s1 + $0x10d0] ss:$8 sps:$4 sm:$0xff]   ;;  %v7516_v28 = vld [vmem:[%s10923_s1 + $0x4e4] ss:$8 sps:$4 sm:$0xff]  }
 0x101   :  { %5590 = vmatprep.subr.bf16.mxu0 %v7435_v31  ;;  %v7517_v31 = vld [vmem:[%s10923_s1 + $0x10e0] ss:$8 sps:$4 sm:$0xff]  }
 0x102   :  { %5090 = vmatmul.mubr.bf16.vlgmr.msra.gmra.mrb[0].mxu1 %v78_v34  ;;  %v7520_v34 = vld [vmem:[%s10923_s1 + $0x4f0] ss:$8 sps:$4 sm:$0xff]  }
 0x103   :  { %5582 = vmatmul.mubr.bf16.vlgmr.msra.gmra.mrb[0].mxu0 %v102_v35  ;;  %5099 = vmatpush1.bf16.msra.mxu1 %v7430_v32  ;;  %v7522_v32 = vld [vmem:[%s10923_s1 + $0x4f4] ss:$8 sps:$4 sm:$0xff]   ;;  %v7523_v35 = vld [vmem:[%s10923_s1 + $0x10f0] ss:$8 sps:$4 sm:$0xff]  }
 0x104   :  { %5591 = vmatpush1.bf16.msra.mxu0 %v7433_v33  ;;  %5100 = vmatprep.subr.bf16.mxu1 %v7438_v38  ;;  %v7525_v33 = vld [vmem:[%s10923_s1 + $0x10f4] ss:$8 sps:$4 sm:$0xff]   ;;  %v30_v38 = vld [vmem:[%s10922_s0 + $0x40] sm:$0xff] }
 0x105   :  { %5592 = vmatprep.subr.bf16.mxu0 %v7441_v39  ;;  %5130 = vmatprep.mubr.bf16.mxu1 %v81_v40  ;;  %v54_v39 = vld [vmem:[%s10922_s0 + $0x100] sm:$0xff]  ;;  %v33_v40 = vld [vmem:[%s10922_s0 + $0x58] sm:$0xff] }
 0x106   :  { %5622 = vmatprep.mubr.bf16.mxu0 %v105_v41  ;;  %v57_v41 = vld [vmem:[%s10922_s0 + $0x118] sm:$0xff] }
 0x107   :  { %5101 = vmatpush1.bf16.msra.mxu1 %v7436_v42  ;;  %v80_v42 = vpack.c.bf16 %v30_v38, %v30_v38  ;;  %v7610_v38 = vld [vmem:[%s10923_s1 + $0x5e0] ss:$8 sps:$4 sm:$0xff]  }
 0x108   :  { %5593 = vmatpush1.bf16.msra.mxu0 %v7439_v43  ;;  %5102 = vmatprep.subr.bf16.mxu1 %v7444_v44  ;;  %v104_v43 = vpack.c.bf16 %v54_v39, %v54_v39  ;;  %v7526_v44 = vld [vmem:[%s10923_s1 + $0x500] ss:$8 sps:$4 sm:$0xff]  }
 0x109   :  { %5594 = vmatprep.subr.bf16.mxu0 %v7447_v45  ;;  %v7529_v45 = vld [vmem:[%s10923_s1 + $0x1100] ss:$8 sps:$4 sm:$0xff]  }
 0x10a   :  { %v7613_v39 = vld [vmem:[%s10923_s1 + $0x11e0] ss:$8 sps:$4 sm:$0xff]  }
 0x10b   :  { %5103 = vmatpush1.bf16.msra.mxu1 %v7442_v46  ;;  %v7534_v46 = vld [vmem:[%s10923_s1 + $0x514] ss:$8 sps:$4 sm:$0xff]  }
 0x10c   :  { %5595 = vmatpush1.bf16.msra.mxu0 %v7445_v47  ;;  %5104 = vmatprep.subr.bf16.mxu1 %v7450_v48  ;;  %v7537_v47 = vld [vmem:[%s10923_s1 + $0x1114] ss:$8 sps:$4 sm:$0xff]   ;;  %v83_v48 = vpack.c.bf16 %v33_v40, %v33_v40 }
 0x10d   :  { %5596 = vmatprep.subr.bf16.mxu0 %v7453_v49  ;;  %v107_v49 = vpack.c.bf16 %v57_v41, %v57_v41  ;;  %v7618_v40 = vld [vmem:[%s10923_s1 + $0x5f4] ss:$8 sps:$4 sm:$0xff]  }
 0x10e   :  { %v7621_v41 = vld [vmem:[%s10923_s1 + $0x11f4] ss:$8 sps:$4 sm:$0xff]  }
 0x10f   :  { %5105 = vmatpush1.bf16.msra.mxu1 %v7448_v50  ;;  %v7532_v50 = vld [vmem:[%s10923_s1 + $0x510] ss:$8 sps:$4 sm:$0xff]  }
 0x110   :  { %5597 = vmatpush1.bf16.msra.mxu0 %v7451_v51  ;;  %5106 = vmatprep.subr.bf16.mxu1 %v7456_v52  ;;  %v7535_v51 = vld [vmem:[%s10923_s1 + $0x1110] ss:$8 sps:$4 sm:$0xff]   ;;  %v7540_v52 = vld [vmem:[%s10923_s1 + $0x524] ss:$8 sps:$4 sm:$0xff]  }
 0x111   :  { %5598 = vmatprep.subr.bf16.mxu0 %v7459_v53  ;;  %v7543_v53 = vld [vmem:[%s10923_s1 + $0x1124] ss:$8 sps:$4 sm:$0xff]  }
 0x113   :  { %5107 = vmatpush1.bf16.msra.mxu1 %v7454_v54  ;;  %v7538_v54 = vld [vmem:[%s10923_s1 + $0x520] ss:$8 sps:$4 sm:$0xff]  }
 0x114   :  { %5599 = vmatpush1.bf16.msra.mxu0 %v7457_v55  ;;  %5108 = vmatprep.subr.bf16.mxu1 %v7462_v56  ;;  %v7541_v55 = vld [vmem:[%s10923_s1 + $0x1120] ss:$8 sps:$4 sm:$0xff]   ;;  %v7546_v56 = vld [vmem:[%s10923_s1 + $0x534] ss:$8 sps:$4 sm:$0xff]  }
 0x115   :  { %5600 = vmatprep.subr.bf16.mxu0 %v7465_v57  ;;  %v7549_v57 = vld [vmem:[%s10923_s1 + $0x1134] ss:$8 sps:$4 sm:$0xff]  }
 0x117   :  { %5109 = vmatpush1.bf16.msra.mxu1 %v7460_v58  ;;  %v7544_v58 = vld [vmem:[%s10923_s1 + $0x530] ss:$8 sps:$4 sm:$0xff]  }
 0x118   :  { %5601 = vmatpush1.bf16.msra.mxu0 %v7463_v59  ;;  %5110 = vmatprep.subr.bf16.mxu1 %v7468_v60  ;;  %v7547_v59 = vld [vmem:[%s10923_s1 + $0x1130] ss:$8 sps:$4 sm:$0xff]   ;;  %v7552_v60 = vld [vmem:[%s10923_s1 + $0x544] ss:$8 sps:$4 sm:$0xff]  }
 0x119   :  { %5602 = vmatprep.subr.bf16.mxu0 %v7471_v61  ;;  %v7555_v61 = vld [vmem:[%s10923_s1 + $0x1144] ss:$8 sps:$4 sm:$0xff]  }
 0x11b   :  { %5111 = vmatpush1.bf16.msra.mxu1 %v7466_v62  ;;  %v7550_v62 = vld [vmem:[%s10923_s1 + $0x540] ss:$8 sps:$4 sm:$0xff]  }
 0x11c   :  { %5603 = vmatpush1.bf16.msra.mxu0 %v7469_v63  ;;  %5112 = vmatprep.subr.bf16.mxu1 %v7474_v0  ;;  %v7553_v63 = vld [vmem:[%s10923_s1 + $0x1140] ss:$8 sps:$4 sm:$0xff]   ;;  %v7558_v0 = vld [vmem:[%s10923_s1 + $0x554] ss:$8 sps:$4 sm:$0xff]  }
 0x11d   :  { %5604 = vmatprep.subr.bf16.mxu0 %v7477_v1  ;;  %v7561_v1 = vld [vmem:[%s10923_s1 + $0x1154] ss:$8 sps:$4 sm:$0xff]  }
 0x11f   :  { %5113 = vmatpush1.bf16.msra.mxu1 %v7472_v2  ;;  %v7556_v2 = vld [vmem:[%s10923_s1 + $0x550] ss:$8 sps:$4 sm:$0xff]  }
 0x120   :  { %5605 = vmatpush1.bf16.msra.mxu0 %v7475_v3  ;;  %5114 = vmatprep.subr.bf16.mxu1 %v7480_v4  ;;  %v7559_v3 = vld [vmem:[%s10923_s1 + $0x1150] ss:$8 sps:$4 sm:$0xff]   ;;  %v7564_v4 = vld [vmem:[%s10923_s1 + $0x564] ss:$8 sps:$4 sm:$0xff]  }
 0x121   :  { %5606 = vmatprep.subr.bf16.mxu0 %v7483_v5  ;;  %v7567_v5 = vld [vmem:[%s10923_s1 + $0x1164] ss:$8 sps:$4 sm:$0xff]  }
 0x123   :  { %5115 = vmatpush1.bf16.msra.mxu1 %v7478_v6  ;;  %v7562_v6 = vld [vmem:[%s10923_s1 + $0x560] ss:$8 sps:$4 sm:$0xff]  }
 0x124   :  { %5607 = vmatpush1.bf16.msra.mxu0 %v7481_v7  ;;  %5116 = vmatprep.subr.bf16.mxu1 %v7486_v8  ;;  %v7565_v7 = vld [vmem:[%s10923_s1 + $0x1160] ss:$8 sps:$4 sm:$0xff]   ;;  %v7570_v8 = vld [vmem:[%s10923_s1 + $0x574] ss:$8 sps:$4 sm:$0xff]  }
 0x125   :  { %5608 = vmatprep.subr.bf16.mxu0 %v7489_v9  ;;  %v7573_v9 = vld [vmem:[%s10923_s1 + $0x1174] ss:$8 sps:$4 sm:$0xff]  }
 0x127   :  { %5117 = vmatpush1.bf16.msra.mxu1 %v7484_v10  ;;  %v7568_v10 = vld [vmem:[%s10923_s1 + $0x570] ss:$8 sps:$4 sm:$0xff]  }
 0x128   :  { %5609 = vmatpush1.bf16.msra.mxu0 %v7487_v11  ;;  %5118 = vmatprep.subr.bf16.mxu1 %v7492_v12  ;;  %v7571_v11 = vld [vmem:[%s10923_s1 + $0x1170] ss:$8 sps:$4 sm:$0xff]   ;;  %v7576_v12 = vld [vmem:[%s10923_s1 + $0x584] ss:$8 sps:$4 sm:$0xff]  }
 0x129   :  { %5610 = vmatprep.subr.bf16.mxu0 %v7495_v13  ;;  %v7579_v13 = vld [vmem:[%s10923_s1 + $0x1184] ss:$8 sps:$4 sm:$0xff]  }
 0x12b   :  { %5119 = vmatpush1.bf16.msra.mxu1 %v7490_v14  ;;  %v7574_v14 = vld [vmem:[%s10923_s1 + $0x580] ss:$8 sps:$4 sm:$0xff]  }
 0x12c   :  { %5611 = vmatpush1.bf16.msra.mxu0 %v7493_v15  ;;  %5120 = vmatprep.subr.bf16.mxu1 %v7498_v16  ;;  %v7577_v15 = vld [vmem:[%s10923_s1 + $0x1180] ss:$8 sps:$4 sm:$0xff]   ;;  %v7582_v16 = vld [vmem:[%s10923_s1 + $0x594] ss:$8 sps:$4 sm:$0xff]  }
 0x12d   :  { %5612 = vmatprep.subr.bf16.mxu0 %v7501_v17  ;;  %v7585_v17 = vld [vmem:[%s10923_s1 + $0x1194] ss:$8 sps:$4 sm:$0xff]  }
 0x12f   :  { %5121 = vmatpush1.bf16.msra.mxu1 %v7496_v18  ;;  %v7580_v18 = vld [vmem:[%s10923_s1 + $0x590] ss:$8 sps:$4 sm:$0xff]  }
 0x130   :  { %5613 = vmatpush1.bf16.msra.mxu0 %v7499_v19  ;;  %5122 = vmatprep.subr.bf16.mxu1 %v7504_v20  ;;  %v7583_v19 = vld [vmem:[%s10923_s1 + $0x1190] ss:$8 sps:$4 sm:$0xff]   ;;  %v7588_v20 = vld [vmem:[%s10923_s1 + $0x5a4] ss:$8 sps:$4 sm:$0xff]  }
 0x131   :  { %5614 = vmatprep.subr.bf16.mxu0 %v7507_v21  ;;  %v7591_v21 = vld [vmem:[%s10923_s1 + $0x11a4] ss:$8 sps:$4 sm:$0xff]  }
 0x133   :  { %5123 = vmatpush1.bf16.msra.mxu1 %v7502_v22  ;;  %v7586_v22 = vld [vmem:[%s10923_s1 + $0x5a0] ss:$8 sps:$4 sm:$0xff]  }
 0x134   :  { %5615 = vmatpush1.bf16.msra.mxu0 %v7505_v23  ;;  %5124 = vmatprep.subr.bf16.mxu1 %v7510_v24  ;;  %v7589_v23 = vld [vmem:[%s10923_s1 + $0x11a0] ss:$8 sps:$4 sm:$0xff]   ;;  %v7594_v24 = vld [vmem:[%s10923_s1 + $0x5b4] ss:$8 sps:$4 sm:$0xff]  }
 0x135   :  { %5616 = vmatprep.subr.bf16.mxu0 %v7513_v25  ;;  %v7597_v25 = vld [vmem:[%s10923_s1 + $0x11b4] ss:$8 sps:$4 sm:$0xff]  }
 0x137   :  { %5125 = vmatpush1.bf16.msra.mxu1 %v7508_v26  ;;  %v7592_v26 = vld [vmem:[%s10923_s1 + $0x5b0] ss:$8 sps:$4 sm:$0xff]  }
 0x138   :  { %5617 = vmatpush1.bf16.msra.mxu0 %v7511_v27  ;;  %5126 = vmatprep.subr.bf16.mxu1 %v7516_v28  ;;  %v7595_v27 = vld [vmem:[%s10923_s1 + $0x11b0] ss:$8 sps:$4 sm:$0xff]   ;;  %v7600_v28 = vld [vmem:[%s10923_s1 + $0x5c4] ss:$8 sps:$4 sm:$0xff]  }
 0x139   :  { %5618 = vmatprep.subr.bf16.mxu0 %v7519_v29  ;;  %v7603_v29 = vld [vmem:[%s10923_s1 + $0x11c4] ss:$8 sps:$4 sm:$0xff]  }
 0x13b   :  { %5127 = vmatpush1.bf16.msra.mxu1 %v7514_v30  ;;  %v7598_v30 = vld [vmem:[%s10923_s1 + $0x5c0] ss:$8 sps:$4 sm:$0xff]  }
 0x13c   :  { %5619 = vmatpush1.bf16.msra.mxu0 %v7517_v31  ;;  %5128 = vmatprep.subr.bf16.mxu1 %v7522_v32  ;;  %v7601_v31 = vld [vmem:[%s10923_s1 + $0x11c0] ss:$8 sps:$4 sm:$0xff]   ;;  %v7606_v32 = vld [vmem:[%s10923_s1 + $0x5d4] ss:$8 sps:$4 sm:$0xff]  }
 0x13d   :  { %5620 = vmatprep.subr.bf16.mxu0 %v7525_v33  ;;  %v7609_v33 = vld [vmem:[%s10923_s1 + $0x11d4] ss:$8 sps:$4 sm:$0xff]  }
 0x13f   :  { %5129 = vmatpush1.bf16.msra.mxu1 %v7520_v34  ;;  %v7604_v34 = vld [vmem:[%s10923_s1 + $0x5d0] ss:$8 sps:$4 sm:$0xff]  }
 0x140   :  { %5621 = vmatpush1.bf16.msra.mxu0 %v7523_v35  ;;  %5139 = vmatprep.subr.bf16.mxu1 %v7528_v36  ;;  %v7607_v35 = vld [vmem:[%s10923_s1 + $0x11d0] ss:$8 sps:$4 sm:$0xff]   ;;  %v7612_v36 = vld [vmem:[%s10923_s1 + $0x5e4] ss:$8 sps:$4 sm:$0xff]  }
 0x141   :  { %5631 = vmatprep.subr.bf16.mxu0 %v7531_v37  ;;  %v7615_v37 = vld [vmem:[%s10923_s1 + $0x11e4] ss:$8 sps:$4 sm:$0xff]  }
 0x142   :  { %5131 = vmatmul.mubr.bf16.vlgmr.msra.gmra.mrb[0].mxu1 %v80_v42  ;;  %v7616_v42 = vld [vmem:[%s10923_s1 + $0x5f0] ss:$8 sps:$4 sm:$0xff]  }
 0x143   :  { %5623 = vmatmul.mubr.bf16.vlgmr.msra.gmra.mrb[0].mxu0 %v104_v43  ;;  %5140 = vmatpush1.bf16.msra.mxu1 %v7526_v44  ;;  %v7619_v43 = vld [vmem:[%s10923_s1 + $0x11f0] ss:$8 sps:$4 sm:$0xff]   ;;  %v7624_v44 = vld [vmem:[%s10923_s1 + $0x604] ss:$8 sps:$4 sm:$0xff]  }
 0x144   :  { %5632 = vmatpush1.bf16.msra.mxu0 %v7529_v45  ;;  %5141 = vmatprep.subr.bf16.mxu1 %v7534_v46  ;;  %v7627_v45 = vld [vmem:[%s10923_s1 + $0x1204] ss:$8 sps:$4 sm:$0xff]   ;;  %v32_v46 = vld [vmem:[%s10922_s0 + $0x50] sm:$0xff] }
 0x145   :  { %5633 = vmatprep.subr.bf16.mxu0 %v7537_v47  ;;  %5171 = vmatprep.mubr.bf16.mxu1 %v83_v48  ;;  %v56_v47 = vld [vmem:[%s10922_s0 + $0x110] sm:$0xff]  ;;  %v35_v48 = vld [vmem:[%s10922_s0 + $0x68] sm:$0xff] }
 0x146   :  { %5663 = vmatprep.mubr.bf16.mxu0 %v107_v49  ;;  %v59_v49 = vld [vmem:[%s10922_s0 + $0x128] sm:$0xff] }
 0x147   :  { %5142 = vmatpush1.bf16.msra.mxu1 %v7532_v50  ;;  %v82_v50 = vpack.c.bf16 %v32_v46, %v32_v46  ;;  %v7706_v46 = vld [vmem:[%s10923_s1 + $0x6e0] ss:$8 sps:$4 sm:$0xff]  }
 0x148   :  { %5634 = vmatpush1.bf16.msra.mxu0 %v7535_v51  ;;  %5143 = vmatprep.subr.bf16.mxu1 %v7540_v52  ;;  %v106_v51 = vpack.c.bf16 %v56_v47, %v56_v47  ;;  %v7622_v52 = vld [vmem:[%s10923_s1 + $0x600] ss:$8 sps:$4 sm:$0xff]  }
 0x149   :  { %5635 = vmatprep.subr.bf16.mxu0 %v7543_v53  ;;  %v7625_v53 = vld [vmem:[%s10923_s1 + $0x1200] ss:$8 sps:$4 sm:$0xff]  }
 0x14a   :  { %v7709_v47 = vld [vmem:[%s10923_s1 + $0x12e0] ss:$8 sps:$4 sm:$0xff]  }
 0x14b   :  { %5144 = vmatpush1.bf16.msra.mxu1 %v7538_v54  ;;  %v7630_v54 = vld [vmem:[%s10923_s1 + $0x614] ss:$8 sps:$4 sm:$0xff]  }
 0x14c   :  { %5636 = vmatpush1.bf16.msra.mxu0 %v7541_v55  ;;  %5145 = vmatprep.subr.bf16.mxu1 %v7546_v56  ;;  %v7633_v55 = vld [vmem:[%s10923_s1 + $0x1214] ss:$8 sps:$4 sm:$0xff]   ;;  %v85_v56 = vpack.c.bf16 %v35_v48, %v35_v48 }
 0x14d   :  { %5637 = vmatprep.subr.bf16.mxu0 %v7549_v57  ;;  %v109_v57 = vpack.c.bf16 %v59_v49, %v59_v49  ;;  %v7714_v48 = vld [vmem:[%s10923_s1 + $0x6f4] ss:$8 sps:$4 sm:$0xff]  }
 0x14e   :  { %v7717_v49 = vld [vmem:[%s10923_s1 + $0x12f4] ss:$8 sps:$4 sm:$0xff]  }
 0x14f   :  { %5146 = vmatpush1.bf16.msra.mxu1 %v7544_v58  ;;  %v7628_v58 = vld [vmem:[%s10923_s1 + $0x610] ss:$8 sps:$4 sm:$0xff]  }
 0x150   :  { %5638 = vmatpush1.bf16.msra.mxu0 %v7547_v59  ;;  %5147 = vmatprep.subr.bf16.mxu1 %v7552_v60  ;;  %v7631_v59 = vld [vmem:[%s10923_s1 + $0x1210] ss:$8 sps:$4 sm:$0xff]   ;;  %v7636_v60 = vld [vmem:[%s10923_s1 + $0x624] ss:$8 sps:$4 sm:$0xff]  }
 0x151   :  { %5639 = vmatprep.subr.bf16.mxu0 %v7555_v61  ;;  %v7639_v61 = vld [vmem:[%s10923_s1 + $0x1224] ss:$8 sps:$4 sm:$0xff]  }
 0x153   :  { %5148 = vmatpush1.bf16.msra.mxu1 %v7550_v62  ;;  %v7634_v62 = vld [vmem:[%s10923_s1 + $0x620] ss:$8 sps:$4 sm:$0xff]  }
 0x154   :  { %5640 = vmatpush1.bf16.msra.mxu0 %v7553_v63  ;;  %5149 = vmatprep.subr.bf16.mxu1 %v7558_v0  ;;  %v7637_v63 = vld [vmem:[%s10923_s1 + $0x1220] ss:$8 sps:$4 sm:$0xff]   ;;  %v7642_v0 = vld [vmem:[%s10923_s1 + $0x634] ss:$8 sps:$4 sm:$0xff]  }
 0x155   :  { %5641 = vmatprep.subr.bf16.mxu0 %v7561_v1  ;;  %v7645_v1 = vld [vmem:[%s10923_s1 + $0x1234] ss:$8 sps:$4 sm:$0xff]  }
 0x157   :  { %5150 = vmatpush1.bf16.msra.mxu1 %v7556_v2  ;;  %v7640_v2 = vld [vmem:[%s10923_s1 + $0x630] ss:$8 sps:$4 sm:$0xff]  }
 0x158   :  { %5642 = vmatpush1.bf16.msra.mxu0 %v7559_v3  ;;  %5151 = vmatprep.subr.bf16.mxu1 %v7564_v4  ;;  %v7643_v3 = vld [vmem:[%s10923_s1 + $0x1230] ss:$8 sps:$4 sm:$0xff]   ;;  %v7648_v4 = vld [vmem:[%s10923_s1 + $0x644] ss:$8 sps:$4 sm:$0xff]  }
 0x159   :  { %5643 = vmatprep.subr.bf16.mxu0 %v7567_v5  ;;  %v7651_v5 = vld [vmem:[%s10923_s1 + $0x1244] ss:$8 sps:$4 sm:$0xff]  }
 0x15b   :  { %5152 = vmatpush1.bf16.msra.mxu1 %v7562_v6  ;;  %v7646_v6 = vld [vmem:[%s10923_s1 + $0x640] ss:$8 sps:$4 sm:$0xff]  }
 0x15c   :  { %5644 = vmatpush1.bf16.msra.mxu0 %v7565_v7  ;;  %5153 = vmatprep.subr.bf16.mxu1 %v7570_v8  ;;  %v7649_v7 = vld [vmem:[%s10923_s1 + $0x1240] ss:$8 sps:$4 sm:$0xff]   ;;  %v7654_v8 = vld [vmem:[%s10923_s1 + $0x654] ss:$8 sps:$4 sm:$0xff]  }
 0x15d   :  { %5645 = vmatprep.subr.bf16.mxu0 %v7573_v9  ;;  %v7657_v9 = vld [vmem:[%s10923_s1 + $0x1254] ss:$8 sps:$4 sm:$0xff]  }
 0x15f   :  { %5154 = vmatpush1.bf16.msra.mxu1 %v7568_v10  ;;  %v7652_v10 = vld [vmem:[%s10923_s1 + $0x650] ss:$8 sps:$4 sm:$0xff]  }
 0x160   :  { %5646 = vmatpush1.bf16.msra.mxu0 %v7571_v11  ;;  %5155 = vmatprep.subr.bf16.mxu1 %v7576_v12  ;;  %v7655_v11 = vld [vmem:[%s10923_s1 + $0x1250] ss:$8 sps:$4 sm:$0xff]   ;;  %v7660_v12 = vld [vmem:[%s10923_s1 + $0x664] ss:$8 sps:$4 sm:$0xff]  }
 0x161   :  { %5647 = vmatprep.subr.bf16.mxu0 %v7579_v13  ;;  %v7663_v13 = vld [vmem:[%s10923_s1 + $0x1264] ss:$8 sps:$4 sm:$0xff]  }
 0x163   :  { %5156 = vmatpush1.bf16.msra.mxu1 %v7574_v14  ;;  %v7658_v14 = vld [vmem:[%s10923_s1 + $0x660] ss:$8 sps:$4 sm:$0xff]  }
 0x164   :  { %5648 = vmatpush1.bf16.msra.mxu0 %v7577_v15  ;;  %5157 = vmatprep.subr.bf16.mxu1 %v7582_v16  ;;  %v7661_v15 = vld [vmem:[%s10923_s1 + $0x1260] ss:$8 sps:$4 sm:$0xff]   ;;  %v7666_v16 = vld [vmem:[%s10923_s1 + $0x674] ss:$8 sps:$4 sm:$0xff]  }
 0x165   :  { %5649 = vmatprep.subr.bf16.mxu0 %v7585_v17  ;;  %v7669_v17 = vld [vmem:[%s10923_s1 + $0x1274] ss:$8 sps:$4 sm:$0xff]  }
 0x167   :  { %5158 = vmatpush1.bf16.msra.mxu1 %v7580_v18  ;;  %v7664_v18 = vld [vmem:[%s10923_s1 + $0x670] ss:$8 sps:$4 sm:$0xff]  }
 0x168   :  { %5650 = vmatpush1.bf16.msra.mxu0 %v7583_v19  ;;  %5159 = vmatprep.subr.bf16.mxu1 %v7588_v20  ;;  %v7667_v19 = vld [vmem:[%s10923_s1 + $0x1270] ss:$8 sps:$4 sm:$0xff]   ;;  %v7672_v20 = vld [vmem:[%s10923_s1 + $0x684] ss:$8 sps:$4 sm:$0xff]  }
 0x169   :  { %5651 = vmatprep.subr.bf16.mxu0 %v7591_v21  ;;  %v7675_v21 = vld [vmem:[%s10923_s1 + $0x1284] ss:$8 sps:$4 sm:$0xff]  }
 0x16b   :  { %5160 = vmatpush1.bf16.msra.mxu1 %v7586_v22  ;;  %v7670_v22 = vld [vmem:[%s10923_s1 + $0x680] ss:$8 sps:$4 sm:$0xff]  }
 0x16c   :  { %5652 = vmatpush1.bf16.msra.mxu0 %v7589_v23  ;;  %5161 = vmatprep.subr.bf16.mxu1 %v7594_v24  ;;  %v7673_v23 = vld [vmem:[%s10923_s1 + $0x1280] ss:$8 sps:$4 sm:$0xff]   ;;  %v7678_v24 = vld [vmem:[%s10923_s1 + $0x694] ss:$8 sps:$4 sm:$0xff]  }
 0x16d   :  { %5653 = vmatprep.subr.bf16.mxu0 %v7597_v25  ;;  %v7681_v25 = vld [vmem:[%s10923_s1 + $0x1294] ss:$8 sps:$4 sm:$0xff]  }
 0x16f   :  { %5162 = vmatpush1.bf16.msra.mxu1 %v7592_v26  ;;  %v7676_v26 = vld [vmem:[%s10923_s1 + $0x690] ss:$8 sps:$4 sm:$0xff]  }
 0x170   :  { %5654 = vmatpush1.bf16.msra.mxu0 %v7595_v27  ;;  %5163 = vmatprep.subr.bf16.mxu1 %v7600_v28  ;;  %v7679_v27 = vld [vmem:[%s10923_s1 + $0x1290] ss:$8 sps:$4 sm:$0xff]   ;;  %v7684_v28 = vld [vmem:[%s10923_s1 + $0x6a4] ss:$8 sps:$4 sm:$0xff]  }
 0x171   :  { %5655 = vmatprep.subr.bf16.mxu0 %v7603_v29  ;;  %v7687_v29 = vld [vmem:[%s10923_s1 + $0x12a4] ss:$8 sps:$4 sm:$0xff]  }
 0x173   :  { %5164 = vmatpush1.bf16.msra.mxu1 %v7598_v30  ;;  %v7682_v30 = vld [vmem:[%s10923_s1 + $0x6a0] ss:$8 sps:$4 sm:$0xff]  }
 0x174   :  { %5656 = vmatpush1.bf16.msra.mxu0 %v7601_v31  ;;  %5165 = vmatprep.subr.bf16.mxu1 %v7606_v32  ;;  %v7685_v31 = vld [vmem:[%s10923_s1 + $0x12a0] ss:$8 sps:$4 sm:$0xff]   ;;  %v7690_v32 = vld [vmem:[%s10923_s1 + $0x6b4] ss:$8 sps:$4 sm:$0xff]  }
 0x175   :  { %5657 = vmatprep.subr.bf16.mxu0 %v7609_v33  ;;  %v7693_v33 = vld [vmem:[%s10923_s1 + $0x12b4] ss:$8 sps:$4 sm:$0xff]  }
 0x177   :  { %5166 = vmatpush1.bf16.msra.mxu1 %v7604_v34  ;;  %v7688_v34 = vld [vmem:[%s10923_s1 + $0x6b0] ss:$8 sps:$4 sm:$0xff]  }
 0x178   :  { %5658 = vmatpush1.bf16.msra.mxu0 %v7607_v35  ;;  %5167 = vmatprep.subr.bf16.mxu1 %v7612_v36  ;;  %v7691_v35 = vld [vmem:[%s10923_s1 + $0x12b0] ss:$8 sps:$4 sm:$0xff]   ;;  %v7696_v36 = vld [vmem:[%s10923_s1 + $0x6c4] ss:$8 sps:$4 sm:$0xff]  }
 0x179   :  { %5659 = vmatprep.subr.bf16.mxu0 %v7615_v37  ;;  %v7699_v37 = vld [vmem:[%s10923_s1 + $0x12c4] ss:$8 sps:$4 sm:$0xff]  }
 0x17b   :  { %5168 = vmatpush1.bf16.msra.mxu1 %v7610_v38  ;;  %v7694_v38 = vld [vmem:[%s10923_s1 + $0x6c0] ss:$8 sps:$4 sm:$0xff]  }
 0x17c   :  { %5660 = vmatpush1.bf16.msra.mxu0 %v7613_v39  ;;  %5169 = vmatprep.subr.bf16.mxu1 %v7618_v40  ;;  %v7697_v39 = vld [vmem:[%s10923_s1 + $0x12c0] ss:$8 sps:$4 sm:$0xff]   ;;  %v7702_v40 = vld [vmem:[%s10923_s1 + $0x6d4] ss:$8 sps:$4 sm:$0xff]  }
 0x17d   :  { %5661 = vmatprep.subr.bf16.mxu0 %v7621_v41  ;;  %v7705_v41 = vld [vmem:[%s10923_s1 + $0x12d4] ss:$8 sps:$4 sm:$0xff]  }
 0x17f   :  { %5170 = vmatpush1.bf16.msra.mxu1 %v7616_v42  ;;  %v7700_v42 = vld [vmem:[%s10923_s1 + $0x6d0] ss:$8 sps:$4 sm:$0xff]  }
 0x180   :  { %5662 = vmatpush1.bf16.msra.mxu0 %v7619_v43  ;;  %5180 = vmatprep.subr.bf16.mxu1 %v7624_v44  ;;  %v7703_v43 = vld [vmem:[%s10923_s1 + $0x12d0] ss:$8 sps:$4 sm:$0xff]   ;;  %v7708_v44 = vld [vmem:[%s10923_s1 + $0x6e4] ss:$8 sps:$4 sm:$0xff]  }
 0x181   :  { %5672 = vmatprep.subr.bf16.mxu0 %v7627_v45  ;;  %v7711_v45 = vld [vmem:[%s10923_s1 + $0x12e4] ss:$8 sps:$4 sm:$0xff]  }
 0x182   :  { %5172 = vmatmul.mubr.bf16.vlgmr.msra.gmra.mrb[0].mxu1 %v82_v50  ;;  %v7712_v50 = vld [vmem:[%s10923_s1 + $0x6f0] ss:$8 sps:$4 sm:$0xff]  }
 0x183   :  { %5664 = vmatmul.mubr.bf16.vlgmr.msra.gmra.mrb[0].mxu0 %v106_v51  ;;  %5181 = vmatpush1.bf16.msra.mxu1 %v7622_v52  ;;  %v7715_v51 = vld [vmem:[%s10923_s1 + $0x12f0] ss:$8 sps:$4 sm:$0xff]   ;;  %v7720_v52 = vld [vmem:[%s10923_s1 + $0x704] ss:$8 sps:$4 sm:$0xff]  }
 0x184   :  { %5673 = vmatpush1.bf16.msra.mxu0 %v7625_v53  ;;  %5182 = vmatprep.subr.bf16.mxu1 %v7630_v54  ;;  %v7723_v53 = vld [vmem:[%s10923_s1 + $0x1304] ss:$8 sps:$4 sm:$0xff]  }
 0x185   :  { %5674 = vmatprep.subr.bf16.mxu0 %v7633_v55  ;;  %5212 = vmatprep.mubr.bf16.mxu1 %v85_v56  ;;  %v34_v54 = vld [vmem:[%s10922_s0 + $0x60] sm:$0xff]  ;;  %v37_v56 = vld [vmem:[%s10922_s0 + $0x78] sm:$0xff] }
 0x186   :  { %5704 = vmatprep.mubr.bf16.mxu0 %v109_v57  ;;  %v58_v55 = vld [vmem:[%s10922_s0 + $0x120] sm:$0xff]  ;;  %v61_v57 = vld [vmem:[%s10922_s0 + $0x138] sm:$0xff] }
 0x187   :  { %5183 = vmatpush1.bf16.msra.mxu1 %v7628_v58  ;;  %v84_v58 = vpack.c.bf16 %v34_v54, %v34_v54 }
 0x188   :  { %5675 = vmatpush1.bf16.msra.mxu0 %v7631_v59  ;;  %5184 = vmatprep.subr.bf16.mxu1 %v7636_v60  ;;  %v108_v59 = vpack.c.bf16 %v58_v55, %v58_v55  ;;  %v7718_v60 = vld [vmem:[%s10923_s1 + $0x700] ss:$8 sps:$4 sm:$0xff]  }
 0x189   :  { %5676 = vmatprep.subr.bf16.mxu0 %v7639_v61  ;;  %v7721_v61 = vld [vmem:[%s10923_s1 + $0x1300] ss:$8 sps:$4 sm:$0xff]  }
 0x18b   :  { %5185 = vmatpush1.bf16.msra.mxu1 %v7634_v62  ;;  %v7726_v62 = vld [vmem:[%s10923_s1 + $0x714] ss:$8 sps:$4 sm:$0xff]  }
 0x18c   :  { %5677 = vmatpush1.bf16.msra.mxu0 %v7637_v63  ;;  %5186 = vmatprep.subr.bf16.mxu1 %v7642_v0  ;;  %v7729_v63 = vld [vmem:[%s10923_s1 + $0x1314] ss:$8 sps:$4 sm:$0xff]   ;;  %v87_v0 = vpack.c.bf16 %v37_v56, %v37_v56 }
 0x18d   :  { %5678 = vmatprep.subr.bf16.mxu0 %v7645_v1  ;;  %v111_v1 = vpack.c.bf16 %v61_v57, %v61_v57 }
 0x18f   :  { %5187 = vmatpush1.bf16.msra.mxu1 %v7640_v2  ;;  %v7724_v2 = vld [vmem:[%s10923_s1 + $0x710] ss:$8 sps:$4 sm:$0xff]  }
 0x190   :  { %5679 = vmatpush1.bf16.msra.mxu0 %v7643_v3  ;;  %5188 = vmatprep.subr.bf16.mxu1 %v7648_v4  ;;  %v7727_v3 = vld [vmem:[%s10923_s1 + $0x1310] ss:$8 sps:$4 sm:$0xff]   ;;  %v7732_v4 = vld [vmem:[%s10923_s1 + $0x724] ss:$8 sps:$4 sm:$0xff]  }
 0x191   :  { %5680 = vmatprep.subr.bf16.mxu0 %v7651_v5  ;;  %v7735_v5 = vld [vmem:[%s10923_s1 + $0x1324] ss:$8 sps:$4 sm:$0xff]  }
 0x193   :  { %5189 = vmatpush1.bf16.msra.mxu1 %v7646_v6  ;;  %v7730_v6 = vld [vmem:[%s10923_s1 + $0x720] ss:$8 sps:$4 sm:$0xff]  }
 0x194   :  { %5681 = vmatpush1.bf16.msra.mxu0 %v7649_v7  ;;  %5190 = vmatprep.subr.bf16.mxu1 %v7654_v8  ;;  %v7733_v7 = vld [vmem:[%s10923_s1 + $0x1320] ss:$8 sps:$4 sm:$0xff]   ;;  %v7738_v8 = vld [vmem:[%s10923_s1 + $0x734] ss:$8 sps:$4 sm:$0xff]  }
 0x195   :  { %5682 = vmatprep.subr.bf16.mxu0 %v7657_v9  ;;  %v7741_v9 = vld [vmem:[%s10923_s1 + $0x1334] ss:$8 sps:$4 sm:$0xff]  }
 0x197   :  { %5191 = vmatpush1.bf16.msra.mxu1 %v7652_v10  ;;  %v7736_v10 = vld [vmem:[%s10923_s1 + $0x730] ss:$8 sps:$4 sm:$0xff]  }
 0x198   :  { %5683 = vmatpush1.bf16.msra.mxu0 %v7655_v11  ;;  %5192 = vmatprep.subr.bf16.mxu1 %v7660_v12  ;;  %v7739_v11 = vld [vmem:[%s10923_s1 + $0x1330] ss:$8 sps:$4 sm:$0xff]   ;;  %v7744_v12 = vld [vmem:[%s10923_s1 + $0x744] ss:$8 sps:$4 sm:$0xff]  }
 0x199   :  { %5684 = vmatprep.subr.bf16.mxu0 %v7663_v13  ;;  %v7747_v13 = vld [vmem:[%s10923_s1 + $0x1344] ss:$8 sps:$4 sm:$0xff]  }
 0x19b   :  { %5193 = vmatpush1.bf16.msra.mxu1 %v7658_v14  ;;  %v7742_v14 = vld [vmem:[%s10923_s1 + $0x740] ss:$8 sps:$4 sm:$0xff]  }
 0x19c   :  { %5685 = vmatpush1.bf16.msra.mxu0 %v7661_v15  ;;  %5194 = vmatprep.subr.bf16.mxu1 %v7666_v16  ;;  %v7745_v15 = vld [vmem:[%s10923_s1 + $0x1340] ss:$8 sps:$4 sm:$0xff]   ;;  %v7750_v16 = vld [vmem:[%s10923_s1 + $0x754] ss:$8 sps:$4 sm:$0xff]  }
 0x19d   :  { %5686 = vmatprep.subr.bf16.mxu0 %v7669_v17  ;;  %v7753_v17 = vld [vmem:[%s10923_s1 + $0x1354] ss:$8 sps:$4 sm:$0xff]  }
 0x19f   :  { %5195 = vmatpush1.bf16.msra.mxu1 %v7664_v18  ;;  %v7748_v18 = vld [vmem:[%s10923_s1 + $0x750] ss:$8 sps:$4 sm:$0xff]  }
 0x1a0   :  { %5687 = vmatpush1.bf16.msra.mxu0 %v7667_v19  ;;  %5196 = vmatprep.subr.bf16.mxu1 %v7672_v20  ;;  %v7751_v19 = vld [vmem:[%s10923_s1 + $0x1350] ss:$8 sps:$4 sm:$0xff]   ;;  %v7756_v20 = vld [vmem:[%s10923_s1 + $0x764] ss:$8 sps:$4 sm:$0xff]  }
 0x1a1   :  { %5688 = vmatprep.subr.bf16.mxu0 %v7675_v21  ;;  %v7759_v21 = vld [vmem:[%s10923_s1 + $0x1364] ss:$8 sps:$4 sm:$0xff]  }
 0x1a3   :  { %5197 = vmatpush1.bf16.msra.mxu1 %v7670_v22  ;;  %v7754_v22 = vld [vmem:[%s10923_s1 + $0x760] ss:$8 sps:$4 sm:$0xff]  }
 0x1a4   :  { %5689 = vmatpush1.bf16.msra.mxu0 %v7673_v23  ;;  %5198 = vmatprep.subr.bf16.mxu1 %v7678_v24  ;;  %v7757_v23 = vld [vmem:[%s10923_s1 + $0x1360] ss:$8 sps:$4 sm:$0xff]   ;;  %v7762_v24 = vld [vmem:[%s10923_s1 + $0x774] ss:$8 sps:$4 sm:$0xff]  }
 0x1a5   :  { %5690 = vmatprep.subr.bf16.mxu0 %v7681_v25  ;;  %v7765_v25 = vld [vmem:[%s10923_s1 + $0x1374] ss:$8 sps:$4 sm:$0xff]  }
 0x1a7   :  { %5199 = vmatpush1.bf16.msra.mxu1 %v7676_v26  ;;  %v7760_v26 = vld [vmem:[%s10923_s1 + $0x770] ss:$8 sps:$4 sm:$0xff]  }
 0x1a8   :  { %5691 = vmatpush1.bf16.msra.mxu0 %v7679_v27  ;;  %5200 = vmatprep.subr.bf16.mxu1 %v7684_v28  ;;  %v7763_v27 = vld [vmem:[%s10923_s1 + $0x1370] ss:$8 sps:$4 sm:$0xff]   ;;  %v7768_v28 = vld [vmem:[%s10923_s1 + $0x784] ss:$8 sps:$4 sm:$0xff]  }
 0x1a9   :  { %5692 = vmatprep.subr.bf16.mxu0 %v7687_v29  ;;  %v7771_v29 = vld [vmem:[%s10923_s1 + $0x1384] ss:$8 sps:$4 sm:$0xff]  }
 0x1ab   :  { %5201 = vmatpush1.bf16.msra.mxu1 %v7682_v30  ;;  %v7766_v30 = vld [vmem:[%s10923_s1 + $0x780] ss:$8 sps:$4 sm:$0xff]  }
 0x1ac   :  { %5693 = vmatpush1.bf16.msra.mxu0 %v7685_v31  ;;  %5202 = vmatprep.subr.bf16.mxu1 %v7690_v32  ;;  %v7769_v31 = vld [vmem:[%s10923_s1 + $0x1380] ss:$8 sps:$4 sm:$0xff]   ;;  %v7774_v32 = vld [vmem:[%s10923_s1 + $0x794] ss:$8 sps:$4 sm:$0xff]  }
 0x1ad   :  { %5694 = vmatprep.subr.bf16.mxu0 %v7693_v33  ;;  %v7777_v33 = vld [vmem:[%s10923_s1 + $0x1394] ss:$8 sps:$4 sm:$0xff]  }
 0x1af   :  { %5203 = vmatpush1.bf16.msra.mxu1 %v7688_v34  ;;  %v7772_v34 = vld [vmem:[%s10923_s1 + $0x790] ss:$8 sps:$4 sm:$0xff]  }
 0x1b0   :  { %5695 = vmatpush1.bf16.msra.mxu0 %v7691_v35  ;;  %5204 = vmatprep.subr.bf16.mxu1 %v7696_v36  ;;  %v7775_v35 = vld [vmem:[%s10923_s1 + $0x1390] ss:$8 sps:$4 sm:$0xff]   ;;  %v7780_v36 = vld [vmem:[%s10923_s1 + $0x7a4] ss:$8 sps:$4 sm:$0xff]  }
 0x1b1   :  { %5696 = vmatprep.subr.bf16.mxu0 %v7699_v37  ;;  %v7783_v37 = vld [vmem:[%s10923_s1 + $0x13a4] ss:$8 sps:$4 sm:$0xff]  }
 0x1b3   :  { %5205 = vmatpush1.bf16.msra.mxu1 %v7694_v38  ;;  %v7778_v38 = vld [vmem:[%s10923_s1 + $0x7a0] ss:$8 sps:$4 sm:$0xff]  }
 0x1b4   :  { %5697 = vmatpush1.bf16.msra.mxu0 %v7697_v39  ;;  %5206 = vmatprep.subr.bf16.mxu1 %v7702_v40  ;;  %v7781_v39 = vld [vmem:[%s10923_s1 + $0x13a0] ss:$8 sps:$4 sm:$0xff]   ;;  %v7786_v40 = vld [vmem:[%s10923_s1 + $0x7b4] ss:$8 sps:$4 sm:$0xff]  }
 0x1b5   :  { %5698 = vmatprep.subr.bf16.mxu0 %v7705_v41  ;;  %v7789_v41 = vld [vmem:[%s10923_s1 + $0x13b4] ss:$8 sps:$4 sm:$0xff]  }
 0x1b7   :  { %5207 = vmatpush1.bf16.msra.mxu1 %v7700_v42  ;;  %v7784_v42 = vld [vmem:[%s10923_s1 + $0x7b0] ss:$8 sps:$4 sm:$0xff]  }
 0x1b8   :  { %5699 = vmatpush1.bf16.msra.mxu0 %v7703_v43  ;;  %5208 = vmatprep.subr.bf16.mxu1 %v7708_v44  ;;  %v7787_v43 = vld [vmem:[%s10923_s1 + $0x13b0] ss:$8 sps:$4 sm:$0xff]   ;;  %v7792_v44 = vld [vmem:[%s10923_s1 + $0x7c4] ss:$8 sps:$4 sm:$0xff]  }
 0x1b9   :  { %5700 = vmatprep.subr.bf16.mxu0 %v7711_v45  ;;  %v7795_v45 = vld [vmem:[%s10923_s1 + $0x13c4] ss:$8 sps:$4 sm:$0xff]  }
 0x1bb   :  { %5209 = vmatpush1.bf16.msra.mxu1 %v7706_v46 }
 0x1bc   :  { %5701 = vmatpush1.bf16.msra.mxu0 %v7709_v47  ;;  %5210 = vmatprep.subr.bf16.mxu1 %v7714_v48 }
 0x1bd   :  { %5702 = vmatprep.subr.bf16.mxu0 %v7717_v49 }
 0x1bf   :  { %5211 = vmatpush1.bf16.msra.mxu1 %v7712_v50 }
 0x1c0   :  { %5703 = vmatpush1.bf16.msra.mxu0 %v7715_v51  ;;  %5221 = vmatprep.subr.bf16.mxu1 %v7720_v52 }
 0x1c1   :  { %5713 = vmatprep.subr.bf16.mxu0 %v7723_v53 }
 0x1c2   :  { %5213 = vmatmul.mubr.bf16.vlgmr.msra.gmra.mrb[0].mxu1 %v84_v58 }
 0x1c3   :  { %5705 = vmatmul.mubr.bf16.vlgmr.msra.gmra.mrb[0].mxu0 %v108_v59  ;;  %5222 = vmatpush1.bf16.msra.mxu1 %v7718_v60 }
 0x1c4   :  { %5714 = vmatpush1.bf16.msra.mxu0 %v7721_v61  ;;  %5223 = vmatprep.subr.bf16.mxu1 %v7726_v62 }
 0x1c5   :  { %5715 = vmatprep.subr.bf16.mxu0 %v7729_v63  ;;  %5253 = vmatprep.mubr.bf16.mxu1 %v87_v0 }
 0x1c6   :  { %5745 = vmatprep.mubr.bf16.mxu0 %v111_v1 }
 0x1c7   :  { %5224 = vmatpush1.bf16.msra.mxu1 %v7724_v2 }
 0x1c8   :  { %5716 = vmatpush1.bf16.msra.mxu0 %v7727_v3  ;;  %5225 = vmatprep.subr.bf16.mxu1 %v7732_v4 }
 0x1c9   :  { %5717 = vmatprep.subr.bf16.mxu0 %v7735_v5 }
 0x1cb   :  { %5226 = vmatpush1.bf16.msra.mxu1 %v7730_v6 }
 0x1cc   :  { %5718 = vmatpush1.bf16.msra.mxu0 %v7733_v7  ;;  %5227 = vmatprep.subr.bf16.mxu1 %v7738_v8 }
 0x1cd   :  { %5719 = vmatprep.subr.bf16.mxu0 %v7741_v9 }
 0x1cf   :  { %5228 = vmatpush1.bf16.msra.mxu1 %v7736_v10 }
 0x1d0   :  { %5720 = vmatpush1.bf16.msra.mxu0 %v7739_v11  ;;  %5229 = vmatprep.subr.bf16.mxu1 %v7744_v12 }
 0x1d1   :  { %5721 = vmatprep.subr.bf16.mxu0 %v7747_v13 }
 0x1d3   :  { %5230 = vmatpush1.bf16.msra.mxu1 %v7742_v14 }
 0x1d4   :  { %5722 = vmatpush1.bf16.msra.mxu0 %v7745_v15  ;;  %5231 = vmatprep.subr.bf16.mxu1 %v7750_v16 }
 0x1d5   :  { %5723 = vmatprep.subr.bf16.mxu0 %v7753_v17 }
 0x1d7   :  { %5232 = vmatpush1.bf16.msra.mxu1 %v7748_v18 }
 0x1d8   :  { %5724 = vmatpush1.bf16.msra.mxu0 %v7751_v19  ;;  %5233 = vmatprep.subr.bf16.mxu1 %v7756_v20 }
 0x1d9   :  { %5725 = vmatprep.subr.bf16.mxu0 %v7759_v21 }
 0x1db   :  { %5234 = vmatpush1.bf16.msra.mxu1 %v7754_v22 }
 0x1dc   :  { %5726 = vmatpush1.bf16.msra.mxu0 %v7757_v23  ;;  %5235 = vmatprep.subr.bf16.mxu1 %v7762_v24 }
 0x1dd   :  { %5727 = vmatprep.subr.bf16.mxu0 %v7765_v25 }
 0x1df   :  { %5236 = vmatpush1.bf16.msra.mxu1 %v7760_v26 }
 0x1e0   :  { %5728 = vmatpush1.bf16.msra.mxu0 %v7763_v27  ;;  %5237 = vmatprep.subr.bf16.mxu1 %v7768_v28 }
 0x1e1   :  { %5729 = vmatprep.subr.bf16.mxu0 %v7771_v29 }
 0x1e3   :  { %5238 = vmatpush1.bf16.msra.mxu1 %v7766_v30 }
 0x1e4   :  { %5730 = vmatpush1.bf16.msra.mxu0 %v7769_v31  ;;  %5239 = vmatprep.subr.bf16.mxu1 %v7774_v32 }
 0x1e5   :  { %5731 = vmatprep.subr.bf16.mxu0 %v7777_v33 }
 0x1e7   :  { %5240 = vmatpush1.bf16.msra.mxu1 %v7772_v34 }
 0x1e8   :  { %5732 = vmatpush1.bf16.msra.mxu0 %v7775_v35  ;;  %5241 = vmatprep.subr.bf16.mxu1 %v7780_v36 }
 0x1e9   :  { %5733 = vmatprep.subr.bf16.mxu0 %v7783_v37 }
 0x1eb   :  { %5242 = vmatpush1.bf16.msra.mxu1 %v7778_v38 }
 0x1ec   :  { %5734 = vmatpush1.bf16.msra.mxu0 %v7781_v39  ;;  %5243 = vmatprep.subr.bf16.mxu1 %v7786_v40 }
 0x1ed   :  { %5735 = vmatprep.subr.bf16.mxu0 %v7789_v41 }
 0x1ee   :  { %10 = vsyncpa [#allocation3], 0  ;;  %v7790_v46 = vld [vmem:[%s10923_s1 + $0x7c0] ss:$8 sps:$4 sm:$0xff]   ;;  %v7798_v48 = vld [vmem:[%s10923_s1 + $0x7d4] ss:$8 sps:$4 sm:$0xff]  }
 0x1ef   :  { %5244 = vmatpush1.bf16.msra.mxu1 %v7784_v42  ;;  %v7793_v47 = vld [vmem:[%s10923_s1 + $0x13c0] ss:$8 sps:$4 sm:$0xff]   ;;  %v7801_v49 = vld [vmem:[%s10923_s1 + $0x13d4] ss:$8 sps:$4 sm:$0xff]   ;;  %v7796_v50 = vld [vmem:[%s10923_s1 + $0x7d0] ss:$8 sps:$4 sm:$0xff]  }
 0x1f0   :  { %5736 = vmatpush1.bf16.msra.mxu0 %v7787_v43  ;;  %5245 = vmatprep.subr.bf16.mxu1 %v7792_v44  ;;  %v7799_v51 = vld [vmem:[%s10923_s1 + $0x13d0] ss:$8 sps:$4 sm:$0xff]   ;;  %v7804_v52 = vld [vmem:[%s10923_s1 + $0x7e4] ss:$8 sps:$4 sm:$0xff]   ;;  %v7802_v54 = vld [vmem:[%s10923_s1 + $0x7e0] ss:$8 sps:$4 sm:$0xff]  }
 0x1f1   :  { %5737 = vmatprep.subr.bf16.mxu0 %v7795_v45  ;;  %v7807_v53 = vld [vmem:[%s10923_s1 + $0x13e4] ss:$8 sps:$4 sm:$0xff]   ;;  %v7805_v55 = vld [vmem:[%s10923_s1 + $0x13e0] ss:$8 sps:$4 sm:$0xff]   ;;  %v7810_v56 = vld [vmem:[%s10923_s1 + $0x7f4] ss:$8 sps:$4 sm:$0xff]  }
 0x1f2   :  { %v7813_v57 = vld [vmem:[%s10923_s1 + $0x13f4] ss:$8 sps:$4 sm:$0xff]   ;;  %v7808_v58 = vld [vmem:[%s10923_s1 + $0x7f0] ss:$8 sps:$4 sm:$0xff]   ;;  %v7816_v62 = vld [vmem:[%s10923_s1 + $0x804] ss:$8 sps:$4 sm:$0xff]  }
 0x1f3   :  { %5246 = vmatpush1.bf16.msra.mxu1 %v7790_v46  ;;  %v7811_v59 = vld [vmem:[%s10923_s1 + $0x13f0] ss:$8 sps:$4 sm:$0xff]   ;;  %v7819_v63 = vld [vmem:[%s10923_s1 + $0x1404] ss:$8 sps:$4 sm:$0xff]   ;;  %v7814_v4 = vld [vmem:[%s10923_s1 + $0x800] ss:$8 sps:$4 sm:$0xff]  }
 0x1f4   :  { %5738 = vmatpush1.bf16.msra.mxu0 %v7793_v47  ;;  %5247 = vmatprep.subr.bf16.mxu1 %v7798_v48  ;;  %v36_v60 = vld [vmem:[%s10922_s0 + $0x70] sm:$0xff]  ;;  %v39_v2 = vld [vmem:[%s10922_s0 + $0x88] sm:$0xff]  ;;  %vm6074_vm0 = vcmask 1043456   ;;  %vm6070_vm1 = vcmask 588800   ;;  %s8284_s19 = smov [#allocation2]  }
 0x1f5   :  { %5739 = vmatprep.subr.bf16.mxu0 %v7801_v49  ;;  %v60_v61 = vld [vmem:[%s10922_s0 + $0x130] sm:$0xff]  ;;  %v86_v0 = vpack.c.bf16 %v36_v60, %v36_v60  ;;  %v63_v3 = vld [vmem:[%s10922_s0 + $0x148] sm:$0xff]  ;;  %v89_v8 = vpack.c.bf16 %v39_v2, %v39_v2  ;;  %s6125_s20 = sshll.u32 %s8284_s19, 4  ;;  %s6126_s20 = int_to_ptr.vmem [resolvable:$true] %s6125_s20 }
 0x1f6   :  { %v110_v1 = vpack.c.bf16 %v60_v61, %v60_v61  ;;  %v7817_v5 = vld [vmem:[%s10923_s1 + $0x1400] ss:$8 sps:$4 sm:$0xff]   ;;  %v7822_v6 = vld [vmem:[%s10923_s1 + $0x814] ss:$8 sps:$4 sm:$0xff]   ;;  %v113_v9 = vpack.c.bf16 %v63_v3, %v63_v3  ;;  %v7820_v10 = vld [vmem:[%s10923_s1 + $0x810] ss:$8 sps:$4 sm:$0xff]   ;;  %p8264_p1 = scmp.lt.s32.totalorder %s6126_s20, %s6126_s20 }
 0x1f7   :  { %5248 = vmatpush1.bf16.msra.mxu1 %v7796_v50  ;;  %v7825_v7 = vld [vmem:[%s10923_s1 + $0x1414] ss:$8 sps:$4 sm:$0xff]   ;;  %v7823_v11 = vld [vmem:[%s10923_s1 + $0x1410] ss:$8 sps:$4 sm:$0xff]   ;;  %v7828_v12 = vld [vmem:[%s10923_s1 + $0x824] ss:$8 sps:$4 sm:$0xff]  }
 0x1f8   :  { %5740 = vmatpush1.bf16.msra.mxu0 %v7799_v51  ;;  %5249 = vmatprep.subr.bf16.mxu1 %v7804_v52  ;;  %v7831_v13 = vld [vmem:[%s10923_s1 + $0x1424] ss:$8 sps:$4 sm:$0xff]   ;;  %v7826_v14 = vld [vmem:[%s10923_s1 + $0x820] ss:$8 sps:$4 sm:$0xff]   ;;  %v7834_v16 = vld [vmem:[%s10923_s1 + $0x834] ss:$8 sps:$4 sm:$0xff]  }
 0x1f9   :  { %5741 = vmatprep.subr.bf16.mxu0 %v7807_v53  ;;  %v7829_v15 = vld [vmem:[%s10923_s1 + $0x1420] ss:$8 sps:$4 sm:$0xff]   ;;  %v7837_v17 = vld [vmem:[%s10923_s1 + $0x1434] ss:$8 sps:$4 sm:$0xff]   ;;  %v7832_v18 = vld [vmem:[%s10923_s1 + $0x830] ss:$8 sps:$4 sm:$0xff]  }
 0x1fa   :  { %v7835_v19 = vld [vmem:[%s10923_s1 + $0x1430] ss:$8 sps:$4 sm:$0xff]   ;;  %v7840_v20 = vld [vmem:[%s10923_s1 + $0x844] ss:$8 sps:$4 sm:$0xff]   ;;  %v7838_v22 = vld [vmem:[%s10923_s1 + $0x840] ss:$8 sps:$4 sm:$0xff]  }
 0x1fb   :  { %5250 = vmatpush1.bf16.msra.mxu1 %v7802_v54  ;;  %v7843_v21 = vld [vmem:[%s10923_s1 + $0x1444] ss:$8 sps:$4 sm:$0xff]   ;;  %v7841_v23 = vld [vmem:[%s10923_s1 + $0x1440] ss:$8 sps:$4 sm:$0xff]   ;;  %v7846_v24 = vld [vmem:[%s10923_s1 + $0x854] ss:$8 sps:$4 sm:$0xff]  }
 0x1fc   :  { %5742 = vmatpush1.bf16.msra.mxu0 %v7805_v55  ;;  %5251 = vmatprep.subr.bf16.mxu1 %v7810_v56  ;;  %v7849_v25 = vld [vmem:[%s10923_s1 + $0x1454] ss:$8 sps:$4 sm:$0xff]   ;;  %v7844_v26 = vld [vmem:[%s10923_s1 + $0x850] ss:$8 sps:$4 sm:$0xff]   ;;  %v7852_v28 = vld [vmem:[%s10923_s1 + $0x864] ss:$8 sps:$4 sm:$0xff]  }
 0x1fd   :  { %5743 = vmatprep.subr.bf16.mxu0 %v7813_v57  ;;  %v7847_v27 = vld [vmem:[%s10923_s1 + $0x1450] ss:$8 sps:$4 sm:$0xff]   ;;  %v7855_v29 = vld [vmem:[%s10923_s1 + $0x1464] ss:$8 sps:$4 sm:$0xff]   ;;  %v7850_v30 = vld [vmem:[%s10923_s1 + $0x860] ss:$8 sps:$4 sm:$0xff]  }
 0x1fe   :  { %v7853_v31 = vld [vmem:[%s10923_s1 + $0x1460] ss:$8 sps:$4 sm:$0xff]   ;;  %v7858_v32 = vld [vmem:[%s10923_s1 + $0x874] ss:$8 sps:$4 sm:$0xff]   ;;  %v7856_v34 = vld [vmem:[%s10923_s1 + $0x870] ss:$8 sps:$4 sm:$0xff]  }
 0x1ff   :  { %5252 = vmatpush1.bf16.msra.mxu1 %v7808_v58  ;;  %v7861_v33 = vld [vmem:[%s10923_s1 + $0x1474] ss:$8 sps:$4 sm:$0xff]   ;;  %v7859_v35 = vld [vmem:[%s10923_s1 + $0x1470] ss:$8 sps:$4 sm:$0xff]   ;;  %v7864_v36 = vld [vmem:[%s10923_s1 + $0x884] ss:$8 sps:$4 sm:$0xff]  }
 0x200   :  { %5744 = vmatpush1.bf16.msra.mxu0 %v7811_v59  ;;  %5262 = vmatprep.subr.bf16.mxu1 %v7816_v62  ;;  %v7867_v37 = vld [vmem:[%s10923_s1 + $0x1484] ss:$8 sps:$4 sm:$0xff]   ;;  %v7862_v38 = vld [vmem:[%s10923_s1 + $0x880] ss:$8 sps:$4 sm:$0xff]   ;;  %v7870_v40 = vld [vmem:[%s10923_s1 + $0x894] ss:$8 sps:$4 sm:$0xff]  }
 0x201   :  { %5754 = vmatprep.subr.bf16.mxu0 %v7819_v63  ;;  %v7865_v39 = vld [vmem:[%s10923_s1 + $0x1480] ss:$8 sps:$4 sm:$0xff]   ;;  %v7873_v41 = vld [vmem:[%s10923_s1 + $0x1494] ss:$8 sps:$4 sm:$0xff]   ;;  %v7868_v42 = vld [vmem:[%s10923_s1 + $0x890] ss:$8 sps:$4 sm:$0xff]  }
 0x202   :  { %5254 = vmatmul.mubr.bf16.vlgmr.msra.gmra.mrb[0].mxu1 %v86_v0  ;;  %v7871_v43 = vld [vmem:[%s10923_s1 + $0x1490] ss:$8 sps:$4 sm:$0xff]   ;;  %v7876_v44 = vld [vmem:[%s10923_s1 + $0x8a4] ss:$8 sps:$4 sm:$0xff]   ;;  %v7874_v46 = vld [vmem:[%s10923_s1 + $0x8a0] ss:$8 sps:$4 sm:$0xff]  }
 0x203   :  { %5746 = vmatmul.mubr.bf16.vlgmr.msra.gmra.mrb[0].mxu0 %v110_v1  ;;  %5263 = vmatpush1.bf16.msra.mxu1 %v7814_v4  ;;  %v7879_v45 = vld [vmem:[%s10923_s1 + $0x14a4] ss:$8 sps:$4 sm:$0xff]   ;;  %v7877_v47 = vld [vmem:[%s10923_s1 + $0x14a0] ss:$8 sps:$4 sm:$0xff]   ;;  %v7882_v48 = vld [vmem:[%s10923_s1 + $0x8b4] ss:$8 sps:$4 sm:$0xff]  }
 0x204   :  { %5755 = vmatpush1.bf16.msra.mxu0 %v7817_v5  ;;  %5264 = vmatprep.subr.bf16.mxu1 %v7822_v6  ;;  %v7885_v49 = vld [vmem:[%s10923_s1 + $0x14b4] ss:$8 sps:$4 sm:$0xff]   ;;  %v7880_v50 = vld [vmem:[%s10923_s1 + $0x8b0] ss:$8 sps:$4 sm:$0xff]   ;;  %v7888_v52 = vld [vmem:[%s10923_s1 + $0x8c4] ss:$8 sps:$4 sm:$0xff]  }
 0x205   :  { %5756 = vmatprep.subr.bf16.mxu0 %v7825_v7  ;;  %5294 = vmatprep.mubr.bf16.mxu1 %v89_v8  ;;  %v7883_v51 = vld [vmem:[%s10923_s1 + $0x14b0] ss:$8 sps:$4 sm:$0xff]   ;;  %v7891_v53 = vld [vmem:[%s10923_s1 + $0x14c4] ss:$8 sps:$4 sm:$0xff]   ;;  %v7886_v54 = vld [vmem:[%s10923_s1 + $0x8c0] ss:$8 sps:$4 sm:$0xff]  }
 0x206   :  { %5786 = vmatprep.mubr.bf16.mxu0 %v113_v9  ;;  %v7889_v55 = vld [vmem:[%s10923_s1 + $0x14c0] ss:$8 sps:$4 sm:$0xff]   ;;  %v7894_v56 = vld [vmem:[%s10923_s1 + $0x8d4] ss:$8 sps:$4 sm:$0xff]   ;;  %v7892_v58 = vld [vmem:[%s10923_s1 + $0x8d0] ss:$8 sps:$4 sm:$0xff]  }
 0x207   :  { %5265 = vmatpush1.bf16.msra.mxu1 %v7820_v10  ;;  %v7897_v57 = vld [vmem:[%s10923_s1 + $0x14d4] ss:$8 sps:$4 sm:$0xff]   ;;  %v7895_v59 = vld [vmem:[%s10923_s1 + $0x14d0] ss:$8 sps:$4 sm:$0xff]   ;;  %v7900_v60 = vld [vmem:[%s10923_s1 + $0x8e4] ss:$8 sps:$4 sm:$0xff]  }
 0x208   :  { %5757 = vmatpush1.bf16.msra.mxu0 %v7823_v11  ;;  %5266 = vmatprep.subr.bf16.mxu1 %v7828_v12  ;;  %v7903_v61 = vld [vmem:[%s10923_s1 + $0x14e4] ss:$8 sps:$4 sm:$0xff]   ;;  %v7898_v62 = vld [vmem:[%s10923_s1 + $0x8e0] ss:$8 sps:$4 sm:$0xff]   ;;  %v7906_v0 = vld [vmem:[%s10923_s1 + $0x8f4] ss:$8 sps:$4 sm:$0xff]  }
 0x209   :  { %5758 = vmatprep.subr.bf16.mxu0 %v7831_v13  ;;  %v7901_v63 = vld [vmem:[%s10923_s1 + $0x14e0] ss:$8 sps:$4 sm:$0xff]   ;;  %v7909_v1 = vld [vmem:[%s10923_s1 + $0x14f4] ss:$8 sps:$4 sm:$0xff]   ;;  %v7904_v2 = vld [vmem:[%s10923_s1 + $0x8f0] ss:$8 sps:$4 sm:$0xff]  }
 0x20a   :  { %v7907_v3 = vld [vmem:[%s10923_s1 + $0x14f0] ss:$8 sps:$4 sm:$0xff]   ;;  %v38_v4 = vld [vmem:[%s10922_s0 + $0x80] sm:$0xff]  ;;  %s8259_s21 = scalar_lea.vmem %s6126_s20, 128 }
 0x20b   :  { %5267 = vmatpush1.bf16.msra.mxu1 %v7826_v14  ;;  %v62_v5 = vld [vmem:[%s10922_s0 + $0x140] sm:$0xff]  ;;  %v88_v8 = vpack.c.bf16 %v38_v4, %v38_v4  ;;  %v41_v10 = vld [vmem:[%s10922_s0 + $0x98] sm:$0xff]  ;;  %p8260_p0 = scmp.ne.s32.totalorder %s6126_s20, %s8259_s21  ;;  %p8265_p2 = scmp.lt.s32.totalorder %s8259_s21, %s8259_s21 }
 0x20c   :  { %5759 = vmatpush1.bf16.msra.mxu0 %v7829_v15  ;;  %5268 = vmatprep.subr.bf16.mxu1 %v7834_v16  ;;  %v7912_v6 = vld [vmem:[%s10923_s1 + $0x904] ss:$8 sps:$4 sm:$0xff]   ;;  %v112_v9 = vpack.c.bf16 %v62_v5, %v62_v5  ;;  %v65_v11 = vld [vmem:[%s10922_s0 + $0x158] sm:$0xff]  ;;  %v7910_v12 = vld [vmem:[%s10923_s1 + $0x900] ss:$8 sps:$4 sm:$0xff]   ;;  %v91_v16 = vpack.c.bf16 %v41_v10, %v41_v10 }
 0x20d   :  { %5760 = vmatprep.subr.bf16.mxu0 %v7837_v17  ;;  %v7915_v7 = vld [vmem:[%s10923_s1 + $0x1504] ss:$8 sps:$4 sm:$0xff]   ;;  %v7913_v13 = vld [vmem:[%s10923_s1 + $0x1500] ss:$8 sps:$4 sm:$0xff]   ;;  %v7918_v14 = vld [vmem:[%s10923_s1 + $0x914] ss:$8 sps:$4 sm:$0xff]   ;;  %v115_v17 = vpack.c.bf16 %v65_v11, %v65_v11  ;;  %p8266_p3 = por %p8265_p2, %p8264_p1 }
 0x20e   :  { %v7921_v15 = vld [vmem:[%s10923_s1 + $0x1514] ss:$8 sps:$4 sm:$0xff]   ;;  %v7996_v4 = vld [vmem:[%s10923_s1 + $0x9e4] ss:$8 sps:$4 sm:$0xff]   ;;  %v8000_v10 = vld [vmem:[%s10923_s1 + $0x9f0] ss:$8 sps:$4 sm:$0xff]  }
 0x20f   :  { %5269 = vmatpush1.bf16.msra.mxu1 %v7832_v18  ;;  %v7916_v18 = vld [vmem:[%s10923_s1 + $0x910] ss:$8 sps:$4 sm:$0xff]   ;;  %v7999_v5 = vld [vmem:[%s10923_s1 + $0x15e4] ss:$8 sps:$4 sm:$0xff]   ;;  %p8267_p4 = pnand %p8266_p3, %p8260_p0 }
 0x210   :  { %5761 = vmatpush1.bf16.msra.mxu0 %v7835_v19  ;;  %5270 = vmatprep.subr.bf16.mxu1 %v7840_v20  ;;  %v7919_v19 = vld [vmem:[%s10923_s1 + $0x1510] ss:$8 sps:$4 sm:$0xff]   ;;  %v7924_v20 = vld [vmem:[%s10923_s1 + $0x924] ss:$8 sps:$4 sm:$0xff]  }
 0x211   :  { %5762 = vmatprep.subr.bf16.mxu0 %v7843_v21  ;;  %v7927_v21 = vld [vmem:[%s10923_s1 + $0x1524] ss:$8 sps:$4 sm:$0xff]   ;;  %v8003_v11 = vld [vmem:[%s10923_s1 + $0x15f0] ss:$8 sps:$4 sm:$0xff]  }
 0x213   :  { %5271 = vmatpush1.bf16.msra.mxu1 %v7838_v22  ;;  %v7922_v22 = vld [vmem:[%s10923_s1 + $0x920] ss:$8 sps:$4 sm:$0xff]  }
 0x214   :  { %5763 = vmatpush1.bf16.msra.mxu0 %v7841_v23  ;;  %5272 = vmatprep.subr.bf16.mxu1 %v7846_v24  ;;  %v7925_v23 = vld [vmem:[%s10923_s1 + $0x1520] ss:$8 sps:$4 sm:$0xff]   ;;  %v7930_v24 = vld [vmem:[%s10923_s1 + $0x934] ss:$8 sps:$4 sm:$0xff]  }
 0x215   :  { %5764 = vmatprep.subr.bf16.mxu0 %v7849_v25  ;;  %v7933_v25 = vld [vmem:[%s10923_s1 + $0x1534] ss:$8 sps:$4 sm:$0xff]  }
 0x217   :  { %5273 = vmatpush1.bf16.msra.mxu1 %v7844_v26  ;;  %v7928_v26 = vld [vmem:[%s10923_s1 + $0x930] ss:$8 sps:$4 sm:$0xff]  }
 0x218   :  { %5765 = vmatpush1.bf16.msra.mxu0 %v7847_v27  ;;  %5274 = vmatprep.subr.bf16.mxu1 %v7852_v28  ;;  %v7931_v27 = vld [vmem:[%s10923_s1 + $0x1530] ss:$8 sps:$4 sm:$0xff]   ;;  %v7936_v28 = vld [vmem:[%s10923_s1 + $0x944] ss:$8 sps:$4 sm:$0xff]  }
 0x219   :  { %5766 = vmatprep.subr.bf16.mxu0 %v7855_v29  ;;  %v7939_v29 = vld [vmem:[%s10923_s1 + $0x1544] ss:$8 sps:$4 sm:$0xff]  }
 0x21b   :  { %5275 = vmatpush1.bf16.msra.mxu1 %v7850_v30  ;;  %v7934_v30 = vld [vmem:[%s10923_s1 + $0x940] ss:$8 sps:$4 sm:$0xff]  }
 0x21c   :  { %5767 = vmatpush1.bf16.msra.mxu0 %v7853_v31  ;;  %5276 = vmatprep.subr.bf16.mxu1 %v7858_v32  ;;  %v7937_v31 = vld [vmem:[%s10923_s1 + $0x1540] ss:$8 sps:$4 sm:$0xff]   ;;  %v7942_v32 = vld [vmem:[%s10923_s1 + $0x954] ss:$8 sps:$4 sm:$0xff]  }
 0x21d   :  { %5768 = vmatprep.subr.bf16.mxu0 %v7861_v33  ;;  %v7945_v33 = vld [vmem:[%s10923_s1 + $0x1554] ss:$8 sps:$4 sm:$0xff]  }
 0x21f   :  { %5277 = vmatpush1.bf16.msra.mxu1 %v7856_v34  ;;  %v7940_v34 = vld [vmem:[%s10923_s1 + $0x950] ss:$8 sps:$4 sm:$0xff]  }
 0x220   :  { %5769 = vmatpush1.bf16.msra.mxu0 %v7859_v35  ;;  %5278 = vmatprep.subr.bf16.mxu1 %v7864_v36  ;;  %v7943_v35 = vld [vmem:[%s10923_s1 + $0x1550] ss:$8 sps:$4 sm:$0xff]   ;;  %v7948_v36 = vld [vmem:[%s10923_s1 + $0x964] ss:$8 sps:$4 sm:$0xff]  }
 0x221   :  { %5770 = vmatprep.subr.bf16.mxu0 %v7867_v37  ;;  %v7951_v37 = vld [vmem:[%s10923_s1 + $0x1564] ss:$8 sps:$4 sm:$0xff]  }
 0x223   :  { %5279 = vmatpush1.bf16.msra.mxu1 %v7862_v38  ;;  %v7946_v38 = vld [vmem:[%s10923_s1 + $0x960] ss:$8 sps:$4 sm:$0xff]  }
 0x224   :  { %5771 = vmatpush1.bf16.msra.mxu0 %v7865_v39  ;;  %5280 = vmatprep.subr.bf16.mxu1 %v7870_v40  ;;  %v7949_v39 = vld [vmem:[%s10923_s1 + $0x1560] ss:$8 sps:$4 sm:$0xff]   ;;  %v7954_v40 = vld [vmem:[%s10923_s1 + $0x974] ss:$8 sps:$4 sm:$0xff]  }
 0x225   :  { %5772 = vmatprep.subr.bf16.mxu0 %v7873_v41  ;;  %v7957_v41 = vld [vmem:[%s10923_s1 + $0x1574] ss:$8 sps:$4 sm:$0xff]  }
 0x227   :  { %5281 = vmatpush1.bf16.msra.mxu1 %v7868_v42  ;;  %v7952_v42 = vld [vmem:[%s10923_s1 + $0x970] ss:$8 sps:$4 sm:$0xff]  }
 0x228   :  { %5773 = vmatpush1.bf16.msra.mxu0 %v7871_v43  ;;  %5282 = vmatprep.subr.bf16.mxu1 %v7876_v44  ;;  %v7955_v43 = vld [vmem:[%s10923_s1 + $0x1570] ss:$8 sps:$4 sm:$0xff]   ;;  %v7960_v44 = vld [vmem:[%s10923_s1 + $0x984] ss:$8 sps:$4 sm:$0xff]  }
 0x229   :  { %5774 = vmatprep.subr.bf16.mxu0 %v7879_v45  ;;  %v7963_v45 = vld [vmem:[%s10923_s1 + $0x1584] ss:$8 sps:$4 sm:$0xff]  }
 0x22b   :  { %5283 = vmatpush1.bf16.msra.mxu1 %v7874_v46  ;;  %v7958_v46 = vld [vmem:[%s10923_s1 + $0x980] ss:$8 sps:$4 sm:$0xff]  }
 0x22c   :  { %5775 = vmatpush1.bf16.msra.mxu0 %v7877_v47  ;;  %5284 = vmatprep.subr.bf16.mxu1 %v7882_v48  ;;  %v7961_v47 = vld [vmem:[%s10923_s1 + $0x1580] ss:$8 sps:$4 sm:$0xff]   ;;  %v7966_v48 = vld [vmem:[%s10923_s1 + $0x994] ss:$8 sps:$4 sm:$0xff]  }
 0x22d   :  { %5776 = vmatprep.subr.bf16.mxu0 %v7885_v49  ;;  %v7969_v49 = vld [vmem:[%s10923_s1 + $0x1594] ss:$8 sps:$4 sm:$0xff]  }
 0x22f   :  { %5285 = vmatpush1.bf16.msra.mxu1 %v7880_v50  ;;  %v7964_v50 = vld [vmem:[%s10923_s1 + $0x990] ss:$8 sps:$4 sm:$0xff]  }
 0x230   :  { %5777 = vmatpush1.bf16.msra.mxu0 %v7883_v51  ;;  %5286 = vmatprep.subr.bf16.mxu1 %v7888_v52  ;;  %v7967_v51 = vld [vmem:[%s10923_s1 + $0x1590] ss:$8 sps:$4 sm:$0xff]   ;;  %v7972_v52 = vld [vmem:[%s10923_s1 + $0x9a4] ss:$8 sps:$4 sm:$0xff]  }
 0x231   :  { %5778 = vmatprep.subr.bf16.mxu0 %v7891_v53  ;;  %v7975_v53 = vld [vmem:[%s10923_s1 + $0x15a4] ss:$8 sps:$4 sm:$0xff]  }
 0x233   :  { %5287 = vmatpush1.bf16.msra.mxu1 %v7886_v54  ;;  %v7970_v54 = vld [vmem:[%s10923_s1 + $0x9a0] ss:$8 sps:$4 sm:$0xff]  }
 0x234   :  { %5779 = vmatpush1.bf16.msra.mxu0 %v7889_v55  ;;  %5288 = vmatprep.subr.bf16.mxu1 %v7894_v56  ;;  %v7973_v55 = vld [vmem:[%s10923_s1 + $0x15a0] ss:$8 sps:$4 sm:$0xff]   ;;  %v7978_v56 = vld [vmem:[%s10923_s1 + $0x9b4] ss:$8 sps:$4 sm:$0xff]  }
 0x235   :  { %5780 = vmatprep.subr.bf16.mxu0 %v7897_v57  ;;  %v7981_v57 = vld [vmem:[%s10923_s1 + $0x15b4] ss:$8 sps:$4 sm:$0xff]  }
 0x237   :  { %5289 = vmatpush1.bf16.msra.mxu1 %v7892_v58  ;;  %v7976_v58 = vld [vmem:[%s10923_s1 + $0x9b0] ss:$8 sps:$4 sm:$0xff]  }
 0x238   :  { %5781 = vmatpush1.bf16.msra.mxu0 %v7895_v59  ;;  %5290 = vmatprep.subr.bf16.mxu1 %v7900_v60  ;;  %v7979_v59 = vld [vmem:[%s10923_s1 + $0x15b0] ss:$8 sps:$4 sm:$0xff]   ;;  %v7984_v60 = vld [vmem:[%s10923_s1 + $0x9c4] ss:$8 sps:$4 sm:$0xff]  }
 0x239   :  { %5782 = vmatprep.subr.bf16.mxu0 %v7903_v61  ;;  %v7987_v61 = vld [vmem:[%s10923_s1 + $0x15c4] ss:$8 sps:$4 sm:$0xff]  }
 0x23b   :  { %5291 = vmatpush1.bf16.msra.mxu1 %v7898_v62  ;;  %v7982_v62 = vld [vmem:[%s10923_s1 + $0x9c0] ss:$8 sps:$4 sm:$0xff]  }
 0x23c   :  { %5783 = vmatpush1.bf16.msra.mxu0 %v7901_v63  ;;  %5292 = vmatprep.subr.bf16.mxu1 %v7906_v0  ;;  %v7985_v63 = vld [vmem:[%s10923_s1 + $0x15c0] ss:$8 sps:$4 sm:$0xff]   ;;  %v7990_v0 = vld [vmem:[%s10923_s1 + $0x9d4] ss:$8 sps:$4 sm:$0xff]  }
 0x23d   :  { %5784 = vmatprep.subr.bf16.mxu0 %v7909_v1  ;;  %v7993_v1 = vld [vmem:[%s10923_s1 + $0x15d4] ss:$8 sps:$4 sm:$0xff]  }
 0x23f   :  { %5293 = vmatpush1.bf16.msra.mxu1 %v7904_v2  ;;  %v7988_v2 = vld [vmem:[%s10923_s1 + $0x9d0] ss:$8 sps:$4 sm:$0xff]  }
 0x240   :  { %5785 = vmatpush1.bf16.msra.mxu0 %v7907_v3  ;;  %5303 = vmatprep.subr.bf16.mxu1 %v7912_v6  ;;  %v7991_v3 = vld [vmem:[%s10923_s1 + $0x15d0] ss:$8 sps:$4 sm:$0xff]   ;;  %v7994_v6 = vld [vmem:[%s10923_s1 + $0x9e0] ss:$8 sps:$4 sm:$0xff]  }
 0x241   :  { %5795 = vmatprep.subr.bf16.mxu0 %v7915_v7  ;;  %v7997_v7 = vld [vmem:[%s10923_s1 + $0x15e0] ss:$8 sps:$4 sm:$0xff]  }
 0x242   :  { %5295 = vmatmul.mubr.bf16.vlgmr.msra.gmra.mrb[0].mxu1 %v88_v8  ;;  %v8002_v8 = vld [vmem:[%s10923_s1 + $0x9f4] ss:$8 sps:$4 sm:$0xff]  }
 0x243   :  { %5787 = vmatmul.mubr.bf16.vlgmr.msra.gmra.mrb[0].mxu0 %v112_v9  ;;  %5304 = vmatpush1.bf16.msra.mxu1 %v7910_v12  ;;  %v8005_v9 = vld [vmem:[%s10923_s1 + $0x15f4] ss:$8 sps:$4 sm:$0xff]  }
 0x244   :  { %5796 = vmatpush1.bf16.msra.mxu0 %v7913_v13  ;;  %5305 = vmatprep.subr.bf16.mxu1 %v7918_v14  ;;  %v40_v12 = vld [vmem:[%s10922_s0 + $0x90] sm:$0xff]  ;;  %v8008_v14 = vld [vmem:[%s10923_s1 + $0xa04] ss:$8 sps:$4 sm:$0xff]  }
 0x245   :  { %5797 = vmatprep.subr.bf16.mxu0 %v7921_v15  ;;  %5335 = vmatprep.mubr.bf16.mxu1 %v91_v16  ;;  %v64_v13 = vld [vmem:[%s10922_s0 + $0x150] sm:$0xff]  ;;  %v8011_v15 = vld [vmem:[%s10923_s1 + $0x1604] ss:$8 sps:$4 sm:$0xff]   ;;  %v90_v16 = vpack.c.bf16 %v40_v12, %v40_v12 }
 0x246   :  { %5827 = vmatprep.mubr.bf16.mxu0 %v115_v17  ;;  %v114_v17 = vpack.c.bf16 %v64_v13, %v64_v13  ;;  %v8092_v12 = vld [vmem:[%s10923_s1 + $0xae4] ss:$8 sps:$4 sm:$0xff]  }
 0x247   :  { %5306 = vmatpush1.bf16.msra.mxu1 %v7916_v18  ;;  %v43_v18 = vld [vmem:[%s10922_s0 + $0xa8] sm:$0xff] }
 0x248   :  { %5798 = vmatpush1.bf16.msra.mxu0 %v7919_v19  ;;  %5307 = vmatprep.subr.bf16.mxu1 %v7924_v20  ;;  %v67_v19 = vld [vmem:[%s10922_s0 + $0x168] sm:$0xff] }
 0x249   :  { %5799 = vmatprep.subr.bf16.mxu0 %v7927_v21  ;;  %v8006_v20 = vld [vmem:[%s10923_s1 + $0xa00] ss:$8 sps:$4 sm:$0xff]   ;;  %v8095_v13 = vld [vmem:[%s10923_s1 + $0x16e4] ss:$8 sps:$4 sm:$0xff]  }
 0x24a   :  { %v8009_v21 = vld [vmem:[%s10923_s1 + $0x1600] ss:$8 sps:$4 sm:$0xff]  }
 0x24b   :  { %5308 = vmatpush1.bf16.msra.mxu1 %v7922_v22  ;;  %v8014_v22 = vld [vmem:[%s10923_s1 + $0xa14] ss:$8 sps:$4 sm:$0xff]  }
 0x24c   :  { %5800 = vmatpush1.bf16.msra.mxu0 %v7925_v23  ;;  %5309 = vmatprep.subr.bf16.mxu1 %v7930_v24  ;;  %v8017_v23 = vld [vmem:[%s10923_s1 + $0x1614] ss:$8 sps:$4 sm:$0xff]   ;;  %v93_v24 = vpack.c.bf16 %v43_v18, %v43_v18  ;;  %v8096_v18 = vld [vmem:[%s10923_s1 + $0xaf0] ss:$8 sps:$4 sm:$0xff]  }
 0x24d   :  { %5801 = vmatprep.subr.bf16.mxu0 %v7933_v25  ;;  %v117_v25 = vpack.c.bf16 %v67_v19, %v67_v19  ;;  %v8099_v19 = vld [vmem:[%s10923_s1 + $0x16f0] ss:$8 sps:$4 sm:$0xff]  }
 0x24f   :  { %5310 = vmatpush1.bf16.msra.mxu1 %v7928_v26  ;;  %v8012_v26 = vld [vmem:[%s10923_s1 + $0xa10] ss:$8 sps:$4 sm:$0xff]  }
 0x250   :  { %5802 = vmatpush1.bf16.msra.mxu0 %v7931_v27  ;;  %5311 = vmatprep.subr.bf16.mxu1 %v7936_v28  ;;  %v8015_v27 = vld [vmem:[%s10923_s1 + $0x1610] ss:$8 sps:$4 sm:$0xff]   ;;  %v8020_v28 = vld [vmem:[%s10923_s1 + $0xa24] ss:$8 sps:$4 sm:$0xff]  }
 0x251   :  { %5803 = vmatprep.subr.bf16.mxu0 %v7939_v29  ;;  %v8023_v29 = vld [vmem:[%s10923_s1 + $0x1624] ss:$8 sps:$4 sm:$0xff]  }
 0x253   :  { %5312 = vmatpush1.bf16.msra.mxu1 %v7934_v30  ;;  %v8018_v30 = vld [vmem:[%s10923_s1 + $0xa20] ss:$8 sps:$4 sm:$0xff]  }
 0x254   :  { %5804 = vmatpush1.bf16.msra.mxu0 %v7937_v31  ;;  %5313 = vmatprep.subr.bf16.mxu1 %v7942_v32  ;;  %v8021_v31 = vld [vmem:[%s10923_s1 + $0x1620] ss:$8 sps:$4 sm:$0xff]   ;;  %v8026_v32 = vld [vmem:[%s10923_s1 + $0xa34] ss:$8 sps:$4 sm:$0xff]  }
 0x255   :  { %5805 = vmatprep.subr.bf16.mxu0 %v7945_v33  ;;  %v8029_v33 = vld [vmem:[%s10923_s1 + $0x1634] ss:$8 sps:$4 sm:$0xff]  }
 0x257   :  { %5314 = vmatpush1.bf16.msra.mxu1 %v7940_v34  ;;  %v8024_v34 = vld [vmem:[%s10923_s1 + $0xa30] ss:$8 sps:$4 sm:$0xff]  }
 0x258   :  { %5806 = vmatpush1.bf16.msra.mxu0 %v7943_v35  ;;  %5315 = vmatprep.subr.bf16.mxu1 %v7948_v36  ;;  %v8027_v35 = vld [vmem:[%s10923_s1 + $0x1630] ss:$8 sps:$4 sm:$0xff]   ;;  %v8032_v36 = vld [vmem:[%s10923_s1 + $0xa44] ss:$8 sps:$4 sm:$0xff]  }
 0x259   :  { %5807 = vmatprep.subr.bf16.mxu0 %v7951_v37  ;;  %v8035_v37 = vld [vmem:[%s10923_s1 + $0x1644] ss:$8 sps:$4 sm:$0xff]  }
 0x25b   :  { %5316 = vmatpush1.bf16.msra.mxu1 %v7946_v38  ;;  %v8030_v38 = vld [vmem:[%s10923_s1 + $0xa40] ss:$8 sps:$4 sm:$0xff]  }
 0x25c   :  { %5808 = vmatpush1.bf16.msra.mxu0 %v7949_v39  ;;  %5317 = vmatprep.subr.bf16.mxu1 %v7954_v40  ;;  %v8033_v39 = vld [vmem:[%s10923_s1 + $0x1640] ss:$8 sps:$4 sm:$0xff]   ;;  %v8038_v40 = vld [vmem:[%s10923_s1 + $0xa54] ss:$8 sps:$4 sm:$0xff]  }
 0x25d   :  { %5809 = vmatprep.subr.bf16.mxu0 %v7957_v41  ;;  %v8041_v41 = vld [vmem:[%s10923_s1 + $0x1654] ss:$8 sps:$4 sm:$0xff]  }
 0x25f   :  { %5318 = vmatpush1.bf16.msra.mxu1 %v7952_v42  ;;  %v8036_v42 = vld [vmem:[%s10923_s1 + $0xa50] ss:$8 sps:$4 sm:$0xff]  }
 0x260   :  { %5810 = vmatpush1.bf16.msra.mxu0 %v7955_v43  ;;  %5319 = vmatprep.subr.bf16.mxu1 %v7960_v44  ;;  %v8039_v43 = vld [vmem:[%s10923_s1 + $0x1650] ss:$8 sps:$4 sm:$0xff]   ;;  %v8044_v44 = vld [vmem:[%s10923_s1 + $0xa64] ss:$8 sps:$4 sm:$0xff]  }
 0x261   :  { %5811 = vmatprep.subr.bf16.mxu0 %v7963_v45  ;;  %v8047_v45 = vld [vmem:[%s10923_s1 + $0x1664] ss:$8 sps:$4 sm:$0xff]  }
 0x263   :  { %5320 = vmatpush1.bf16.msra.mxu1 %v7958_v46  ;;  %v8042_v46 = vld [vmem:[%s10923_s1 + $0xa60] ss:$8 sps:$4 sm:$0xff]  }
 0x264   :  { %5812 = vmatpush1.bf16.msra.mxu0 %v7961_v47  ;;  %5321 = vmatprep.subr.bf16.mxu1 %v7966_v48  ;;  %v8045_v47 = vld [vmem:[%s10923_s1 + $0x1660] ss:$8 sps:$4 sm:$0xff]   ;;  %v8050_v48 = vld [vmem:[%s10923_s1 + $0xa74] ss:$8 sps:$4 sm:$0xff]  }
 0x265   :  { %5813 = vmatprep.subr.bf16.mxu0 %v7969_v49  ;;  %v8053_v49 = vld [vmem:[%s10923_s1 + $0x1674] ss:$8 sps:$4 sm:$0xff]  }
 0x267   :  { %5322 = vmatpush1.bf16.msra.mxu1 %v7964_v50  ;;  %v8048_v50 = vld [vmem:[%s10923_s1 + $0xa70] ss:$8 sps:$4 sm:$0xff]  }
 0x268   :  { %5814 = vmatpush1.bf16.msra.mxu0 %v7967_v51  ;;  %5323 = vmatprep.subr.bf16.mxu1 %v7972_v52  ;;  %v8051_v51 = vld [vmem:[%s10923_s1 + $0x1670] ss:$8 sps:$4 sm:$0xff]   ;;  %v8056_v52 = vld [vmem:[%s10923_s1 + $0xa84] ss:$8 sps:$4 sm:$0xff]  }
 0x269   :  { %5815 = vmatprep.subr.bf16.mxu0 %v7975_v53  ;;  %v8059_v53 = vld [vmem:[%s10923_s1 + $0x1684] ss:$8 sps:$4 sm:$0xff]  }
 0x26b   :  { %5324 = vmatpush1.bf16.msra.mxu1 %v7970_v54  ;;  %v8054_v54 = vld [vmem:[%s10923_s1 + $0xa80] ss:$8 sps:$4 sm:$0xff]  }
 0x26c   :  { %5816 = vmatpush1.bf16.msra.mxu0 %v7973_v55  ;;  %5325 = vmatprep.subr.bf16.mxu1 %v7978_v56  ;;  %v8057_v55 = vld [vmem:[%s10923_s1 + $0x1680] ss:$8 sps:$4 sm:$0xff]   ;;  %v8062_v56 = vld [vmem:[%s10923_s1 + $0xa94] ss:$8 sps:$4 sm:$0xff]  }
 0x26d   :  { %5817 = vmatprep.subr.bf16.mxu0 %v7981_v57  ;;  %v8065_v57 = vld [vmem:[%s10923_s1 + $0x1694] ss:$8 sps:$4 sm:$0xff]  }
 0x26f   :  { %5326 = vmatpush1.bf16.msra.mxu1 %v7976_v58  ;;  %v8060_v58 = vld [vmem:[%s10923_s1 + $0xa90] ss:$8 sps:$4 sm:$0xff]  }
 0x270   :  { %5818 = vmatpush1.bf16.msra.mxu0 %v7979_v59  ;;  %5327 = vmatprep.subr.bf16.mxu1 %v7984_v60  ;;  %v8063_v59 = vld [vmem:[%s10923_s1 + $0x1690] ss:$8 sps:$4 sm:$0xff]   ;;  %v8068_v60 = vld [vmem:[%s10923_s1 + $0xaa4] ss:$8 sps:$4 sm:$0xff]  }
 0x271   :  { %5819 = vmatprep.subr.bf16.mxu0 %v7987_v61  ;;  %v8071_v61 = vld [vmem:[%s10923_s1 + $0x16a4] ss:$8 sps:$4 sm:$0xff]  }
 0x273   :  { %5328 = vmatpush1.bf16.msra.mxu1 %v7982_v62  ;;  %v8066_v62 = vld [vmem:[%s10923_s1 + $0xaa0] ss:$8 sps:$4 sm:$0xff]  }
 0x274   :  { %5820 = vmatpush1.bf16.msra.mxu0 %v7985_v63  ;;  %5329 = vmatprep.subr.bf16.mxu1 %v7990_v0  ;;  %v8069_v63 = vld [vmem:[%s10923_s1 + $0x16a0] ss:$8 sps:$4 sm:$0xff]   ;;  %v8074_v0 = vld [vmem:[%s10923_s1 + $0xab4] ss:$8 sps:$4 sm:$0xff]  }
 0x275   :  { %5821 = vmatprep.subr.bf16.mxu0 %v7993_v1  ;;  %v8077_v1 = vld [vmem:[%s10923_s1 + $0x16b4] ss:$8 sps:$4 sm:$0xff]  }
 0x277   :  { %5330 = vmatpush1.bf16.msra.mxu1 %v7988_v2  ;;  %v8072_v2 = vld [vmem:[%s10923_s1 + $0xab0] ss:$8 sps:$4 sm:$0xff]  }
 0x278   :  { %5822 = vmatpush1.bf16.msra.mxu0 %v7991_v3  ;;  %5331 = vmatprep.subr.bf16.mxu1 %v7996_v4  ;;  %v8075_v3 = vld [vmem:[%s10923_s1 + $0x16b0] ss:$8 sps:$4 sm:$0xff]   ;;  %v8080_v4 = vld [vmem:[%s10923_s1 + $0xac4] ss:$8 sps:$4 sm:$0xff]  }
 0x279   :  { %5823 = vmatprep.subr.bf16.mxu0 %v7999_v5  ;;  %v8083_v5 = vld [vmem:[%s10923_s1 + $0x16c4] ss:$8 sps:$4 sm:$0xff]  }
 0x27b   :  { %5332 = vmatpush1.bf16.msra.mxu1 %v7994_v6  ;;  %v8078_v6 = vld [vmem:[%s10923_s1 + $0xac0] ss:$8 sps:$4 sm:$0xff]  }
 0x27c   :  { %5824 = vmatpush1.bf16.msra.mxu0 %v7997_v7  ;;  %5333 = vmatprep.subr.bf16.mxu1 %v8002_v8  ;;  %v8081_v7 = vld [vmem:[%s10923_s1 + $0x16c0] ss:$8 sps:$4 sm:$0xff]   ;;  %v8086_v8 = vld [vmem:[%s10923_s1 + $0xad4] ss:$8 sps:$4 sm:$0xff]  }
 0x27d   :  { %5825 = vmatprep.subr.bf16.mxu0 %v8005_v9  ;;  %v8089_v9 = vld [vmem:[%s10923_s1 + $0x16d4] ss:$8 sps:$4 sm:$0xff]  }
 0x27f   :  { %5334 = vmatpush1.bf16.msra.mxu1 %v8000_v10  ;;  %v8084_v10 = vld [vmem:[%s10923_s1 + $0xad0] ss:$8 sps:$4 sm:$0xff]  }
 0x280   :  { %5826 = vmatpush1.bf16.msra.mxu0 %v8003_v11  ;;  %5344 = vmatprep.subr.bf16.mxu1 %v8008_v14  ;;  %v8087_v11 = vld [vmem:[%s10923_s1 + $0x16d0] ss:$8 sps:$4 sm:$0xff]   ;;  %v8090_v14 = vld [vmem:[%s10923_s1 + $0xae0] ss:$8 sps:$4 sm:$0xff]  }
 0x281   :  { %5836 = vmatprep.subr.bf16.mxu0 %v8011_v15  ;;  %v8093_v15 = vld [vmem:[%s10923_s1 + $0x16e0] ss:$8 sps:$4 sm:$0xff]  }
 0x282   :  { %5336 = vmatmul.mubr.bf16.vlgmr.msra.gmra.mrb[0].mxu1 %v90_v16  ;;  %v8098_v16 = vld [vmem:[%s10923_s1 + $0xaf4] ss:$8 sps:$4 sm:$0xff]  }
 0x283   :  { %5828 = vmatmul.mubr.bf16.vlgmr.msra.gmra.mrb[0].mxu0 %v114_v17  ;;  %5345 = vmatpush1.bf16.msra.mxu1 %v8006_v20  ;;  %v8101_v17 = vld [vmem:[%s10923_s1 + $0x16f4] ss:$8 sps:$4 sm:$0xff]   ;;  %v42_v20 = vld [vmem:[%s10922_s0 + $0xa0] sm:$0xff] }
 0x284   :  { %5837 = vmatpush1.bf16.msra.mxu0 %v8009_v21  ;;  %5346 = vmatprep.subr.bf16.mxu1 %v8014_v22  ;;  %v66_v21 = vld [vmem:[%s10922_s0 + $0x160] sm:$0xff] }
 0x285   :  { %5838 = vmatprep.subr.bf16.mxu0 %v8017_v23  ;;  %5376 = vmatprep.mubr.bf16.mxu1 %v93_v24  ;;  %v8104_v22 = vld [vmem:[%s10923_s1 + $0xb04] ss:$8 sps:$4 sm:$0xff]   ;;  %v92_v24 = vpack.c.bf16 %v42_v20, %v42_v20 }
 0x286   :  { %5868 = vmatprep.mubr.bf16.mxu0 %v117_v25  ;;  %v8107_v23 = vld [vmem:[%s10923_s1 + $0x1704] ss:$8 sps:$4 sm:$0xff]   ;;  %v116_v25 = vpack.c.bf16 %v66_v21, %v66_v21 }
 0x287   :  { %5347 = vmatpush1.bf16.msra.mxu1 %v8012_v26  ;;  %v45_v26 = vld [vmem:[%s10922_s0 + $0xb8] sm:$0xff]  ;;  %v8188_v20 = vld [vmem:[%s10923_s1 + $0xbe4] ss:$8 sps:$4 sm:$0xff]  }
 0x288   :  { %5839 = vmatpush1.bf16.msra.mxu0 %v8015_v27  ;;  %5348 = vmatprep.subr.bf16.mxu1 %v8020_v28  ;;  %v69_v27 = vld [vmem:[%s10922_s0 + $0x178] sm:$0xff]  ;;  %v8102_v28 = vld [vmem:[%s10923_s1 + $0xb00] ss:$8 sps:$4 sm:$0xff]   ;;  %v8191_v21 = vld [vmem:[%s10923_s1 + $0x17e4] ss:$8 sps:$4 sm:$0xff]  }
 0x289   :  { %5840 = vmatprep.subr.bf16.mxu0 %v8023_v29  ;;  %v8105_v29 = vld [vmem:[%s10923_s1 + $0x1700] ss:$8 sps:$4 sm:$0xff]  }
 0x28b   :  { %5349 = vmatpush1.bf16.msra.mxu1 %v8018_v30  ;;  %v8110_v30 = vld [vmem:[%s10923_s1 + $0xb14] ss:$8 sps:$4 sm:$0xff]  }
 0x28c   :  { %5841 = vmatpush1.bf16.msra.mxu0 %v8021_v31  ;;  %5350 = vmatprep.subr.bf16.mxu1 %v8026_v32  ;;  %v8113_v31 = vld [vmem:[%s10923_s1 + $0x1714] ss:$8 sps:$4 sm:$0xff]   ;;  %v95_v32 = vpack.c.bf16 %v45_v26, %v45_v26  ;;  %v8192_v26 = vld [vmem:[%s10923_s1 + $0xbf0] ss:$8 sps:$4 sm:$0xff]  }
 0x28d   :  { %5842 = vmatprep.subr.bf16.mxu0 %v8029_v33  ;;  %v119_v33 = vpack.c.bf16 %v69_v27, %v69_v27  ;;  %v8195_v27 = vld [vmem:[%s10923_s1 + $0x17f0] ss:$8 sps:$4 sm:$0xff]  }
 0x28f   :  { %5351 = vmatpush1.bf16.msra.mxu1 %v8024_v34  ;;  %v8108_v34 = vld [vmem:[%s10923_s1 + $0xb10] ss:$8 sps:$4 sm:$0xff]  }
 0x290   :  { %5843 = vmatpush1.bf16.msra.mxu0 %v8027_v35  ;;  %5352 = vmatprep.subr.bf16.mxu1 %v8032_v36  ;;  %v8111_v35 = vld [vmem:[%s10923_s1 + $0x1710] ss:$8 sps:$4 sm:$0xff]   ;;  %v8116_v36 = vld [vmem:[%s10923_s1 + $0xb24] ss:$8 sps:$4 sm:$0xff]  }
 0x291   :  { %5844 = vmatprep.subr.bf16.mxu0 %v8035_v37  ;;  %v8119_v37 = vld [vmem:[%s10923_s1 + $0x1724] ss:$8 sps:$4 sm:$0xff]  }
 0x293   :  { %5353 = vmatpush1.bf16.msra.mxu1 %v8030_v38  ;;  %v8114_v38 = vld [vmem:[%s10923_s1 + $0xb20] ss:$8 sps:$4 sm:$0xff]  }
 0x294   :  { %5845 = vmatpush1.bf16.msra.mxu0 %v8033_v39  ;;  %5354 = vmatprep.subr.bf16.mxu1 %v8038_v40  ;;  %v8117_v39 = vld [vmem:[%s10923_s1 + $0x1720] ss:$8 sps:$4 sm:$0xff]   ;;  %v8122_v40 = vld [vmem:[%s10923_s1 + $0xb34] ss:$8 sps:$4 sm:$0xff]  }
 0x295   :  { %5846 = vmatprep.subr.bf16.mxu0 %v8041_v41  ;;  %v8125_v41 = vld [vmem:[%s10923_s1 + $0x1734] ss:$8 sps:$4 sm:$0xff]  }
 0x297   :  { %5355 = vmatpush1.bf16.msra.mxu1 %v8036_v42  ;;  %v8120_v42 = vld [vmem:[%s10923_s1 + $0xb30] ss:$8 sps:$4 sm:$0xff]  }
 0x298   :  { %5847 = vmatpush1.bf16.msra.mxu0 %v8039_v43  ;;  %5356 = vmatprep.subr.bf16.mxu1 %v8044_v44  ;;  %v8123_v43 = vld [vmem:[%s10923_s1 + $0x1730] ss:$8 sps:$4 sm:$0xff]   ;;  %v8128_v44 = vld [vmem:[%s10923_s1 + $0xb44] ss:$8 sps:$4 sm:$0xff]  }
 0x299   :  { %5848 = vmatprep.subr.bf16.mxu0 %v8047_v45  ;;  %v8131_v45 = vld [vmem:[%s10923_s1 + $0x1744] ss:$8 sps:$4 sm:$0xff]  }
 0x29b   :  { %5357 = vmatpush1.bf16.msra.mxu1 %v8042_v46  ;;  %v8126_v46 = vld [vmem:[%s10923_s1 + $0xb40] ss:$8 sps:$4 sm:$0xff]  }
 0x29c   :  { %5849 = vmatpush1.bf16.msra.mxu0 %v8045_v47  ;;  %5358 = vmatprep.subr.bf16.mxu1 %v8050_v48  ;;  %v8129_v47 = vld [vmem:[%s10923_s1 + $0x1740] ss:$8 sps:$4 sm:$0xff]   ;;  %v8134_v48 = vld [vmem:[%s10923_s1 + $0xb54] ss:$8 sps:$4 sm:$0xff]  }
 0x29d   :  { %5850 = vmatprep.subr.bf16.mxu0 %v8053_v49  ;;  %v8137_v49 = vld [vmem:[%s10923_s1 + $0x1754] ss:$8 sps:$4 sm:$0xff]  }
 0x29f   :  { %5359 = vmatpush1.bf16.msra.mxu1 %v8048_v50  ;;  %v8132_v50 = vld [vmem:[%s10923_s1 + $0xb50] ss:$8 sps:$4 sm:$0xff]  }
 0x2a0   :  { %5851 = vmatpush1.bf16.msra.mxu0 %v8051_v51  ;;  %5360 = vmatprep.subr.bf16.mxu1 %v8056_v52  ;;  %v8135_v51 = vld [vmem:[%s10923_s1 + $0x1750] ss:$8 sps:$4 sm:$0xff]   ;;  %v8140_v52 = vld [vmem:[%s10923_s1 + $0xb64] ss:$8 sps:$4 sm:$0xff]  }
 0x2a1   :  { %5852 = vmatprep.subr.bf16.mxu0 %v8059_v53  ;;  %v8143_v53 = vld [vmem:[%s10923_s1 + $0x1764] ss:$8 sps:$4 sm:$0xff]  }
 0x2a3   :  { %5361 = vmatpush1.bf16.msra.mxu1 %v8054_v54  ;;  %v8138_v54 = vld [vmem:[%s10923_s1 + $0xb60] ss:$8 sps:$4 sm:$0xff]  }
 0x2a4   :  { %5853 = vmatpush1.bf16.msra.mxu0 %v8057_v55  ;;  %5362 = vmatprep.subr.bf16.mxu1 %v8062_v56  ;;  %v8141_v55 = vld [vmem:[%s10923_s1 + $0x1760] ss:$8 sps:$4 sm:$0xff]   ;;  %v8146_v56 = vld [vmem:[%s10923_s1 + $0xb74] ss:$8 sps:$4 sm:$0xff]  }
 0x2a5   :  { %5854 = vmatprep.subr.bf16.mxu0 %v8065_v57  ;;  %v8149_v57 = vld [vmem:[%s10923_s1 + $0x1774] ss:$8 sps:$4 sm:$0xff]  }
 0x2a7   :  { %5363 = vmatpush1.bf16.msra.mxu1 %v8060_v58  ;;  %v8144_v58 = vld [vmem:[%s10923_s1 + $0xb70] ss:$8 sps:$4 sm:$0xff]  }
 0x2a8   :  { %5855 = vmatpush1.bf16.msra.mxu0 %v8063_v59  ;;  %5364 = vmatprep.subr.bf16.mxu1 %v8068_v60  ;;  %v8147_v59 = vld [vmem:[%s10923_s1 + $0x1770] ss:$8 sps:$4 sm:$0xff]   ;;  %v8152_v60 = vld [vmem:[%s10923_s1 + $0xb84] ss:$8 sps:$4 sm:$0xff]  }
 0x2a9   :  { %5856 = vmatprep.subr.bf16.mxu0 %v8071_v61  ;;  %v8155_v61 = vld [vmem:[%s10923_s1 + $0x1784] ss:$8 sps:$4 sm:$0xff]  }
 0x2ab   :  { %5365 = vmatpush1.bf16.msra.mxu1 %v8066_v62  ;;  %v8150_v62 = vld [vmem:[%s10923_s1 + $0xb80] ss:$8 sps:$4 sm:$0xff]  }
 0x2ac   :  { %5857 = vmatpush1.bf16.msra.mxu0 %v8069_v63  ;;  %5366 = vmatprep.subr.bf16.mxu1 %v8074_v0  ;;  %v8153_v63 = vld [vmem:[%s10923_s1 + $0x1780] ss:$8 sps:$4 sm:$0xff]   ;;  %v8158_v0 = vld [vmem:[%s10923_s1 + $0xb94] ss:$8 sps:$4 sm:$0xff]  }
 0x2ad   :  { %5858 = vmatprep.subr.bf16.mxu0 %v8077_v1  ;;  %v8161_v1 = vld [vmem:[%s10923_s1 + $0x1794] ss:$8 sps:$4 sm:$0xff]  }
 0x2af   :  { %5367 = vmatpush1.bf16.msra.mxu1 %v8072_v2  ;;  %v8156_v2 = vld [vmem:[%s10923_s1 + $0xb90] ss:$8 sps:$4 sm:$0xff]  }
 0x2b0   :  { %5859 = vmatpush1.bf16.msra.mxu0 %v8075_v3  ;;  %5368 = vmatprep.subr.bf16.mxu1 %v8080_v4  ;;  %v8159_v3 = vld [vmem:[%s10923_s1 + $0x1790] ss:$8 sps:$4 sm:$0xff]   ;;  %v8164_v4 = vld [vmem:[%s10923_s1 + $0xba4] ss:$8 sps:$4 sm:$0xff]  }
 0x2b1   :  { %5860 = vmatprep.subr.bf16.mxu0 %v8083_v5  ;;  %v8167_v5 = vld [vmem:[%s10923_s1 + $0x17a4] ss:$8 sps:$4 sm:$0xff]  }
 0x2b3   :  { %5369 = vmatpush1.bf16.msra.mxu1 %v8078_v6  ;;  %v8162_v6 = vld [vmem:[%s10923_s1 + $0xba0] ss:$8 sps:$4 sm:$0xff]  }
 0x2b4   :  { %5861 = vmatpush1.bf16.msra.mxu0 %v8081_v7  ;;  %5370 = vmatprep.subr.bf16.mxu1 %v8086_v8  ;;  %v8165_v7 = vld [vmem:[%s10923_s1 + $0x17a0] ss:$8 sps:$4 sm:$0xff]   ;;  %v8170_v8 = vld [vmem:[%s10923_s1 + $0xbb4] ss:$8 sps:$4 sm:$0xff]  }
 0x2b5   :  { %5862 = vmatprep.subr.bf16.mxu0 %v8089_v9  ;;  %v8173_v9 = vld [vmem:[%s10923_s1 + $0x17b4] ss:$8 sps:$4 sm:$0xff]  }
 0x2b7   :  { %5371 = vmatpush1.bf16.msra.mxu1 %v8084_v10  ;;  %v8168_v10 = vld [vmem:[%s10923_s1 + $0xbb0] ss:$8 sps:$4 sm:$0xff]  }
 0x2b8   :  { %5863 = vmatpush1.bf16.msra.mxu0 %v8087_v11  ;;  %5372 = vmatprep.subr.bf16.mxu1 %v8092_v12  ;;  %v8171_v11 = vld [vmem:[%s10923_s1 + $0x17b0] ss:$8 sps:$4 sm:$0xff]   ;;  %v8176_v12 = vld [vmem:[%s10923_s1 + $0xbc4] ss:$8 sps:$4 sm:$0xff]  }
 0x2b9   :  { %5864 = vmatprep.subr.bf16.mxu0 %v8095_v13  ;;  %v8179_v13 = vld [vmem:[%s10923_s1 + $0x17c4] ss:$8 sps:$4 sm:$0xff]  }
 0x2bb   :  { %5373 = vmatpush1.bf16.msra.mxu1 %v8090_v14  ;;  %v8174_v14 = vld [vmem:[%s10923_s1 + $0xbc0] ss:$8 sps:$4 sm:$0xff]  }
 0x2bc   :  { %5865 = vmatpush1.bf16.msra.mxu0 %v8093_v15  ;;  %5374 = vmatprep.subr.bf16.mxu1 %v8098_v16  ;;  %v8177_v15 = vld [vmem:[%s10923_s1 + $0x17c0] ss:$8 sps:$4 sm:$0xff]   ;;  %v8182_v16 = vld [vmem:[%s10923_s1 + $0xbd4] ss:$8 sps:$4 sm:$0xff]  }
 0x2bd   :  { %5866 = vmatprep.subr.bf16.mxu0 %v8101_v17  ;;  %v8185_v17 = vld [vmem:[%s10923_s1 + $0x17d4] ss:$8 sps:$4 sm:$0xff]  }
 0x2bf   :  { %5375 = vmatpush1.bf16.msra.mxu1 %v8096_v18  ;;  %v8180_v18 = vld [vmem:[%s10923_s1 + $0xbd0] ss:$8 sps:$4 sm:$0xff]  }
 0x2c0   :  { %5867 = vmatpush1.bf16.msra.mxu0 %v8099_v19  ;;  %5385 = vmatprep.subr.bf16.mxu1 %v8104_v22  ;;  %v8183_v19 = vld [vmem:[%s10923_s1 + $0x17d0] ss:$8 sps:$4 sm:$0xff]   ;;  %v8186_v22 = vld [vmem:[%s10923_s1 + $0xbe0] ss:$8 sps:$4 sm:$0xff]  }
 0x2c1   :  { %5877 = vmatprep.subr.bf16.mxu0 %v8107_v23  ;;  %v8189_v23 = vld [vmem:[%s10923_s1 + $0x17e0] ss:$8 sps:$4 sm:$0xff]  }
 0x2c2   :  { %5377 = vmatmul.mubr.bf16.vlgmr.msra.gmra.mrb[0].mxu1 %v92_v24  ;;  %v8194_v24 = vld [vmem:[%s10923_s1 + $0xbf4] ss:$8 sps:$4 sm:$0xff]  }
 0x2c3   :  { %5869 = vmatmul.mubr.bf16.vlgmr.msra.gmra.mrb[0].mxu0 %v116_v25  ;;  %5386 = vmatpush1.bf16.msra.mxu1 %v8102_v28  ;;  %v8197_v25 = vld [vmem:[%s10923_s1 + $0x17f4] ss:$8 sps:$4 sm:$0xff]  }
 0x2c4   :  { %5878 = vmatpush1.bf16.msra.mxu0 %v8105_v29  ;;  %5387 = vmatprep.subr.bf16.mxu1 %v8110_v30  ;;  %v44_v28 = vld [vmem:[%s10922_s0 + $0xb0] sm:$0xff]  ;;  %v8200_v30 = vld [vmem:[%s10923_s1 + $0x1804] ss:$8 sps:$4 sm:$0xff]  }
 0x2c5   :  { %5879 = vmatprep.subr.bf16.mxu0 %v8113_v31  ;;  %5417 = vmatprep.mubr.bf16.mxu1 %v95_v32  ;;  %v68_v29 = vld [vmem:[%s10922_s0 + $0x170] sm:$0xff]  ;;  %v71_v31 = vld [vmem:[%s10922_s0 + $0x188] sm:$0xff]  ;;  %v94_v32 = vpack.c.bf16 %v44_v28, %v44_v28 }
 0x2c6   :  { %5909 = vmatprep.mubr.bf16.mxu0 %v119_v33  ;;  %v118_v33 = vpack.c.bf16 %v68_v29, %v68_v29 }
 0x2c7   :  { %5388 = vmatpush1.bf16.msra.mxu1 %v8108_v34  ;;  %v8198_v34 = vld [vmem:[%s10923_s1 + $0x1800] ss:$8 sps:$4 sm:$0xff]  }
 0x2c8   :  { %5880 = vmatpush1.bf16.msra.mxu0 %v8111_v35  ;;  %5389 = vmatprep.subr.bf16.mxu1 %v8116_v36  ;;  %v121_v35 = vpack.c.bf16 %v71_v31, %v71_v31  ;;  %v8203_v36 = vld [vmem:[%s10923_s1 + $0x1814] ss:$8 sps:$4 sm:$0xff]  }
 0x2c9   :  { %5881 = vmatprep.subr.bf16.mxu0 %v8119_v37  ;;  %v8201_v37 = vld [vmem:[%s10923_s1 + $0x1810] ss:$8 sps:$4 sm:$0xff]  }
 0x2cb   :  { %5390 = vmatpush1.bf16.msra.mxu1 %v8114_v38  ;;  %v8206_v38 = vld [vmem:[%s10923_s1 + $0x1824] ss:$8 sps:$4 sm:$0xff]  }
 0x2cc   :  { %5882 = vmatpush1.bf16.msra.mxu0 %v8117_v39  ;;  %5391 = vmatprep.subr.bf16.mxu1 %v8122_v40  ;;  %v8204_v39 = vld [vmem:[%s10923_s1 + $0x1820] ss:$8 sps:$4 sm:$0xff]   ;;  %v8209_v40 = vld [vmem:[%s10923_s1 + $0x1834] ss:$8 sps:$4 sm:$0xff]  }
 0x2cd   :  { %5883 = vmatprep.subr.bf16.mxu0 %v8125_v41  ;;  %v8207_v41 = vld [vmem:[%s10923_s1 + $0x1830] ss:$8 sps:$4 sm:$0xff]  }
 0x2cf   :  { %5392 = vmatpush1.bf16.msra.mxu1 %v8120_v42  ;;  %v8212_v42 = vld [vmem:[%s10923_s1 + $0x1844] ss:$8 sps:$4 sm:$0xff]  }
 0x2d0   :  { %5884 = vmatpush1.bf16.msra.mxu0 %v8123_v43  ;;  %5393 = vmatprep.subr.bf16.mxu1 %v8128_v44  ;;  %v8210_v43 = vld [vmem:[%s10923_s1 + $0x1840] ss:$8 sps:$4 sm:$0xff]   ;;  %v8215_v44 = vld [vmem:[%s10923_s1 + $0x1854] ss:$8 sps:$4 sm:$0xff]  }
 0x2d1   :  { %5885 = vmatprep.subr.bf16.mxu0 %v8131_v45  ;;  %v8213_v45 = vld [vmem:[%s10923_s1 + $0x1850] ss:$8 sps:$4 sm:$0xff]  }
 0x2d3   :  { %5394 = vmatpush1.bf16.msra.mxu1 %v8126_v46  ;;  %v8218_v46 = vld [vmem:[%s10923_s1 + $0x1864] ss:$8 sps:$4 sm:$0xff]  }
 0x2d4   :  { %5886 = vmatpush1.bf16.msra.mxu0 %v8129_v47  ;;  %5395 = vmatprep.subr.bf16.mxu1 %v8134_v48  ;;  %v8216_v47 = vld [vmem:[%s10923_s1 + $0x1860] ss:$8 sps:$4 sm:$0xff]   ;;  %v8221_v48 = vld [vmem:[%s10923_s1 + $0x1874] ss:$8 sps:$4 sm:$0xff]  }
 0x2d5   :  { %5887 = vmatprep.subr.bf16.mxu0 %v8137_v49  ;;  %v8219_v49 = vld [vmem:[%s10923_s1 + $0x1870] ss:$8 sps:$4 sm:$0xff]  }
 0x2d7   :  { %5396 = vmatpush1.bf16.msra.mxu1 %v8132_v50  ;;  %v8224_v50 = vld [vmem:[%s10923_s1 + $0x1884] ss:$8 sps:$4 sm:$0xff]  }
 0x2d8   :  { %5888 = vmatpush1.bf16.msra.mxu0 %v8135_v51  ;;  %5397 = vmatprep.subr.bf16.mxu1 %v8140_v52  ;;  %v8222_v51 = vld [vmem:[%s10923_s1 + $0x1880] ss:$8 sps:$4 sm:$0xff]   ;;  %v8227_v52 = vld [vmem:[%s10923_s1 + $0x1894] ss:$8 sps:$4 sm:$0xff]  }
 0x2d9   :  { %5889 = vmatprep.subr.bf16.mxu0 %v8143_v53  ;;  %v8225_v53 = vld [vmem:[%s10923_s1 + $0x1890] ss:$8 sps:$4 sm:$0xff]  }
 0x2db   :  { %5398 = vmatpush1.bf16.msra.mxu1 %v8138_v54  ;;  %v8230_v54 = vld [vmem:[%s10923_s1 + $0x18a4] ss:$8 sps:$4 sm:$0xff]  }
 0x2dc   :  { %5890 = vmatpush1.bf16.msra.mxu0 %v8141_v55  ;;  %5399 = vmatprep.subr.bf16.mxu1 %v8146_v56  ;;  %v8228_v55 = vld [vmem:[%s10923_s1 + $0x18a0] ss:$8 sps:$4 sm:$0xff]   ;;  %v8233_v56 = vld [vmem:[%s10923_s1 + $0x18b4] ss:$8 sps:$4 sm:$0xff]  }
 0x2dd   :  { %5891 = vmatprep.subr.bf16.mxu0 %v8149_v57  ;;  %v8231_v57 = vld [vmem:[%s10923_s1 + $0x18b0] ss:$8 sps:$4 sm:$0xff]  }
 0x2df   :  { %5400 = vmatpush1.bf16.msra.mxu1 %v8144_v58  ;;  %v8236_v58 = vld [vmem:[%s10923_s1 + $0x18c4] ss:$8 sps:$4 sm:$0xff]  }
 0x2e0   :  { %5892 = vmatpush1.bf16.msra.mxu0 %v8147_v59  ;;  %5401 = vmatprep.subr.bf16.mxu1 %v8152_v60  ;;  %v8234_v59 = vld [vmem:[%s10923_s1 + $0x18c0] ss:$8 sps:$4 sm:$0xff]   ;;  %v8239_v60 = vld [vmem:[%s10923_s1 + $0x18d4] ss:$8 sps:$4 sm:$0xff]  }
 0x2e1   :  { %5893 = vmatprep.subr.bf16.mxu0 %v8155_v61  ;;  %v8237_v61 = vld [vmem:[%s10923_s1 + $0x18d0] ss:$8 sps:$4 sm:$0xff]  }
 0x2e3   :  { %5402 = vmatpush1.bf16.msra.mxu1 %v8150_v62  ;;  %v8242_v62 = vld [vmem:[%s10923_s1 + $0x18e4] ss:$8 sps:$4 sm:$0xff]  }
 0x2e4   :  { %5894 = vmatpush1.bf16.msra.mxu0 %v8153_v63  ;;  %5403 = vmatprep.subr.bf16.mxu1 %v8158_v0  ;;  %v8240_v63 = vld [vmem:[%s10923_s1 + $0x18e0] ss:$8 sps:$4 sm:$0xff]   ;;  %v8245_v0 = vld [vmem:[%s10923_s1 + $0x18f4] ss:$8 sps:$4 sm:$0xff]  }
 0x2e5   :  { %5895 = vmatprep.subr.bf16.mxu0 %v8161_v1  ;;  %v8243_v1 = vld [vmem:[%s10923_s1 + $0x18f0] ss:$8 sps:$4 sm:$0xff]  }
 0x2e7   :  { %5404 = vmatpush1.bf16.msra.mxu1 %v8156_v2  ;;  %v70_v2 = vld [vmem:[%s10922_s0 + $0x180] sm:$0xff] }
 0x2e8   :  { %5896 = vmatpush1.bf16.msra.mxu0 %v8159_v3  ;;  %5405 = vmatprep.subr.bf16.mxu1 %v8164_v4  ;;  %v120_v3 = vpack.c.bf16 %v70_v2, %v70_v2  ;;  %v8246_v4 = vld [vmem:[%s10925_s3] sm:$0xff]  }
 0x2e9   :  { %5897 = vmatprep.subr.bf16.mxu0 %v8167_v5  ;;  %v8283_v5 = vmov 0  }
 0x2eb   :  { %5406 = vmatpush1.bf16.msra.mxu1 %v8162_v6  ;;  %v8247_v6 = vld [vmem:[%s10925_s3 + $0x8] sm:$0xff]  }
 0x2ec   :  { %5898 = vmatpush1.bf16.msra.mxu0 %v8165_v7  ;;  %5407 = vmatprep.subr.bf16.mxu1 %v8170_v8  ;;  %v8248_v7 = vld [vmem:[%s10925_s3 + $0x10] sm:$0xff]   ;;  %v8249_v8 = vld [vmem:[%s10925_s3 + $0x18] sm:$0xff]  }
 0x2ed   :  { %5899 = vmatprep.subr.bf16.mxu0 %v8173_v9  ;;  %v8250_v9 = vld [vmem:[%s10925_s3 + $0x20] sm:$0xff]  }
 0x2ef   :  { %5408 = vmatpush1.bf16.msra.mxu1 %v8168_v10  ;;  %v8251_v10 = vld [vmem:[%s10925_s3 + $0x28] sm:$0xff]  }
 0x2f0   :  { %5900 = vmatpush1.bf16.msra.mxu0 %v8171_v11  ;;  %5409 = vmatprep.subr.bf16.mxu1 %v8176_v12  ;;  %v8252_v11 = vld [vmem:[%s10925_s3 + $0x30] sm:$0xff]   ;;  %v8253_v12 = vld [vmem:[%s10925_s3 + $0x38] sm:$0xff]  }
 0x2f1   :  { %5901 = vmatprep.subr.bf16.mxu0 %v8179_v13  ;;  %v8254_v13 = vld [vmem:[%s10925_s3 + $0x40] sm:$0xff]  }
 0x2f3   :  { %5410 = vmatpush1.bf16.msra.mxu1 %v8174_v14  ;;  %v8255_v14 = vld [vmem:[%s10925_s3 + $0x48] sm:$0xff]  }
 0x2f4   :  { %5902 = vmatpush1.bf16.msra.mxu0 %v8177_v15  ;;  %5411 = vmatprep.subr.bf16.mxu1 %v8182_v16  ;;  %v8256_v15 = vld [vmem:[%s10925_s3 + $0x50] sm:$0xff]   ;;  %v8257_v16 = vld [vmem:[%s10925_s3 + $0x58] sm:$0xff]  }
 0x2f5   :  { %5903 = vmatprep.subr.bf16.mxu0 %v8185_v17  ;;  %v8258_v17 = vld [vmem:[%s10925_s3 + $0x60] ss:$0 sps:$4 sm:$0xff]  }
 0x2f7   :  { %5412 = vmatpush1.bf16.msra.mxu1 %v8180_v18  ;;  %v6076_v18 = vsel %vm6074_vm0, %v8258_v17, 0 }
 0x2f8   :  { %5904 = vmatpush1.bf16.msra.mxu0 %v8183_v19  ;;  %5413 = vmatprep.subr.bf16.mxu1 %v8188_v20 }
 0x2f9   :  { %5905 = vmatprep.subr.bf16.mxu0 %v8191_v21 }
 0x2fb   :  { %5414 = vmatpush1.bf16.msra.mxu1 %v8186_v22 }
 0x2fc   :  { %5906 = vmatpush1.bf16.msra.mxu0 %v8189_v23  ;;  %5415 = vmatprep.subr.bf16.mxu1 %v8194_v24  ;;  %v924_v23 = vlaneseq }
 0x2fd   :  { %5907 = vmatprep.subr.bf16.mxu0 %v8197_v25 }
 0x2fe   :  { %v925_v24 = vshrl.u32 %v924_v23, 7 }
 0x2ff   :  { %5416 = vmatpush1.bf16.msra.mxu1 %v8192_v26  ;;  %v922_v26 = vld [vmem:[%s10924_s2] sm:$0x3] }
 0x300   :  { %5908 = vmatpush1.bf16.msra.mxu0 %v8195_v27  ;;  %6078 = vmatprep.subr.bf16.mxu1 %v8283_v5  ;;  %v926_v25 = vsub.s32 0, %v925_v24  ;;  %v930_v27 = vsub.s32 1, %v925_v24 }
 0x301   :  { %5918 = vmatprep.subr.bf16.mxu0 %v8200_v30 }
 0x302   :  { %5418 = vmatmul.mubr.bf16.vlgmr.msra.gmra.mrb[0].mxu1 %v94_v32  ;;  %v927_v28 = vrot.slane %v922_v26, %v926_v25  ;;  %v931_v29 = vrot.slane %v922_v26, %v930_v27 }
 0x303   :  { %5910 = vmatmul.mubr.bf16.vlgmr.msra.gmra.mrb[0].mxu0 %v118_v33  ;;  %6079 = vmatpush1.bf16.msra.mxu1 %v8246_v4 }
 0x304   :  { %5919 = vmatpush1.bf16.msra.mxu0 %v8198_v34  ;;  %5950 = vmatprep.mubr.bf16.mxu0 %v121_v35 }
 0x305   :  { %5920 = vmatprep.subr.bf16.mxu0 %v8203_v36  ;;  %6080 = vmatprep.subr.bf16.mxu1 %v8283_v5 }
 0x307   :  { %6081 = vmatpush1.bf16.msra.mxu1 %v8247_v6 }
 0x308   :  { %5921 = vmatpush1.bf16.msra.mxu0 %v8201_v37  ;;  %6082 = vmatprep.subr.bf16.mxu1 %v8283_v5 }
 0x309   :  { %5922 = vmatprep.subr.bf16.mxu0 %v8206_v38 }
 0x30b   :  { %6083 = vmatpush1.bf16.msra.mxu1 %v8248_v7 }
 0x30c   :  { %5923 = vmatpush1.bf16.msra.mxu0 %v8204_v39  ;;  %6084 = vmatprep.subr.bf16.mxu1 %v8283_v5 }
 0x30d   :  { %5924 = vmatprep.subr.bf16.mxu0 %v8209_v40 }
 0x30f   :  { %6085 = vmatpush1.bf16.msra.mxu1 %v8249_v8 }
 0x310   :  { %5925 = vmatpush1.bf16.msra.mxu0 %v8207_v41  ;;  %6086 = vmatprep.subr.bf16.mxu1 %v8283_v5 }
 0x311   :  { %5926 = vmatprep.subr.bf16.mxu0 %v8212_v42  ;;  %v6933_v42 = vld [vmem:[%s10926_s4] ss:$0 sm:$0xff] }
 0x313   :  { %6087 = vmatpush1.bf16.msra.mxu1 %v8250_v9 }
 0x314   :  { %5927 = vmatpush1.bf16.msra.mxu0 %v8210_v43  ;;  %6088 = vmatprep.subr.bf16.mxu1 %v8283_v5 }
 0x315   :  { %5928 = vmatprep.subr.bf16.mxu0 %v8215_v44 }
 0x317   :  { %6089 = vmatpush1.bf16.msra.mxu1 %v8251_v10 }
 0x318   :  { %5929 = vmatpush1.bf16.msra.mxu0 %v8213_v45  ;;  %6090 = vmatprep.subr.bf16.mxu1 %v8283_v5 }
 0x319   :  { %5930 = vmatprep.subr.bf16.mxu0 %v8218_v46 }
 0x31b   :  { %6091 = vmatpush1.bf16.msra.mxu1 %v8252_v11 }
 0x31c   :  { %5931 = vmatpush1.bf16.msra.mxu0 %v8216_v47  ;;  %6092 = vmatprep.subr.bf16.mxu1 %v8283_v5 }
 0x31d   :  { %5932 = vmatprep.subr.bf16.mxu0 %v8221_v48 }
 0x31f   :  { %6093 = vmatpush1.bf16.msra.mxu1 %v8253_v12 }
 0x320   :  { %5933 = vmatpush1.bf16.msra.mxu0 %v8219_v49  ;;  %6094 = vmatprep.subr.bf16.mxu1 %v8283_v5 }
 0x321   :  { %5934 = vmatprep.subr.bf16.mxu0 %v8224_v50 }
 0x323   :  { %6095 = vmatpush1.bf16.msra.mxu1 %v8254_v13 }
 0x324   :  { %5935 = vmatpush1.bf16.msra.mxu0 %v8222_v51  ;;  %6096 = vmatprep.subr.bf16.mxu1 %v8283_v5 }
 0x325   :  { %5936 = vmatprep.subr.bf16.mxu0 %v8227_v52 }
 0x327   :  { %6097 = vmatpush1.bf16.msra.mxu1 %v8255_v14 }
 0x328   :  { %5937 = vmatpush1.bf16.msra.mxu0 %v8225_v53  ;;  %6098 = vmatprep.subr.bf16.mxu1 %v8283_v5 }
 0x329   :  { %5938 = vmatprep.subr.bf16.mxu0 %v8230_v54 }
 0x32b   :  { %6099 = vmatpush1.bf16.msra.mxu1 %v8256_v15 }
 0x32c   :  { %5939 = vmatpush1.bf16.msra.mxu0 %v8228_v55  ;;  %6100 = vmatprep.subr.bf16.mxu1 %v8283_v5 }
 0x32d   :  { %5940 = vmatprep.subr.bf16.mxu0 %v8233_v56 }
 0x32f   :  { %6101 = vmatpush1.bf16.msra.mxu1 %v8257_v16 }
 0x330   :  { %5941 = vmatpush1.bf16.msra.mxu0 %v8231_v57  ;;  %6102 = vmatprep.subr.bf16.mxu1 %v8283_v5 }
 0x331   :  { %5942 = vmatprep.subr.bf16.mxu0 %v8236_v58 }
 0x333   :  { %6103 = vmatpush1.bf16.msra.mxu1 %v6076_v18 }
 0x334   :  { %5943 = vmatpush1.bf16.msra.mxu0 %v8234_v59 }
 0x335   :  { %5944 = vmatprep.subr.bf16.mxu0 %v8239_v60 }
 0x338   :  { %5945 = vmatpush1.bf16.msra.mxu0 %v8237_v61 }
 0x339   :  { %5946 = vmatprep.subr.bf16.mxu0 %v8242_v62 }
 0x33c   :  { %5947 = vmatpush1.bf16.msra.mxu0 %v8240_v63 }
 0x33d   :  { %5948 = vmatprep.subr.bf16.mxu0 %v8245_v0 }
 0x340   :  { %5949 = vmatpush1.bf16.msra.mxu0 %v8243_v1 }
 0x343   :  { %5951 = vmatmul.mubr.bf16.vlgmr.msra.gmra.mrb[0].mxu0 %v120_v3 }
 0x3d5   :  { %v5419_v19 = vpop.f32.mrb[0].mxu1 }
 0x3d6   :  { %v5421_v20 = vpop.f32.mrb[1].mxu1  ;;  %v6948_v30 = vadd.f32 %v5419_v19, %v927_v28 }
 0x3d7   :  { %v5423_v21 = vpop.f32.mrb[2].mxu1  ;;  %v6950_v31 = vadd.f32 %v5421_v20, %v931_v29 }
 0x3d8   :  { %v5424_v22 = vpop.f32.mrb[3].mxu1 }
 0x416   :  { %v5952_v32 = vpop.f32.mrb[0].mxu0 }
 0x417   :  { %v6949_v33 = vadd.f32 %v6948_v30, %v5952_v32  ;;  %v5954_v34 = vpop.f32.mrb[1].mxu0 }
 0x418   :  { %v6951_v35 = vadd.f32 %v6950_v31, %v5954_v34  ;;  %v5956_v36 = vpop.f32.mrb[2].mxu0 }
 0x419   :  { %v5959_v37 = vmax.f32 %v6949_v33, 0.0  ;;  %v5957_v38 = vpop.f32.mrb[3].mxu0 }
 0x41a   :  { %v5960_v39 = vmax.f32 %v6951_v35, 0.0 }
 0x41b   :  { %v5961_v41 = vpack.c.bf16 %v5959_v37, %v5959_v37 }
 0x41c   :  { %v5962_v40 = vpack.c.bf16 %v5960_v39, %v5960_v39 }
 0x41e   :  { %6947 = vmatprep.mubr.msk.bf16.mxu1 %vm6070_vm1, %v5962_v40 }
 0x41f   :  { %6111 = vmatmul.mubr.bf16.vlgmr.msra.gmra.mrb[4].mxu1 %v5961_v41 }
 0x4f2   :  { %v6112_v43 = vpop.f32.mrb[4].mxu1 }
 0x4f3   :  { %v6113_v44 = vadd.f32 %v6933_v42, %v6112_v43  ;;  %v6114_v45 = vpop.f32.mrb[5].mxu1 }
 0x4f4   :  { %v6115_v46 = vpop.f32.mrb[6].mxu1 }
 0x4f5   :  { %6118 = vst [vmem:[#allocation2] sm:$0xff] %v6113_v44  ;;  %v6116_v47 = vpop.f32.mrb[7].mxu1 }
 0x4f6   :  { %8270 = shalt.err (!%p8267_p4)
}
 0x4f7   :  { %s8271_s4 = scalar_lea.hbm %s10927_s5, 128 }
 0x4f8   :  { %p8272_p5 = scmp.ne.s32.totalorder %s10927_s5, %s8271_s4  ;;  %p8275_p6 = scmp.lt.u32.totalorder %s8271_s4, %s10927_s5 }
 0x4fa   :  { %p8277_p7 = pnand %p8275_p6, %p8272_p5 }
 0x4fc   :  { %8280 = shalt.err (!%p8277_p7)
}
 0x4fd   :  { %6128 = dma.vmem_to_hbm [thread:$0]  %s6126_s20, 128, %s10927_s5, [#allocation3]  }
 0x4fe   :  { %8281 = dma.done.wait [#allocation3], 128  }
 0x4ff   :  { %8282 = vsyncadd [#allocation3], 4294967168 }
 0x500   :  { %6132 = vsyncpa [#allocation3], 1 }

// kernel: tpu_custom_call.1
= control target key start
LH: loop header
LB: loop body
LE: loop exit
PB: predicated region body
PF: predicated region fallthrough
CT: control target
= control target key end

     0   :  { %s10922_s0 = inlined_call_operand.vmem [shape: f32[8,6400], index: 0, kind: input, shape index: {}]   ;;  %s10923_s1 = inlined_call_operand.vmem [shape: bf16[6400,200], index: 1, kind: input, shape index: {}]   ;;  %s10924_s2 = inlined_call_operand.vmem [shape: f32[1,200], index: 2, kind: input, shape index: {}]   ;;  %s10925_s3 = inlined_call_operand.vmem [shape: bf16[200,128], index: 3, kind: input, shape index: {}]   ;;  %s10926_s4 = inlined_call_operand.vmem [shape: f32[1,128], index: 4, kind: input, shape index: {}]   ;;  %s10927_s5 = inlined_call_operand.hbm [shape: f32[8,128], index: 5, kind: output, shape index: {}]  }
   0x1   :  { %v7046_v0 = vld [vmem:[%s10923_s1 + $0x4] ss:$8 sps:$4 sm:$0xff]   ;;  %v7050_v2 = vld [vmem:[%s10923_s1] ss:$8 sps:$4 sm:$0xff]   ;;  %v7052_v4 = vld [vmem:[%s10923_s1 + $0x14] ss:$8 sps:$4 sm:$0xff]  }
   0x2   :  { %v7048_v1 = vld [vmem:[%s10923_s1 + $0xc04] ss:$8 sps:$4 sm:$0xff]   ;;  %4934 = vmatprep.subr.bf16.mxu1 %v7046_v0  ;;  %v7051_v3 = vld [vmem:[%s10923_s1 + $0xc00] ss:$8 sps:$4 sm:$0xff]   ;;  %v7054_v5 = vld [vmem:[%s10923_s1 + $0xc14] ss:$8 sps:$4 sm:$0xff]  }
   0x3   :  { %5426 = vmatprep.subr.bf16.mxu0 %v7048_v1  ;;  %4935 = vmatpush1.bf16.msra.mxu1 %v7050_v2  ;;  %v7056_v6 = vld [vmem:[%s10923_s1 + $0x10] ss:$8 sps:$4 sm:$0xff]   ;;  %v7058_v8 = vld [vmem:[%s10923_s1 + $0x24] ss:$8 sps:$4 sm:$0xff]   ;;  %v7062_v10 = vld [vmem:[%s10923_s1 + $0x20] ss:$8 sps:$4 sm:$0xff]  }
   0x4   :  { %5427 = vmatpush1.bf16.msra.mxu0 %v7051_v3  ;;  %4936 = vmatprep.subr.bf16.mxu1 %v7052_v4  ;;  %v7057_v7 = vld [vmem:[%s10923_s1 + $0xc10] ss:$8 sps:$4 sm:$0xff]   ;;  %v7060_v9 = vld [vmem:[%s10923_s1 + $0xc24] ss:$8 sps:$4 sm:$0xff]   ;;  %v7063_v11 = vld [vmem:[%s10923_s1 + $0xc20] ss:$8 sps:$4 sm:$0xff]  }
   0x5   :  { %5428 = vmatprep.subr.bf16.mxu0 %v7054_v5  ;;  %v7064_v12 = vld [vmem:[%s10923_s1 + $0x34] ss:$8 sps:$4 sm:$0xff]   ;;  %v7068_v14 = vld [vmem:[%s10923_s1 + $0x30] ss:$8 sps:$4 sm:$0xff]   ;;  %v7070_v16 = vld [vmem:[%s10923_s1 + $0x44] ss:$8 sps:$4 sm:$0xff]  }
   0x6   :  { %v7066_v13 = vld [vmem:[%s10923_s1 + $0xc34] ss:$8 sps:$4 sm:$0xff]   ;;  %v7069_v15 = vld [vmem:[%s10923_s1 + $0xc30] ss:$8 sps:$4 sm:$0xff]   ;;  %v7072_v17 = vld [vmem:[%s10923_s1 + $0xc44] ss:$8 sps:$4 sm:$0xff]  }
   0x7   :  { %4937 = vmatpush1.bf16.msra.mxu1 %v7056_v6  ;;  %v7074_v18 = vld [vmem:[%s10923_s1 + $0x40] ss:$8 sps:$4 sm:$0xff]   ;;  %v7076_v20 = vld [vmem:[%s10923_s1 + $0x54] ss:$8 sps:$4 sm:$0xff]   ;;  %v7080_v22 = vld [vmem:[%s10923_s1 + $0x50] ss:$8 sps:$4 sm:$0xff]  }
   0x8   :  { %5429 = vmatpush1.bf16.msra.mxu0 %v7057_v7  ;;  %4938 = vmatprep.subr.bf16.mxu1 %v7058_v8  ;;  %v7075_v19 = vld [vmem:[%s10923_s1 + $0xc40] ss:$8 sps:$4 sm:$0xff]   ;;  %v7078_v21 = vld [vmem:[%s10923_s1 + $0xc54] ss:$8 sps:$4 sm:$0xff]   ;;  %v7081_v23 = vld [vmem:[%s10923_s1 + $0xc50] ss:$8 sps:$4 sm:$0xff]  }
   0x9   :  { %5430 = vmatprep.subr.bf16.mxu0 %v7060_v9  ;;  %v7082_v24 = vld [vmem:[%s10923_s1 + $0x64] ss:$8 sps:$4 sm:$0xff]   ;;  %v7086_v26 = vld [vmem:[%s10923_s1 + $0x60] ss:$8 sps:$4 sm:$0xff]   ;;  %v7088_v28 = vld [vmem:[%s10923_s1 + $0x74] ss:$8 sps:$4 sm:$0xff]  }
   0xa   :  { %v7084_v25 = vld [vmem:[%s10923_s1 + $0xc64] ss:$8 sps:$4 sm:$0xff]   ;;  %v7087_v27 = vld [vmem:[%s10923_s1 + $0xc60] ss:$8 sps:$4 sm:$0xff]   ;;  %v7090_v29 = vld [vmem:[%s10923_s1 + $0xc74] ss:$8 sps:$4 sm:$0xff]  }
   0xb   :  { %4939 = vmatpush1.bf16.msra.mxu1 %v7062_v10  ;;  %v7092_v30 = vld [vmem:[%s10923_s1 + $0x70] ss:$8 sps:$4 sm:$0xff]   ;;  %v7094_v32 = vld [vmem:[%s10923_s1 + $0x84] ss:$8 sps:$4 sm:$0xff]   ;;  %v7098_v34 = vld [vmem:[%s10923_s1 + $0x80] ss:$8 sps:$4 sm:$0xff]  }
   0xc   :  { %5431 = vmatpush1.bf16.msra.mxu0 %v7063_v11  ;;  %4940 = vmatprep.subr.bf16.mxu1 %v7064_v12  ;;  %v7093_v31 = vld [vmem:[%s10923_s1 + $0xc70] ss:$8 sps:$4 sm:$0xff]   ;;  %v7096_v33 = vld [vmem:[%s10923_s1 + $0xc84] ss:$8 sps:$4 sm:$0xff]   ;;  %v7099_v35 = vld [vmem:[%s10923_s1 + $0xc80] ss:$8 sps:$4 sm:$0xff]  }
   0xd   :  { %5432 = vmatprep.subr.bf16.mxu0 %v7066_v13  ;;  %v7100_v36 = vld [vmem:[%s10923_s1 + $0x94] ss:$8 sps:$4 sm:$0xff]   ;;  %v7104_v38 = vld [vmem:[%s10923_s1 + $0x90] ss:$8 sps:$4 sm:$0xff]   ;;  %v7106_v40 = vld [vmem:[%s10923_s1 + $0xa4] ss:$8 sps:$4 sm:$0xff]  }
   0xe   :  { %v7102_v37 = vld [vmem:[%s10923_s1 + $0xc94] ss:$8 sps:$4 sm:$0xff]   ;;  %v7105_v39 = vld [vmem:[%s10923_s1 + $0xc90] ss:$8 sps:$4 sm:$0xff]   ;;  %v7108_v41 = vld [vmem:[%s10923_s1 + $0xca4] ss:$8 sps:$4 sm:$0xff]  }
   0xf   :  { %4941 = vmatpush1.bf16.msra.mxu1 %v7068_v14  ;;  %v7110_v42 = vld [vmem:[%s10923_s1 + $0xa0] ss:$8 sps:$4 sm:$0xff]   ;;  %v7112_v44 = vld [vmem:[%s10923_s1 + $0xb4] ss:$8 sps:$4 sm:$0xff]   ;;  %v7116_v47 = vld [vmem:[%s10923_s1 + $0xb0] ss:$8 sps:$4 sm:$0xff]  }
  0x10   :  { %5433 = vmatpush1.bf16.msra.mxu0 %v7069_v15  ;;  %4942 = vmatprep.subr.bf16.mxu1 %v7070_v16  ;;  %v7111_v43 = vld [vmem:[%s10923_s1 + $0xca0] ss:$8 sps:$4 sm:$0xff]   ;;  %v7114_v45 = vld [vmem:[%s10923_s1 + $0xcb4] ss:$8 sps:$4 sm:$0xff]   ;;  %v7117_v49 = vld [vmem:[%s10923_s1 + $0xcb0] ss:$8 sps:$4 sm:$0xff]  }
  0x11   :  { %5434 = vmatprep.subr.bf16.mxu0 %v7072_v17  ;;  %v23_v46 = vld [vmem:[%s10922_s0 + $0x8] sm:$0xff]  ;;  %v7124_v56 = vld [vmem:[%s10923_s1 + $0xd4] ss:$8 sps:$4 sm:$0xff]   ;;  %v7128_v58 = vld [vmem:[%s10923_s1 + $0xd0] ss:$8 sps:$4 sm:$0xff]  }
  0x12   :  { %v73_v48 = vpack.c.bf16 %v23_v46, %v23_v46  ;;  %v47_v50 = vld [vmem:[%s10922_s0 + $0xc8] sm:$0xff]  ;;  %v7126_v57 = vld [vmem:[%s10923_s1 + $0xcd4] ss:$8 sps:$4 sm:$0xff]   ;;  %v7129_v59 = vld [vmem:[%s10923_s1 + $0xcd0] ss:$8 sps:$4 sm:$0xff]  }
  0x13   :  { %4943 = vmatpush1.bf16.msra.mxu1 %v7074_v18  ;;  %v7118_v51 = vld [vmem:[%s10923_s1 + $0xc4] ss:$8 sps:$4 sm:$0xff]   ;;  %v97_v53 = vpack.c.bf16 %v47_v50, %v47_v50  ;;  %v7122_v54 = vld [vmem:[%s10923_s1 + $0xc0] ss:$8 sps:$4 sm:$0xff]   ;;  %v7136_v0 = vld [vmem:[%s10923_s1 + $0xf4] ss:$8 sps:$4 sm:$0xff]  }
  0x14   :  { %5435 = vmatpush1.bf16.msra.mxu0 %v7075_v19  ;;  %4944 = vmatprep.subr.bf16.mxu1 %v7076_v20  ;;  %v7120_v52 = vld [vmem:[%s10923_s1 + $0xcc4] ss:$8 sps:$4 sm:$0xff]   ;;  %v7123_v55 = vld [vmem:[%s10923_s1 + $0xcc0] ss:$8 sps:$4 sm:$0xff]   ;;  %v7138_v1 = vld [vmem:[%s10923_s1 + $0xcf4] ss:$8 sps:$4 sm:$0xff]  }
  0x15   :  { %5436 = vmatprep.subr.bf16.mxu0 %v7078_v21  ;;  %4966 = vmatprep.mubr.bf16.mxu1 %v73_v48  ;;  %v7130_v60 = vld [vmem:[%s10923_s1 + $0xe4] ss:$8 sps:$4 sm:$0xff]   ;;  %v7134_v62 = vld [vmem:[%s10923_s1 + $0xe0] ss:$8 sps:$4 sm:$0xff]   ;;  %v7140_v2 = vld [vmem:[%s10923_s1 + $0xf0] ss:$8 sps:$4 sm:$0xff]  }
  0x16   :  { %5458 = vmatprep.mubr.bf16.mxu0 %v97_v53  ;;  %v7132_v61 = vld [vmem:[%s10923_s1 + $0xce4] ss:$8 sps:$4 sm:$0xff]   ;;  %v7135_v63 = vld [vmem:[%s10923_s1 + $0xce0] ss:$8 sps:$4 sm:$0xff]   ;;  %v7141_v3 = vld [vmem:[%s10923_s1 + $0xcf0] ss:$8 sps:$4 sm:$0xff]  }
  0x17   :  { %4945 = vmatpush1.bf16.msra.mxu1 %v7080_v22  ;;  %v7144_v4 = vld [vmem:[%s10923_s1 + $0x104] ss:$8 sps:$4 sm:$0xff]   ;;  %v7142_v8 = vld [vmem:[%s10923_s1 + $0x100] ss:$8 sps:$4 sm:$0xff]   ;;  %v7150_v12 = vld [vmem:[%s10923_s1 + $0x114] ss:$8 sps:$4 sm:$0xff]  }
  0x18   :  { %5437 = vmatpush1.bf16.msra.mxu0 %v7081_v23  ;;  %4946 = vmatprep.subr.bf16.mxu1 %v7082_v24  ;;  %v22_v5 = vld [vmem:[%s10922_s0] sm:$0xff]  ;;  %v7153_v13 = vld [vmem:[%s10923_s1 + $0xd14] ss:$8 sps:$4 sm:$0xff]   ;;  %v7148_v14 = vld [vmem:[%s10923_s1 + $0x110] ss:$8 sps:$4 sm:$0xff]  }
  0x19   :  { %5438 = vmatprep.subr.bf16.mxu0 %v7084_v25  ;;  %v46_v6 = vld [vmem:[%s10922_s0 + $0xc0] sm:$0xff]  ;;  %v72_v10 = vpack.c.bf16 %v22_v5, %v22_v5  ;;  %v7151_v15 = vld [vmem:[%s10923_s1 + $0xd10] ss:$8 sps:$4 sm:$0xff]   ;;  %v7162_v20 = vld [vmem:[%s10923_s1 + $0x134] ss:$8 sps:$4 sm:$0xff]  }
  0x1a   :  { %v7147_v7 = vld [vmem:[%s10923_s1 + $0xd04] ss:$8 sps:$4 sm:$0xff]   ;;  %v7145_v9 = vld [vmem:[%s10923_s1 + $0xd00] ss:$8 sps:$4 sm:$0xff]   ;;  %v96_v11 = vpack.c.bf16 %v46_v6, %v46_v6  ;;  %v7165_v21 = vld [vmem:[%s10923_s1 + $0xd34] ss:$8 sps:$4 sm:$0xff]  }
  0x1b   :  { %4947 = vmatpush1.bf16.msra.mxu1 %v7086_v26  ;;  %v7156_v16 = vld [vmem:[%s10923_s1 + $0x124] ss:$8 sps:$4 sm:$0xff]   ;;  %v7154_v18 = vld [vmem:[%s10923_s1 + $0x120] ss:$8 sps:$4 sm:$0xff]   ;;  %v7160_v22 = vld [vmem:[%s10923_s1 + $0x130] ss:$8 sps:$4 sm:$0xff]  }
  0x1c   :  { %5439 = vmatpush1.bf16.msra.mxu0 %v7087_v27  ;;  %4948 = vmatprep.subr.bf16.mxu1 %v7088_v28  ;;  %v7159_v17 = vld [vmem:[%s10923_s1 + $0xd24] ss:$8 sps:$4 sm:$0xff]   ;;  %v7157_v19 = vld [vmem:[%s10923_s1 + $0xd20] ss:$8 sps:$4 sm:$0xff]   ;;  %v7163_v23 = vld [vmem:[%s10923_s1 + $0xd30] ss:$8 sps:$4 sm:$0xff]  }
  0x1d   :  { %5440 = vmatprep.subr.bf16.mxu0 %v7090_v29  ;;  %v7168_v24 = vld [vmem:[%s10923_s1 + $0x144] ss:$8 sps:$4 sm:$0xff]   ;;  %v7166_v26 = vld [vmem:[%s10923_s1 + $0x140] ss:$8 sps:$4 sm:$0xff]   ;;  %v7174_v28 = vld [vmem:[%s10923_s1 + $0x154] ss:$8 sps:$4 sm:$0xff]  }
  0x1e   :  { %v7171_v25 = vld [vmem:[%s10923_s1 + $0xd44] ss:$8 sps:$4 sm:$0xff]   ;;  %v7169_v27 = vld [vmem:[%s10923_s1 + $0xd40] ss:$8 sps:$4 sm:$0xff]   ;;  %v7177_v29 = vld [vmem:[%s10923_s1 + $0xd54] ss:$8 sps:$4 sm:$0xff]  }
  0x1f   :  { %4949 = vmatpush1.bf16.msra.mxu1 %v7092_v30  ;;  %v7172_v30 = vld [vmem:[%s10923_s1 + $0x150] ss:$8 sps:$4 sm:$0xff]   ;;  %v7190_v46 = vld [vmem:[%s10923_s1 + $0x180] ss:$8 sps:$4 sm:$0xff]   ;;  %v7198_v48 = vld [vmem:[%s10923_s1 + $0x194] ss:$8 sps:$4 sm:$0xff]  }
  0x20   :  { %5441 = vmatpush1.bf16.msra.mxu0 %v7093_v31  ;;  %4950 = vmatprep.subr.bf16.mxu1 %v7094_v32  ;;  %v7175_v31 = vld [vmem:[%s10923_s1 + $0xd50] ss:$8 sps:$4 sm:$0xff]   ;;  %v7180_v32 = vld [vmem:[%s10923_s1 + $0x164] ss:$8 sps:$4 sm:$0xff]   ;;  %v7226_v6 = vld [vmem:[%s10923_s1 + $0x1e0] ss:$8 sps:$4 sm:$0xff]  }
  0x21   :  { %5442 = vmatprep.subr.bf16.mxu0 %v7096_v33  ;;  %v7183_v33 = vld [vmem:[%s10923_s1 + $0xd64] ss:$8 sps:$4 sm:$0xff]   ;;  %v7196_v50 = vld [vmem:[%s10923_s1 + $0x190] ss:$8 sps:$4 sm:$0xff]  }
  0x22   :  { %v7207_v53 = vld [vmem:[%s10923_s1 + $0xda4] ss:$8 sps:$4 sm:$0xff]  }
  0x23   :  { %4951 = vmatpush1.bf16.msra.mxu1 %v7098_v34  ;;  %v25_v34 = vld [vmem:[%s10922_s0 + $0x18] sm:$0xff]  ;;  %v7231_v5 = vld [vmem:[%s10923_s1 + $0xde4] ss:$8 sps:$4 sm:$0xff]  }
  0x24   :  { %5443 = vmatpush1.bf16.msra.mxu0 %v7099_v35  ;;  %4952 = vmatprep.subr.bf16.mxu1 %v7100_v36  ;;  %v7178_v35 = vld [vmem:[%s10923_s1 + $0x160] ss:$8 sps:$4 sm:$0xff]   ;;  %v75_v36 = vpack.c.bf16 %v25_v34, %v25_v34  ;;  %v7256_v34 = vld [vmem:[%s10923_s1 + $0x230] ss:$8 sps:$4 sm:$0xff]  }
  0x25   :  { %5444 = vmatprep.subr.bf16.mxu0 %v7102_v37  ;;  %v7181_v37 = vld [vmem:[%s10923_s1 + $0xd60] ss:$8 sps:$4 sm:$0xff]  }
  0x27   :  { %4953 = vmatpush1.bf16.msra.mxu1 %v7104_v38  ;;  %v49_v38 = vld [vmem:[%s10922_s0 + $0xd8] sm:$0xff] }
  0x28   :  { %5445 = vmatpush1.bf16.msra.mxu0 %v7105_v39  ;;  %4954 = vmatprep.subr.bf16.mxu1 %v7106_v40  ;;  %v7186_v39 = vld [vmem:[%s10923_s1 + $0x174] ss:$8 sps:$4 sm:$0xff]  }
  0x29   :  { %5446 = vmatprep.subr.bf16.mxu0 %v7108_v41  ;;  %v7189_v40 = vld [vmem:[%s10923_s1 + $0xd74] ss:$8 sps:$4 sm:$0xff]   ;;  %v99_v41 = vpack.c.bf16 %v49_v38, %v49_v38  ;;  %v7262_v38 = vld [vmem:[%s10923_s1 + $0x240] ss:$8 sps:$4 sm:$0xff]  }
  0x2b   :  { %4955 = vmatpush1.bf16.msra.mxu1 %v7110_v42  ;;  %v7184_v42 = vld [vmem:[%s10923_s1 + $0x170] ss:$8 sps:$4 sm:$0xff]  }
  0x2c   :  { %5447 = vmatpush1.bf16.msra.mxu0 %v7111_v43  ;;  %4956 = vmatprep.subr.bf16.mxu1 %v7112_v44  ;;  %v7187_v43 = vld [vmem:[%s10923_s1 + $0xd70] ss:$8 sps:$4 sm:$0xff]   ;;  %v7192_v44 = vld [vmem:[%s10923_s1 + $0x184] ss:$8 sps:$4 sm:$0xff]  }
  0x2d   :  { %5448 = vmatprep.subr.bf16.mxu0 %v7114_v45  ;;  %v7195_v45 = vld [vmem:[%s10923_s1 + $0xd84] ss:$8 sps:$4 sm:$0xff]  }
  0x2f   :  { %4957 = vmatpush1.bf16.msra.mxu1 %v7116_v47  ;;  %v7193_v47 = vld [vmem:[%s10923_s1 + $0xd80] ss:$8 sps:$4 sm:$0xff]  }
  0x30   :  { %5449 = vmatpush1.bf16.msra.mxu0 %v7117_v49  ;;  %4958 = vmatprep.subr.bf16.mxu1 %v7118_v51  ;;  %v7201_v49 = vld [vmem:[%s10923_s1 + $0xd94] ss:$8 sps:$4 sm:$0xff]   ;;  %v7199_v51 = vld [vmem:[%s10923_s1 + $0xd90] ss:$8 sps:$4 sm:$0xff]  }
  0x31   :  { %5450 = vmatprep.subr.bf16.mxu0 %v7120_v52  ;;  %v7204_v52 = vld [vmem:[%s10923_s1 + $0x1a4] ss:$8 sps:$4 sm:$0xff]  }
  0x33   :  { %4959 = vmatpush1.bf16.msra.mxu1 %v7122_v54  ;;  %v7202_v54 = vld [vmem:[%s10923_s1 + $0x1a0] ss:$8 sps:$4 sm:$0xff]  }
  0x34   :  { %5451 = vmatpush1.bf16.msra.mxu0 %v7123_v55  ;;  %4960 = vmatprep.subr.bf16.mxu1 %v7124_v56  ;;  %v7205_v55 = vld [vmem:[%s10923_s1 + $0xda0] ss:$8 sps:$4 sm:$0xff]   ;;  %v7210_v56 = vld [vmem:[%s10923_s1 + $0x1b4] ss:$8 sps:$4 sm:$0xff]  }
  0x35   :  { %5452 = vmatprep.subr.bf16.mxu0 %v7126_v57  ;;  %v7213_v57 = vld [vmem:[%s10923_s1 + $0xdb4] ss:$8 sps:$4 sm:$0xff]  }
  0x37   :  { %4961 = vmatpush1.bf16.msra.mxu1 %v7128_v58  ;;  %v7208_v58 = vld [vmem:[%s10923_s1 + $0x1b0] ss:$8 sps:$4 sm:$0xff]  }
  0x38   :  { %5453 = vmatpush1.bf16.msra.mxu0 %v7129_v59  ;;  %4962 = vmatprep.subr.bf16.mxu1 %v7130_v60  ;;  %v7211_v59 = vld [vmem:[%s10923_s1 + $0xdb0] ss:$8 sps:$4 sm:$0xff]   ;;  %v7216_v60 = vld [vmem:[%s10923_s1 + $0x1c4] ss:$8 sps:$4 sm:$0xff]  }
  0x39   :  { %5454 = vmatprep.subr.bf16.mxu0 %v7132_v61  ;;  %v7219_v61 = vld [vmem:[%s10923_s1 + $0xdc4] ss:$8 sps:$4 sm:$0xff]  }
  0x3b   :  { %4963 = vmatpush1.bf16.msra.mxu1 %v7134_v62  ;;  %v7214_v62 = vld [vmem:[%s10923_s1 + $0x1c0] ss:$8 sps:$4 sm:$0xff]  }
  0x3c   :  { %5455 = vmatpush1.bf16.msra.mxu0 %v7135_v63  ;;  %4964 = vmatprep.subr.bf16.mxu1 %v7136_v0  ;;  %v7217_v63 = vld [vmem:[%s10923_s1 + $0xdc0] ss:$8 sps:$4 sm:$0xff]   ;;  %v7222_v0 = vld [vmem:[%s10923_s1 + $0x1d4] ss:$8 sps:$4 sm:$0xff]  }
  0x3d   :  { %5456 = vmatprep.subr.bf16.mxu0 %v7138_v1  ;;  %v7225_v1 = vld [vmem:[%s10923_s1 + $0xdd4] ss:$8 sps:$4 sm:$0xff]  }
  0x3f   :  { %4965 = vmatpush1.bf16.msra.mxu1 %v7140_v2  ;;  %v7220_v2 = vld [vmem:[%s10923_s1 + $0x1d0] ss:$8 sps:$4 sm:$0xff]  }
  0x40   :  { %5457 = vmatpush1.bf16.msra.mxu0 %v7141_v3  ;;  %4975 = vmatprep.subr.bf16.mxu1 %v7144_v4  ;;  %v7223_v3 = vld [vmem:[%s10923_s1 + $0xdd0] ss:$8 sps:$4 sm:$0xff]   ;;  %v7228_v4 = vld [vmem:[%s10923_s1 + $0x1e4] ss:$8 sps:$4 sm:$0xff]  }
  0x41   :  { %5467 = vmatprep.subr.bf16.mxu0 %v7147_v7  ;;  %v7229_v7 = vld [vmem:[%s10923_s1 + $0xde0] ss:$8 sps:$4 sm:$0xff]  }
  0x42   :  { %4967 = vmatmul.mubr.bf16.vlgmr.msra.gmra.mrb[0].mxu1 %v72_v10  ;;  %v7232_v10 = vld [vmem:[%s10923_s1 + $0x1f0] ss:$8 sps:$4 sm:$0xff]  }
  0x43   :  { %5459 = vmatmul.mubr.bf16.vlgmr.msra.gmra.mrb[0].mxu0 %v96_v11  ;;  %4976 = vmatpush1.bf16.msra.mxu1 %v7142_v8  ;;  %v7234_v8 = vld [vmem:[%s10923_s1 + $0x1f4] ss:$8 sps:$4 sm:$0xff]   ;;  %v7235_v11 = vld [vmem:[%s10923_s1 + $0xdf0] ss:$8 sps:$4 sm:$0xff]  }
  0x44   :  { %5468 = vmatpush1.bf16.msra.mxu0 %v7145_v9  ;;  %4977 = vmatprep.subr.bf16.mxu1 %v7150_v12  ;;  %v7237_v9 = vld [vmem:[%s10923_s1 + $0xdf4] ss:$8 sps:$4 sm:$0xff]   ;;  %v7240_v12 = vld [vmem:[%s10923_s1 + $0x204] ss:$8 sps:$4 sm:$0xff]  }
  0x45   :  { %5469 = vmatprep.subr.bf16.mxu0 %v7153_v13  ;;  %5007 = vmatprep.mubr.bf16.mxu1 %v75_v36  ;;  %v24_v13 = vld [vmem:[%s10922_s0 + $0x10] sm:$0xff]  ;;  %v7264_v36 = vld [vmem:[%s10923_s1 + $0x244] ss:$8 sps:$4 sm:$0xff]  }
  0x46   :  { %5499 = vmatprep.mubr.bf16.mxu0 %v99_v41  ;;  %v7273_v41 = vld [vmem:[%s10923_s1 + $0xe54] ss:$8 sps:$4 sm:$0xff]  }
  0x47   :  { %4978 = vmatpush1.bf16.msra.mxu1 %v7148_v14  ;;  %v48_v14 = vld [vmem:[%s10922_s0 + $0xd0] sm:$0xff] }
  0x48   :  { %5470 = vmatpush1.bf16.msra.mxu0 %v7151_v15  ;;  %4979 = vmatprep.subr.bf16.mxu1 %v7156_v16  ;;  %v7243_v15 = vld [vmem:[%s10923_s1 + $0xe04] ss:$8 sps:$4 sm:$0xff]   ;;  %v7238_v16 = vld [vmem:[%s10923_s1 + $0x200] ss:$8 sps:$4 sm:$0xff]  }
  0x49   :  { %5471 = vmatprep.subr.bf16.mxu0 %v7159_v17  ;;  %v7241_v17 = vld [vmem:[%s10923_s1 + $0xe00] ss:$8 sps:$4 sm:$0xff]  }
  0x4b   :  { %4980 = vmatpush1.bf16.msra.mxu1 %v7154_v18  ;;  %v74_v18 = vpack.c.bf16 %v24_v13, %v24_v13  ;;  %v7327_v13 = vld [vmem:[%s10923_s1 + $0xee4] ss:$8 sps:$4 sm:$0xff]  }
  0x4c   :  { %5472 = vmatpush1.bf16.msra.mxu0 %v7157_v19  ;;  %4981 = vmatprep.subr.bf16.mxu1 %v7162_v20  ;;  %v98_v19 = vpack.c.bf16 %v48_v14, %v48_v14  ;;  %v7246_v20 = vld [vmem:[%s10923_s1 + $0x214] ss:$8 sps:$4 sm:$0xff]   ;;  %v7322_v14 = vld [vmem:[%s10923_s1 + $0x2e0] ss:$8 sps:$4 sm:$0xff]  }
  0x4d   :  { %5473 = vmatprep.subr.bf16.mxu0 %v7165_v21  ;;  %v7249_v21 = vld [vmem:[%s10923_s1 + $0xe14] ss:$8 sps:$4 sm:$0xff]  }
  0x4f   :  { %4982 = vmatpush1.bf16.msra.mxu1 %v7160_v22  ;;  %v27_v22 = vld [vmem:[%s10922_s0 + $0x28] sm:$0xff] }
  0x50   :  { %5474 = vmatpush1.bf16.msra.mxu0 %v7163_v23  ;;  %4983 = vmatprep.subr.bf16.mxu1 %v7168_v24  ;;  %v7244_v23 = vld [vmem:[%s10923_s1 + $0x210] ss:$8 sps:$4 sm:$0xff]   ;;  %v77_v24 = vpack.c.bf16 %v27_v22, %v27_v22  ;;  %v50_v22 = vld [vmem:[%s10922_s0 + $0xe0] sm:$0xff] }
  0x51   :  { %5475 = vmatprep.subr.bf16.mxu0 %v7171_v25  ;;  %v7247_v25 = vld [vmem:[%s10923_s1 + $0xe10] ss:$8 sps:$4 sm:$0xff]  }
  0x53   :  { %4984 = vmatpush1.bf16.msra.mxu1 %v7166_v26  ;;  %v51_v26 = vld [vmem:[%s10922_s0 + $0xe8] sm:$0xff] }
  0x54   :  { %5476 = vmatpush1.bf16.msra.mxu0 %v7169_v27  ;;  %4985 = vmatprep.subr.bf16.mxu1 %v7174_v28  ;;  %v7252_v27 = vld [vmem:[%s10923_s1 + $0x224] ss:$8 sps:$4 sm:$0xff]  }
  0x55   :  { %5477 = vmatprep.subr.bf16.mxu0 %v7177_v29  ;;  %v7255_v28 = vld [vmem:[%s10923_s1 + $0xe24] ss:$8 sps:$4 sm:$0xff]   ;;  %v101_v29 = vpack.c.bf16 %v51_v26, %v51_v26 }
  0x57   :  { %4986 = vmatpush1.bf16.msra.mxu1 %v7172_v30  ;;  %v7250_v30 = vld [vmem:[%s10923_s1 + $0x220] ss:$8 sps:$4 sm:$0xff]  }
  0x58   :  { %5478 = vmatpush1.bf16.msra.mxu0 %v7175_v31  ;;  %4987 = vmatprep.subr.bf16.mxu1 %v7180_v32  ;;  %v7253_v31 = vld [vmem:[%s10923_s1 + $0xe20] ss:$8 sps:$4 sm:$0xff]   ;;  %v7258_v32 = vld [vmem:[%s10923_s1 + $0x234] ss:$8 sps:$4 sm:$0xff]  }
  0x59   :  { %5479 = vmatprep.subr.bf16.mxu0 %v7183_v33  ;;  %v7261_v33 = vld [vmem:[%s10923_s1 + $0xe34] ss:$8 sps:$4 sm:$0xff]  }
  0x5b   :  { %4988 = vmatpush1.bf16.msra.mxu1 %v7178_v35  ;;  %v7259_v35 = vld [vmem:[%s10923_s1 + $0xe30] ss:$8 sps:$4 sm:$0xff]  }
  0x5c   :  { %5480 = vmatpush1.bf16.msra.mxu0 %v7181_v37  ;;  %4989 = vmatprep.subr.bf16.mxu1 %v7186_v39  ;;  %v7267_v37 = vld [vmem:[%s10923_s1 + $0xe44] ss:$8 sps:$4 sm:$0xff]   ;;  %v7265_v39 = vld [vmem:[%s10923_s1 + $0xe40] ss:$8 sps:$4 sm:$0xff]  }
  0x5d   :  { %5481 = vmatprep.subr.bf16.mxu0 %v7189_v40  ;;  %v7270_v40 = vld [vmem:[%s10923_s1 + $0x254] ss:$8 sps:$4 sm:$0xff]  }
  0x5f   :  { %4990 = vmatpush1.bf16.msra.mxu1 %v7184_v42  ;;  %v7268_v42 = vld [vmem:[%s10923_s1 + $0x250] ss:$8 sps:$4 sm:$0xff]  }
  0x60   :  { %5482 = vmatpush1.bf16.msra.mxu0 %v7187_v43  ;;  %4991 = vmatprep.subr.bf16.mxu1 %v7192_v44  ;;  %v7271_v43 = vld [vmem:[%s10923_s1 + $0xe50] ss:$8 sps:$4 sm:$0xff]   ;;  %v7276_v44 = vld [vmem:[%s10923_s1 + $0x264] ss:$8 sps:$4 sm:$0xff]  }
  0x61   :  { %5483 = vmatprep.subr.bf16.mxu0 %v7195_v45  ;;  %v7279_v45 = vld [vmem:[%s10923_s1 + $0xe64] ss:$8 sps:$4 sm:$0xff]  }
  0x63   :  { %4992 = vmatpush1.bf16.msra.mxu1 %v7190_v46  ;;  %v7274_v46 = vld [vmem:[%s10923_s1 + $0x260] ss:$8 sps:$4 sm:$0xff]  }
  0x64   :  { %5484 = vmatpush1.bf16.msra.mxu0 %v7193_v47  ;;  %4993 = vmatprep.subr.bf16.mxu1 %v7198_v48  ;;  %v7277_v47 = vld [vmem:[%s10923_s1 + $0xe60] ss:$8 sps:$4 sm:$0xff]   ;;  %v7282_v48 = vld [vmem:[%s10923_s1 + $0x274] ss:$8 sps:$4 sm:$0xff]  }
  0x65   :  { %5485 = vmatprep.subr.bf16.mxu0 %v7201_v49  ;;  %v7285_v49 = vld [vmem:[%s10923_s1 + $0xe74] ss:$8 sps:$4 sm:$0xff]  }
  0x67   :  { %4994 = vmatpush1.bf16.msra.mxu1 %v7196_v50  ;;  %v7280_v50 = vld [vmem:[%s10923_s1 + $0x270] ss:$8 sps:$4 sm:$0xff]  }
  0x68   :  { %5486 = vmatpush1.bf16.msra.mxu0 %v7199_v51  ;;  %4995 = vmatprep.subr.bf16.mxu1 %v7204_v52  ;;  %v7283_v51 = vld [vmem:[%s10923_s1 + $0xe70] ss:$8 sps:$4 sm:$0xff]   ;;  %v7288_v52 = vld [vmem:[%s10923_s1 + $0x284] ss:$8 sps:$4 sm:$0xff]  }
  0x69   :  { %5487 = vmatprep.subr.bf16.mxu0 %v7207_v53  ;;  %v7291_v53 = vld [vmem:[%s10923_s1 + $0xe84] ss:$8 sps:$4 sm:$0xff]  }
  0x6b   :  { %4996 = vmatpush1.bf16.msra.mxu1 %v7202_v54  ;;  %v7286_v54 = vld [vmem:[%s10923_s1 + $0x280] ss:$8 sps:$4 sm:$0xff]  }
  0x6c   :  { %5488 = vmatpush1.bf16.msra.mxu0 %v7205_v55  ;;  %4997 = vmatprep.subr.bf16.mxu1 %v7210_v56  ;;  %v7289_v55 = vld [vmem:[%s10923_s1 + $0xe80] ss:$8 sps:$4 sm:$0xff]   ;;  %v7294_v56 = vld [vmem:[%s10923_s1 + $0x294] ss:$8 sps:$4 sm:$0xff]  }
  0x6d   :  { %5489 = vmatprep.subr.bf16.mxu0 %v7213_v57  ;;  %v7297_v57 = vld [vmem:[%s10923_s1 + $0xe94] ss:$8 sps:$4 sm:$0xff]  }
  0x6f   :  { %4998 = vmatpush1.bf16.msra.mxu1 %v7208_v58  ;;  %v7292_v58 = vld [vmem:[%s10923_s1 + $0x290] ss:$8 sps:$4 sm:$0xff]  }
  0x70   :  { %5490 = vmatpush1.bf16.msra.mxu0 %v7211_v59  ;;  %4999 = vmatprep.subr.bf16.mxu1 %v7216_v60  ;;  %v7295_v59 = vld [vmem:[%s10923_s1 + $0xe90] ss:$8 sps:$4 sm:$0xff]   ;;  %v7300_v60 = vld [vmem:[%s10923_s1 + $0x2a4] ss:$8 sps:$4 sm:$0xff]  }
  0x71   :  { %5491 = vmatprep.subr.bf16.mxu0 %v7219_v61  ;;  %v7303_v61 = vld [vmem:[%s10923_s1 + $0xea4] ss:$8 sps:$4 sm:$0xff]  }
  0x73   :  { %5000 = vmatpush1.bf16.msra.mxu1 %v7214_v62  ;;  %v7298_v62 = vld [vmem:[%s10923_s1 + $0x2a0] ss:$8 sps:$4 sm:$0xff]  }
  0x74   :  { %5492 = vmatpush1.bf16.msra.mxu0 %v7217_v63  ;;  %5001 = vmatprep.subr.bf16.mxu1 %v7222_v0  ;;  %v7301_v63 = vld [vmem:[%s10923_s1 + $0xea0] ss:$8 sps:$4 sm:$0xff]   ;;  %v7306_v0 = vld [vmem:[%s10923_s1 + $0x2b4] ss:$8 sps:$4 sm:$0xff]  }
  0x75   :  { %5493 = vmatprep.subr.bf16.mxu0 %v7225_v1  ;;  %v7309_v1 = vld [vmem:[%s10923_s1 + $0xeb4] ss:$8 sps:$4 sm:$0xff]  }
  0x77   :  { %5002 = vmatpush1.bf16.msra.mxu1 %v7220_v2  ;;  %v7304_v2 = vld [vmem:[%s10923_s1 + $0x2b0] ss:$8 sps:$4 sm:$0xff]  }
  0x78   :  { %5494 = vmatpush1.bf16.msra.mxu0 %v7223_v3  ;;  %5003 = vmatprep.subr.bf16.mxu1 %v7228_v4  ;;  %v7307_v3 = vld [vmem:[%s10923_s1 + $0xeb0] ss:$8 sps:$4 sm:$0xff]   ;;  %v7312_v4 = vld [vmem:[%s10923_s1 + $0x2c4] ss:$8 sps:$4 sm:$0xff]  }
  0x79   :  { %5495 = vmatprep.subr.bf16.mxu0 %v7231_v5  ;;  %v7315_v5 = vld [vmem:[%s10923_s1 + $0xec4] ss:$8 sps:$4 sm:$0xff]  }
  0x7b   :  { %5004 = vmatpush1.bf16.msra.mxu1 %v7226_v6  ;;  %v7310_v6 = vld [vmem:[%s10923_s1 + $0x2c0] ss:$8 sps:$4 sm:$0xff]  }
  0x7c   :  { %5496 = vmatpush1.bf16.msra.mxu0 %v7229_v7  ;;  %5005 = vmatprep.subr.bf16.mxu1 %v7234_v8  ;;  %v7313_v7 = vld [vmem:[%s10923_s1 + $0xec0] ss:$8 sps:$4 sm:$0xff]   ;;  %v7318_v8 = vld [vmem:[%s10923_s1 + $0x2d4] ss:$8 sps:$4 sm:$0xff]  }
  0x7d   :  { %5497 = vmatprep.subr.bf16.mxu0 %v7237_v9  ;;  %v7321_v9 = vld [vmem:[%s10923_s1 + $0xed4] ss:$8 sps:$4 sm:$0xff]  }
  0x7f   :  { %5006 = vmatpush1.bf16.msra.mxu1 %v7232_v10  ;;  %v7316_v10 = vld [vmem:[%s10923_s1 + $0x2d0] ss:$8 sps:$4 sm:$0xff]  }
  0x80   :  { %5498 = vmatpush1.bf16.msra.mxu0 %v7235_v11  ;;  %5016 = vmatprep.subr.bf16.mxu1 %v7240_v12  ;;  %v7319_v11 = vld [vmem:[%s10923_s1 + $0xed0] ss:$8 sps:$4 sm:$0xff]   ;;  %v7324_v12 = vld [vmem:[%s10923_s1 + $0x2e4] ss:$8 sps:$4 sm:$0xff]  }
  0x81   :  { %5508 = vmatprep.subr.bf16.mxu0 %v7243_v15  ;;  %v7325_v15 = vld [vmem:[%s10923_s1 + $0xee0] ss:$8 sps:$4 sm:$0xff]  }
  0x82   :  { %5008 = vmatmul.mubr.bf16.vlgmr.msra.gmra.mrb[0].mxu1 %v74_v18  ;;  %v7328_v18 = vld [vmem:[%s10923_s1 + $0x2f0] ss:$8 sps:$4 sm:$0xff]  }
  0x83   :  { %5500 = vmatmul.mubr.bf16.vlgmr.msra.gmra.mrb[0].mxu0 %v98_v19  ;;  %5017 = vmatpush1.bf16.msra.mxu1 %v7238_v16  ;;  %v7330_v16 = vld [vmem:[%s10923_s1 + $0x2f4] ss:$8 sps:$4 sm:$0xff]   ;;  %v7331_v19 = vld [vmem:[%s10923_s1 + $0xef0] ss:$8 sps:$4 sm:$0xff]  }
  0x84   :  { %5509 = vmatpush1.bf16.msra.mxu0 %v7241_v17  ;;  %5018 = vmatprep.subr.bf16.mxu1 %v7246_v20  ;;  %v7333_v17 = vld [vmem:[%s10923_s1 + $0xef4] ss:$8 sps:$4 sm:$0xff]   ;;  %v7336_v20 = vld [vmem:[%s10923_s1 + $0x304] ss:$8 sps:$4 sm:$0xff]  }
  0x85   :  { %5510 = vmatprep.subr.bf16.mxu0 %v7249_v21  ;;  %5048 = vmatprep.mubr.bf16.mxu1 %v77_v24  ;;  %v26_v21 = vld [vmem:[%s10922_s0 + $0x20] sm:$0xff] }
  0x86   :  { %5540 = vmatprep.mubr.bf16.mxu0 %v101_v29  ;;  %v7334_v24 = vld [vmem:[%s10923_s1 + $0x300] ss:$8 sps:$4 sm:$0xff]   ;;  %v76_v26 = vpack.c.bf16 %v26_v21, %v26_v21  ;;  %v53_v29 = vld [vmem:[%s10922_s0 + $0xf8] sm:$0xff]  ;;  %v7423_v21 = vld [vmem:[%s10923_s1 + $0xfe4] ss:$8 sps:$4 sm:$0xff]  }
  0x87   :  { %5019 = vmatpush1.bf16.msra.mxu1 %v7244_v23  ;;  %v7339_v23 = vld [vmem:[%s10923_s1 + $0xf04] ss:$8 sps:$4 sm:$0xff]  }
  0x88   :  { %5511 = vmatpush1.bf16.msra.mxu0 %v7247_v25  ;;  %5020 = vmatprep.subr.bf16.mxu1 %v7252_v27  ;;  %v7337_v25 = vld [vmem:[%s10923_s1 + $0xf00] ss:$8 sps:$4 sm:$0xff]   ;;  %v100_v27 = vpack.c.bf16 %v50_v22, %v50_v22 }
  0x89   :  { %5512 = vmatprep.subr.bf16.mxu0 %v7255_v28  ;;  %v29_v28 = vld [vmem:[%s10922_s0 + $0x38] sm:$0xff]  ;;  %v7418_v22 = vld [vmem:[%s10923_s1 + $0x3e0] ss:$8 sps:$4 sm:$0xff]  }
  0x8b   :  { %5021 = vmatpush1.bf16.msra.mxu1 %v7250_v30  ;;  %v7342_v30 = vld [vmem:[%s10923_s1 + $0x314] ss:$8 sps:$4 sm:$0xff]  }
  0x8c   :  { %5513 = vmatpush1.bf16.msra.mxu0 %v7253_v31  ;;  %5022 = vmatprep.subr.bf16.mxu1 %v7258_v32  ;;  %v7345_v31 = vld [vmem:[%s10923_s1 + $0xf14] ss:$8 sps:$4 sm:$0xff]   ;;  %v79_v32 = vpack.c.bf16 %v29_v28, %v29_v28  ;;  %v7432_v28 = vld [vmem:[%s10923_s1 + $0x404] ss:$8 sps:$4 sm:$0xff]  }
  0x8d   :  { %5514 = vmatprep.subr.bf16.mxu0 %v7261_v33  ;;  %v103_v33 = vpack.c.bf16 %v53_v29, %v53_v29  ;;  %v28_v29 = vld [vmem:[%s10922_s0 + $0x30] sm:$0xff] }
  0x8f   :  { %5023 = vmatpush1.bf16.msra.mxu1 %v7256_v34  ;;  %v7340_v34 = vld [vmem:[%s10923_s1 + $0x310] ss:$8 sps:$4 sm:$0xff]  }
  0x90   :  { %5515 = vmatpush1.bf16.msra.mxu0 %v7259_v35  ;;  %5024 = vmatprep.subr.bf16.mxu1 %v7264_v36  ;;  %v7343_v35 = vld [vmem:[%s10923_s1 + $0xf10] ss:$8 sps:$4 sm:$0xff]   ;;  %v7348_v36 = vld [vmem:[%s10923_s1 + $0x324] ss:$8 sps:$4 sm:$0xff]  }
  0x91   :  { %5516 = vmatprep.subr.bf16.mxu0 %v7267_v37  ;;  %v7351_v37 = vld [vmem:[%s10923_s1 + $0xf24] ss:$8 sps:$4 sm:$0xff]  }
  0x93   :  { %5025 = vmatpush1.bf16.msra.mxu1 %v7262_v38  ;;  %v7346_v38 = vld [vmem:[%s10923_s1 + $0x320] ss:$8 sps:$4 sm:$0xff]  }
  0x94   :  { %5517 = vmatpush1.bf16.msra.mxu0 %v7265_v39  ;;  %5026 = vmatprep.subr.bf16.mxu1 %v7270_v40  ;;  %v7349_v39 = vld [vmem:[%s10923_s1 + $0xf20] ss:$8 sps:$4 sm:$0xff]   ;;  %v7354_v40 = vld [vmem:[%s10923_s1 + $0x334] ss:$8 sps:$4 sm:$0xff]  }
  0x95   :  { %5518 = vmatprep.subr.bf16.mxu0 %v7273_v41  ;;  %v7357_v41 = vld [vmem:[%s10923_s1 + $0xf34] ss:$8 sps:$4 sm:$0xff]  }
  0x97   :  { %5027 = vmatpush1.bf16.msra.mxu1 %v7268_v42  ;;  %v7352_v42 = vld [vmem:[%s10923_s1 + $0x330] ss:$8 sps:$4 sm:$0xff]  }
  0x98   :  { %5519 = vmatpush1.bf16.msra.mxu0 %v7271_v43  ;;  %5028 = vmatprep.subr.bf16.mxu1 %v7276_v44  ;;  %v7355_v43 = vld [vmem:[%s10923_s1 + $0xf30] ss:$8 sps:$4 sm:$0xff]   ;;  %v7360_v44 = vld [vmem:[%s10923_s1 + $0x344] ss:$8 sps:$4 sm:$0xff]  }
  0x99   :  { %5520 = vmatprep.subr.bf16.mxu0 %v7279_v45  ;;  %v7363_v45 = vld [vmem:[%s10923_s1 + $0xf44] ss:$8 sps:$4 sm:$0xff]  }
  0x9b   :  { %5029 = vmatpush1.bf16.msra.mxu1 %v7274_v46  ;;  %v7358_v46 = vld [vmem:[%s10923_s1 + $0x340] ss:$8 sps:$4 sm:$0xff]  }
  0x9c   :  { %5521 = vmatpush1.bf16.msra.mxu0 %v7277_v47  ;;  %5030 = vmatprep.subr.bf16.mxu1 %v7282_v48  ;;  %v7361_v47 = vld [vmem:[%s10923_s1 + $0xf40] ss:$8 sps:$4 sm:$0xff]   ;;  %v7366_v48 = vld [vmem:[%s10923_s1 + $0x354] ss:$8 sps:$4 sm:$0xff]  }
  0x9d   :  { %5522 = vmatprep.subr.bf16.mxu0 %v7285_v49  ;;  %v7369_v49 = vld [vmem:[%s10923_s1 + $0xf54] ss:$8 sps:$4 sm:$0xff]  }
  0x9f   :  { %5031 = vmatpush1.bf16.msra.mxu1 %v7280_v50  ;;  %v7364_v50 = vld [vmem:[%s10923_s1 + $0x350] ss:$8 sps:$4 sm:$0xff]  }
  0xa0   :  { %5523 = vmatpush1.bf16.msra.mxu0 %v7283_v51  ;;  %5032 = vmatprep.subr.bf16.mxu1 %v7288_v52  ;;  %v7367_v51 = vld [vmem:[%s10923_s1 + $0xf50] ss:$8 sps:$4 sm:$0xff]   ;;  %v7372_v52 = vld [vmem:[%s10923_s1 + $0x364] ss:$8 sps:$4 sm:$0xff]  }
  0xa1   :  { %5524 = vmatprep.subr.bf16.mxu0 %v7291_v53  ;;  %v7375_v53 = vld [vmem:[%s10923_s1 + $0xf64] ss:$8 sps:$4 sm:$0xff]  }
  0xa3   :  { %5033 = vmatpush1.bf16.msra.mxu1 %v7286_v54  ;;  %v7370_v54 = vld [vmem:[%s10923_s1 + $0x360] ss:$8 sps:$4 sm:$0xff]  }
  0xa4   :  { %5525 = vmatpush1.bf16.msra.mxu0 %v7289_v55  ;;  %5034 = vmatprep.subr.bf16.mxu1 %v7294_v56  ;;  %v7373_v55 = vld [vmem:[%s10923_s1 + $0xf60] ss:$8 sps:$4 sm:$0xff]   ;;  %v7378_v56 = vld [vmem:[%s10923_s1 + $0x374] ss:$8 sps:$4 sm:$0xff]  }
  0xa5   :  { %5526 = vmatprep.subr.bf16.mxu0 %v7297_v57  ;;  %v7381_v57 = vld [vmem:[%s10923_s1 + $0xf74] ss:$8 sps:$4 sm:$0xff]  }
  0xa7   :  { %5035 = vmatpush1.bf16.msra.mxu1 %v7292_v58  ;;  %v7376_v58 = vld [vmem:[%s10923_s1 + $0x370] ss:$8 sps:$4 sm:$0xff]  }
  0xa8   :  { %5527 = vmatpush1.bf16.msra.mxu0 %v7295_v59  ;;  %5036 = vmatprep.subr.bf16.mxu1 %v7300_v60  ;;  %v7379_v59 = vld [vmem:[%s10923_s1 + $0xf70] ss:$8 sps:$4 sm:$0xff]   ;;  %v7384_v60 = vld [vmem:[%s10923_s1 + $0x384] ss:$8 sps:$4 sm:$0xff]  }
  0xa9   :  { %5528 = vmatprep.subr.bf16.mxu0 %v7303_v61  ;;  %v7387_v61 = vld [vmem:[%s10923_s1 + $0xf84] ss:$8 sps:$4 sm:$0xff]  }
  0xab   :  { %5037 = vmatpush1.bf16.msra.mxu1 %v7298_v62  ;;  %v7382_v62 = vld [vmem:[%s10923_s1 + $0x380] ss:$8 sps:$4 sm:$0xff]  }
  0xac   :  { %5529 = vmatpush1.bf16.msra.mxu0 %v7301_v63  ;;  %5038 = vmatprep.subr.bf16.mxu1 %v7306_v0  ;;  %v7385_v63 = vld [vmem:[%s10923_s1 + $0xf80] ss:$8 sps:$4 sm:$0xff]   ;;  %v7390_v0 = vld [vmem:[%s10923_s1 + $0x394] ss:$8 sps:$4 sm:$0xff]  }
  0xad   :  { %5530 = vmatprep.subr.bf16.mxu0 %v7309_v1  ;;  %v7393_v1 = vld [vmem:[%s10923_s1 + $0xf94] ss:$8 sps:$4 sm:$0xff]  }
  0xaf   :  { %5039 = vmatpush1.bf16.msra.mxu1 %v7304_v2  ;;  %v7388_v2 = vld [vmem:[%s10923_s1 + $0x390] ss:$8 sps:$4 sm:$0xff]  }
  0xb0   :  { %5531 = vmatpush1.bf16.msra.mxu0 %v7307_v3  ;;  %5040 = vmatprep.subr.bf16.mxu1 %v7312_v4  ;;  %v7391_v3 = vld [vmem:[%s10923_s1 + $0xf90] ss:$8 sps:$4 sm:$0xff]   ;;  %v7396_v4 = vld [vmem:[%s10923_s1 + $0x3a4] ss:$8 sps:$4 sm:$0xff]  }
  0xb1   :  { %5532 = vmatprep.subr.bf16.mxu0 %v7315_v5  ;;  %v7399_v5 = vld [vmem:[%s10923_s1 + $0xfa4] ss:$8 sps:$4 sm:$0xff]  }
  0xb3   :  { %5041 = vmatpush1.bf16.msra.mxu1 %v7310_v6  ;;  %v7394_v6 = vld [vmem:[%s10923_s1 + $0x3a0] ss:$8 sps:$4 sm:$0xff]  }
  0xb4   :  { %5533 = vmatpush1.bf16.msra.mxu0 %v7313_v7  ;;  %5042 = vmatprep.subr.bf16.mxu1 %v7318_v8  ;;  %v7397_v7 = vld [vmem:[%s10923_s1 + $0xfa0] ss:$8 sps:$4 sm:$0xff]   ;;  %v7402_v8 = vld [vmem:[%s10923_s1 + $0x3b4] ss:$8 sps:$4 sm:$0xff]  }
  0xb5   :  { %5534 = vmatprep.subr.bf16.mxu0 %v7321_v9  ;;  %v7405_v9 = vld [vmem:[%s10923_s1 + $0xfb4] ss:$8 sps:$4 sm:$0xff]  }
  0xb7   :  { %5043 = vmatpush1.bf16.msra.mxu1 %v7316_v10  ;;  %v7400_v10 = vld [vmem:[%s10923_s1 + $0x3b0] ss:$8 sps:$4 sm:$0xff]  }
  0xb8   :  { %5535 = vmatpush1.bf16.msra.mxu0 %v7319_v11  ;;  %5044 = vmatprep.subr.bf16.mxu1 %v7324_v12  ;;  %v7403_v11 = vld [vmem:[%s10923_s1 + $0xfb0] ss:$8 sps:$4 sm:$0xff]   ;;  %v7408_v12 = vld [vmem:[%s10923_s1 + $0x3c4] ss:$8 sps:$4 sm:$0xff]  }
  0xb9   :  { %5536 = vmatprep.subr.bf16.mxu0 %v7327_v13  ;;  %v7411_v13 = vld [vmem:[%s10923_s1 + $0xfc4] ss:$8 sps:$4 sm:$0xff]  }
  0xbb   :  { %5045 = vmatpush1.bf16.msra.mxu1 %v7322_v14  ;;  %v7406_v14 = vld [vmem:[%s10923_s1 + $0x3c0] ss:$8 sps:$4 sm:$0xff]  }
  0xbc   :  { %5537 = vmatpush1.bf16.msra.mxu0 %v7325_v15  ;;  %5046 = vmatprep.subr.bf16.mxu1 %v7330_v16  ;;  %v7409_v15 = vld [vmem:[%s10923_s1 + $0xfc0] ss:$8 sps:$4 sm:$0xff]   ;;  %v7414_v16 = vld [vmem:[%s10923_s1 + $0x3d4] ss:$8 sps:$4 sm:$0xff]  }
  0xbd   :  { %5538 = vmatprep.subr.bf16.mxu0 %v7333_v17  ;;  %v7417_v17 = vld [vmem:[%s10923_s1 + $0xfd4] ss:$8 sps:$4 sm:$0xff]  }
  0xbf   :  { %5047 = vmatpush1.bf16.msra.mxu1 %v7328_v18  ;;  %v7412_v18 = vld [vmem:[%s10923_s1 + $0x3d0] ss:$8 sps:$4 sm:$0xff]  }
  0xc0   :  { %5539 = vmatpush1.bf16.msra.mxu0 %v7331_v19  ;;  %5057 = vmatprep.subr.bf16.mxu1 %v7336_v20  ;;  %v7415_v19 = vld [vmem:[%s10923_s1 + $0xfd0] ss:$8 sps:$4 sm:$0xff]   ;;  %v7420_v20 = vld [vmem:[%s10923_s1 + $0x3e4] ss:$8 sps:$4 sm:$0xff]  }
  0xc1   :  { %5549 = vmatprep.subr.bf16.mxu0 %v7339_v23  ;;  %v7421_v23 = vld [vmem:[%s10923_s1 + $0xfe0] ss:$8 sps:$4 sm:$0xff]  }
  0xc2   :  { %5049 = vmatmul.mubr.bf16.vlgmr.msra.gmra.mrb[0].mxu1 %v76_v26  ;;  %v7424_v26 = vld [vmem:[%s10923_s1 + $0x3f0] ss:$8 sps:$4 sm:$0xff]  }
  0xc3   :  { %5541 = vmatmul.mubr.bf16.vlgmr.msra.gmra.mrb[0].mxu0 %v100_v27  ;;  %5058 = vmatpush1.bf16.msra.mxu1 %v7334_v24  ;;  %v7426_v24 = vld [vmem:[%s10923_s1 + $0x3f4] ss:$8 sps:$4 sm:$0xff]   ;;  %v7427_v27 = vld [vmem:[%s10923_s1 + $0xff0] ss:$8 sps:$4 sm:$0xff]  }
  0xc4   :  { %5550 = vmatpush1.bf16.msra.mxu0 %v7337_v25  ;;  %5059 = vmatprep.subr.bf16.mxu1 %v7342_v30  ;;  %v7429_v25 = vld [vmem:[%s10923_s1 + $0xff4] ss:$8 sps:$4 sm:$0xff]  }
  0xc5   :  { %5551 = vmatprep.subr.bf16.mxu0 %v7345_v31  ;;  %5089 = vmatprep.mubr.bf16.mxu1 %v79_v32  ;;  %v52_v30 = vld [vmem:[%s10922_s0 + $0xf0] sm:$0xff]  ;;  %v7435_v31 = vld [vmem:[%s10923_s1 + $0x1004] ss:$8 sps:$4 sm:$0xff]   ;;  %v7430_v32 = vld [vmem:[%s10923_s1 + $0x400] ss:$8 sps:$4 sm:$0xff]  }
  0xc6   :  { %5581 = vmatprep.mubr.bf16.mxu0 %v103_v33  ;;  %v7433_v33 = vld [vmem:[%s10923_s1 + $0x1000] ss:$8 sps:$4 sm:$0xff]  }
  0xc7   :  { %5060 = vmatpush1.bf16.msra.mxu1 %v7340_v34  ;;  %v78_v34 = vpack.c.bf16 %v28_v29, %v28_v29  ;;  %v7519_v29 = vld [vmem:[%s10923_s1 + $0x10e4] ss:$8 sps:$4 sm:$0xff]  }
  0xc8   :  { %5552 = vmatpush1.bf16.msra.mxu0 %v7343_v35  ;;  %5061 = vmatprep.subr.bf16.mxu1 %v7348_v36  ;;  %v102_v35 = vpack.c.bf16 %v52_v30, %v52_v30  ;;  %v31_v36 = vld [vmem:[%s10922_s0 + $0x48] sm:$0xff] }
  0xc9   :  { %5553 = vmatprep.subr.bf16.mxu0 %v7351_v37  ;;  %v55_v37 = vld [vmem:[%s10922_s0 + $0x108] sm:$0xff] }
  0xca   :  { %v7514_v30 = vld [vmem:[%s10923_s1 + $0x4e0] ss:$8 sps:$4 sm:$0xff]  }
  0xcb   :  { %5062 = vmatpush1.bf16.msra.mxu1 %v7346_v38  ;;  %v7438_v38 = vld [vmem:[%s10923_s1 + $0x414] ss:$8 sps:$4 sm:$0xff]  }
  0xcc   :  { %5554 = vmatpush1.bf16.msra.mxu0 %v7349_v39  ;;  %5063 = vmatprep.subr.bf16.mxu1 %v7354_v40  ;;  %v7441_v39 = vld [vmem:[%s10923_s1 + $0x1014] ss:$8 sps:$4 sm:$0xff]   ;;  %v81_v40 = vpack.c.bf16 %v31_v36, %v31_v36  ;;  %v7528_v36 = vld [vmem:[%s10923_s1 + $0x504] ss:$8 sps:$4 sm:$0xff]  }
  0xcd   :  { %5555 = vmatprep.subr.bf16.mxu0 %v7357_v41  ;;  %v105_v41 = vpack.c.bf16 %v55_v37, %v55_v37  ;;  %v7531_v37 = vld [vmem:[%s10923_s1 + $0x1104] ss:$8 sps:$4 sm:$0xff]  }
  0xcf   :  { %5064 = vmatpush1.bf16.msra.mxu1 %v7352_v42  ;;  %v7436_v42 = vld [vmem:[%s10923_s1 + $0x410] ss:$8 sps:$4 sm:$0xff]  }
  0xd0   :  { %5556 = vmatpush1.bf16.msra.mxu0 %v7355_v43  ;;  %5065 = vmatprep.subr.bf16.mxu1 %v7360_v44  ;;  %v7439_v43 = vld [vmem:[%s10923_s1 + $0x1010] ss:$8 sps:$4 sm:$0xff]   ;;  %v7444_v44 = vld [vmem:[%s10923_s1 + $0x424] ss:$8 sps:$4 sm:$0xff]  }
  0xd1   :  { %5557 = vmatprep.subr.bf16.mxu0 %v7363_v45  ;;  %v7447_v45 = vld [vmem:[%s10923_s1 + $0x1024] ss:$8 sps:$4 sm:$0xff]  }
  0xd3   :  { %5066 = vmatpush1.bf16.msra.mxu1 %v7358_v46  ;;  %v7442_v46 = vld [vmem:[%s10923_s1 + $0x420] ss:$8 sps:$4 sm:$0xff]  }
  0xd4   :  { %5558 = vmatpush1.bf16.msra.mxu0 %v7361_v47  ;;  %5067 = vmatprep.subr.bf16.mxu1 %v7366_v48  ;;  %v7445_v47 = vld [vmem:[%s10923_s1 + $0x1020] ss:$8 sps:$4 sm:$0xff]   ;;  %v7450_v48 = vld [vmem:[%s10923_s1 + $0x434] ss:$8 sps:$4 sm:$0xff]  }
  0xd5   :  { %5559 = vmatprep.subr.bf16.mxu0 %v7369_v49  ;;  %v7453_v49 = vld [vmem:[%s10923_s1 + $0x1034] ss:$8 sps:$4 sm:$0xff]  }
  0xd7   :  { %5068 = vmatpush1.bf16.msra.mxu1 %v7364_v50  ;;  %v7448_v50 = vld [vmem:[%s10923_s1 + $0x430] ss:$8 sps:$4 sm:$0xff]  }
  0xd8   :  { %5560 = vmatpush1.bf16.msra.mxu0 %v7367_v51  ;;  %5069 = vmatprep.subr.bf16.mxu1 %v7372_v52  ;;  %v7451_v51 = vld [vmem:[%s10923_s1 + $0x1030] ss:$8 sps:$4 sm:$0xff]   ;;  %v7456_v52 = vld [vmem:[%s10923_s1 + $0x444] ss:$8 sps:$4 sm:$0xff]  }
  0xd9   :  { %5561 = vmatprep.subr.bf16.mxu0 %v7375_v53  ;;  %v7459_v53 = vld [vmem:[%s10923_s1 + $0x1044] ss:$8 sps:$4 sm:$0xff]  }
  0xdb   :  { %5070 = vmatpush1.bf16.msra.mxu1 %v7370_v54  ;;  %v7454_v54 = vld [vmem:[%s10923_s1 + $0x440] ss:$8 sps:$4 sm:$0xff]  }
  0xdc   :  { %5562 = vmatpush1.bf16.msra.mxu0 %v7373_v55  ;;  %5071 = vmatprep.subr.bf16.mxu1 %v7378_v56  ;;  %v7457_v55 = vld [vmem:[%s10923_s1 + $0x1040] ss:$8 sps:$4 sm:$0xff]   ;;  %v7462_v56 = vld [vmem:[%s10923_s1 + $0x454] ss:$8 sps:$4 sm:$0xff]  }
  0xdd   :  { %5563 = vmatprep.subr.bf16.mxu0 %v7381_v57  ;;  %v7465_v57 = vld [vmem:[%s10923_s1 + $0x1054] ss:$8 sps:$4 sm:$0xff]  }
  0xdf   :  { %5072 = vmatpush1.bf16.msra.mxu1 %v7376_v58  ;;  %v7460_v58 = vld [vmem:[%s10923_s1 + $0x450] ss:$8 sps:$4 sm:$0xff]  }
  0xe0   :  { %5564 = vmatpush1.bf16.msra.mxu0 %v7379_v59  ;;  %5073 = vmatprep.subr.bf16.mxu1 %v7384_v60  ;;  %v7463_v59 = vld [vmem:[%s10923_s1 + $0x1050] ss:$8 sps:$4 sm:$0xff]   ;;  %v7468_v60 = vld [vmem:[%s10923_s1 + $0x464] ss:$8 sps:$4 sm:$0xff]  }
  0xe1   :  { %5565 = vmatprep.subr.bf16.mxu0 %v7387_v61  ;;  %v7471_v61 = vld [vmem:[%s10923_s1 + $0x1064] ss:$8 sps:$4 sm:$0xff]  }
  0xe3   :  { %5074 = vmatpush1.bf16.msra.mxu1 %v7382_v62  ;;  %v7466_v62 = vld [vmem:[%s10923_s1 + $0x460] ss:$8 sps:$4 sm:$0xff]  }
  0xe4   :  { %5566 = vmatpush1.bf16.msra.mxu0 %v7385_v63  ;;  %5075 = vmatprep.subr.bf16.mxu1 %v7390_v0  ;;  %v7469_v63 = vld [vmem:[%s10923_s1 + $0x1060] ss:$8 sps:$4 sm:$0xff]   ;;  %v7474_v0 = vld [vmem:[%s10923_s1 + $0x474] ss:$8 sps:$4 sm:$0xff]  }
  0xe5   :  { %5567 = vmatprep.subr.bf16.mxu0 %v7393_v1  ;;  %v7477_v1 = vld [vmem:[%s10923_s1 + $0x1074] ss:$8 sps:$4 sm:$0xff]  }
  0xe7   :  { %5076 = vmatpush1.bf16.msra.mxu1 %v7388_v2  ;;  %v7472_v2 = vld [vmem:[%s10923_s1 + $0x470] ss:$8 sps:$4 sm:$0xff]  }
  0xe8   :  { %5568 = vmatpush1.bf16.msra.mxu0 %v7391_v3  ;;  %5077 = vmatprep.subr.bf16.mxu1 %v7396_v4  ;;  %v7475_v3 = vld [vmem:[%s10923_s1 + $0x1070] ss:$8 sps:$4 sm:$0xff]   ;;  %v7480_v4 = vld [vmem:[%s10923_s1 + $0x484] ss:$8 sps:$4 sm:$0xff]  }
  0xe9   :  { %5569 = vmatprep.subr.bf16.mxu0 %v7399_v5  ;;  %v7483_v5 = vld [vmem:[%s10923_s1 + $0x1084] ss:$8 sps:$4 sm:$0xff]  }
  0xeb   :  { %5078 = vmatpush1.bf16.msra.mxu1 %v7394_v6  ;;  %v7478_v6 = vld [vmem:[%s10923_s1 + $0x480] ss:$8 sps:$4 sm:$0xff]  }
  0xec   :  { %5570 = vmatpush1.bf16.msra.mxu0 %v7397_v7  ;;  %5079 = vmatprep.subr.bf16.mxu1 %v7402_v8  ;;  %v7481_v7 = vld [vmem:[%s10923_s1 + $0x1080] ss:$8 sps:$4 sm:$0xff]   ;;  %v7486_v8 = vld [vmem:[%s10923_s1 + $0x494] ss:$8 sps:$4 sm:$0xff]  }
  0xed   :  { %5571 = vmatprep.subr.bf16.mxu0 %v7405_v9  ;;  %v7489_v9 = vld [vmem:[%s10923_s1 + $0x1094] ss:$8 sps:$4 sm:$0xff]  }
  0xef   :  { %5080 = vmatpush1.bf16.msra.mxu1 %v7400_v10  ;;  %v7484_v10 = vld [vmem:[%s10923_s1 + $0x490] ss:$8 sps:$4 sm:$0xff]  }
  0xf0   :  { %5572 = vmatpush1.bf16.msra.mxu0 %v7403_v11  ;;  %5081 = vmatprep.subr.bf16.mxu1 %v7408_v12  ;;  %v7487_v11 = vld [vmem:[%s10923_s1 + $0x1090] ss:$8 sps:$4 sm:$0xff]   ;;  %v7492_v12 = vld [vmem:[%s10923_s1 + $0x4a4] ss:$8 sps:$4 sm:$0xff]  }
  0xf1   :  { %5573 = vmatprep.subr.bf16.mxu0 %v7411_v13  ;;  %v7495_v13 = vld [vmem:[%s10923_s1 + $0x10a4] ss:$8 sps:$4 sm:$0xff]  }
  0xf3   :  { %5082 = vmatpush1.bf16.msra.mxu1 %v7406_v14  ;;  %v7490_v14 = vld [vmem:[%s10923_s1 + $0x4a0] ss:$8 sps:$4 sm:$0xff]  }
  0xf4   :  { %5574 = vmatpush1.bf16.msra.mxu0 %v7409_v15  ;;  %5083 = vmatprep.subr.bf16.mxu1 %v7414_v16  ;;  %v7493_v15 = vld [vmem:[%s10923_s1 + $0x10a0] ss:$8 sps:$4 sm:$0xff]   ;;  %v7498_v16 = vld [vmem:[%s10923_s1 + $0x4b4] ss:$8 sps:$4 sm:$0xff]  }
  0xf5   :  { %5575 = vmatprep.subr.bf16.mxu0 %v7417_v17  ;;  %v7501_v17 = vld [vmem:[%s10923_s1 + $0x10b4] ss:$8 sps:$4 sm:$0xff]  }
  0xf7   :  { %5084 = vmatpush1.bf16.msra.mxu1 %v7412_v18  ;;  %v7496_v18 = vld [vmem:[%s10923_s1 + $0x4b0] ss:$8 sps:$4 sm:$0xff]  }
  0xf8   :  { %5576 = vmatpush1.bf16.msra.mxu0 %v7415_v19  ;;  %5085 = vmatprep.subr.bf16.mxu1 %v7420_v20  ;;  %v7499_v19 = vld [vmem:[%s10923_s1 + $0x10b0] ss:$8 sps:$4 sm:$0xff]   ;;  %v7504_v20 = vld [vmem:[%s10923_s1 + $0x4c4] ss:$8 sps:$4 sm:$0xff]  }
  0xf9   :  { %5577 = vmatprep.subr.bf16.mxu0 %v7423_v21  ;;  %v7507_v21 = vld [vmem:[%s10923_s1 + $0x10c4] ss:$8 sps:$4 sm:$0xff]  }
  0xfb   :  { %5086 = vmatpush1.bf16.msra.mxu1 %v7418_v22  ;;  %v7502_v22 = vld [vmem:[%s10923_s1 + $0x4c0] ss:$8 sps:$4 sm:$0xff]  }
  0xfc   :  { %5578 = vmatpush1.bf16.msra.mxu0 %v7421_v23  ;;  %5087 = vmatprep.subr.bf16.mxu1 %v7426_v24  ;;  %v7505_v23 = vld [vmem:[%s10923_s1 + $0x10c0] ss:$8 sps:$4 sm:$0xff]   ;;  %v7510_v24 = vld [vmem:[%s10923_s1 + $0x4d4] ss:$8 sps:$4 sm:$0xff]  }
  0xfd   :  { %5579 = vmatprep.subr.bf16.mxu0 %v7429_v25  ;;  %v7513_v25 = vld [vmem:[%s10923_s1 + $0x10d4] ss:$8 sps:$4 sm:$0xff]  }
  0xff   :  { %5088 = vmatpush1.bf16.msra.mxu1 %v7424_v26  ;;  %v7508_v26 = vld [vmem:[%s10923_s1 + $0x4d0] ss:$8 sps:$4 sm:$0xff]  }
 0x100   :  { %5580 = vmatpush1.bf16.msra.mxu0 %v7427_v27  ;;  %5098 = vmatprep.subr.bf16.mxu1 %v7432_v28  ;;  %v7511_v27 = vld [vmem:[%s10923_s1 + $0x10d0] ss:$8 sps:$4 sm:$0xff]   ;;  %v7516_v28 = vld [vmem:[%s10923_s1 + $0x4e4] ss:$8 sps:$4 sm:$0xff]  }
 0x101   :  { %5590 = vmatprep.subr.bf16.mxu0 %v7435_v31  ;;  %v7517_v31 = vld [vmem:[%s10923_s1 + $0x10e0] ss:$8 sps:$4 sm:$0xff]  }
 0x102   :  { %5090 = vmatmul.mubr.bf16.vlgmr.msra.gmra.mrb[0].mxu1 %v78_v34  ;;  %v7520_v34 = vld [vmem:[%s10923_s1 + $0x4f0] ss:$8 sps:$4 sm:$0xff]  }
 0x103   :  { %5582 = vmatmul.mubr.bf16.vlgmr.msra.gmra.mrb[0].mxu0 %v102_v35  ;;  %5099 = vmatpush1.bf16.msra.mxu1 %v7430_v32  ;;  %v7522_v32 = vld [vmem:[%s10923_s1 + $0x4f4] ss:$8 sps:$4 sm:$0xff]   ;;  %v7523_v35 = vld [vmem:[%s10923_s1 + $0x10f0] ss:$8 sps:$4 sm:$0xff]  }
 0x104   :  { %5591 = vmatpush1.bf16.msra.mxu0 %v7433_v33  ;;  %5100 = vmatprep.subr.bf16.mxu1 %v7438_v38  ;;  %v7525_v33 = vld [vmem:[%s10923_s1 + $0x10f4] ss:$8 sps:$4 sm:$0xff]   ;;  %v30_v38 = vld [vmem:[%s10922_s0 + $0x40] sm:$0xff] }
 0x105   :  { %5592 = vmatprep.subr.bf16.mxu0 %v7441_v39  ;;  %5130 = vmatprep.mubr.bf16.mxu1 %v81_v40  ;;  %v54_v39 = vld [vmem:[%s10922_s0 + $0x100] sm:$0xff]  ;;  %v33_v40 = vld [vmem:[%s10922_s0 + $0x58] sm:$0xff] }
 0x106   :  { %5622 = vmatprep.mubr.bf16.mxu0 %v105_v41  ;;  %v57_v41 = vld [vmem:[%s10922_s0 + $0x118] sm:$0xff] }
 0x107   :  { %5101 = vmatpush1.bf16.msra.mxu1 %v7436_v42  ;;  %v80_v42 = vpack.c.bf16 %v30_v38, %v30_v38  ;;  %v7610_v38 = vld [vmem:[%s10923_s1 + $0x5e0] ss:$8 sps:$4 sm:$0xff]  }
 0x108   :  { %5593 = vmatpush1.bf16.msra.mxu0 %v7439_v43  ;;  %5102 = vmatprep.subr.bf16.mxu1 %v7444_v44  ;;  %v104_v43 = vpack.c.bf16 %v54_v39, %v54_v39  ;;  %v7526_v44 = vld [vmem:[%s10923_s1 + $0x500] ss:$8 sps:$4 sm:$0xff]  }
 0x109   :  { %5594 = vmatprep.subr.bf16.mxu0 %v7447_v45  ;;  %v7529_v45 = vld [vmem:[%s10923_s1 + $0x1100] ss:$8 sps:$4 sm:$0xff]  }
 0x10a   :  { %v7613_v39 = vld [vmem:[%s10923_s1 + $0x11e0] ss:$8 sps:$4 sm:$0xff]  }
 0x10b   :  { %5103 = vmatpush1.bf16.msra.mxu1 %v7442_v46  ;;  %v7534_v46 = vld [vmem:[%s10923_s1 + $0x514] ss:$8 sps:$4 sm:$0xff]  }
 0x10c   :  { %5595 = vmatpush1.bf16.msra.mxu0 %v7445_v47  ;;  %5104 = vmatprep.subr.bf16.mxu1 %v7450_v48  ;;  %v7537_v47 = vld [vmem:[%s10923_s1 + $0x1114] ss:$8 sps:$4 sm:$0xff]   ;;  %v83_v48 = vpack.c.bf16 %v33_v40, %v33_v40 }
 0x10d   :  { %5596 = vmatprep.subr.bf16.mxu0 %v7453_v49  ;;  %v107_v49 = vpack.c.bf16 %v57_v41, %v57_v41  ;;  %v7618_v40 = vld [vmem:[%s10923_s1 + $0x5f4] ss:$8 sps:$4 sm:$0xff]  }
 0x10e   :  { %v7621_v41 = vld [vmem:[%s10923_s1 + $0x11f4] ss:$8 sps:$4 sm:$0xff]  }
 0x10f   :  { %5105 = vmatpush1.bf16.msra.mxu1 %v7448_v50  ;;  %v7532_v50 = vld [vmem:[%s10923_s1 + $0x510] ss:$8 sps:$4 sm:$0xff]  }
 0x110   :  { %5597 = vmatpush1.bf16.msra.mxu0 %v7451_v51  ;;  %5106 = vmatprep.subr.bf16.mxu1 %v7456_v52  ;;  %v7535_v51 = vld [vmem:[%s10923_s1 + $0x1110] ss:$8 sps:$4 sm:$0xff]   ;;  %v7540_v52 = vld [vmem:[%s10923_s1 + $0x524] ss:$8 sps:$4 sm:$0xff]  }
 0x111   :  { %5598 = vmatprep.subr.bf16.mxu0 %v7459_v53  ;;  %v7543_v53 = vld [vmem:[%s10923_s1 + $0x1124] ss:$8 sps:$4 sm:$0xff]  }
 0x113   :  { %5107 = vmatpush1.bf16.msra.mxu1 %v7454_v54  ;;  %v7538_v54 = vld [vmem:[%s10923_s1 + $0x520] ss:$8 sps:$4 sm:$0xff]  }
 0x114   :  { %5599 = vmatpush1.bf16.msra.mxu0 %v7457_v55  ;;  %5108 = vmatprep.subr.bf16.mxu1 %v7462_v56  ;;  %v7541_v55 = vld [vmem:[%s10923_s1 + $0x1120] ss:$8 sps:$4 sm:$0xff]   ;;  %v7546_v56 = vld [vmem:[%s10923_s1 + $0x534] ss:$8 sps:$4 sm:$0xff]  }
 0x115   :  { %5600 = vmatprep.subr.bf16.mxu0 %v7465_v57  ;;  %v7549_v57 = vld [vmem:[%s10923_s1 + $0x1134] ss:$8 sps:$4 sm:$0xff]  }
 0x117   :  { %5109 = vmatpush1.bf16.msra.mxu1 %v7460_v58  ;;  %v7544_v58 = vld [vmem:[%s10923_s1 + $0x530] ss:$8 sps:$4 sm:$0xff]  }
 0x118   :  { %5601 = vmatpush1.bf16.msra.mxu0 %v7463_v59  ;;  %5110 = vmatprep.subr.bf16.mxu1 %v7468_v60  ;;  %v7547_v59 = vld [vmem:[%s10923_s1 + $0x1130] ss:$8 sps:$4 sm:$0xff]   ;;  %v7552_v60 = vld [vmem:[%s10923_s1 + $0x544] ss:$8 sps:$4 sm:$0xff]  }
 0x119   :  { %5602 = vmatprep.subr.bf16.mxu0 %v7471_v61  ;;  %v7555_v61 = vld [vmem:[%s10923_s1 + $0x1144] ss:$8 sps:$4 sm:$0xff]  }
 0x11b   :  { %5111 = vmatpush1.bf16.msra.mxu1 %v7466_v62  ;;  %v7550_v62 = vld [vmem:[%s10923_s1 + $0x540] ss:$8 sps:$4 sm:$0xff]  }
 0x11c   :  { %5603 = vmatpush1.bf16.msra.mxu0 %v7469_v63  ;;  %5112 = vmatprep.subr.bf16.mxu1 %v7474_v0  ;;  %v7553_v63 = vld [vmem:[%s10923_s1 + $0x1140] ss:$8 sps:$4 sm:$0xff]   ;;  %v7558_v0 = vld [vmem:[%s10923_s1 + $0x554] ss:$8 sps:$4 sm:$0xff]  }
 0x11d   :  { %5604 = vmatprep.subr.bf16.mxu0 %v7477_v1  ;;  %v7561_v1 = vld [vmem:[%s10923_s1 + $0x1154] ss:$8 sps:$4 sm:$0xff]  }
 0x11f   :  { %5113 = vmatpush1.bf16.msra.mxu1 %v7472_v2  ;;  %v7556_v2 = vld [vmem:[%s10923_s1 + $0x550] ss:$8 sps:$4 sm:$0xff]  }
 0x120   :  { %5605 = vmatpush1.bf16.msra.mxu0 %v7475_v3  ;;  %5114 = vmatprep.subr.bf16.mxu1 %v7480_v4  ;;  %v7559_v3 = vld [vmem:[%s10923_s1 + $0x1150] ss:$8 sps:$4 sm:$0xff]   ;;  %v7564_v4 = vld [vmem:[%s10923_s1 + $0x564] ss:$8 sps:$4 sm:$0xff]  }
 0x121   :  { %5606 = vmatprep.subr.bf16.mxu0 %v7483_v5  ;;  %v7567_v5 = vld [vmem:[%s10923_s1 + $0x1164] ss:$8 sps:$4 sm:$0xff]  }
 0x123   :  { %5115 = vmatpush1.bf16.msra.mxu1 %v7478_v6  ;;  %v7562_v6 = vld [vmem:[%s10923_s1 + $0x560] ss:$8 sps:$4 sm:$0xff]  }
 0x124   :  { %5607 = vmatpush1.bf16.msra.mxu0 %v7481_v7  ;;  %5116 = vmatprep.subr.bf16.mxu1 %v7486_v8  ;;  %v7565_v7 = vld [vmem:[%s10923_s1 + $0x1160] ss:$8 sps:$4 sm:$0xff]   ;;  %v7570_v8 = vld [vmem:[%s10923_s1 + $0x574] ss:$8 sps:$4 sm:$0xff]  }
 0x125   :  { %5608 = vmatprep.subr.bf16.mxu0 %v7489_v9  ;;  %v7573_v9 = vld [vmem:[%s10923_s1 + $0x1174] ss:$8 sps:$4 sm:$0xff]  }
 0x127   :  { %5117 = vmatpush1.bf16.msra.mxu1 %v7484_v10  ;;  %v7568_v10 = vld [vmem:[%s10923_s1 + $0x570] ss:$8 sps:$4 sm:$0xff]  }
 0x128   :  { %5609 = vmatpush1.bf16.msra.mxu0 %v7487_v11  ;;  %5118 = vmatprep.subr.bf16.mxu1 %v7492_v12  ;;  %v7571_v11 = vld [vmem:[%s10923_s1 + $0x1170] ss:$8 sps:$4 sm:$0xff]   ;;  %v7576_v12 = vld [vmem:[%s10923_s1 + $0x584] ss:$8 sps:$4 sm:$0xff]  }
 0x129   :  { %5610 = vmatprep.subr.bf16.mxu0 %v7495_v13  ;;  %v7579_v13 = vld [vmem:[%s10923_s1 + $0x1184] ss:$8 sps:$4 sm:$0xff]  }
 0x12b   :  { %5119 = vmatpush1.bf16.msra.mxu1 %v7490_v14  ;;  %v7574_v14 = vld [vmem:[%s10923_s1 + $0x580] ss:$8 sps:$4 sm:$0xff]  }
 0x12c   :  { %5611 = vmatpush1.bf16.msra.mxu0 %v7493_v15  ;;  %5120 = vmatprep.subr.bf16.mxu1 %v7498_v16  ;;  %v7577_v15 = vld [vmem:[%s10923_s1 + $0x1180] ss:$8 sps:$4 sm:$0xff]   ;;  %v7582_v16 = vld [vmem:[%s10923_s1 + $0x594] ss:$8 sps:$4 sm:$0xff]  }
 0x12d   :  { %5612 = vmatprep.subr.bf16.mxu0 %v7501_v17  ;;  %v7585_v17 = vld [vmem:[%s10923_s1 + $0x1194] ss:$8 sps:$4 sm:$0xff]  }
 0x12f   :  { %5121 = vmatpush1.bf16.msra.mxu1 %v7496_v18  ;;  %v7580_v18 = vld [vmem:[%s10923_s1 + $0x590] ss:$8 sps:$4 sm:$0xff]  }
 0x130   :  { %5613 = vmatpush1.bf16.msra.mxu0 %v7499_v19  ;;  %5122 = vmatprep.subr.bf16.mxu1 %v7504_v20  ;;  %v7583_v19 = vld [vmem:[%s10923_s1 + $0x1190] ss:$8 sps:$4 sm:$0xff]   ;;  %v7588_v20 = vld [vmem:[%s10923_s1 + $0x5a4] ss:$8 sps:$4 sm:$0xff]  }
 0x131   :  { %5614 = vmatprep.subr.bf16.mxu0 %v7507_v21  ;;  %v7591_v21 = vld [vmem:[%s10923_s1 + $0x11a4] ss:$8 sps:$4 sm:$0xff]  }
 0x133   :  { %5123 = vmatpush1.bf16.msra.mxu1 %v7502_v22  ;;  %v7586_v22 = vld [vmem:[%s10923_s1 + $0x5a0] ss:$8 sps:$4 sm:$0xff]  }
 0x134   :  { %5615 = vmatpush1.bf16.msra.mxu0 %v7505_v23  ;;  %5124 = vmatprep.subr.bf16.mxu1 %v7510_v24  ;;  %v7589_v23 = vld [vmem:[%s10923_s1 + $0x11a0] ss:$8 sps:$4 sm:$0xff]   ;;  %v7594_v24 = vld [vmem:[%s10923_s1 + $0x5b4] ss:$8 sps:$4 sm:$0xff]  }
 0x135   :  { %5616 = vmatprep.subr.bf16.mxu0 %v7513_v25  ;;  %v7597_v25 = vld [vmem:[%s10923_s1 + $0x11b4] ss:$8 sps:$4 sm:$0xff]  }
 0x137   :  { %5125 = vmatpush1.bf16.msra.mxu1 %v7508_v26  ;;  %v7592_v26 = vld [vmem:[%s10923_s1 + $0x5b0] ss:$8 sps:$4 sm:$0xff]  }
 0x138   :  { %5617 = vmatpush1.bf16.msra.mxu0 %v7511_v27  ;;  %5126 = vmatprep.subr.bf16.mxu1 %v7516_v28  ;;  %v7595_v27 = vld [vmem:[%s10923_s1 + $0x11b0] ss:$8 sps:$4 sm:$0xff]   ;;  %v7600_v28 = vld [vmem:[%s10923_s1 + $0x5c4] ss:$8 sps:$4 sm:$0xff]  }
 0x139   :  { %5618 = vmatprep.subr.bf16.mxu0 %v7519_v29  ;;  %v7603_v29 = vld [vmem:[%s10923_s1 + $0x11c4] ss:$8 sps:$4 sm:$0xff]  }
 0x13b   :  { %5127 = vmatpush1.bf16.msra.mxu1 %v7514_v30  ;;  %v7598_v30 = vld [vmem:[%s10923_s1 + $0x5c0] ss:$8 sps:$4 sm:$0xff]  }
 0x13c   :  { %5619 = vmatpush1.bf16.msra.mxu0 %v7517_v31  ;;  %5128 = vmatprep.subr.bf16.mxu1 %v7522_v32  ;;  %v7601_v31 = vld [vmem:[%s10923_s1 + $0x11c0] ss:$8 sps:$4 sm:$0xff]   ;;  %v7606_v32 = vld [vmem:[%s10923_s1 + $0x5d4] ss:$8 sps:$4 sm:$0xff]  }
 0x13d   :  { %5620 = vmatprep.subr.bf16.mxu0 %v7525_v33  ;;  %v7609_v33 = vld [vmem:[%s10923_s1 + $0x11d4] ss:$8 sps:$4 sm:$0xff]  }
 0x13f   :  { %5129 = vmatpush1.bf16.msra.mxu1 %v7520_v34  ;;  %v7604_v34 = vld [vmem:[%s10923_s1 + $0x5d0] ss:$8 sps:$4 sm:$0xff]  }
 0x140   :  { %5621 = vmatpush1.bf16.msra.mxu0 %v7523_v35  ;;  %5139 = vmatprep.subr.bf16.mxu1 %v7528_v36  ;;  %v7607_v35 = vld [vmem:[%s10923_s1 + $0x11d0] ss:$8 sps:$4 sm:$0xff]   ;;  %v7612_v36 = vld [vmem:[%s10923_s1 + $0x5e4] ss:$8 sps:$4 sm:$0xff]  }
 0x141   :  { %5631 = vmatprep.subr.bf16.mxu0 %v7531_v37  ;;  %v7615_v37 = vld [vmem:[%s10923_s1 + $0x11e4] ss:$8 sps:$4 sm:$0xff]  }
 0x142   :  { %5131 = vmatmul.mubr.bf16.vlgmr.msra.gmra.mrb[0].mxu1 %v80_v42  ;;  %v7616_v42 = vld [vmem:[%s10923_s1 + $0x5f0] ss:$8 sps:$4 sm:$0xff]  }
 0x143   :  { %5623 = vmatmul.mubr.bf16.vlgmr.msra.gmra.mrb[0].mxu0 %v104_v43  ;;  %5140 = vmatpush1.bf16.msra.mxu1 %v7526_v44  ;;  %v7619_v43 = vld [vmem:[%s10923_s1 + $0x11f0] ss:$8 sps:$4 sm:$0xff]   ;;  %v7624_v44 = vld [vmem:[%s10923_s1 + $0x604] ss:$8 sps:$4 sm:$0xff]  }
 0x144   :  { %5632 = vmatpush1.bf16.msra.mxu0 %v7529_v45  ;;  %5141 = vmatprep.subr.bf16.mxu1 %v7534_v46  ;;  %v7627_v45 = vld [vmem:[%s10923_s1 + $0x1204] ss:$8 sps:$4 sm:$0xff]   ;;  %v32_v46 = vld [vmem:[%s10922_s0 + $0x50] sm:$0xff] }
 0x145   :  { %5633 = vmatprep.subr.bf16.mxu0 %v7537_v47  ;;  %5171 = vmatprep.mubr.bf16.mxu1 %v83_v48  ;;  %v56_v47 = vld [vmem:[%s10922_s0 + $0x110] sm:$0xff]  ;;  %v35_v48 = vld [vmem:[%s10922_s0 + $0x68] sm:$0xff] }
 0x146   :  { %5663 = vmatprep.mubr.bf16.mxu0 %v107_v49  ;;  %v59_v49 = vld [vmem:[%s10922_s0 + $0x128] sm:$0xff] }
 0x147   :  { %5142 = vmatpush1.bf16.msra.mxu1 %v7532_v50  ;;  %v82_v50 = vpack.c.bf16 %v32_v46, %v32_v46  ;;  %v7706_v46 = vld [vmem:[%s10923_s1 + $0x6e0] ss:$8 sps:$4 sm:$0xff]  }
 0x148   :  { %5634 = vmatpush1.bf16.msra.mxu0 %v7535_v51  ;;  %5143 = vmatprep.subr.bf16.mxu1 %v7540_v52  ;;  %v106_v51 = vpack.c.bf16 %v56_v47, %v56_v47  ;;  %v7622_v52 = vld [vmem:[%s10923_s1 + $0x600] ss:$8 sps:$4 sm:$0xff]  }
 0x149   :  { %5635 = vmatprep.subr.bf16.mxu0 %v7543_v53  ;;  %v7625_v53 = vld [vmem:[%s10923_s1 + $0x1200] ss:$8 sps:$4 sm:$0xff]  }
 0x14a   :  { %v7709_v47 = vld [vmem:[%s10923_s1 + $0x12e0] ss:$8 sps:$4 sm:$0xff]  }
 0x14b   :  { %5144 = vmatpush1.bf16.msra.mxu1 %v7538_v54  ;;  %v7630_v54 = vld [vmem:[%s10923_s1 + $0x614] ss:$8 sps:$4 sm:$0xff]  }
 0x14c   :  { %5636 = vmatpush1.bf16.msra.mxu0 %v7541_v55  ;;  %5145 = vmatprep.subr.bf16.mxu1 %v7546_v56  ;;  %v7633_v55 = vld [vmem:[%s10923_s1 + $0x1214] ss:$8 sps:$4 sm:$0xff]   ;;  %v85_v56 = vpack.c.bf16 %v35_v48, %v35_v48 }
 0x14d   :  { %5637 = vmatprep.subr.bf16.mxu0 %v7549_v57  ;;  %v109_v57 = vpack.c.bf16 %v59_v49, %v59_v49  ;;  %v7714_v48 = vld [vmem:[%s10923_s1 + $0x6f4] ss:$8 sps:$4 sm:$0xff]  }
 0x14e   :  { %v7717_v49 = vld [vmem:[%s10923_s1 + $0x12f4] ss:$8 sps:$4 sm:$0xff]  }
 0x14f   :  { %5146 = vmatpush1.bf16.msra.mxu1 %v7544_v58  ;;  %v7628_v58 = vld [vmem:[%s10923_s1 + $0x610] ss:$8 sps:$4 sm:$0xff]  }
 0x150   :  { %5638 = vmatpush1.bf16.msra.mxu0 %v7547_v59  ;;  %5147 = vmatprep.subr.bf16.mxu1 %v7552_v60  ;;  %v7631_v59 = vld [vmem:[%s10923_s1 + $0x1210] ss:$8 sps:$4 sm:$0xff]   ;;  %v7636_v60 = vld [vmem:[%s10923_s1 + $0x624] ss:$8 sps:$4 sm:$0xff]  }
 0x151   :  { %5639 = vmatprep.subr.bf16.mxu0 %v7555_v61  ;;  %v7639_v61 = vld [vmem:[%s10923_s1 + $0x1224] ss:$8 sps:$4 sm:$0xff]  }
 0x153   :  { %5148 = vmatpush1.bf16.msra.mxu1 %v7550_v62  ;;  %v7634_v62 = vld [vmem:[%s10923_s1 + $0x620] ss:$8 sps:$4 sm:$0xff]  }
 0x154   :  { %5640 = vmatpush1.bf16.msra.mxu0 %v7553_v63  ;;  %5149 = vmatprep.subr.bf16.mxu1 %v7558_v0  ;;  %v7637_v63 = vld [vmem:[%s10923_s1 + $0x1220] ss:$8 sps:$4 sm:$0xff]   ;;  %v7642_v0 = vld [vmem:[%s10923_s1 + $0x634] ss:$8 sps:$4 sm:$0xff]  }
 0x155   :  { %5641 = vmatprep.subr.bf16.mxu0 %v7561_v1  ;;  %v7645_v1 = vld [vmem:[%s10923_s1 + $0x1234] ss:$8 sps:$4 sm:$0xff]  }
 0x157   :  { %5150 = vmatpush1.bf16.msra.mxu1 %v7556_v2  ;;  %v7640_v2 = vld [vmem:[%s10923_s1 + $0x630] ss:$8 sps:$4 sm:$0xff]  }
 0x158   :  { %5642 = vmatpush1.bf16.msra.mxu0 %v7559_v3  ;;  %5151 = vmatprep.subr.bf16.mxu1 %v7564_v4  ;;  %v7643_v3 = vld [vmem:[%s10923_s1 + $0x1230] ss:$8 sps:$4 sm:$0xff]   ;;  %v7648_v4 = vld [vmem:[%s10923_s1 + $0x644] ss:$8 sps:$4 sm:$0xff]  }
 0x159   :  { %5643 = vmatprep.subr.bf16.mxu0 %v7567_v5  ;;  %v7651_v5 = vld [vmem:[%s10923_s1 + $0x1244] ss:$8 sps:$4 sm:$0xff]  }
 0x15b   :  { %5152 = vmatpush1.bf16.msra.mxu1 %v7562_v6  ;;  %v7646_v6 = vld [vmem:[%s10923_s1 + $0x640] ss:$8 sps:$4 sm:$0xff]  }
 0x15c   :  { %5644 = vmatpush1.bf16.msra.mxu0 %v7565_v7  ;;  %5153 = vmatprep.subr.bf16.mxu1 %v7570_v8  ;;  %v7649_v7 = vld [vmem:[%s10923_s1 + $0x1240] ss:$8 sps:$4 sm:$0xff]   ;;  %v7654_v8 = vld [vmem:[%s10923_s1 + $0x654] ss:$8 sps:$4 sm:$0xff]  }
 0x15d   :  { %5645 = vmatprep.subr.bf16.mxu0 %v7573_v9  ;;  %v7657_v9 = vld [vmem:[%s10923_s1 + $0x1254] ss:$8 sps:$4 sm:$0xff]  }
 0x15f   :  { %5154 = vmatpush1.bf16.msra.mxu1 %v7568_v10  ;;  %v7652_v10 = vld [vmem:[%s10923_s1 + $0x650] ss:$8 sps:$4 sm:$0xff]  }
 0x160   :  { %5646 = vmatpush1.bf16.msra.mxu0 %v7571_v11  ;;  %5155 = vmatprep.subr.bf16.mxu1 %v7576_v12  ;;  %v7655_v11 = vld [vmem:[%s10923_s1 + $0x1250] ss:$8 sps:$4 sm:$0xff]   ;;  %v7660_v12 = vld [vmem:[%s10923_s1 + $0x664] ss:$8 sps:$4 sm:$0xff]  }
 0x161   :  { %5647 = vmatprep.subr.bf16.mxu0 %v7579_v13  ;;  %v7663_v13 = vld [vmem:[%s10923_s1 + $0x1264] ss:$8 sps:$4 sm:$0xff]  }
 0x163   :  { %5156 = vmatpush1.bf16.msra.mxu1 %v7574_v14  ;;  %v7658_v14 = vld [vmem:[%s10923_s1 + $0x660] ss:$8 sps:$4 sm:$0xff]  }
 0x164   :  { %5648 = vmatpush1.bf16.msra.mxu0 %v7577_v15  ;;  %5157 = vmatprep.subr.bf16.mxu1 %v7582_v16  ;;  %v7661_v15 = vld [vmem:[%s10923_s1 + $0x1260] ss:$8 sps:$4 sm:$0xff]   ;;  %v7666_v16 = vld [vmem:[%s10923_s1 + $0x674] ss:$8 sps:$4 sm:$0xff]  }
 0x165   :  { %5649 = vmatprep.subr.bf16.mxu0 %v7585_v17  ;;  %v7669_v17 = vld [vmem:[%s10923_s1 + $0x1274] ss:$8 sps:$4 sm:$0xff]  }
 0x167   :  { %5158 = vmatpush1.bf16.msra.mxu1 %v7580_v18  ;;  %v7664_v18 = vld [vmem:[%s10923_s1 + $0x670] ss:$8 sps:$4 sm:$0xff]  }
 0x168   :  { %5650 = vmatpush1.bf16.msra.mxu0 %v7583_v19  ;;  %5159 = vmatprep.subr.bf16.mxu1 %v7588_v20  ;;  %v7667_v19 = vld [vmem:[%s10923_s1 + $0x1270] ss:$8 sps:$4 sm:$0xff]   ;;  %v7672_v20 = vld [vmem:[%s10923_s1 + $0x684] ss:$8 sps:$4 sm:$0xff]  }
 0x169   :  { %5651 = vmatprep.subr.bf16.mxu0 %v7591_v21  ;;  %v7675_v21 = vld [vmem:[%s10923_s1 + $0x1284] ss:$8 sps:$4 sm:$0xff]  }
 0x16b   :  { %5160 = vmatpush1.bf16.msra.mxu1 %v7586_v22  ;;  %v7670_v22 = vld [vmem:[%s10923_s1 + $0x680] ss:$8 sps:$4 sm:$0xff]  }
 0x16c   :  { %5652 = vmatpush1.bf16.msra.mxu0 %v7589_v23  ;;  %5161 = vmatprep.subr.bf16.mxu1 %v7594_v24  ;;  %v7673_v23 = vld [vmem:[%s10923_s1 + $0x1280] ss:$8 sps:$4 sm:$0xff]   ;;  %v7678_v24 = vld [vmem:[%s10923_s1 + $0x694] ss:$8 sps:$4 sm:$0xff]  }
 0x16d   :  { %5653 = vmatprep.subr.bf16.mxu0 %v7597_v25  ;;  %v7681_v25 = vld [vmem:[%s10923_s1 + $0x1294] ss:$8 sps:$4 sm:$0xff]  }
 0x16f   :  { %5162 = vmatpush1.bf16.msra.mxu1 %v7592_v26  ;;  %v7676_v26 = vld [vmem:[%s10923_s1 + $0x690] ss:$8 sps:$4 sm:$0xff]  }
 0x170   :  { %5654 = vmatpush1.bf16.msra.mxu0 %v7595_v27  ;;  %5163 = vmatprep.subr.bf16.mxu1 %v7600_v28  ;;  %v7679_v27 = vld [vmem:[%s10923_s1 + $0x1290] ss:$8 sps:$4 sm:$0xff]   ;;  %v7684_v28 = vld [vmem:[%s10923_s1 + $0x6a4] ss:$8 sps:$4 sm:$0xff]  }
 0x171   :  { %5655 = vmatprep.subr.bf16.mxu0 %v7603_v29  ;;  %v7687_v29 = vld [vmem:[%s10923_s1 + $0x12a4] ss:$8 sps:$4 sm:$0xff]  }
 0x173   :  { %5164 = vmatpush1.bf16.msra.mxu1 %v7598_v30  ;;  %v7682_v30 = vld [vmem:[%s10923_s1 + $0x6a0] ss:$8 sps:$4 sm:$0xff]  }
 0x174   :  { %5656 = vmatpush1.bf16.msra.mxu0 %v7601_v31  ;;  %5165 = vmatprep.subr.bf16.mxu1 %v7606_v32  ;;  %v7685_v31 = vld [vmem:[%s10923_s1 + $0x12a0] ss:$8 sps:$4 sm:$0xff]   ;;  %v7690_v32 = vld [vmem:[%s10923_s1 + $0x6b4] ss:$8 sps:$4 sm:$0xff]  }
 0x175   :  { %5657 = vmatprep.subr.bf16.mxu0 %v7609_v33  ;;  %v7693_v33 = vld [vmem:[%s10923_s1 + $0x12b4] ss:$8 sps:$4 sm:$0xff]  }
 0x177   :  { %5166 = vmatpush1.bf16.msra.mxu1 %v7604_v34  ;;  %v7688_v34 = vld [vmem:[%s10923_s1 + $0x6b0] ss:$8 sps:$4 sm:$0xff]  }
 0x178   :  { %5658 = vmatpush1.bf16.msra.mxu0 %v7607_v35  ;;  %5167 = vmatprep.subr.bf16.mxu1 %v7612_v36  ;;  %v7691_v35 = vld [vmem:[%s10923_s1 + $0x12b0] ss:$8 sps:$4 sm:$0xff]   ;;  %v7696_v36 = vld [vmem:[%s10923_s1 + $0x6c4] ss:$8 sps:$4 sm:$0xff]  }
 0x179   :  { %5659 = vmatprep.subr.bf16.mxu0 %v7615_v37  ;;  %v7699_v37 = vld [vmem:[%s10923_s1 + $0x12c4] ss:$8 sps:$4 sm:$0xff]  }
 0x17b   :  { %5168 = vmatpush1.bf16.msra.mxu1 %v7610_v38  ;;  %v7694_v38 = vld [vmem:[%s10923_s1 + $0x6c0] ss:$8 sps:$4 sm:$0xff]  }
 0x17c   :  { %5660 = vmatpush1.bf16.msra.mxu0 %v7613_v39  ;;  %5169 = vmatprep.subr.bf16.mxu1 %v7618_v40  ;;  %v7697_v39 = vld [vmem:[%s10923_s1 + $0x12c0] ss:$8 sps:$4 sm:$0xff]   ;;  %v7702_v40 = vld [vmem:[%s10923_s1 + $0x6d4] ss:$8 sps:$4 sm:$0xff]  }
 0x17d   :  { %5661 = vmatprep.subr.bf16.mxu0 %v7621_v41  ;;  %v7705_v41 = vld [vmem:[%s10923_s1 + $0x12d4] ss:$8 sps:$4 sm:$0xff]  }
 0x17f   :  { %5170 = vmatpush1.bf16.msra.mxu1 %v7616_v42  ;;  %v7700_v42 = vld [vmem:[%s10923_s1 + $0x6d0] ss:$8 sps:$4 sm:$0xff]  }
 0x180   :  { %5662 = vmatpush1.bf16.msra.mxu0 %v7619_v43  ;;  %5180 = vmatprep.subr.bf16.mxu1 %v7624_v44  ;;  %v7703_v43 = vld [vmem:[%s10923_s1 + $0x12d0] ss:$8 sps:$4 sm:$0xff]   ;;  %v7708_v44 = vld [vmem:[%s10923_s1 + $0x6e4] ss:$8 sps:$4 sm:$0xff]  }
 0x181   :  { %5672 = vmatprep.subr.bf16.mxu0 %v7627_v45  ;;  %v7711_v45 = vld [vmem:[%s10923_s1 + $0x12e4] ss:$8 sps:$4 sm:$0xff]  }
 0x182   :  { %5172 = vmatmul.mubr.bf16.vlgmr.msra.gmra.mrb[0].mxu1 %v82_v50  ;;  %v7712_v50 = vld [vmem:[%s10923_s1 + $0x6f0] ss:$8 sps:$4 sm:$0xff]  }
 0x183   :  { %5664 = vmatmul.mubr.bf16.vlgmr.msra.gmra.mrb[0].mxu0 %v106_v51  ;;  %5181 = vmatpush1.bf16.msra.mxu1 %v7622_v52  ;;  %v7715_v51 = vld [vmem:[%s10923_s1 + $0x12f0] ss:$8 sps:$4 sm:$0xff]   ;;  %v7720_v52 = vld [vmem:[%s10923_s1 + $0x704] ss:$8 sps:$4 sm:$0xff]  }
 0x184   :  { %5673 = vmatpush1.bf16.msra.mxu0 %v7625_v53  ;;  %5182 = vmatprep.subr.bf16.mxu1 %v7630_v54  ;;  %v7723_v53 = vld [vmem:[%s10923_s1 + $0x1304] ss:$8 sps:$4 sm:$0xff]  }
 0x185   :  { %5674 = vmatprep.subr.bf16.mxu0 %v7633_v55  ;;  %5212 = vmatprep.mubr.bf16.mxu1 %v85_v56  ;;  %v34_v54 = vld [vmem:[%s10922_s0 + $0x60] sm:$0xff]  ;;  %v37_v56 = vld [vmem:[%s10922_s0 + $0x78] sm:$0xff] }
 0x186   :  { %5704 = vmatprep.mubr.bf16.mxu0 %v109_v57  ;;  %v58_v55 = vld [vmem:[%s10922_s0 + $0x120] sm:$0xff]  ;;  %v61_v57 = vld [vmem:[%s10922_s0 + $0x138] sm:$0xff] }
 0x187   :  { %5183 = vmatpush1.bf16.msra.mxu1 %v7628_v58  ;;  %v84_v58 = vpack.c.bf16 %v34_v54, %v34_v54 }
 0x188   :  { %5675 = vmatpush1.bf16.msra.mxu0 %v7631_v59  ;;  %5184 = vmatprep.subr.bf16.mxu1 %v7636_v60  ;;  %v108_v59 = vpack.c.bf16 %v58_v55, %v58_v55  ;;  %v7718_v60 = vld [vmem:[%s10923_s1 + $0x700] ss:$8 sps:$4 sm:$0xff]  }
 0x189   :  { %5676 = vmatprep.subr.bf16.mxu0 %v7639_v61  ;;  %v7721_v61 = vld [vmem:[%s10923_s1 + $0x1300] ss:$8 sps:$4 sm:$0xff]  }
 0x18b   :  { %5185 = vmatpush1.bf16.msra.mxu1 %v7634_v62  ;;  %v7726_v62 = vld [vmem:[%s10923_s1 + $0x714] ss:$8 sps:$4 sm:$0xff]  }
 0x18c   :  { %5677 = vmatpush1.bf16.msra.mxu0 %v7637_v63  ;;  %5186 = vmatprep.subr.bf16.mxu1 %v7642_v0  ;;  %v7729_v63 = vld [vmem:[%s10923_s1 + $0x1314] ss:$8 sps:$4 sm:$0xff]   ;;  %v87_v0 = vpack.c.bf16 %v37_v56, %v37_v56 }
 0x18d   :  { %5678 = vmatprep.subr.bf16.mxu0 %v7645_v1  ;;  %v111_v1 = vpack.c.bf16 %v61_v57, %v61_v57 }
 0x18f   :  { %5187 = vmatpush1.bf16.msra.mxu1 %v7640_v2  ;;  %v7724_v2 = vld [vmem:[%s10923_s1 + $0x710] ss:$8 sps:$4 sm:$0xff]  }
 0x190   :  { %5679 = vmatpush1.bf16.msra.mxu0 %v7643_v3  ;;  %5188 = vmatprep.subr.bf16.mxu1 %v7648_v4  ;;  %v7727_v3 = vld [vmem:[%s10923_s1 + $0x1310] ss:$8 sps:$4 sm:$0xff]   ;;  %v7732_v4 = vld [vmem:[%s10923_s1 + $0x724] ss:$8 sps:$4 sm:$0xff]  }
 0x191   :  { %5680 = vmatprep.subr.bf16.mxu0 %v7651_v5  ;;  %v7735_v5 = vld [vmem:[%s10923_s1 + $0x1324] ss:$8 sps:$4 sm:$0xff]  }
 0x193   :  { %5189 = vmatpush1.bf16.msra.mxu1 %v7646_v6  ;;  %v7730_v6 = vld [vmem:[%s10923_s1 + $0x720] ss:$8 sps:$4 sm:$0xff]  }
 0x194   :  { %5681 = vmatpush1.bf16.msra.mxu0 %v7649_v7  ;;  %5190 = vmatprep.subr.bf16.mxu1 %v7654_v8  ;;  %v7733_v7 = vld [vmem:[%s10923_s1 + $0x1320] ss:$8 sps:$4 sm:$0xff]   ;;  %v7738_v8 = vld [vmem:[%s10923_s1 + $0x734] ss:$8 sps:$4 sm:$0xff]  }
 0x195   :  { %5682 = vmatprep.subr.bf16.mxu0 %v7657_v9  ;;  %v7741_v9 = vld [vmem:[%s10923_s1 + $0x1334] ss:$8 sps:$4 sm:$0xff]  }
 0x197   :  { %5191 = vmatpush1.bf16.msra.mxu1 %v7652_v10  ;;  %v7736_v10 = vld [vmem:[%s10923_s1 + $0x730] ss:$8 sps:$4 sm:$0xff]  }
 0x198   :  { %5683 = vmatpush1.bf16.msra.mxu0 %v7655_v11  ;;  %5192 = vmatprep.subr.bf16.mxu1 %v7660_v12  ;;  %v7739_v11 = vld [vmem:[%s10923_s1 + $0x1330] ss:$8 sps:$4 sm:$0xff]   ;;  %v7744_v12 = vld [vmem:[%s10923_s1 + $0x744] ss:$8 sps:$4 sm:$0xff]  }
 0x199   :  { %5684 = vmatprep.subr.bf16.mxu0 %v7663_v13  ;;  %v7747_v13 = vld [vmem:[%s10923_s1 + $0x1344] ss:$8 sps:$4 sm:$0xff]  }
 0x19b   :  { %5193 = vmatpush1.bf16.msra.mxu1 %v7658_v14  ;;  %v7742_v14 = vld [vmem:[%s10923_s1 + $0x740] ss:$8 sps:$4 sm:$0xff]  }
 0x19c   :  { %5685 = vmatpush1.bf16.msra.mxu0 %v7661_v15  ;;  %5194 = vmatprep.subr.bf16.mxu1 %v7666_v16  ;;  %v7745_v15 = vld [vmem:[%s10923_s1 + $0x1340] ss:$8 sps:$4 sm:$0xff]   ;;  %v7750_v16 = vld [vmem:[%s10923_s1 + $0x754] ss:$8 sps:$4 sm:$0xff]  }
 0x19d   :  { %5686 = vmatprep.subr.bf16.mxu0 %v7669_v17  ;;  %v7753_v17 = vld [vmem:[%s10923_s1 + $0x1354] ss:$8 sps:$4 sm:$0xff]  }
 0x19f   :  { %5195 = vmatpush1.bf16.msra.mxu1 %v7664_v18  ;;  %v7748_v18 = vld [vmem:[%s10923_s1 + $0x750] ss:$8 sps:$4 sm:$0xff]  }
 0x1a0   :  { %5687 = vmatpush1.bf16.msra.mxu0 %v7667_v19  ;;  %5196 = vmatprep.subr.bf16.mxu1 %v7672_v20  ;;  %v7751_v19 = vld [vmem:[%s10923_s1 + $0x1350] ss:$8 sps:$4 sm:$0xff]   ;;  %v7756_v20 = vld [vmem:[%s10923_s1 + $0x764] ss:$8 sps:$4 sm:$0xff]  }
 0x1a1   :  { %5688 = vmatprep.subr.bf16.mxu0 %v7675_v21  ;;  %v7759_v21 = vld [vmem:[%s10923_s1 + $0x1364] ss:$8 sps:$4 sm:$0xff]  }
 0x1a3   :  { %5197 = vmatpush1.bf16.msra.mxu1 %v7670_v22  ;;  %v7754_v22 = vld [vmem:[%s10923_s1 + $0x760] ss:$8 sps:$4 sm:$0xff]  }
 0x1a4   :  { %5689 = vmatpush1.bf16.msra.mxu0 %v7673_v23  ;;  %5198 = vmatprep.subr.bf16.mxu1 %v7678_v24  ;;  %v7757_v23 = vld [vmem:[%s10923_s1 + $0x1360] ss:$8 sps:$4 sm:$0xff]   ;;  %v7762_v24 = vld [vmem:[%s10923_s1 + $0x774] ss:$8 sps:$4 sm:$0xff]  }
 0x1a5   :  { %5690 = vmatprep.subr.bf16.mxu0 %v7681_v25  ;;  %v7765_v25 = vld [vmem:[%s10923_s1 + $0x1374] ss:$8 sps:$4 sm:$0xff]  }
 0x1a7   :  { %5199 = vmatpush1.bf16.msra.mxu1 %v7676_v26  ;;  %v7760_v26 = vld [vmem:[%s10923_s1 + $0x770] ss:$8 sps:$4 sm:$0xff]  }
 0x1a8   :  { %5691 = vmatpush1.bf16.msra.mxu0 %v7679_v27  ;;  %5200 = vmatprep.subr.bf16.mxu1 %v7684_v28  ;;  %v7763_v27 = vld [vmem:[%s10923_s1 + $0x1370] ss:$8 sps:$4 sm:$0xff]   ;;  %v7768_v28 = vld [vmem:[%s10923_s1 + $0x784] ss:$8 sps:$4 sm:$0xff]  }
 0x1a9   :  { %5692 = vmatprep.subr.bf16.mxu0 %v7687_v29  ;;  %v7771_v29 = vld [vmem:[%s10923_s1 + $0x1384] ss:$8 sps:$4 sm:$0xff]  }
 0x1ab   :  { %5201 = vmatpush1.bf16.msra.mxu1 %v7682_v30  ;;  %v7766_v30 = vld [vmem:[%s10923_s1 + $0x780] ss:$8 sps:$4 sm:$0xff]  }
 0x1ac   :  { %5693 = vmatpush1.bf16.msra.mxu0 %v7685_v31  ;;  %5202 = vmatprep.subr.bf16.mxu1 %v7690_v32  ;;  %v7769_v31 = vld [vmem:[%s10923_s1 + $0x1380] ss:$8 sps:$4 sm:$0xff]   ;;  %v7774_v32 = vld [vmem:[%s10923_s1 + $0x794] ss:$8 sps:$4 sm:$0xff]  }
 0x1ad   :  { %5694 = vmatprep.subr.bf16.mxu0 %v7693_v33  ;;  %v7777_v33 = vld [vmem:[%s10923_s1 + $0x1394] ss:$8 sps:$4 sm:$0xff]  }
 0x1af   :  { %5203 = vmatpush1.bf16.msra.mxu1 %v7688_v34  ;;  %v7772_v34 = vld [vmem:[%s10923_s1 + $0x790] ss:$8 sps:$4 sm:$0xff]  }
 0x1b0   :  { %5695 = vmatpush1.bf16.msra.mxu0 %v7691_v35  ;;  %5204 = vmatprep.subr.bf16.mxu1 %v7696_v36  ;;  %v7775_v35 = vld [vmem:[%s10923_s1 + $0x1390] ss:$8 sps:$4 sm:$0xff]   ;;  %v7780_v36 = vld [vmem:[%s10923_s1 + $0x7a4] ss:$8 sps:$4 sm:$0xff]  }
 0x1b1   :  { %5696 = vmatprep.subr.bf16.mxu0 %v7699_v37  ;;  %v7783_v37 = vld [vmem:[%s10923_s1 + $0x13a4] ss:$8 sps:$4 sm:$0xff]  }
 0x1b3   :  { %5205 = vmatpush1.bf16.msra.mxu1 %v7694_v38  ;;  %v7778_v38 = vld [vmem:[%s10923_s1 + $0x7a0] ss:$8 sps:$4 sm:$0xff]  }
 0x1b4   :  { %5697 = vmatpush1.bf16.msra.mxu0 %v7697_v39  ;;  %5206 = vmatprep.subr.bf16.mxu1 %v7702_v40  ;;  %v7781_v39 = vld [vmem:[%s10923_s1 + $0x13a0] ss:$8 sps:$4 sm:$0xff]   ;;  %v7786_v40 = vld [vmem:[%s10923_s1 + $0x7b4] ss:$8 sps:$4 sm:$0xff]  }
 0x1b5   :  { %5698 = vmatprep.subr.bf16.mxu0 %v7705_v41  ;;  %v7789_v41 = vld [vmem:[%s10923_s1 + $0x13b4] ss:$8 sps:$4 sm:$0xff]  }
 0x1b7   :  { %5207 = vmatpush1.bf16.msra.mxu1 %v7700_v42  ;;  %v7784_v42 = vld [vmem:[%s10923_s1 + $0x7b0] ss:$8 sps:$4 sm:$0xff]  }
 0x1b8   :  { %5699 = vmatpush1.bf16.msra.mxu0 %v7703_v43  ;;  %5208 = vmatprep.subr.bf16.mxu1 %v7708_v44  ;;  %v7787_v43 = vld [vmem:[%s10923_s1 + $0x13b0] ss:$8 sps:$4 sm:$0xff]   ;;  %v7792_v44 = vld [vmem:[%s10923_s1 + $0x7c4] ss:$8 sps:$4 sm:$0xff]  }
 0x1b9   :  { %5700 = vmatprep.subr.bf16.mxu0 %v7711_v45  ;;  %v7795_v45 = vld [vmem:[%s10923_s1 + $0x13c4] ss:$8 sps:$4 sm:$0xff]  }
 0x1bb   :  { %5209 = vmatpush1.bf16.msra.mxu1 %v7706_v46 }
 0x1bc   :  { %5701 = vmatpush1.bf16.msra.mxu0 %v7709_v47  ;;  %5210 = vmatprep.subr.bf16.mxu1 %v7714_v48 }
 0x1bd   :  { %5702 = vmatprep.subr.bf16.mxu0 %v7717_v49 }
 0x1bf   :  { %5211 = vmatpush1.bf16.msra.mxu1 %v7712_v50 }
 0x1c0   :  { %5703 = vmatpush1.bf16.msra.mxu0 %v7715_v51  ;;  %5221 = vmatprep.subr.bf16.mxu1 %v7720_v52 }
 0x1c1   :  { %5713 = vmatprep.subr.bf16.mxu0 %v7723_v53 }
 0x1c2   :  { %5213 = vmatmul.mubr.bf16.vlgmr.msra.gmra.mrb[0].mxu1 %v84_v58 }
 0x1c3   :  { %5705 = vmatmul.mubr.bf16.vlgmr.msra.gmra.mrb[0].mxu0 %v108_v59  ;;  %5222 = vmatpush1.bf16.msra.mxu1 %v7718_v60 }
 0x1c4   :  { %5714 = vmatpush1.bf16.msra.mxu0 %v7721_v61  ;;  %5223 = vmatprep.subr.bf16.mxu1 %v7726_v62 }
 0x1c5   :  { %5715 = vmatprep.subr.bf16.mxu0 %v7729_v63  ;;  %5253 = vmatprep.mubr.bf16.mxu1 %v87_v0 }
 0x1c6   :  { %5745 = vmatprep.mubr.bf16.mxu0 %v111_v1 }
 0x1c7   :  { %5224 = vmatpush1.bf16.msra.mxu1 %v7724_v2 }
 0x1c8   :  { %5716 = vmatpush1.bf16.msra.mxu0 %v7727_v3  ;;  %5225 = vmatprep.subr.bf16.mxu1 %v7732_v4 }
 0x1c9   :  { %5717 = vmatprep.subr.bf16.mxu0 %v7735_v5 }
 0x1cb   :  { %5226 = vmatpush1.bf16.msra.mxu1 %v7730_v6 }
 0x1cc   :  { %5718 = vmatpush1.bf16.msra.mxu0 %v7733_v7  ;;  %5227 = vmatprep.subr.bf16.mxu1 %v7738_v8 }
 0x1cd   :  { %5719 = vmatprep.subr.bf16.mxu0 %v7741_v9 }
 0x1cf   :  { %5228 = vmatpush1.bf16.msra.mxu1 %v7736_v10 }
 0x1d0   :  { %5720 = vmatpush1.bf16.msra.mxu0 %v7739_v11  ;;  %5229 = vmatprep.subr.bf16.mxu1 %v7744_v12 }
 0x1d1   :  { %5721 = vmatprep.subr.bf16.mxu0 %v7747_v13 }
 0x1d3   :  { %5230 = vmatpush1.bf16.msra.mxu1 %v7742_v14 }
 0x1d4   :  { %5722 = vmatpush1.bf16.msra.mxu0 %v7745_v15  ;;  %5231 = vmatprep.subr.bf16.mxu1 %v7750_v16 }
 0x1d5   :  { %5723 = vmatprep.subr.bf16.mxu0 %v7753_v17 }
 0x1d7   :  { %5232 = vmatpush1.bf16.msra.mxu1 %v7748_v18 }
 0x1d8   :  { %5724 = vmatpush1.bf16.msra.mxu0 %v7751_v19  ;;  %5233 = vmatprep.subr.bf16.mxu1 %v7756_v20 }
 0x1d9   :  { %5725 = vmatprep.subr.bf16.mxu0 %v7759_v21 }
 0x1db   :  { %5234 = vmatpush1.bf16.msra.mxu1 %v7754_v22 }
 0x1dc   :  { %5726 = vmatpush1.bf16.msra.mxu0 %v7757_v23  ;;  %5235 = vmatprep.subr.bf16.mxu1 %v7762_v24 }
 0x1dd   :  { %5727 = vmatprep.subr.bf16.mxu0 %v7765_v25 }
 0x1df   :  { %5236 = vmatpush1.bf16.msra.mxu1 %v7760_v26 }
 0x1e0   :  { %5728 = vmatpush1.bf16.msra.mxu0 %v7763_v27  ;;  %5237 = vmatprep.subr.bf16.mxu1 %v7768_v28 }
 0x1e1   :  { %5729 = vmatprep.subr.bf16.mxu0 %v7771_v29 }
 0x1e3   :  { %5238 = vmatpush1.bf16.msra.mxu1 %v7766_v30 }
 0x1e4   :  { %5730 = vmatpush1.bf16.msra.mxu0 %v7769_v31  ;;  %5239 = vmatprep.subr.bf16.mxu1 %v7774_v32 }
 0x1e5   :  { %5731 = vmatprep.subr.bf16.mxu0 %v7777_v33 }
 0x1e7   :  { %5240 = vmatpush1.bf16.msra.mxu1 %v7772_v34 }
 0x1e8   :  { %5732 = vmatpush1.bf16.msra.mxu0 %v7775_v35  ;;  %5241 = vmatprep.subr.bf16.mxu1 %v7780_v36 }
 0x1e9   :  { %5733 = vmatprep.subr.bf16.mxu0 %v7783_v37 }
 0x1eb   :  { %5242 = vmatpush1.bf16.msra.mxu1 %v7778_v38 }
 0x1ec   :  { %5734 = vmatpush1.bf16.msra.mxu0 %v7781_v39  ;;  %5243 = vmatprep.subr.bf16.mxu1 %v7786_v40 }
 0x1ed   :  { %5735 = vmatprep.subr.bf16.mxu0 %v7789_v41 }
 0x1ee   :  { %10 = vsyncpa [#allocation3], 0  ;;  %v7790_v46 = vld [vmem:[%s10923_s1 + $0x7c0] ss:$8 sps:$4 sm:$0xff]   ;;  %v7798_v48 = vld [vmem:[%s10923_s1 + $0x7d4] ss:$8 sps:$4 sm:$0xff]  }
 0x1ef   :  { %5244 = vmatpush1.bf16.msra.mxu1 %v7784_v42  ;;  %v7793_v47 = vld [vmem:[%s10923_s1 + $0x13c0] ss:$8 sps:$4 sm:$0xff]   ;;  %v7801_v49 = vld [vmem:[%s10923_s1 + $0x13d4] ss:$8 sps:$4 sm:$0xff]   ;;  %v7796_v50 = vld [vmem:[%s10923_s1 + $0x7d0] ss:$8 sps:$4 sm:$0xff]  }
 0x1f0   :  { %5736 = vmatpush1.bf16.msra.mxu0 %v7787_v43  ;;  %5245 = vmatprep.subr.bf16.mxu1 %v7792_v44  ;;  %v7799_v51 = vld [vmem:[%s10923_s1 + $0x13d0] ss:$8 sps:$4 sm:$0xff]   ;;  %v7804_v52 = vld [vmem:[%s10923_s1 + $0x7e4] ss:$8 sps:$4 sm:$0xff]   ;;  %v7802_v54 = vld [vmem:[%s10923_s1 + $0x7e0] ss:$8 sps:$4 sm:$0xff]  }
 0x1f1   :  { %5737 = vmatprep.subr.bf16.mxu0 %v7795_v45  ;;  %v7807_v53 = vld [vmem:[%s10923_s1 + $0x13e4] ss:$8 sps:$4 sm:$0xff]   ;;  %v7805_v55 = vld [vmem:[%s10923_s1 + $0x13e0] ss:$8 sps:$4 sm:$0xff]   ;;  %v7810_v56 = vld [vmem:[%s10923_s1 + $0x7f4] ss:$8 sps:$4 sm:$0xff]  }
 0x1f2   :  { %v7813_v57 = vld [vmem:[%s10923_s1 + $0x13f4] ss:$8 sps:$4 sm:$0xff]   ;;  %v7808_v58 = vld [vmem:[%s10923_s1 + $0x7f0] ss:$8 sps:$4 sm:$0xff]   ;;  %v7816_v62 = vld [vmem:[%s10923_s1 + $0x804] ss:$8 sps:$4 sm:$0xff]  }
 0x1f3   :  { %5246 = vmatpush1.bf16.msra.mxu1 %v7790_v46  ;;  %v7811_v59 = vld [vmem:[%s10923_s1 + $0x13f0] ss:$8 sps:$4 sm:$0xff]   ;;  %v7819_v63 = vld [vmem:[%s10923_s1 + $0x1404] ss:$8 sps:$4 sm:$0xff]   ;;  %v7814_v4 = vld [vmem:[%s10923_s1 + $0x800] ss:$8 sps:$4 sm:$0xff]  }
 0x1f4   :  { %5738 = vmatpush1.bf16.msra.mxu0 %v7793_v47  ;;  %5247 = vmatprep.subr.bf16.mxu1 %v7798_v48  ;;  %v36_v60 = vld [vmem:[%s10922_s0 + $0x70] sm:$0xff]  ;;  %v39_v2 = vld [vmem:[%s10922_s0 + $0x88] sm:$0xff]  ;;  %vm6074_vm0 = vcmask 1043456   ;;  %vm6070_vm1 = vcmask 588800   ;;  %s8284_s19 = smov [#allocation2]  }
 0x1f5   :  { %5739 = vmatprep.subr.bf16.mxu0 %v7801_v49  ;;  %v60_v61 = vld [vmem:[%s10922_s0 + $0x130] sm:$0xff]  ;;  %v86_v0 = vpack.c.bf16 %v36_v60, %v36_v60  ;;  %v63_v3 = vld [vmem:[%s10922_s0 + $0x148] sm:$0xff]  ;;  %v89_v8 = vpack.c.bf16 %v39_v2, %v39_v2  ;;  %s6125_s20 = sshll.u32 %s8284_s19, 4  ;;  %s6126_s20 = int_to_ptr.vmem [resolvable:$true] %s6125_s20 }
 0x1f6   :  { %v110_v1 = vpack.c.bf16 %v60_v61, %v60_v61  ;;  %v7817_v5 = vld [vmem:[%s10923_s1 + $0x1400] ss:$8 sps:$4 sm:$0xff]   ;;  %v7822_v6 = vld [vmem:[%s10923_s1 + $0x814] ss:$8 sps:$4 sm:$0xff]   ;;  %v113_v9 = vpack.c.bf16 %v63_v3, %v63_v3  ;;  %v7820_v10 = vld [vmem:[%s10923_s1 + $0x810] ss:$8 sps:$4 sm:$0xff]   ;;  %p8264_p1 = scmp.lt.s32.totalorder %s6126_s20, %s6126_s20 }
 0x1f7   :  { %5248 = vmatpush1.bf16.msra.mxu1 %v7796_v50  ;;  %v7825_v7 = vld [vmem:[%s10923_s1 + $0x1414] ss:$8 sps:$4 sm:$0xff]   ;;  %v7823_v11 = vld [vmem:[%s10923_s1 + $0x1410] ss:$8 sps:$4 sm:$0xff]   ;;  %v7828_v12 = vld [vmem:[%s10923_s1 + $0x824] ss:$8 sps:$4 sm:$0xff]  }
 0x1f8   :  { %5740 = vmatpush1.bf16.msra.mxu0 %v7799_v51  ;;  %5249 = vmatprep.subr.bf16.mxu1 %v7804_v52  ;;  %v7831_v13 = vld [vmem:[%s10923_s1 + $0x1424] ss:$8 sps:$4 sm:$0xff]   ;;  %v7826_v14 = vld [vmem:[%s10923_s1 + $0x820] ss:$8 sps:$4 sm:$0xff]   ;;  %v7834_v16 = vld [vmem:[%s10923_s1 + $0x834] ss:$8 sps:$4 sm:$0xff]  }
 0x1f9   :  { %5741 = vmatprep.subr.bf16.mxu0 %v7807_v53  ;;  %v7829_v15 = vld [vmem:[%s10923_s1 + $0x1420] ss:$8 sps:$4 sm:$0xff]   ;;  %v7837_v17 = vld [vmem:[%s10923_s1 + $0x1434] ss:$8 sps:$4 sm:$0xff]   ;;  %v7832_v18 = vld [vmem:[%s10923_s1 + $0x830] ss:$8 sps:$4 sm:$0xff]  }
 0x1fa   :  { %v7835_v19 = vld [vmem:[%s10923_s1 + $0x1430] ss:$8 sps:$4 sm:$0xff]   ;;  %v7840_v20 = vld [vmem:[%s10923_s1 + $0x844] ss:$8 sps:$4 sm:$0xff]   ;;  %v7838_v22 = vld [vmem:[%s10923_s1 + $0x840] ss:$8 sps:$4 sm:$0xff]  }
 0x1fb   :  { %5250 = vmatpush1.bf16.msra.mxu1 %v7802_v54  ;;  %v7843_v21 = vld [vmem:[%s10923_s1 + $0x1444] ss:$8 sps:$4 sm:$0xff]   ;;  %v7841_v23 = vld [vmem:[%s10923_s1 + $0x1440] ss:$8 sps:$4 sm:$0xff]   ;;  %v7846_v24 = vld [vmem:[%s10923_s1 + $0x854] ss:$8 sps:$4 sm:$0xff]  }
 0x1fc   :  { %5742 = vmatpush1.bf16.msra.mxu0 %v7805_v55  ;;  %5251 = vmatprep.subr.bf16.mxu1 %v7810_v56  ;;  %v7849_v25 = vld [vmem:[%s10923_s1 + $0x1454] ss:$8 sps:$4 sm:$0xff]   ;;  %v7844_v26 = vld [vmem:[%s10923_s1 + $0x850] ss:$8 sps:$4 sm:$0xff]   ;;  %v7852_v28 = vld [vmem:[%s10923_s1 + $0x864] ss:$8 sps:$4 sm:$0xff]  }
 0x1fd   :  { %5743 = vmatprep.subr.bf16.mxu0 %v7813_v57  ;;  %v7847_v27 = vld [vmem:[%s10923_s1 + $0x1450] ss:$8 sps:$4 sm:$0xff]   ;;  %v7855_v29 = vld [vmem:[%s10923_s1 + $0x1464] ss:$8 sps:$4 sm:$0xff]   ;;  %v7850_v30 = vld [vmem:[%s10923_s1 + $0x860] ss:$8 sps:$4 sm:$0xff]  }
 0x1fe   :  { %v7853_v31 = vld [vmem:[%s10923_s1 + $0x1460] ss:$8 sps:$4 sm:$0xff]   ;;  %v7858_v32 = vld [vmem:[%s10923_s1 + $0x874] ss:$8 sps:$4 sm:$0xff]   ;;  %v7856_v34 = vld [vmem:[%s10923_s1 + $0x870] ss:$8 sps:$4 sm:$0xff]  }
 0x1ff   :  { %5252 = vmatpush1.bf16.msra.mxu1 %v7808_v58  ;;  %v7861_v33 = vld [vmem:[%s10923_s1 + $0x1474] ss:$8 sps:$4 sm:$0xff]   ;;  %v7859_v35 = vld [vmem:[%s10923_s1 + $0x1470] ss:$8 sps:$4 sm:$0xff]   ;;  %v7864_v36 = vld [vmem:[%s10923_s1 + $0x884] ss:$8 sps:$4 sm:$0xff]  }
 0x200   :  { %5744 = vmatpush1.bf16.msra.mxu0 %v7811_v59  ;;  %5262 = vmatprep.subr.bf16.mxu1 %v7816_v62  ;;  %v7867_v37 = vld [vmem:[%s10923_s1 + $0x1484] ss:$8 sps:$4 sm:$0xff]   ;;  %v7862_v38 = vld [vmem:[%s10923_s1 + $0x880] ss:$8 sps:$4 sm:$0xff]   ;;  %v7870_v40 = vld [vmem:[%s10923_s1 + $0x894] ss:$8 sps:$4 sm:$0xff]  }
 0x201   :  { %5754 = vmatprep.subr.bf16.mxu0 %v7819_v63  ;;  %v7865_v39 = vld [vmem:[%s10923_s1 + $0x1480] ss:$8 sps:$4 sm:$0xff]   ;;  %v7873_v41 = vld [vmem:[%s10923_s1 + $0x1494] ss:$8 sps:$4 sm:$0xff]   ;;  %v7868_v42 = vld [vmem:[%s10923_s1 + $0x890] ss:$8 sps:$4 sm:$0xff]  }
 0x202   :  { %5254 = vmatmul.mubr.bf16.vlgmr.msra.gmra.mrb[0].mxu1 %v86_v0  ;;  %v7871_v43 = vld [vmem:[%s10923_s1 + $0x1490] ss:$8 sps:$4 sm:$0xff]   ;;  %v7876_v44 = vld [vmem:[%s10923_s1 + $0x8a4] ss:$8 sps:$4 sm:$0xff]   ;;  %v7874_v46 = vld [vmem:[%s10923_s1 + $0x8a0] ss:$8 sps:$4 sm:$0xff]  }
 0x203   :  { %5746 = vmatmul.mubr.bf16.vlgmr.msra.gmra.mrb[0].mxu0 %v110_v1  ;;  %5263 = vmatpush1.bf16.msra.mxu1 %v7814_v4  ;;  %v7879_v45 = vld [vmem:[%s10923_s1 + $0x14a4] ss:$8 sps:$4 sm:$0xff]   ;;  %v7877_v47 = vld [vmem:[%s10923_s1 + $0x14a0] ss:$8 sps:$4 sm:$0xff]   ;;  %v7882_v48 = vld [vmem:[%s10923_s1 + $0x8b4] ss:$8 sps:$4 sm:$0xff]  }
 0x204   :  { %5755 = vmatpush1.bf16.msra.mxu0 %v7817_v5  ;;  %5264 = vmatprep.subr.bf16.mxu1 %v7822_v6  ;;  %v7885_v49 = vld [vmem:[%s10923_s1 + $0x14b4] ss:$8 sps:$4 sm:$0xff]   ;;  %v7880_v50 = vld [vmem:[%s10923_s1 + $0x8b0] ss:$8 sps:$4 sm:$0xff]   ;;  %v7888_v52 = vld [vmem:[%s10923_s1 + $0x8c4] ss:$8 sps:$4 sm:$0xff]  }
 0x205   :  { %5756 = vmatprep.subr.bf16.mxu0 %v7825_v7  ;;  %5294 = vmatprep.mubr.bf16.mxu1 %v89_v8  ;;  %v7883_v51 = vld [vmem:[%s10923_s1 + $0x14b0] ss:$8 sps:$4 sm:$0xff]   ;;  %v7891_v53 = vld [vmem:[%s10923_s1 + $0x14c4] ss:$8 sps:$4 sm:$0xff]   ;;  %v7886_v54 = vld [vmem:[%s10923_s1 + $0x8c0] ss:$8 sps:$4 sm:$0xff]  }
 0x206   :  { %5786 = vmatprep.mubr.bf16.mxu0 %v113_v9  ;;  %v7889_v55 = vld [vmem:[%s10923_s1 + $0x14c0] ss:$8 sps:$4 sm:$0xff]   ;;  %v7894_v56 = vld [vmem:[%s10923_s1 + $0x8d4] ss:$8 sps:$4 sm:$0xff]   ;;  %v7892_v58 = vld [vmem:[%s10923_s1 + $0x8d0] ss:$8 sps:$4 sm:$0xff]  }
 0x207   :  { %5265 = vmatpush1.bf16.msra.mxu1 %v7820_v10  ;;  %v7897_v57 = vld [vmem:[%s10923_s1 + $0x14d4] ss:$8 sps:$4 sm:$0xff]   ;;  %v7895_v59 = vld [vmem:[%s10923_s1 + $0x14d0] ss:$8 sps:$4 sm:$0xff]   ;;  %v7900_v60 = vld [vmem:[%s10923_s1 + $0x8e4] ss:$8 sps:$4 sm:$0xff]  }
 0x208   :  { %5757 = vmatpush1.bf16.msra.mxu0 %v7823_v11  ;;  %5266 = vmatprep.subr.bf16.mxu1 %v7828_v12  ;;  %v7903_v61 = vld [vmem:[%s10923_s1 + $0x14e4] ss:$8 sps:$4 sm:$0xff]   ;;  %v7898_v62 = vld [vmem:[%s10923_s1 + $0x8e0] ss:$8 sps:$4 sm:$0xff]   ;;  %v7906_v0 = vld [vmem:[%s10923_s1 + $0x8f4] ss:$8 sps:$4 sm:$0xff]  }
 0x209   :  { %5758 = vmatprep.subr.bf16.mxu0 %v7831_v13  ;;  %v7901_v63 = vld [vmem:[%s10923_s1 + $0x14e0] ss:$8 sps:$4 sm:$0xff]   ;;  %v7909_v1 = vld [vmem:[%s10923_s1 + $0x14f4] ss:$8 sps:$4 sm:$0xff]   ;;  %v7904_v2 = vld [vmem:[%s10923_s1 + $0x8f0] ss:$8 sps:$4 sm:$0xff]  }
 0x20a   :  { %v7907_v3 = vld [vmem:[%s10923_s1 + $0x14f0] ss:$8 sps:$4 sm:$0xff]   ;;  %v38_v4 = vld [vmem:[%s10922_s0 + $0x80] sm:$0xff]  ;;  %s8259_s21 = scalar_lea.vmem %s6126_s20, 128 }
 0x20b   :  { %5267 = vmatpush1.bf16.msra.mxu1 %v7826_v14  ;;  %v62_v5 = vld [vmem:[%s10922_s0 + $0x140] sm:$0xff]  ;;  %v88_v8 = vpack.c.bf16 %v38_v4, %v38_v4  ;;  %v41_v10 = vld [vmem:[%s10922_s0 + $0x98] sm:$0xff]  ;;  %p8260_p0 = scmp.ne.s32.totalorder %s6126_s20, %s8259_s21  ;;  %p8265_p2 = scmp.lt.s32.totalorder %s8259_s21, %s8259_s21 }
 0x20c   :  { %5759 = vmatpush1.bf16.msra.mxu0 %v7829_v15  ;;  %5268 = vmatprep.subr.bf16.mxu1 %v7834_v16  ;;  %v7912_v6 = vld [vmem:[%s10923_s1 + $0x904] ss:$8 sps:$4 sm:$0xff]   ;;  %v112_v9 = vpack.c.bf16 %v62_v5, %v62_v5  ;;  %v65_v11 = vld [vmem:[%s10922_s0 + $0x158] sm:$0xff]  ;;  %v7910_v12 = vld [vmem:[%s10923_s1 + $0x900] ss:$8 sps:$4 sm:$0xff]   ;;  %v91_v16 = vpack.c.bf16 %v41_v10, %v41_v10 }
 0x20d   :  { %5760 = vmatprep.subr.bf16.mxu0 %v7837_v17  ;;  %v7915_v7 = vld [vmem:[%s10923_s1 + $0x1504] ss:$8 sps:$4 sm:$0xff]   ;;  %v7913_v13 = vld [vmem:[%s10923_s1 + $0x1500] ss:$8 sps:$4 sm:$0xff]   ;;  %v7918_v14 = vld [vmem:[%s10923_s1 + $0x914] ss:$8 sps:$4 sm:$0xff]   ;;  %v115_v17 = vpack.c.bf16 %v65_v11, %v65_v11  ;;  %p8266_p3 = por %p8265_p2, %p8264_p1 }
 0x20e   :  { %v7921_v15 = vld [vmem:[%s10923_s1 + $0x1514] ss:$8 sps:$4 sm:$0xff]   ;;  %v7996_v4 = vld [vmem:[%s10923_s1 + $0x9e4] ss:$8 sps:$4 sm:$0xff]   ;;  %v8000_v10 = vld [vmem:[%s10923_s1 + $0x9f0] ss:$8 sps:$4 sm:$0xff]  }
 0x20f   :  { %5269 = vmatpush1.bf16.msra.mxu1 %v7832_v18  ;;  %v7916_v18 = vld [vmem:[%s10923_s1 + $0x910] ss:$8 sps:$4 sm:$0xff]   ;;  %v7999_v5 = vld [vmem:[%s10923_s1 + $0x15e4] ss:$8 sps:$4 sm:$0xff]   ;;  %p8267_p4 = pnand %p8266_p3, %p8260_p0 }
 0x210   :  { %5761 = vmatpush1.bf16.msra.mxu0 %v7835_v19  ;;  %5270 = vmatprep.subr.bf16.mxu1 %v7840_v20  ;;  %v7919_v19 = vld [vmem:[%s10923_s1 + $0x1510] ss:$8 sps:$4 sm:$0xff]   ;;  %v7924_v20 = vld [vmem:[%s10923_s1 + $0x924] ss:$8 sps:$4 sm:$0xff]  }
 0x211   :  { %5762 = vmatprep.subr.bf16.mxu0 %v7843_v21  ;;  %v7927_v21 = vld [vmem:[%s10923_s1 + $0x1524] ss:$8 sps:$4 sm:$0xff]   ;;  %v8003_v11 = vld [vmem:[%s10923_s1 + $0x15f0] ss:$8 sps:$4 sm:$0xff]  }
 0x213   :  { %5271 = vmatpush1.bf16.msra.mxu1 %v7838_v22  ;;  %v7922_v22 = vld [vmem:[%s10923_s1 + $0x920] ss:$8 sps:$4 sm:$0xff]  }
 0x214   :  { %5763 = vmatpush1.bf16.msra.mxu0 %v7841_v23  ;;  %5272 = vmatprep.subr.bf16.mxu1 %v7846_v24  ;;  %v7925_v23 = vld [vmem:[%s10923_s1 + $0x1520] ss:$8 sps:$4 sm:$0xff]   ;;  %v7930_v24 = vld [vmem:[%s10923_s1 + $0x934] ss:$8 sps:$4 sm:$0xff]  }
 0x215   :  { %5764 = vmatprep.subr.bf16.mxu0 %v7849_v25  ;;  %v7933_v25 = vld [vmem:[%s10923_s1 + $0x1534] ss:$8 sps:$4 sm:$0xff]  }
 0x217   :  { %5273 = vmatpush1.bf16.msra.mxu1 %v7844_v26  ;;  %v7928_v26 = vld [vmem:[%s10923_s1 + $0x930] ss:$8 sps:$4 sm:$0xff]  }
 0x218   :  { %5765 = vmatpush1.bf16.msra.mxu0 %v7847_v27  ;;  %5274 = vmatprep.subr.bf16.mxu1 %v7852_v28  ;;  %v7931_v27 = vld [vmem:[%s10923_s1 + $0x1530] ss:$8 sps:$4 sm:$0xff]   ;;  %v7936_v28 = vld [vmem:[%s10923_s1 + $0x944] ss:$8 sps:$4 sm:$0xff]  }
 0x219   :  { %5766 = vmatprep.subr.bf16.mxu0 %v7855_v29  ;;  %v7939_v29 = vld [vmem:[%s10923_s1 + $0x1544] ss:$8 sps:$4 sm:$0xff]  }
 0x21b   :  { %5275 = vmatpush1.bf16.msra.mxu1 %v7850_v30  ;;  %v7934_v30 = vld [vmem:[%s10923_s1 + $0x940] ss:$8 sps:$4 sm:$0xff]  }
 0x21c   :  { %5767 = vmatpush1.bf16.msra.mxu0 %v7853_v31  ;;  %5276 = vmatprep.subr.bf16.mxu1 %v7858_v32  ;;  %v7937_v31 = vld [vmem:[%s10923_s1 + $0x1540] ss:$8 sps:$4 sm:$0xff]   ;;  %v7942_v32 = vld [vmem:[%s10923_s1 + $0x954] ss:$8 sps:$4 sm:$0xff]  }
 0x21d   :  { %5768 = vmatprep.subr.bf16.mxu0 %v7861_v33  ;;  %v7945_v33 = vld [vmem:[%s10923_s1 + $0x1554] ss:$8 sps:$4 sm:$0xff]  }
 0x21f   :  { %5277 = vmatpush1.bf16.msra.mxu1 %v7856_v34  ;;  %v7940_v34 = vld [vmem:[%s10923_s1 + $0x950] ss:$8 sps:$4 sm:$0xff]  }
 0x220   :  { %5769 = vmatpush1.bf16.msra.mxu0 %v7859_v35  ;;  %5278 = vmatprep.subr.bf16.mxu1 %v7864_v36  ;;  %v7943_v35 = vld [vmem:[%s10923_s1 + $0x1550] ss:$8 sps:$4 sm:$0xff]   ;;  %v7948_v36 = vld [vmem:[%s10923_s1 + $0x964] ss:$8 sps:$4 sm:$0xff]  }
 0x221   :  { %5770 = vmatprep.subr.bf16.mxu0 %v7867_v37  ;;  %v7951_v37 = vld [vmem:[%s10923_s1 + $0x1564] ss:$8 sps:$4 sm:$0xff]  }
 0x223   :  { %5279 = vmatpush1.bf16.msra.mxu1 %v7862_v38  ;;  %v7946_v38 = vld [vmem:[%s10923_s1 + $0x960] ss:$8 sps:$4 sm:$0xff]  }
 0x224   :  { %5771 = vmatpush1.bf16.msra.mxu0 %v7865_v39  ;;  %5280 = vmatprep.subr.bf16.mxu1 %v7870_v40  ;;  %v7949_v39 = vld [vmem:[%s10923_s1 + $0x1560] ss:$8 sps:$4 sm:$0xff]   ;;  %v7954_v40 = vld [vmem:[%s10923_s1 + $0x974] ss:$8 sps:$4 sm:$0xff]  }
 0x225   :  { %5772 = vmatprep.subr.bf16.mxu0 %v7873_v41  ;;  %v7957_v41 = vld [vmem:[%s10923_s1 + $0x1574] ss:$8 sps:$4 sm:$0xff]  }
 0x227   :  { %5281 = vmatpush1.bf16.msra.mxu1 %v7868_v42  ;;  %v7952_v42 = vld [vmem:[%s10923_s1 + $0x970] ss:$8 sps:$4 sm:$0xff]  }
 0x228   :  { %5773 = vmatpush1.bf16.msra.mxu0 %v7871_v43  ;;  %5282 = vmatprep.subr.bf16.mxu1 %v7876_v44  ;;  %v7955_v43 = vld [vmem:[%s10923_s1 + $0x1570] ss:$8 sps:$4 sm:$0xff]   ;;  %v7960_v44 = vld [vmem:[%s10923_s1 + $0x984] ss:$8 sps:$4 sm:$0xff]  }
 0x229   :  { %5774 = vmatprep.subr.bf16.mxu0 %v7879_v45  ;;  %v7963_v45 = vld [vmem:[%s10923_s1 + $0x1584] ss:$8 sps:$4 sm:$0xff]  }
 0x22b   :  { %5283 = vmatpush1.bf16.msra.mxu1 %v7874_v46  ;;  %v7958_v46 = vld [vmem:[%s10923_s1 + $0x980] ss:$8 sps:$4 sm:$0xff]  }
 0x22c   :  { %5775 = vmatpush1.bf16.msra.mxu0 %v7877_v47  ;;  %5284 = vmatprep.subr.bf16.mxu1 %v7882_v48  ;;  %v7961_v47 = vld [vmem:[%s10923_s1 + $0x1580] ss:$8 sps:$4 sm:$0xff]   ;;  %v7966_v48 = vld [vmem:[%s10923_s1 + $0x994] ss:$8 sps:$4 sm:$0xff]  }
 0x22d   :  { %5776 = vmatprep.subr.bf16.mxu0 %v7885_v49  ;;  %v7969_v49 = vld [vmem:[%s10923_s1 + $0x1594] ss:$8 sps:$4 sm:$0xff]  }
 0x22f   :  { %5285 = vmatpush1.bf16.msra.mxu1 %v7880_v50  ;;  %v7964_v50 = vld [vmem:[%s10923_s1 + $0x990] ss:$8 sps:$4 sm:$0xff]  }
 0x230   :  { %5777 = vmatpush1.bf16.msra.mxu0 %v7883_v51  ;;  %5286 = vmatprep.subr.bf16.mxu1 %v7888_v52  ;;  %v7967_v51 = vld [vmem:[%s10923_s1 + $0x1590] ss:$8 sps:$4 sm:$0xff]   ;;  %v7972_v52 = vld [vmem:[%s10923_s1 + $0x9a4] ss:$8 sps:$4 sm:$0xff]  }
 0x231   :  { %5778 = vmatprep.subr.bf16.mxu0 %v7891_v53  ;;  %v7975_v53 = vld [vmem:[%s10923_s1 + $0x15a4] ss:$8 sps:$4 sm:$0xff]  }
 0x233   :  { %5287 = vmatpush1.bf16.msra.mxu1 %v7886_v54  ;;  %v7970_v54 = vld [vmem:[%s10923_s1 + $0x9a0] ss:$8 sps:$4 sm:$0xff]  }
 0x234   :  { %5779 = vmatpush1.bf16.msra.mxu0 %v7889_v55  ;;  %5288 = vmatprep.subr.bf16.mxu1 %v7894_v56  ;;  %v7973_v55 = vld [vmem:[%s10923_s1 + $0x15a0] ss:$8 sps:$4 sm:$0xff]   ;;  %v7978_v56 = vld [vmem:[%s10923_s1 + $0x9b4] ss:$8 sps:$4 sm:$0xff]  }
 0x235   :  { %5780 = vmatprep.subr.bf16.mxu0 %v7897_v57  ;;  %v7981_v57 = vld [vmem:[%s10923_s1 + $0x15b4] ss:$8 sps:$4 sm:$0xff]  }
 0x237   :  { %5289 = vmatpush1.bf16.msra.mxu1 %v7892_v58  ;;  %v7976_v58 = vld [vmem:[%s10923_s1 + $0x9b0] ss:$8 sps:$4 sm:$0xff]  }
 0x238   :  { %5781 = vmatpush1.bf16.msra.mxu0 %v7895_v59  ;;  %5290 = vmatprep.subr.bf16.mxu1 %v7900_v60  ;;  %v7979_v59 = vld [vmem:[%s10923_s1 + $0x15b0] ss:$8 sps:$4 sm:$0xff]   ;;  %v7984_v60 = vld [vmem:[%s10923_s1 + $0x9c4] ss:$8 sps:$4 sm:$0xff]  }
 0x239   :  { %5782 = vmatprep.subr.bf16.mxu0 %v7903_v61  ;;  %v7987_v61 = vld [vmem:[%s10923_s1 + $0x15c4] ss:$8 sps:$4 sm:$0xff]  }
 0x23b   :  { %5291 = vmatpush1.bf16.msra.mxu1 %v7898_v62  ;;  %v7982_v62 = vld [vmem:[%s10923_s1 + $0x9c0] ss:$8 sps:$4 sm:$0xff]  }
 0x23c   :  { %5783 = vmatpush1.bf16.msra.mxu0 %v7901_v63  ;;  %5292 = vmatprep.subr.bf16.mxu1 %v7906_v0  ;;  %v7985_v63 = vld [vmem:[%s10923_s1 + $0x15c0] ss:$8 sps:$4 sm:$0xff]   ;;  %v7990_v0 = vld [vmem:[%s10923_s1 + $0x9d4] ss:$8 sps:$4 sm:$0xff]  }
 0x23d   :  { %5784 = vmatprep.subr.bf16.mxu0 %v7909_v1  ;;  %v7993_v1 = vld [vmem:[%s10923_s1 + $0x15d4] ss:$8 sps:$4 sm:$0xff]  }
 0x23f   :  { %5293 = vmatpush1.bf16.msra.mxu1 %v7904_v2  ;;  %v7988_v2 = vld [vmem:[%s10923_s1 + $0x9d0] ss:$8 sps:$4 sm:$0xff]  }
 0x240   :  { %5785 = vmatpush1.bf16.msra.mxu0 %v7907_v3  ;;  %5303 = vmatprep.subr.bf16.mxu1 %v7912_v6  ;;  %v7991_v3 = vld [vmem:[%s10923_s1 + $0x15d0] ss:$8 sps:$4 sm:$0xff]   ;;  %v7994_v6 = vld [vmem:[%s10923_s1 + $0x9e0] ss:$8 sps:$4 sm:$0xff]  }
 0x241   :  { %5795 = vmatprep.subr.bf16.mxu0 %v7915_v7  ;;  %v7997_v7 = vld [vmem:[%s10923_s1 + $0x15e0] ss:$8 sps:$4 sm:$0xff]  }
 0x242   :  { %5295 = vmatmul.mubr.bf16.vlgmr.msra.gmra.mrb[0].mxu1 %v88_v8  ;;  %v8002_v8 = vld [vmem:[%s10923_s1 + $0x9f4] ss:$8 sps:$4 sm:$0xff]  }
 0x243   :  { %5787 = vmatmul.mubr.bf16.vlgmr.msra.gmra.mrb[0].mxu0 %v112_v9  ;;  %5304 = vmatpush1.bf16.msra.mxu1 %v7910_v12  ;;  %v8005_v9 = vld [vmem:[%s10923_s1 + $0x15f4] ss:$8 sps:$4 sm:$0xff]  }
 0x244   :  { %5796 = vmatpush1.bf16.msra.mxu0 %v7913_v13  ;;  %5305 = vmatprep.subr.bf16.mxu1 %v7918_v14  ;;  %v40_v12 = vld [vmem:[%s10922_s0 + $0x90] sm:$0xff]  ;;  %v8008_v14 = vld [vmem:[%s10923_s1 + $0xa04] ss:$8 sps:$4 sm:$0xff]  }
 0x245   :  { %5797 = vmatprep.subr.bf16.mxu0 %v7921_v15  ;;  %5335 = vmatprep.mubr.bf16.mxu1 %v91_v16  ;;  %v64_v13 = vld [vmem:[%s10922_s0 + $0x150] sm:$0xff]  ;;  %v8011_v15 = vld [vmem:[%s10923_s1 + $0x1604] ss:$8 sps:$4 sm:$0xff]   ;;  %v90_v16 = vpack.c.bf16 %v40_v12, %v40_v12 }
 0x246   :  { %5827 = vmatprep.mubr.bf16.mxu0 %v115_v17  ;;  %v114_v17 = vpack.c.bf16 %v64_v13, %v64_v13  ;;  %v8092_v12 = vld [vmem:[%s10923_s1 + $0xae4] ss:$8 sps:$4 sm:$0xff]  }
 0x247   :  { %5306 = vmatpush1.bf16.msra.mxu1 %v7916_v18  ;;  %v43_v18 = vld [vmem:[%s10922_s0 + $0xa8] sm:$0xff] }
 0x248   :  { %5798 = vmatpush1.bf16.msra.mxu0 %v7919_v19  ;;  %5307 = vmatprep.subr.bf16.mxu1 %v7924_v20  ;;  %v67_v19 = vld [vmem:[%s10922_s0 + $0x168] sm:$0xff] }
 0x249   :  { %5799 = vmatprep.subr.bf16.mxu0 %v7927_v21  ;;  %v8006_v20 = vld [vmem:[%s10923_s1 + $0xa00] ss:$8 sps:$4 sm:$0xff]   ;;  %v8095_v13 = vld [vmem:[%s10923_s1 + $0x16e4] ss:$8 sps:$4 sm:$0xff]  }
 0x24a   :  { %v8009_v21 = vld [vmem:[%s10923_s1 + $0x1600] ss:$8 sps:$4 sm:$0xff]  }
 0x24b   :  { %5308 = vmatpush1.bf16.msra.mxu1 %v7922_v22  ;;  %v8014_v22 = vld [vmem:[%s10923_s1 + $0xa14] ss:$8 sps:$4 sm:$0xff]  }
 0x24c   :  { %5800 = vmatpush1.bf16.msra.mxu0 %v7925_v23  ;;  %5309 = vmatprep.subr.bf16.mxu1 %v7930_v24  ;;  %v8017_v23 = vld [vmem:[%s10923_s1 + $0x1614] ss:$8 sps:$4 sm:$0xff]   ;;  %v93_v24 = vpack.c.bf16 %v43_v18, %v43_v18  ;;  %v8096_v18 = vld [vmem:[%s10923_s1 + $0xaf0] ss:$8 sps:$4 sm:$0xff]  }
 0x24d   :  { %5801 = vmatprep.subr.bf16.mxu0 %v7933_v25  ;;  %v117_v25 = vpack.c.bf16 %v67_v19, %v67_v19  ;;  %v8099_v19 = vld [vmem:[%s10923_s1 + $0x16f0] ss:$8 sps:$4 sm:$0xff]  }
 0x24f   :  { %5310 = vmatpush1.bf16.msra.mxu1 %v7928_v26  ;;  %v8012_v26 = vld [vmem:[%s10923_s1 + $0xa10] ss:$8 sps:$4 sm:$0xff]  }
 0x250   :  { %5802 = vmatpush1.bf16.msra.mxu0 %v7931_v27  ;;  %5311 = vmatprep.subr.bf16.mxu1 %v7936_v28  ;;  %v8015_v27 = vld [vmem:[%s10923_s1 + $0x1610] ss:$8 sps:$4 sm:$0xff]   ;;  %v8020_v28 = vld [vmem:[%s10923_s1 + $0xa24] ss:$8 sps:$4 sm:$0xff]  }
 0x251   :  { %5803 = vmatprep.subr.bf16.mxu0 %v7939_v29  ;;  %v8023_v29 = vld [vmem:[%s10923_s1 + $0x1624] ss:$8 sps:$4 sm:$0xff]  }
 0x253   :  { %5312 = vmatpush1.bf16.msra.mxu1 %v7934_v30  ;;  %v8018_v30 = vld [vmem:[%s10923_s1 + $0xa20] ss:$8 sps:$4 sm:$0xff]  }
 0x254   :  { %5804 = vmatpush1.bf16.msra.mxu0 %v7937_v31  ;;  %5313 = vmatprep.subr.bf16.mxu1 %v7942_v32  ;;  %v8021_v31 = vld [vmem:[%s10923_s1 + $0x1620] ss:$8 sps:$4 sm:$0xff]   ;;  %v8026_v32 = vld [vmem:[%s10923_s1 + $0xa34] ss:$8 sps:$4 sm:$0xff]  }
 0x255   :  { %5805 = vmatprep.subr.bf16.mxu0 %v7945_v33  ;;  %v8029_v33 = vld [vmem:[%s10923_s1 + $0x1634] ss:$8 sps:$4 sm:$0xff]  }
 0x257   :  { %5314 = vmatpush1.bf16.msra.mxu1 %v7940_v34  ;;  %v8024_v34 = vld [vmem:[%s10923_s1 + $0xa30] ss:$8 sps:$4 sm:$0xff]  }
 0x258   :  { %5806 = vmatpush1.bf16.msra.mxu0 %v7943_v35  ;;  %5315 = vmatprep.subr.bf16.mxu1 %v7948_v36  ;;  %v8027_v35 = vld [vmem:[%s10923_s1 + $0x1630] ss:$8 sps:$4 sm:$0xff]   ;;  %v8032_v36 = vld [vmem:[%s10923_s1 + $0xa44] ss:$8 sps:$4 sm:$0xff]  }
 0x259   :  { %5807 = vmatprep.subr.bf16.mxu0 %v7951_v37  ;;  %v8035_v37 = vld [vmem:[%s10923_s1 + $0x1644] ss:$8 sps:$4 sm:$0xff]  }
 0x25b   :  { %5316 = vmatpush1.bf16.msra.mxu1 %v7946_v38  ;;  %v8030_v38 = vld [vmem:[%s10923_s1 + $0xa40] ss:$8 sps:$4 sm:$0xff]  }
 0x25c   :  { %5808 = vmatpush1.bf16.msra.mxu0 %v7949_v39  ;;  %5317 = vmatprep.subr.bf16.mxu1 %v7954_v40  ;;  %v8033_v39 = vld [vmem:[%s10923_s1 + $0x1640] ss:$8 sps:$4 sm:$0xff]   ;;  %v8038_v40 = vld [vmem:[%s10923_s1 + $0xa54] ss:$8 sps:$4 sm:$0xff]  }
 0x25d   :  { %5809 = vmatprep.subr.bf16.mxu0 %v7957_v41  ;;  %v8041_v41 = vld [vmem:[%s10923_s1 + $0x1654] ss:$8 sps:$4 sm:$0xff]  }
 0x25f   :  { %5318 = vmatpush1.bf16.msra.mxu1 %v7952_v42  ;;  %v8036_v42 = vld [vmem:[%s10923_s1 + $0xa50] ss:$8 sps:$4 sm:$0xff]  }
 0x260   :  { %5810 = vmatpush1.bf16.msra.mxu0 %v7955_v43  ;;  %5319 = vmatprep.subr.bf16.mxu1 %v7960_v44  ;;  %v8039_v43 = vld [vmem:[%s10923_s1 + $0x1650] ss:$8 sps:$4 sm:$0xff]   ;;  %v8044_v44 = vld [vmem:[%s10923_s1 + $0xa64] ss:$8 sps:$4 sm:$0xff]  }
 0x261   :  { %5811 = vmatprep.subr.bf16.mxu0 %v7963_v45  ;;  %v8047_v45 = vld [vmem:[%s10923_s1 + $0x1664] ss:$8 sps:$4 sm:$0xff]  }
 0x263   :  { %5320 = vmatpush1.bf16.msra.mxu1 %v7958_v46  ;;  %v8042_v46 = vld [vmem:[%s10923_s1 + $0xa60] ss:$8 sps:$4 sm:$0xff]  }
 0x264   :  { %5812 = vmatpush1.bf16.msra.mxu0 %v7961_v47  ;;  %5321 = vmatprep.subr.bf16.mxu1 %v7966_v48  ;;  %v8045_v47 = vld [vmem:[%s10923_s1 + $0x1660] ss:$8 sps:$4 sm:$0xff]   ;;  %v8050_v48 = vld [vmem:[%s10923_s1 + $0xa74] ss:$8 sps:$4 sm:$0xff]  }
 0x265   :  { %5813 = vmatprep.subr.bf16.mxu0 %v7969_v49  ;;  %v8053_v49 = vld [vmem:[%s10923_s1 + $0x1674] ss:$8 sps:$4 sm:$0xff]  }
 0x267   :  { %5322 = vmatpush1.bf16.msra.mxu1 %v7964_v50  ;;  %v8048_v50 = vld [vmem:[%s10923_s1 + $0xa70] ss:$8 sps:$4 sm:$0xff]  }
 0x268   :  { %5814 = vmatpush1.bf16.msra.mxu0 %v7967_v51  ;;  %5323 = vmatprep.subr.bf16.mxu1 %v7972_v52  ;;  %v8051_v51 = vld [vmem:[%s10923_s1 + $0x1670] ss:$8 sps:$4 sm:$0xff]   ;;  %v8056_v52 = vld [vmem:[%s10923_s1 + $0xa84] ss:$8 sps:$4 sm:$0xff]  }
 0x269   :  { %5815 = vmatprep.subr.bf16.mxu0 %v7975_v53  ;;  %v8059_v53 = vld [vmem:[%s10923_s1 + $0x1684] ss:$8 sps:$4 sm:$0xff]  }
 0x26b   :  { %5324 = vmatpush1.bf16.msra.mxu1 %v7970_v54  ;;  %v8054_v54 = vld [vmem:[%s10923_s1 + $0xa80] ss:$8 sps:$4 sm:$0xff]  }
 0x26c   :  { %5816 = vmatpush1.bf16.msra.mxu0 %v7973_v55  ;;  %5325 = vmatprep.subr.bf16.mxu1 %v7978_v56  ;;  %v8057_v55 = vld [vmem:[%s10923_s1 + $0x1680] ss:$8 sps:$4 sm:$0xff]   ;;  %v8062_v56 = vld [vmem:[%s10923_s1 + $0xa94] ss:$8 sps:$4 sm:$0xff]  }
 0x26d   :  { %5817 = vmatprep.subr.bf16.mxu0 %v7981_v57  ;;  %v8065_v57 = vld [vmem:[%s10923_s1 + $0x1694] ss:$8 sps:$4 sm:$0xff]  }
 0x26f   :  { %5326 = vmatpush1.bf16.msra.mxu1 %v7976_v58  ;;  %v8060_v58 = vld [vmem:[%s10923_s1 + $0xa90] ss:$8 sps:$4 sm:$0xff]  }
 0x270   :  { %5818 = vmatpush1.bf16.msra.mxu0 %v7979_v59  ;;  %5327 = vmatprep.subr.bf16.mxu1 %v7984_v60  ;;  %v8063_v59 = vld [vmem:[%s10923_s1 + $0x1690] ss:$8 sps:$4 sm:$0xff]   ;;  %v8068_v60 = vld [vmem:[%s10923_s1 + $0xaa4] ss:$8 sps:$4 sm:$0xff]  }
 0x271   :  { %5819 = vmatprep.subr.bf16.mxu0 %v7987_v61  ;;  %v8071_v61 = vld [vmem:[%s10923_s1 + $0x16a4] ss:$8 sps:$4 sm:$0xff]  }
 0x273   :  { %5328 = vmatpush1.bf16.msra.mxu1 %v7982_v62  ;;  %v8066_v62 = vld [vmem:[%s10923_s1 + $0xaa0] ss:$8 sps:$4 sm:$0xff]  }
 0x274   :  { %5820 = vmatpush1.bf16.msra.mxu0 %v7985_v63  ;;  %5329 = vmatprep.subr.bf16.mxu1 %v7990_v0  ;;  %v8069_v63 = vld [vmem:[%s10923_s1 + $0x16a0] ss:$8 sps:$4 sm:$0xff]   ;;  %v8074_v0 = vld [vmem:[%s10923_s1 + $0xab4] ss:$8 sps:$4 sm:$0xff]  }
 0x275   :  { %5821 = vmatprep.subr.bf16.mxu0 %v7993_v1  ;;  %v8077_v1 = vld [vmem:[%s10923_s1 + $0x16b4] ss:$8 sps:$4 sm:$0xff]  }
 0x277   :  { %5330 = vmatpush1.bf16.msra.mxu1 %v7988_v2  ;;  %v8072_v2 = vld [vmem:[%s10923_s1 + $0xab0] ss:$8 sps:$4 sm:$0xff]  }
 0x278   :  { %5822 = vmatpush1.bf16.msra.mxu0 %v7991_v3  ;;  %5331 = vmatprep.subr.bf16.mxu1 %v7996_v4  ;;  %v8075_v3 = vld [vmem:[%s10923_s1 + $0x16b0] ss:$8 sps:$4 sm:$0xff]   ;;  %v8080_v4 = vld [vmem:[%s10923_s1 + $0xac4] ss:$8 sps:$4 sm:$0xff]  }
 0x279   :  { %5823 = vmatprep.subr.bf16.mxu0 %v7999_v5  ;;  %v8083_v5 = vld [vmem:[%s10923_s1 + $0x16c4] ss:$8 sps:$4 sm:$0xff]  }
 0x27b   :  { %5332 = vmatpush1.bf16.msra.mxu1 %v7994_v6  ;;  %v8078_v6 = vld [vmem:[%s10923_s1 + $0xac0] ss:$8 sps:$4 sm:$0xff]  }
 0x27c   :  { %5824 = vmatpush1.bf16.msra.mxu0 %v7997_v7  ;;  %5333 = vmatprep.subr.bf16.mxu1 %v8002_v8  ;;  %v8081_v7 = vld [vmem:[%s10923_s1 + $0x16c0] ss:$8 sps:$4 sm:$0xff]   ;;  %v8086_v8 = vld [vmem:[%s10923_s1 + $0xad4] ss:$8 sps:$4 sm:$0xff]  }
 0x27d   :  { %5825 = vmatprep.subr.bf16.mxu0 %v8005_v9  ;;  %v8089_v9 = vld [vmem:[%s10923_s1 + $0x16d4] ss:$8 sps:$4 sm:$0xff]  }
 0x27f   :  { %5334 = vmatpush1.bf16.msra.mxu1 %v8000_v10  ;;  %v8084_v10 = vld [vmem:[%s10923_s1 + $0xad0] ss:$8 sps:$4 sm:$0xff]  }
 0x280   :  { %5826 = vmatpush1.bf16.msra.mxu0 %v8003_v11  ;;  %5344 = vmatprep.subr.bf16.mxu1 %v8008_v14  ;;  %v8087_v11 = vld [vmem:[%s10923_s1 + $0x16d0] ss:$8 sps:$4 sm:$0xff]   ;;  %v8090_v14 = vld [vmem:[%s10923_s1 + $0xae0] ss:$8 sps:$4 sm:$0xff]  }
 0x281   :  { %5836 = vmatprep.subr.bf16.mxu0 %v8011_v15  ;;  %v8093_v15 = vld [vmem:[%s10923_s1 + $0x16e0] ss:$8 sps:$4 sm:$0xff]  }
 0x282   :  { %5336 = vmatmul.mubr.bf16.vlgmr.msra.gmra.mrb[0].mxu1 %v90_v16  ;;  %v8098_v16 = vld [vmem:[%s10923_s1 + $0xaf4] ss:$8 sps:$4 sm:$0xff]  }
 0x283   :  { %5828 = vmatmul.mubr.bf16.vlgmr.msra.gmra.mrb[0].mxu0 %v114_v17  ;;  %5345 = vmatpush1.bf16.msra.mxu1 %v8006_v20  ;;  %v8101_v17 = vld [vmem:[%s10923_s1 + $0x16f4] ss:$8 sps:$4 sm:$0xff]   ;;  %v42_v20 = vld [vmem:[%s10922_s0 + $0xa0] sm:$0xff] }
 0x284   :  { %5837 = vmatpush1.bf16.msra.mxu0 %v8009_v21  ;;  %5346 = vmatprep.subr.bf16.mxu1 %v8014_v22  ;;  %v66_v21 = vld [vmem:[%s10922_s0 + $0x160] sm:$0xff] }
 0x285   :  { %5838 = vmatprep.subr.bf16.mxu0 %v8017_v23  ;;  %5376 = vmatprep.mubr.bf16.mxu1 %v93_v24  ;;  %v8104_v22 = vld [vmem:[%s10923_s1 + $0xb04] ss:$8 sps:$4 sm:$0xff]   ;;  %v92_v24 = vpack.c.bf16 %v42_v20, %v42_v20 }
 0x286   :  { %5868 = vmatprep.mubr.bf16.mxu0 %v117_v25  ;;  %v8107_v23 = vld [vmem:[%s10923_s1 + $0x1704] ss:$8 sps:$4 sm:$0xff]   ;;  %v116_v25 = vpack.c.bf16 %v66_v21, %v66_v21 }
 0x287   :  { %5347 = vmatpush1.bf16.msra.mxu1 %v8012_v26  ;;  %v45_v26 = vld [vmem:[%s10922_s0 + $0xb8] sm:$0xff]  ;;  %v8188_v20 = vld [vmem:[%s10923_s1 + $0xbe4] ss:$8 sps:$4 sm:$0xff]  }
 0x288   :  { %5839 = vmatpush1.bf16.msra.mxu0 %v8015_v27  ;;  %5348 = vmatprep.subr.bf16.mxu1 %v8020_v28  ;;  %v69_v27 = vld [vmem:[%s10922_s0 + $0x178] sm:$0xff]  ;;  %v8102_v28 = vld [vmem:[%s10923_s1 + $0xb00] ss:$8 sps:$4 sm:$0xff]   ;;  %v8191_v21 = vld [vmem:[%s10923_s1 + $0x17e4] ss:$8 sps:$4 sm:$0xff]  }
 0x289   :  { %5840 = vmatprep.subr.bf16.mxu0 %v8023_v29  ;;  %v8105_v29 = vld [vmem:[%s10923_s1 + $0x1700] ss:$8 sps:$4 sm:$0xff]  }
 0x28b   :  { %5349 = vmatpush1.bf16.msra.mxu1 %v8018_v30  ;;  %v8110_v30 = vld [vmem:[%s10923_s1 + $0xb14] ss:$8 sps:$4 sm:$0xff]  }
 0x28c   :  { %5841 = vmatpush1.bf16.msra.mxu0 %v8021_v31  ;;  %5350 = vmatprep.subr.bf16.mxu1 %v8026_v32  ;;  %v8113_v31 = vld [vmem:[%s10923_s1 + $0x1714] ss:$8 sps:$4 sm:$0xff]   ;;  %v95_v32 = vpack.c.bf16 %v45_v26, %v45_v26  ;;  %v8192_v26 = vld [vmem:[%s10923_s1 + $0xbf0] ss:$8 sps:$4 sm:$0xff]  }
 0x28d   :  { %5842 = vmatprep.subr.bf16.mxu0 %v8029_v33  ;;  %v119_v33 = vpack.c.bf16 %v69_v27, %v69_v27  ;;  %v8195_v27 = vld [vmem:[%s10923_s1 + $0x17f0] ss:$8 sps:$4 sm:$0xff]  }
 0x28f   :  { %5351 = vmatpush1.bf16.msra.mxu1 %v8024_v34  ;;  %v8108_v34 = vld [vmem:[%s10923_s1 + $0xb10] ss:$8 sps:$4 sm:$0xff]  }
 0x290   :  { %5843 = vmatpush1.bf16.msra.mxu0 %v8027_v35  ;;  %5352 = vmatprep.subr.bf16.mxu1 %v8032_v36  ;;  %v8111_v35 = vld [vmem:[%s10923_s1 + $0x1710] ss:$8 sps:$4 sm:$0xff]   ;;  %v8116_v36 = vld [vmem:[%s10923_s1 + $0xb24] ss:$8 sps:$4 sm:$0xff]  }
 0x291   :  { %5844 = vmatprep.subr.bf16.mxu0 %v8035_v37  ;;  %v8119_v37 = vld [vmem:[%s10923_s1 + $0x1724] ss:$8 sps:$4 sm:$0xff]  }
 0x293   :  { %5353 = vmatpush1.bf16.msra.mxu1 %v8030_v38  ;;  %v8114_v38 = vld [vmem:[%s10923_s1 + $0xb20] ss:$8 sps:$4 sm:$0xff]  }
 0x294   :  { %5845 = vmatpush1.bf16.msra.mxu0 %v8033_v39  ;;  %5354 = vmatprep.subr.bf16.mxu1 %v8038_v40  ;;  %v8117_v39 = vld [vmem:[%s10923_s1 + $0x1720] ss:$8 sps:$4 sm:$0xff]   ;;  %v8122_v40 = vld [vmem:[%s10923_s1 + $0xb34] ss:$8 sps:$4 sm:$0xff]  }
 0x295   :  { %5846 = vmatprep.subr.bf16.mxu0 %v8041_v41  ;;  %v8125_v41 = vld [vmem:[%s10923_s1 + $0x1734] ss:$8 sps:$4 sm:$0xff]  }
 0x297   :  { %5355 = vmatpush1.bf16.msra.mxu1 %v8036_v42  ;;  %v8120_v42 = vld [vmem:[%s10923_s1 + $0xb30] ss:$8 sps:$4 sm:$0xff]  }
 0x298   :  { %5847 = vmatpush1.bf16.msra.mxu0 %v8039_v43  ;;  %5356 = vmatprep.subr.bf16.mxu1 %v8044_v44  ;;  %v8123_v43 = vld [vmem:[%s10923_s1 + $0x1730] ss:$8 sps:$4 sm:$0xff]   ;;  %v8128_v44 = vld [vmem:[%s10923_s1 + $0xb44] ss:$8 sps:$4 sm:$0xff]  }
 0x299   :  { %5848 = vmatprep.subr.bf16.mxu0 %v8047_v45  ;;  %v8131_v45 = vld [vmem:[%s10923_s1 + $0x1744] ss:$8 sps:$4 sm:$0xff]  }
 0x29b   :  { %5357 = vmatpush1.bf16.msra.mxu1 %v8042_v46  ;;  %v8126_v46 = vld [vmem:[%s10923_s1 + $0xb40] ss:$8 sps:$4 sm:$0xff]  }
 0x29c   :  { %5849 = vmatpush1.bf16.msra.mxu0 %v8045_v47  ;;  %5358 = vmatprep.subr.bf16.mxu1 %v8050_v48  ;;  %v8129_v47 = vld [vmem:[%s10923_s1 + $0x1740] ss:$8 sps:$4 sm:$0xff]   ;;  %v8134_v48 = vld [vmem:[%s10923_s1 + $0xb54] ss:$8 sps:$4 sm:$0xff]  }
 0x29d   :  { %5850 = vmatprep.subr.bf16.mxu0 %v8053_v49  ;;  %v8137_v49 = vld [vmem:[%s10923_s1 + $0x1754] ss:$8 sps:$4 sm:$0xff]  }
 0x29f   :  { %5359 = vmatpush1.bf16.msra.mxu1 %v8048_v50  ;;  %v8132_v50 = vld [vmem:[%s10923_s1 + $0xb50] ss:$8 sps:$4 sm:$0xff]  }
 0x2a0   :  { %5851 = vmatpush1.bf16.msra.mxu0 %v8051_v51  ;;  %5360 = vmatprep.subr.bf16.mxu1 %v8056_v52  ;;  %v8135_v51 = vld [vmem:[%s10923_s1 + $0x1750] ss:$8 sps:$4 sm:$0xff]   ;;  %v8140_v52 = vld [vmem:[%s10923_s1 + $0xb64] ss:$8 sps:$4 sm:$0xff]  }
 0x2a1   :  { %5852 = vmatprep.subr.bf16.mxu0 %v8059_v53  ;;  %v8143_v53 = vld [vmem:[%s10923_s1 + $0x1764] ss:$8 sps:$4 sm:$0xff]  }
 0x2a3   :  { %5361 = vmatpush1.bf16.msra.mxu1 %v8054_v54  ;;  %v8138_v54 = vld [vmem:[%s10923_s1 + $0xb60] ss:$8 sps:$4 sm:$0xff]  }
 0x2a4   :  { %5853 = vmatpush1.bf16.msra.mxu0 %v8057_v55  ;;  %5362 = vmatprep.subr.bf16.mxu1 %v8062_v56  ;;  %v8141_v55 = vld [vmem:[%s10923_s1 + $0x1760] ss:$8 sps:$4 sm:$0xff]   ;;  %v8146_v56 = vld [vmem:[%s10923_s1 + $0xb74] ss:$8 sps:$4 sm:$0xff]  }
 0x2a5   :  { %5854 = vmatprep.subr.bf16.mxu0 %v8065_v57  ;;  %v8149_v57 = vld [vmem:[%s10923_s1 + $0x1774] ss:$8 sps:$4 sm:$0xff]  }
 0x2a7   :  { %5363 = vmatpush1.bf16.msra.mxu1 %v8060_v58  ;;  %v8144_v58 = vld [vmem:[%s10923_s1 + $0xb70] ss:$8 sps:$4 sm:$0xff]  }
 0x2a8   :  { %5855 = vmatpush1.bf16.msra.mxu0 %v8063_v59  ;;  %5364 = vmatprep.subr.bf16.mxu1 %v8068_v60  ;;  %v8147_v59 = vld [vmem:[%s10923_s1 + $0x1770] ss:$8 sps:$4 sm:$0xff]   ;;  %v8152_v60 = vld [vmem:[%s10923_s1 + $0xb84] ss:$8 sps:$4 sm:$0xff]  }
 0x2a9   :  { %5856 = vmatprep.subr.bf16.mxu0 %v8071_v61  ;;  %v8155_v61 = vld [vmem:[%s10923_s1 + $0x1784] ss:$8 sps:$4 sm:$0xff]  }
 0x2ab   :  { %5365 = vmatpush1.bf16.msra.mxu1 %v8066_v62  ;;  %v8150_v62 = vld [vmem:[%s10923_s1 + $0xb80] ss:$8 sps:$4 sm:$0xff]  }
 0x2ac   :  { %5857 = vmatpush1.bf16.msra.mxu0 %v8069_v63  ;;  %5366 = vmatprep.subr.bf16.mxu1 %v8074_v0  ;;  %v8153_v63 = vld [vmem:[%s10923_s1 + $0x1780] ss:$8 sps:$4 sm:$0xff]   ;;  %v8158_v0 = vld [vmem:[%s10923_s1 + $0xb94] ss:$8 sps:$4 sm:$0xff]  }
 0x2ad   :  { %5858 = vmatprep.subr.bf16.mxu0 %v8077_v1  ;;  %v8161_v1 = vld [vmem:[%s10923_s1 + $0x1794] ss:$8 sps:$4 sm:$0xff]  }
 0x2af   :  { %5367 = vmatpush1.bf16.msra.mxu1 %v8072_v2  ;;  %v8156_v2 = vld [vmem:[%s10923_s1 + $0xb90] ss:$8 sps:$4 sm:$0xff]  }
 0x2b0   :  { %5859 = vmatpush1.bf16.msra.mxu0 %v8075_v3  ;;  %5368 = vmatprep.subr.bf16.mxu1 %v8080_v4  ;;  %v8159_v3 = vld [vmem:[%s10923_s1 + $0x1790] ss:$8 sps:$4 sm:$0xff]   ;;  %v8164_v4 = vld [vmem:[%s10923_s1 + $0xba4] ss:$8 sps:$4 sm:$0xff]  }
 0x2b1   :  { %5860 = vmatprep.subr.bf16.mxu0 %v8083_v5  ;;  %v8167_v5 = vld [vmem:[%s10923_s1 + $0x17a4] ss:$8 sps:$4 sm:$0xff]  }
 0x2b3   :  { %5369 = vmatpush1.bf16.msra.mxu1 %v8078_v6  ;;  %v8162_v6 = vld [vmem:[%s10923_s1 + $0xba0] ss:$8 sps:$4 sm:$0xff]  }
 0x2b4   :  { %5861 = vmatpush1.bf16.msra.mxu0 %v8081_v7  ;;  %5370 = vmatprep.subr.bf16.mxu1 %v8086_v8  ;;  %v8165_v7 = vld [vmem:[%s10923_s1 + $0x17a0] ss:$8 sps:$4 sm:$0xff]   ;;  %v8170_v8 = vld [vmem:[%s10923_s1 + $0xbb4] ss:$8 sps:$4 sm:$0xff]  }
 0x2b5   :  { %5862 = vmatprep.subr.bf16.mxu0 %v8089_v9  ;;  %v8173_v9 = vld [vmem:[%s10923_s1 + $0x17b4] ss:$8 sps:$4 sm:$0xff]  }
 0x2b7   :  { %5371 = vmatpush1.bf16.msra.mxu1 %v8084_v10  ;;  %v8168_v10 = vld [vmem:[%s10923_s1 + $0xbb0] ss:$8 sps:$4 sm:$0xff]  }
 0x2b8   :  { %5863 = vmatpush1.bf16.msra.mxu0 %v8087_v11  ;;  %5372 = vmatprep.subr.bf16.mxu1 %v8092_v12  ;;  %v8171_v11 = vld [vmem:[%s10923_s1 + $0x17b0] ss:$8 sps:$4 sm:$0xff]   ;;  %v8176_v12 = vld [vmem:[%s10923_s1 + $0xbc4] ss:$8 sps:$4 sm:$0xff]  }
 0x2b9   :  { %5864 = vmatprep.subr.bf16.mxu0 %v8095_v13  ;;  %v8179_v13 = vld [vmem:[%s10923_s1 + $0x17c4] ss:$8 sps:$4 sm:$0xff]  }
 0x2bb   :  { %5373 = vmatpush1.bf16.msra.mxu1 %v8090_v14  ;;  %v8174_v14 = vld [vmem:[%s10923_s1 + $0xbc0] ss:$8 sps:$4 sm:$0xff]  }
 0x2bc   :  { %5865 = vmatpush1.bf16.msra.mxu0 %v8093_v15  ;;  %5374 = vmatprep.subr.bf16.mxu1 %v8098_v16  ;;  %v8177_v15 = vld [vmem:[%s10923_s1 + $0x17c0] ss:$8 sps:$4 sm:$0xff]   ;;  %v8182_v16 = vld [vmem:[%s10923_s1 + $0xbd4] ss:$8 sps:$4 sm:$0xff]  }
 0x2bd   :  { %5866 = vmatprep.subr.bf16.mxu0 %v8101_v17  ;;  %v8185_v17 = vld [vmem:[%s10923_s1 + $0x17d4] ss:$8 sps:$4 sm:$0xff]  }
 0x2bf   :  { %5375 = vmatpush1.bf16.msra.mxu1 %v8096_v18  ;;  %v8180_v18 = vld [vmem:[%s10923_s1 + $0xbd0] ss:$8 sps:$4 sm:$0xff]  }
 0x2c0   :  { %5867 = vmatpush1.bf16.msra.mxu0 %v8099_v19  ;;  %5385 = vmatprep.subr.bf16.mxu1 %v8104_v22  ;;  %v8183_v19 = vld [vmem:[%s10923_s1 + $0x17d0] ss:$8 sps:$4 sm:$0xff]   ;;  %v8186_v22 = vld [vmem:[%s10923_s1 + $0xbe0] ss:$8 sps:$4 sm:$0xff]  }
 0x2c1   :  { %5877 = vmatprep.subr.bf16.mxu0 %v8107_v23  ;;  %v8189_v23 = vld [vmem:[%s10923_s1 + $0x17e0] ss:$8 sps:$4 sm:$0xff]  }
 0x2c2   :  { %5377 = vmatmul.mubr.bf16.vlgmr.msra.gmra.mrb[0].mxu1 %v92_v24  ;;  %v8194_v24 = vld [vmem:[%s10923_s1 + $0xbf4] ss:$8 sps:$4 sm:$0xff]  }
 0x2c3   :  { %5869 = vmatmul.mubr.bf16.vlgmr.msra.gmra.mrb[0].mxu0 %v116_v25  ;;  %5386 = vmatpush1.bf16.msra.mxu1 %v8102_v28  ;;  %v8197_v25 = vld [vmem:[%s10923_s1 + $0x17f4] ss:$8 sps:$4 sm:$0xff]  }
 0x2c4   :  { %5878 = vmatpush1.bf16.msra.mxu0 %v8105_v29  ;;  %5387 = vmatprep.subr.bf16.mxu1 %v8110_v30  ;;  %v44_v28 = vld [vmem:[%s10922_s0 + $0xb0] sm:$0xff]  ;;  %v8200_v30 = vld [vmem:[%s10923_s1 + $0x1804] ss:$8 sps:$4 sm:$0xff]  }
 0x2c5   :  { %5879 = vmatprep.subr.bf16.mxu0 %v8113_v31  ;;  %5417 = vmatprep.mubr.bf16.mxu1 %v95_v32  ;;  %v68_v29 = vld [vmem:[%s10922_s0 + $0x170] sm:$0xff]  ;;  %v71_v31 = vld [vmem:[%s10922_s0 + $0x188] sm:$0xff]  ;;  %v94_v32 = vpack.c.bf16 %v44_v28, %v44_v28 }
 0x2c6   :  { %5909 = vmatprep.mubr.bf16.mxu0 %v119_v33  ;;  %v118_v33 = vpack.c.bf16 %v68_v29, %v68_v29 }
 0x2c7   :  { %5388 = vmatpush1.bf16.msra.mxu1 %v8108_v34  ;;  %v8198_v34 = vld [vmem:[%s10923_s1 + $0x1800] ss:$8 sps:$4 sm:$0xff]  }
 0x2c8   :  { %5880 = vmatpush1.bf16.msra.mxu0 %v8111_v35  ;;  %5389 = vmatprep.subr.bf16.mxu1 %v8116_v36  ;;  %v121_v35 = vpack.c.bf16 %v71_v31, %v71_v31  ;;  %v8203_v36 = vld [vmem:[%s10923_s1 + $0x1814] ss:$8 sps:$4 sm:$0xff]  }
 0x2c9   :  { %5881 = vmatprep.subr.bf16.mxu0 %v8119_v37  ;;  %v8201_v37 = vld [vmem:[%s10923_s1 + $0x1810] ss:$8 sps:$4 sm:$0xff]  }
 0x2cb   :  { %5390 = vmatpush1.bf16.msra.mxu1 %v8114_v38  ;;  %v8206_v38 = vld [vmem:[%s10923_s1 + $0x1824] ss:$8 sps:$4 sm:$0xff]  }
 0x2cc   :  { %5882 = vmatpush1.bf16.msra.mxu0 %v8117_v39  ;;  %5391 = vmatprep.subr.bf16.mxu1 %v8122_v40  ;;  %v8204_v39 = vld [vmem:[%s10923_s1 + $0x1820] ss:$8 sps:$4 sm:$0xff]   ;;  %v8209_v40 = vld [vmem:[%s10923_s1 + $0x1834] ss:$8 sps:$4 sm:$0xff]  }
 0x2cd   :  { %5883 = vmatprep.subr.bf16.mxu0 %v8125_v41  ;;  %v8207_v41 = vld [vmem:[%s10923_s1 + $0x1830] ss:$8 sps:$4 sm:$0xff]  }
 0x2cf   :  { %5392 = vmatpush1.bf16.msra.mxu1 %v8120_v42  ;;  %v8212_v42 = vld [vmem:[%s10923_s1 + $0x1844] ss:$8 sps:$4 sm:$0xff]  }
 0x2d0   :  { %5884 = vmatpush1.bf16.msra.mxu0 %v8123_v43  ;;  %5393 = vmatprep.subr.bf16.mxu1 %v8128_v44  ;;  %v8210_v43 = vld [vmem:[%s10923_s1 + $0x1840] ss:$8 sps:$4 sm:$0xff]   ;;  %v8215_v44 = vld [vmem:[%s10923_s1 + $0x1854] ss:$8 sps:$4 sm:$0xff]  }
 0x2d1   :  { %5885 = vmatprep.subr.bf16.mxu0 %v8131_v45  ;;  %v8213_v45 = vld [vmem:[%s10923_s1 + $0x1850] ss:$8 sps:$4 sm:$0xff]  }
 0x2d3   :  { %5394 = vmatpush1.bf16.msra.mxu1 %v8126_v46  ;;  %v8218_v46 = vld [vmem:[%s10923_s1 + $0x1864] ss:$8 sps:$4 sm:$0xff]  }
 0x2d4   :  { %5886 = vmatpush1.bf16.msra.mxu0 %v8129_v47  ;;  %5395 = vmatprep.subr.bf16.mxu1 %v8134_v48  ;;  %v8216_v47 = vld [vmem:[%s10923_s1 + $0x1860] ss:$8 sps:$4 sm:$0xff]   ;;  %v8221_v48 = vld [vmem:[%s10923_s1 + $0x1874] ss:$8 sps:$4 sm:$0xff]  }
 0x2d5   :  { %5887 = vmatprep.subr.bf16.mxu0 %v8137_v49  ;;  %v8219_v49 = vld [vmem:[%s10923_s1 + $0x1870] ss:$8 sps:$4 sm:$0xff]  }
 0x2d7   :  { %5396 = vmatpush1.bf16.msra.mxu1 %v8132_v50  ;;  %v8224_v50 = vld [vmem:[%s10923_s1 + $0x1884] ss:$8 sps:$4 sm:$0xff]  }
 0x2d8   :  { %5888 = vmatpush1.bf16.msra.mxu0 %v8135_v51  ;;  %5397 = vmatprep.subr.bf16.mxu1 %v8140_v52  ;;  %v8222_v51 = vld [vmem:[%s10923_s1 + $0x1880] ss:$8 sps:$4 sm:$0xff]   ;;  %v8227_v52 = vld [vmem:[%s10923_s1 + $0x1894] ss:$8 sps:$4 sm:$0xff]  }
 0x2d9   :  { %5889 = vmatprep.subr.bf16.mxu0 %v8143_v53  ;;  %v8225_v53 = vld [vmem:[%s10923_s1 + $0x1890] ss:$8 sps:$4 sm:$0xff]  }
 0x2db   :  { %5398 = vmatpush1.bf16.msra.mxu1 %v8138_v54  ;;  %v8230_v54 = vld [vmem:[%s10923_s1 + $0x18a4] ss:$8 sps:$4 sm:$0xff]  }
 0x2dc   :  { %5890 = vmatpush1.bf16.msra.mxu0 %v8141_v55  ;;  %5399 = vmatprep.subr.bf16.mxu1 %v8146_v56  ;;  %v8228_v55 = vld [vmem:[%s10923_s1 + $0x18a0] ss:$8 sps:$4 sm:$0xff]   ;;  %v8233_v56 = vld [vmem:[%s10923_s1 + $0x18b4] ss:$8 sps:$4 sm:$0xff]  }
 0x2dd   :  { %5891 = vmatprep.subr.bf16.mxu0 %v8149_v57  ;;  %v8231_v57 = vld [vmem:[%s10923_s1 + $0x18b0] ss:$8 sps:$4 sm:$0xff]  }
 0x2df   :  { %5400 = vmatpush1.bf16.msra.mxu1 %v8144_v58  ;;  %v8236_v58 = vld [vmem:[%s10923_s1 + $0x18c4] ss:$8 sps:$4 sm:$0xff]  }
 0x2e0   :  { %5892 = vmatpush1.bf16.msra.mxu0 %v8147_v59  ;;  %5401 = vmatprep.subr.bf16.mxu1 %v8152_v60  ;;  %v8234_v59 = vld [vmem:[%s10923_s1 + $0x18c0] ss:$8 sps:$4 sm:$0xff]   ;;  %v8239_v60 = vld [vmem:[%s10923_s1 + $0x18d4] ss:$8 sps:$4 sm:$0xff]  }
 0x2e1   :  { %5893 = vmatprep.subr.bf16.mxu0 %v8155_v61  ;;  %v8237_v61 = vld [vmem:[%s10923_s1 + $0x18d0] ss:$8 sps:$4 sm:$0xff]  }
 0x2e3   :  { %5402 = vmatpush1.bf16.msra.mxu1 %v8150_v62  ;;  %v8242_v62 = vld [vmem:[%s10923_s1 + $0x18e4] ss:$8 sps:$4 sm:$0xff]  }
 0x2e4   :  { %5894 = vmatpush1.bf16.msra.mxu0 %v8153_v63  ;;  %5403 = vmatprep.subr.bf16.mxu1 %v8158_v0  ;;  %v8240_v63 = vld [vmem:[%s10923_s1 + $0x18e0] ss:$8 sps:$4 sm:$0xff]   ;;  %v8245_v0 = vld [vmem:[%s10923_s1 + $0x18f4] ss:$8 sps:$4 sm:$0xff]  }
 0x2e5   :  { %5895 = vmatprep.subr.bf16.mxu0 %v8161_v1  ;;  %v8243_v1 = vld [vmem:[%s10923_s1 + $0x18f0] ss:$8 sps:$4 sm:$0xff]  }
 0x2e7   :  { %5404 = vmatpush1.bf16.msra.mxu1 %v8156_v2  ;;  %v70_v2 = vld [vmem:[%s10922_s0 + $0x180] sm:$0xff] }
 0x2e8   :  { %5896 = vmatpush1.bf16.msra.mxu0 %v8159_v3  ;;  %5405 = vmatprep.subr.bf16.mxu1 %v8164_v4  ;;  %v120_v3 = vpack.c.bf16 %v70_v2, %v70_v2  ;;  %v8246_v4 = vld [vmem:[%s10925_s3] sm:$0xff]  }
 0x2e9   :  { %5897 = vmatprep.subr.bf16.mxu0 %v8167_v5  ;;  %v8283_v5 = vmov 0  }
 0x2eb   :  { %5406 = vmatpush1.bf16.msra.mxu1 %v8162_v6  ;;  %v8247_v6 = vld [vmem:[%s10925_s3 + $0x8] sm:$0xff]  }
 0x2ec   :  { %5898 = vmatpush1.bf16.msra.mxu0 %v8165_v7  ;;  %5407 = vmatprep.subr.bf16.mxu1 %v8170_v8  ;;  %v8248_v7 = vld [vmem:[%s10925_s3 + $0x10] sm:$0xff]   ;;  %v8249_v8 = vld [vmem:[%s10925_s3 + $0x18] sm:$0xff]  }
 0x2ed   :  { %5899 = vmatprep.subr.bf16.mxu0 %v8173_v9  ;;  %v8250_v9 = vld [vmem:[%s10925_s3 + $0x20] sm:$0xff]  }
 0x2ef   :  { %5408 = vmatpush1.bf16.msra.mxu1 %v8168_v10  ;;  %v8251_v10 = vld [vmem:[%s10925_s3 + $0x28] sm:$0xff]  }
 0x2f0   :  { %5900 = vmatpush1.bf16.msra.mxu0 %v8171_v11  ;;  %5409 = vmatprep.subr.bf16.mxu1 %v8176_v12  ;;  %v8252_v11 = vld [vmem:[%s10925_s3 + $0x30] sm:$0xff]   ;;  %v8253_v12 = vld [vmem:[%s10925_s3 + $0x38] sm:$0xff]  }
 0x2f1   :  { %5901 = vmatprep.subr.bf16.mxu0 %v8179_v13  ;;  %v8254_v13 = vld [vmem:[%s10925_s3 + $0x40] sm:$0xff]  }
 0x2f3   :  { %5410 = vmatpush1.bf16.msra.mxu1 %v8174_v14  ;;  %v8255_v14 = vld [vmem:[%s10925_s3 + $0x48] sm:$0xff]  }
 0x2f4   :  { %5902 = vmatpush1.bf16.msra.mxu0 %v8177_v15  ;;  %5411 = vmatprep.subr.bf16.mxu1 %v8182_v16  ;;  %v8256_v15 = vld [vmem:[%s10925_s3 + $0x50] sm:$0xff]   ;;  %v8257_v16 = vld [vmem:[%s10925_s3 + $0x58] sm:$0xff]  }
 0x2f5   :  { %5903 = vmatprep.subr.bf16.mxu0 %v8185_v17  ;;  %v8258_v17 = vld [vmem:[%s10925_s3 + $0x60] ss:$0 sps:$4 sm:$0xff]  }
 0x2f7   :  { %5412 = vmatpush1.bf16.msra.mxu1 %v8180_v18  ;;  %v6076_v18 = vsel %vm6074_vm0, %v8258_v17, 0 }
 0x2f8   :  { %5904 = vmatpush1.bf16.msra.mxu0 %v8183_v19  ;;  %5413 = vmatprep.subr.bf16.mxu1 %v8188_v20 }
 0x2f9   :  { %5905 = vmatprep.subr.bf16.mxu0 %v8191_v21 }
 0x2fb   :  { %5414 = vmatpush1.bf16.msra.mxu1 %v8186_v22 }
 0x2fc   :  { %5906 = vmatpush1.bf16.msra.mxu0 %v8189_v23  ;;  %5415 = vmatprep.subr.bf16.mxu1 %v8194_v24  ;;  %v924_v23 = vlaneseq }
 0x2fd   :  { %5907 = vmatprep.subr.bf16.mxu0 %v8197_v25 }
 0x2fe   :  { %v925_v24 = vshrl.u32 %v924_v23, 7 }
 0x2ff   :  { %5416 = vmatpush1.bf16.msra.mxu1 %v8192_v26  ;;  %v922_v26 = vld [vmem:[%s10924_s2] sm:$0x3] }
 0x300   :  { %5908 = vmatpush1.bf16.msra.mxu0 %v8195_v27  ;;  %6078 = vmatprep.subr.bf16.mxu1 %v8283_v5  ;;  %v926_v25 = vsub.s32 0, %v925_v24  ;;  %v930_v27 = vsub.s32 1, %v925_v24 }
 0x301   :  { %5918 = vmatprep.subr.bf16.mxu0 %v8200_v30 }
 0x302   :  { %5418 = vmatmul.mubr.bf16.vlgmr.msra.gmra.mrb[0].mxu1 %v94_v32  ;;  %v927_v28 = vrot.slane %v922_v26, %v926_v25  ;;  %v931_v29 = vrot.slane %v922_v26, %v930_v27 }
 0x303   :  { %5910 = vmatmul.mubr.bf16.vlgmr.msra.gmra.mrb[0].mxu0 %v118_v33  ;;  %6079 = vmatpush1.bf16.msra.mxu1 %v8246_v4 }
 0x304   :  { %5919 = vmatpush1.bf16.msra.mxu0 %v8198_v34  ;;  %5950 = vmatprep.mubr.bf16.mxu0 %v121_v35 }
 0x305   :  { %5920 = vmatprep.subr.bf16.mxu0 %v8203_v36  ;;  %6080 = vmatprep.subr.bf16.mxu1 %v8283_v5 }
 0x307   :  { %6081 = vmatpush1.bf16.msra.mxu1 %v8247_v6 }
 0x308   :  { %5921 = vmatpush1.bf16.msra.mxu0 %v8201_v37  ;;  %6082 = vmatprep.subr.bf16.mxu1 %v8283_v5 }
 0x309   :  { %5922 = vmatprep.subr.bf16.mxu0 %v8206_v38 }
 0x30b   :  { %6083 = vmatpush1.bf16.msra.mxu1 %v8248_v7 }
 0x30c   :  { %5923 = vmatpush1.bf16.msra.mxu0 %v8204_v39  ;;  %6084 = vmatprep.subr.bf16.mxu1 %v8283_v5 }
 0x30d   :  { %5924 = vmatprep.subr.bf16.mxu0 %v8209_v40 }
 0x30f   :  { %6085 = vmatpush1.bf16.msra.mxu1 %v8249_v8 }
 0x310   :  { %5925 = vmatpush1.bf16.msra.mxu0 %v8207_v41  ;;  %6086 = vmatprep.subr.bf16.mxu1 %v8283_v5 }
 0x311   :  { %5926 = vmatprep.subr.bf16.mxu0 %v8212_v42  ;;  %v6933_v42 = vld [vmem:[%s10926_s4] ss:$0 sm:$0xff] }
 0x313   :  { %6087 = vmatpush1.bf16.msra.mxu1 %v8250_v9 }
 0x314   :  { %5927 = vmatpush1.bf16.msra.mxu0 %v8210_v43  ;;  %6088 = vmatprep.subr.bf16.mxu1 %v8283_v5 }
 0x315   :  { %5928 = vmatprep.subr.bf16.mxu0 %v8215_v44 }
 0x317   :  { %6089 = vmatpush1.bf16.msra.mxu1 %v8251_v10 }
 0x318   :  { %5929 = vmatpush1.bf16.msra.mxu0 %v8213_v45  ;;  %6090 = vmatprep.subr.bf16.mxu1 %v8283_v5 }
 0x319   :  { %5930 = vmatprep.subr.bf16.mxu0 %v8218_v46 }
 0x31b   :  { %6091 = vmatpush1.bf16.msra.mxu1 %v8252_v11 }
 0x31c   :  { %5931 = vmatpush1.bf16.msra.mxu0 %v8216_v47  ;;  %6092 = vmatprep.subr.bf16.mxu1 %v8283_v5 }
 0x31d   :  { %5932 = vmatprep.subr.bf16.mxu0 %v8221_v48 }
 0x31f   :  { %6093 = vmatpush1.bf16.msra.mxu1 %v8253_v12 }
 0x320   :  { %5933 = vmatpush1.bf16.msra.mxu0 %v8219_v49  ;;  %6094 = vmatprep.subr.bf16.mxu1 %v8283_v5 }
 0x321   :  { %5934 = vmatprep.subr.bf16.mxu0 %v8224_v50 }
 0x323   :  { %6095 = vmatpush1.bf16.msra.mxu1 %v8254_v13 }
 0x324   :  { %5935 = vmatpush1.bf16.msra.mxu0 %v8222_v51  ;;  %6096 = vmatprep.subr.bf16.mxu1 %v8283_v5 }
 0x325   :  { %5936 = vmatprep.subr.bf16.mxu0 %v8227_v52 }
 0x327   :  { %6097 = vmatpush1.bf16.msra.mxu1 %v8255_v14 }
 0x328   :  { %5937 = vmatpush1.bf16.msra.mxu0 %v8225_v53  ;;  %6098 = vmatprep.subr.bf16.mxu1 %v8283_v5 }
 0x329   :  { %5938 = vmatprep.subr.bf16.mxu0 %v8230_v54 }
 0x32b   :  { %6099 = vmatpush1.bf16.msra.mxu1 %v8256_v15 }
 0x32c   :  { %5939 = vmatpush1.bf16.msra.mxu0 %v8228_v55  ;;  %6100 = vmatprep.subr.bf16.mxu1 %v8283_v5 }
 0x32d   :  { %5940 = vmatprep.subr.bf16.mxu0 %v8233_v56 }
 0x32f   :  { %6101 = vmatpush1.bf16.msra.mxu1 %v8257_v16 }
 0x330   :  { %5941 = vmatpush1.bf16.msra.mxu0 %v8231_v57  ;;  %6102 = vmatprep.subr.bf16.mxu1 %v8283_v5 }
 0x331   :  { %5942 = vmatprep.subr.bf16.mxu0 %v8236_v58 }
 0x333   :  { %6103 = vmatpush1.bf16.msra.mxu1 %v6076_v18 }
 0x334   :  { %5943 = vmatpush1.bf16.msra.mxu0 %v8234_v59 }
 0x335   :  { %5944 = vmatprep.subr.bf16.mxu0 %v8239_v60 }
 0x338   :  { %5945 = vmatpush1.bf16.msra.mxu0 %v8237_v61 }
 0x339   :  { %5946 = vmatprep.subr.bf16.mxu0 %v8242_v62 }
 0x33c   :  { %5947 = vmatpush1.bf16.msra.mxu0 %v8240_v63 }
 0x33d   :  { %5948 = vmatprep.subr.bf16.mxu0 %v8245_v0 }
 0x340   :  { %5949 = vmatpush1.bf16.msra.mxu0 %v8243_v1 }
 0x343   :  { %5951 = vmatmul.mubr.bf16.vlgmr.msra.gmra.mrb[0].mxu0 %v120_v3 }
 0x3d5   :  { %v5419_v19 = vpop.f32.mrb[0].mxu1 }
 0x3d6   :  { %v5421_v20 = vpop.f32.mrb[1].mxu1  ;;  %v6948_v30 = vadd.f32 %v5419_v19, %v927_v28 }
 0x3d7   :  { %v5423_v21 = vpop.f32.mrb[2].mxu1  ;;  %v6950_v31 = vadd.f32 %v5421_v20, %v931_v29 }
 0x3d8   :  { %v5424_v22 = vpop.f32.mrb[3].mxu1 }
 0x416   :  { %v5952_v32 = vpop.f32.mrb[0].mxu0 }
 0x417   :  { %v6949_v33 = vadd.f32 %v6948_v30, %v5952_v32  ;;  %v5954_v34 = vpop.f32.mrb[1].mxu0 }
 0x418   :  { %v6951_v35 = vadd.f32 %v6950_v31, %v5954_v34  ;;  %v5956_v36 = vpop.f32.mrb[2].mxu0 }
 0x419   :  { %v5959_v37 = vmax.f32 %v6949_v33, 0.0  ;;  %v5957_v38 = vpop.f32.mrb[3].mxu0 }
 0x41a   :  { %v5960_v39 = vmax.f32 %v6951_v35, 0.0 }
 0x41b   :  { %v5961_v41 = vpack.c.bf16 %v5959_v37, %v5959_v37 }
 0x41c   :  { %v5962_v40 = vpack.c.bf16 %v5960_v39, %v5960_v39 }
 0x41e   :  { %6947 = vmatprep.mubr.msk.bf16.mxu1 %vm6070_vm1, %v5962_v40 }
 0x41f   :  { %6111 = vmatmul.mubr.bf16.vlgmr.msra.gmra.mrb[4].mxu1 %v5961_v41 }
 0x4f2   :  { %v6112_v43 = vpop.f32.mrb[4].mxu1 }
 0x4f3   :  { %v6113_v44 = vadd.f32 %v6933_v42, %v6112_v43  ;;  %v6114_v45 = vpop.f32.mrb[5].mxu1 }
 0x4f4   :  { %v6115_v46 = vpop.f32.mrb[6].mxu1 }
 0x4f5   :  { %6118 = vst [vmem:[#allocation2] sm:$0xff] %v6113_v44  ;;  %v6116_v47 = vpop.f32.mrb[7].mxu1 }
 0x4f6   :  { %8270 = shalt.err (!%p8267_p4)
}
 0x4f7   :  { %s8271_s4 = scalar_lea.hbm %s10927_s5, 128 }
 0x4f8   :  { %p8272_p5 = scmp.ne.s32.totalorder %s10927_s5, %s8271_s4  ;;  %p8275_p6 = scmp.lt.u32.totalorder %s8271_s4, %s10927_s5 }
 0x4fa   :  { %p8277_p7 = pnand %p8275_p6, %p8272_p5 }
 0x4fc   :  { %8280 = shalt.err (!%p8277_p7)
}
 0x4fd   :  { %6128 = dma.vmem_to_hbm [thread:$0]  %s6126_s20, 128, %s10927_s5, [#allocation3]  }
 0x4fe   :  { %8281 = dma.done.wait [#allocation3], 128  }
 0x4ff   :  { %8282 = vsyncadd [#allocation3], 4294967168 }
 0x500   :  { %6132 = vsyncpa [#allocation3], 1 }

</bundles_post_ra>
